<compile_context>
chip_gen: v6e
topology: v6e:2x2x1
jax: 0.10.0
libtpu: 0.0.40
codegen_flags: <defaults>
</compile_context>

<pallas_src>
import jax
import jax.numpy as jnp
from jax import lax
from jax.experimental import pallas as pl
from jax.experimental.pallas import tpu as pltpu

# Static network configuration.  TEMPONet.DEFAULT_INPUT_SHAPE = (1, 14, 300);
# Linear(128*5, 128) hard-codes batch 1 / input length 300.
_L_IN = 300
_C_IN = 14
_LANES = 128
_BLOCKS = (
    # (dilation, stride, c_in, c_half, c_out)
    (2, 1, 14, 16, 32),
    (4, 2, 32, 32, 64),
    (8, 4, 64, 64, 128),
)
_OFF = 8          # activations start at sublane row 8 (>= max dilation halo)
_PAD_ROWS = 320   # >= _OFF + 300 + 8, multiple of 8
_XW_ROWS = 304    # >= 300, multiple of 16 (bf16 sublane packing)


def _pool_len(l_in, stride):
    l_conv = (l_in + 2 * 2 - (5 - 1) - 1) // stride + 1   # k=5, pad=2, dil=1
    return l_conv // 2


# ---------------------------------------------------------------------------
# Fused kernel: 9 convolutions (+ fused avg-pools) + 2 linear layers.
# ---------------------------------------------------------------------------
def _temponet_kernel(*refs):
    (x_ref,
     w11, b11, w12, b12, w13, b13,
     w21, b21, w22, b22, w23, b23,
     w31, b31, w32, b32, w33, b33,
     wl1, bl1, wl2, bl2,
     o_ref, pad_ref, xw_ref) = refs

    f32, bf16 = jnp.float32, jnp.bfloat16

    # Zero the padded staging buffer ONCE.  Rows [0, _OFF) are never written
    # afterwards, so the low conv halo stays zero for the whole kernel.
    pad_ref[...] = jnp.zeros_like(pad_ref)

    def stage(h, l_in, halo_hi):
        # Place the (l_in, 128) activation at rows [_OFF, _OFF + l_in).
        pad_ref[_OFF:_OFF + l_in, :] = h
        # Only the few rows the upcoming conv reads above the activation are
        # re-zeroed (they may hold data from a longer, earlier activation).
        pad_ref[_OFF + l_in:_OFF + l_in + halo_hi, :] = jnp.zeros(
            (halo_hi, _LANES), f32)

    def stage_taps(k, shifts, l_in):
        # xw_ref[i, t*128 + c] = pad[_OFF + i + shifts[t], c]   (bf16)
        for t in range(k):
            r0 = _OFF + shifts[t]
            xw_ref[0:l_in, t * _LANES:(t + 1) * _LANES] = (
                pad_ref[r0:r0 + l_in, :].astype(bf16))
        return xw_ref[0:l_in, 0:k * _LANES]

    def conv_same(h, w_ref, b_ref, l_in, dil):
        # Conv1d(k=3, dilation=dil, padding=dil, stride=1): one fused MXU dot.
        stage(h, l_in, halo_hi=dil)
        xw = stage_taps(3, (-dil, 0, dil), l_in)                 # (l_in, 384)
        return jnp.dot(xw, w_ref[...], preferred_element_type=f32) + b_ref[...]

    def conv_pool(h, w_ref, b_ref, l_in, stride):
        # Conv1d(k=5, padding=2, stride=s) + AvgPool1d(2, 2):
        #   1) stride-1 conv as ONE fused dot (contiguous tap reads),
        #   2) stride + pool via two strided row reads of the conv output.
        stage(h, l_in, halo_hi=2)
        xw = stage_taps(5, (-2, -1, 0, 1, 2), l_in)              # (l_in, 640)
        y = jnp.dot(xw, w_ref[...], preferred_element_type=f32)  # stride-1 conv
        pad_ref[_OFF:_OFF + l_in, :] = y                         # reuse as conv-out
        l_pool = _pool_len(l_in, stride)
        step = 2 * stride
        a = pad_ref[pl.ds(_OFF, l_pool, stride=step), :]
        b = pad_ref[pl.ds(_OFF + stride, l_pool, stride=step), :]
        return 0.5 * (a + b) + b_ref[...], l_pool

    h = x_ref[...]                                               # (300, 128)
    l_cur = _L_IN
    conv_refs = ((w11, b11, w12, b12, w13, b13),
                 (w21, b21, w22, b22, w23, b23),
                 (w31, b31, w32, b32, w33, b33))
    for (dil, stride, *_rest), (w1r, b1r, w2r, b2r, w3r, b3r) in zip(_BLOCKS,
                                                                     conv_refs):
        h = conv_same(h, w1r, b1r, l_cur, dil)
        h = conv_same(h, w2r, b2r, l_cur, dil)
        h, l_cur = conv_pool(h, w3r, b3r, l_cur, stride)
    # h is now (5, 128)

    # Classifier head: lane-blocked relayout (5,128) -> (1,640), one K=640 dot,
    # then a lane-padded (1,128)@(128,128) projection (real logits in lanes 0..7).
    for l in range(l_cur):
        xw_ref[0:1, l * _LANES:(l + 1) * _LANES] = h[l:l + 1, :].astype(bf16)
    h1 = (jnp.dot(xw_ref[0:1, 0:l_cur * _LANES], wl1[...],
                  preferred_element_type=f32) + bl1[...])        # (1, 128)
    o_ref[...] = (jnp.dot(h1.astype(bf16), wl2[...],
                          preferred_element_type=f32) + bl2[...])  # (1, 128)


# ---------------------------------------------------------------------------
# One-time parameter re-layout (hoisted out of the per-call path).
# ---------------------------------------------------------------------------
def prepare_params(params):
    """PyTorch-style params -> kernel layout (run once, outside the hot path).

    Conv weight (C_out, C_in, K) -> (K*128, 128) bf16 tap-concatenated matrix
    with channels zero-padded to 128; biases -> (1, 128) f32; linear1 is
    re-indexed to the kernel flatten order (l*128 + c); linear2 padded to
    (128, 128) so the output store is lane-dense.
    """
    kp = []
    for bi, (_dil, _stride, c_in, c_half, c_out) in zip((1, 2, 3), _BLOCKS):
        blk = params[f"block{bi}"]
        for li, (ci, co, k) in enumerate(
                ((c_in, c_half, 3), (c_half, c_half, 3), (c_half, c_out, 5)), 1):
            w = jnp.asarray(blk[f"w{li}"], jnp.float32)            # (co, ci, k)
            wt = jnp.transpose(w, (2, 1, 0))                       # (k, ci, co)
            wp = jnp.zeros((k, _LANES, _LANES), jnp.float32)
            wp = wp.at[:, :ci, :co].set(wt)
            kp.append(wp.reshape(k * _LANES, _LANES).astype(jnp.bfloat16))
            b = jnp.asarray(blk[f"b{li}"], jnp.float32)
            kp.append(jnp.zeros((1, _LANES), jnp.float32).at[0, :co].set(b))
    # linear1: torch flatten order is flat[c*5 + l]; kernel order is l*128 + c.
    w1 = jnp.asarray(params["lin1_w"], jnp.float32).reshape(_LANES, _LANES, 5)
    w1 = jnp.transpose(w1, (2, 1, 0)).reshape(5 * _LANES, _LANES)  # (l*128+c, o)
    kp.append(w1.astype(jnp.bfloat16))
    kp.append(jnp.asarray(params["lin1_b"], jnp.float32).reshape(1, _LANES))
    w2 = jnp.transpose(jnp.asarray(params["lin2_w"], jnp.float32), (1, 0))  # (128, 8)
    kp.append(jnp.zeros((_LANES, _LANES), jnp.float32).at[:, :8].set(w2)
              .astype(jnp.bfloat16))
    kp.append(jnp.zeros((1, _LANES), jnp.float32).at[0, :8].set(
        jnp.asarray(params["lin2_b"], jnp.float32)))
    return tuple(kp)


def _flop_count():
    flops, l = 0, _L_IN
    for (_d, stride, *_rest) in _BLOCKS:
        flops += 2 * (2 * l * (3 * _LANES) * _LANES)   # conv1 + conv2 (fused taps)
        flops += 2 * l * (5 * _LANES) * _LANES         # conv3 at stride 1
        l = _pool_len(l, stride)
    flops += 2 * (5 * _LANES) * _LANES + 2 * _LANES * _LANES
    return flops


# ---------------------------------------------------------------------------
# Forward wrapper: only per-call work is the input transpose/pad + the kernel.
# ---------------------------------------------------------------------------
@jax.jit
def temponet_forward(kernel_params, x):
    """x: (1, 14, 300) NCL float32 -> (8,) float32 logits."""
    if x.shape != (1, _C_IN, _L_IN):
        raise ValueError(
            f"TEMPONet classifier hard-codes input shape (1, 14, 300); got {x.shape}")
    # (1, 14, 300) -> (300, 128) lane-padded, f32 (channels 14..127 are zero).
    x_lc = jnp.zeros((_L_IN, _LANES), jnp.float32).at[:, :_C_IN].set(
        jnp.transpose(x[0].astype(jnp.float32), (1, 0)))

    ins = (x_lc,) + tuple(kernel_params)
    vmem = pl.BlockSpec(memory_space=pltpu.MemorySpace.VMEM)
    bytes_accessed = sum(a.size * a.dtype.itemsize for a in ins) + _LANES * 4
    out = pl.pallas_call(
        _temponet_kernel,
        out_shape=jax.ShapeDtypeStruct((1, _LANES), jnp.float32),
        in_specs=[vmem] * len(ins),
        out_specs=vmem,
        scratch_shapes=[
            pltpu.VMEM((_PAD_ROWS, _LANES), jnp.float32),        # padded activations
            pltpu.VMEM((_XW_ROWS, 5 * _LANES), jnp.bfloat16),    # fused-tap operand
        ],
        cost_estimate=pl.CostEstimate(flops=_flop_count(), transcendentals=0,
                                      bytes_accessed=bytes_accessed),
    )(*ins)
    # TODO(synk): for batched serving, add a leading batch grid axis with
    # dimension_semantics=("parallel",) so v7x's second TensorCore is used.
    return out[0, :8]


# ---------------------------------------------------------------------------
# Pure-JAX (XLA, f32 HIGHEST precision) reference mirroring the PyTorch module.
# ---------------------------------------------------------------------------
@jax.jit
def _reference_forward(params, x):
    hi = lax.Precision.HIGHEST

    def conv1d(h, w, b, dil, stride, padding):
        y = lax.conv_general_dilated(
            h, w, window_strides=(stride,), padding=[(padding, padding)],
            rhs_dilation=(dil,), dimension_numbers=("NCH", "OIH", "NCH"),
            precision=hi)
        return y + b[None, :, None]

    h = x.astype(jnp.float32)
    for (dil, stride, *_rest), name in zip(_BLOCKS, ("block1", "block2", "block3")):
        p = params[name]
        h = conv1d(h, p["w1"], p["b1"], dil, 1, dil)
        h = conv1d(h, p["w2"], p["b2"], dil, 1, dil)
        h = conv1d(h, p["w3"], p["b3"], 1, stride, 2)
        l_pool = h.shape[-1] // 2
        h = h[..., : 2 * l_pool].reshape(h.shape[0], h.shape[1], l_pool, 2).mean(-1)
    flat = h.reshape(-1)
    h1 = jnp.dot(params["lin1_w"], flat, precision=hi) + params["lin1_b"]
    return jnp.dot(params["lin2_w"], h1, precision=hi) + params["lin2_b"]


# ---------------------------------------------------------------------------
# Deterministic parameter initialization (PyTorch-default-style uniform).
# ---------------------------------------------------------------------------
def init_params(key):
    keys = iter(jax.random.split(key, 32))

    def uni(shape, fan_in):
        bound = 1.0 / jnp.sqrt(jnp.float32(fan_in))
        return jax.random.uniform(next(keys), shape, jnp.float32, -bound, bound)

    def conv_block(c_in, c_half, c_out):
        p = {}
        spec = [(c_in, c_half, 3), (c_half, c_half, 3), (c_half, c_out, 5)]
        for i, (ci, co, k) in enumerate(spec, start=1):
            fan_in = ci * k
            p[f"w{i}"] = uni((co, ci, k), fan_in)
            p[f"b{i}"] = uni((co,), fan_in)
        return p

    return {
        "block1": conv_block(14, 16, 32),
        "block2": conv_block(32, 32, 64),
        "block3": conv_block(64, 64, 128),
        "lin1_w": uni((128, 128 * 5), 128 * 5),
        "lin1_b": uni((128,), 128 * 5),
        "lin2_w": uni((8, 128), 128),
        "lin2_b": uni((8,), 128),
    }


if __name__ == "__main__":
    key = jax.random.PRNGKey(0)
    pkey, xkey = jax.random.split(key)
    params = init_params(pkey)
    kernel_params = jax.block_until_ready(prepare_params(params))  # one-time relayout
    # DEFAULT_INPUT_SHAPE of the module: (1, 14, 300) (flattened features = 128*5)
    x = jax.random.normal(xkey, (1, _C_IN, _L_IN), dtype=jnp.float32)

    out = jax.block_until_ready(temponet_forward(kernel_params, x))
    assert out.shape == (8,), out.shape

    ref = jax.block_until_ready(_reference_forward(params, x))
    assert jnp.allclose(out, ref, rtol=2e-2, atol=5e-3), (out, ref)

    print("KERNEL_OK")
</pallas_src>

<mosaic_0001>
module attributes {stable_mosaic.version = 11 : i64} {
  func.func @_temponet_kernel(%arg0: memref<300x128xf32, #tpu.memory_space<vmem>>, %arg1: memref<384x128xbf16, #tpu.memory_space<vmem>>, %arg2: memref<1x128xf32, #tpu.memory_space<vmem>>, %arg3: memref<384x128xbf16, #tpu.memory_space<vmem>>, %arg4: memref<1x128xf32, #tpu.memory_space<vmem>>, %arg5: memref<640x128xbf16, #tpu.memory_space<vmem>>, %arg6: memref<1x128xf32, #tpu.memory_space<vmem>>, %arg7: memref<384x128xbf16, #tpu.memory_space<vmem>>, %arg8: memref<1x128xf32, #tpu.memory_space<vmem>>, %arg9: memref<384x128xbf16, #tpu.memory_space<vmem>>, %arg10: memref<1x128xf32, #tpu.memory_space<vmem>>, %arg11: memref<640x128xbf16, #tpu.memory_space<vmem>>, %arg12: memref<1x128xf32, #tpu.memory_space<vmem>>, %arg13: memref<384x128xbf16, #tpu.memory_space<vmem>>, %arg14: memref<1x128xf32, #tpu.memory_space<vmem>>, %arg15: memref<384x128xbf16, #tpu.memory_space<vmem>>, %arg16: memref<1x128xf32, #tpu.memory_space<vmem>>, %arg17: memref<640x128xbf16, #tpu.memory_space<vmem>>, %arg18: memref<1x128xf32, #tpu.memory_space<vmem>>, %arg19: memref<640x128xbf16, #tpu.memory_space<vmem>>, %arg20: memref<1x128xf32, #tpu.memory_space<vmem>>, %arg21: memref<128x128xbf16, #tpu.memory_space<vmem>>, %arg22: memref<1x128xf32, #tpu.memory_space<vmem>>, %arg23: memref<1x128xf32, #tpu.memory_space<vmem>>, %arg24: memref<320x128xf32, #tpu.memory_space<vmem>>, %arg25: memref<304x640xbf16, #tpu.memory_space<vmem>>) attributes {dimension_semantics = [], scalar_prefetch = 0 : i64, scratch_operands = 2 : i64, tpu.core_type = #tpu.core_type<tc>} {
    %cst = arith.constant 0.000000e+00 : f32
    %0 = vector.broadcast %cst : f32 to vector<320x128xf32>
    %c0 = arith.constant 0 : index
    %c0_0 = arith.constant 0 : index
    %1 = vector.load %arg24[%c0, %c0_0] : memref<320x128xf32, #tpu.memory_space<vmem>>, vector<320x128xf32>
    tpu.vector_store %arg24[%c0, %c0_0], %0 {strides = array<i32>} : memref<320x128xf32, #tpu.memory_space<vmem>>, vector<320x128xf32>,
    %c0_1 = arith.constant 0 : index
    %c0_2 = arith.constant 0 : index
    %2 = vector.load %arg0[%c0_1, %c0_2] : memref<300x128xf32, #tpu.memory_space<vmem>>, vector<300x128xf32>
    %c8 = arith.constant 8 : index
    %c0_3 = arith.constant 0 : index
    %3 = vector.load %arg24[%c8, %c0_3] : memref<320x128xf32, #tpu.memory_space<vmem>>, vector<300x128xf32>
    tpu.vector_store %arg24[%c8, %c0_3], %2 {strides = array<i32>} : memref<320x128xf32, #tpu.memory_space<vmem>>, vector<300x128xf32>,
    %cst_4 = arith.constant 0.000000e+00 : f32
    %4 = vector.broadcast %cst_4 : f32 to vector<2x128xf32>
    %c308 = arith.constant 308 : index
    %c0_5 = arith.constant 0 : index
    %5 = vector.load %arg24[%c308, %c0_5] : memref<320x128xf32, #tpu.memory_space<vmem>>, vector<2x128xf32>
    tpu.vector_store %arg24[%c308, %c0_5], %4 {strides = array<i32>} : memref<320x128xf32, #tpu.memory_space<vmem>>, vector<2x128xf32>,
    %c6 = arith.constant 6 : index
    %c0_6 = arith.constant 0 : index
    %6 = vector.load %arg24[%c6, %c0_6] : memref<320x128xf32, #tpu.memory_space<vmem>>, vector<300x128xf32>
    %7 = arith.truncf %6 : vector<300x128xf32> to vector<300x128xbf16>
    %c0_7 = arith.constant 0 : index
    %c0_8 = arith.constant 0 : index
    %8 = vector.load %arg25[%c0_7, %c0_8] : memref<304x640xbf16, #tpu.memory_space<vmem>>, vector<300x128xbf16>
    tpu.vector_store %arg25[%c0_7, %c0_8], %7 {strides = array<i32>} : memref<304x640xbf16, #tpu.memory_space<vmem>>, vector<300x128xbf16>,
    %c8_9 = arith.constant 8 : index
    %c0_10 = arith.constant 0 : index
    %9 = vector.load %arg24[%c8_9, %c0_10] : memref<320x128xf32, #tpu.memory_space<vmem>>, vector<300x128xf32>
    %10 = arith.truncf %9 : vector<300x128xf32> to vector<300x128xbf16>
    %c0_11 = arith.constant 0 : index
    %c128 = arith.constant 128 : index
    %11 = vector.load %arg25[%c0_11, %c128] : memref<304x640xbf16, #tpu.memory_space<vmem>>, vector<300x128xbf16>
    tpu.vector_store %arg25[%c0_11, %c128], %10 {strides = array<i32>} : memref<304x640xbf16, #tpu.memory_space<vmem>>, vector<300x128xbf16>,
    %c10 = arith.constant 10 : index
    %c0_12 = arith.constant 0 : index
    %12 = vector.load %arg24[%c10, %c0_12] : memref<320x128xf32, #tpu.memory_space<vmem>>, vector<300x128xf32>
    %13 = arith.truncf %12 : vector<300x128xf32> to vector<300x128xbf16>
    %c0_13 = arith.constant 0 : index
    %c256 = arith.constant 256 : index
    %14 = vector.load %arg25[%c0_13, %c256] : memref<304x640xbf16, #tpu.memory_space<vmem>>, vector<300x128xbf16>
    tpu.vector_store %arg25[%c0_13, %c256], %13 {strides = array<i32>} : memref<304x640xbf16, #tpu.memory_space<vmem>>, vector<300x128xbf16>,
    %c0_14 = arith.constant 0 : index
    %c0_15 = arith.constant 0 : index
    %15 = vector.load %arg25[%c0_14, %c0_15] : memref<304x640xbf16, #tpu.memory_space<vmem>>, vector<300x384xbf16>
    %c0_16 = arith.constant 0 : index
    %c0_17 = arith.constant 0 : index
    %16 = vector.load %arg1[%c0_16, %c0_17] : memref<384x128xbf16, #tpu.memory_space<vmem>>, vector<384x128xbf16>
    %cst_18 = arith.constant dense<0.000000e+00> : vector<300x128xf32>
    %17 = tpu.matmul %15, %16, %cst_18 {dimension_numbers = #tpu.dot_dimension_numbers<[1], [0], [0], [1], [0, 0, 1, 1], [], []>} : vector<300x384xbf16>, vector<384x128xbf16>, vector<300x128xf32> -> vector<300x128xf32>
    %c0_19 = arith.constant 0 : index
    %c0_20 = arith.constant 0 : index
    %18 = vector.load %arg2[%c0_19, %c0_20] : memref<1x128xf32, #tpu.memory_space<vmem>>, vector<1x128xf32>
    %19 = vector.broadcast %18 : vector<1x128xf32> to vector<300x128xf32>
    %20 = arith.addf %17, %19 : vector<300x128xf32>
    %c8_21 = arith.constant 8 : index
    %c0_22 = arith.constant 0 : index
    %21 = vector.load %arg24[%c8_21, %c0_22] : memref<320x128xf32, #tpu.memory_space<vmem>>, vector<300x128xf32>
    tpu.vector_store %arg24[%c8_21, %c0_22], %20 {strides = array<i32>} : memref<320x128xf32, #tpu.memory_space<vmem>>, vector<300x128xf32>,
    %cst_23 = arith.constant 0.000000e+00 : f32
    %22 = vector.broadcast %cst_23 : f32 to vector<2x128xf32>
    %c308_24 = arith.constant 308 : index
    %c0_25 = arith.constant 0 : index
    %23 = vector.load %arg24[%c308_24, %c0_25] : memref<320x128xf32, #tpu.memory_space<vmem>>, vector<2x128xf32>
    tpu.vector_store %arg24[%c308_24, %c0_25], %22 {strides = array<i32>} : memref<320x128xf32, #tpu.memory_space<vmem>>, vector<2x128xf32>,
    %c6_26 = arith.constant 6 : index
    %c0_27 = arith.constant 0 : index
    %24 = vector.load %arg24[%c6_26, %c0_27] : memref<320x128xf32, #tpu.memory_space<vmem>>, vector<300x128xf32>
    %25 = arith.truncf %24 : vector<300x128xf32> to vector<300x128xbf16>
    %c0_28 = arith.constant 0 : index
    %c0_29 = arith.constant 0 : index
    %26 = vector.load %arg25[%c0_28, %c0_29] : memref<304x640xbf16, #tpu.memory_space<vmem>>, vector<300x128xbf16>
    tpu.vector_store %arg25[%c0_28, %c0_29], %25 {strides = array<i32>} : memref<304x640xbf16, #tpu.memory_space<vmem>>, vector<300x128xbf16>,
    %c8_30 = arith.constant 8 : index
    %c0_31 = arith.constant 0 : index
    %27 = vector.load %arg24[%c8_30, %c0_31] : memref<320x128xf32, #tpu.memory_space<vmem>>, vector<300x128xf32>
    %28 = arith.truncf %27 : vector<300x128xf32> to vector<300x128xbf16>
    %c0_32 = arith.constant 0 : index
    %c128_33 = arith.constant 128 : index
    %29 = vector.load %arg25[%c0_32, %c128_33] : memref<304x640xbf16, #tpu.memory_space<vmem>>, vector<300x128xbf16>
    tpu.vector_store %arg25[%c0_32, %c128_33], %28 {strides = array<i32>} : memref<304x640xbf16, #tpu.memory_space<vmem>>, vector<300x128xbf16>,
    %c10_34 = arith.constant 10 : index
    %c0_35 = arith.constant 0 : index
    %30 = vector.load %arg24[%c10_34, %c0_35] : memref<320x128xf32, #tpu.memory_space<vmem>>, vector<300x128xf32>
    %31 = arith.truncf %30 : vector<300x128xf32> to vector<300x128xbf16>
    %c0_36 = arith.constant 0 : index
    %c256_37 = arith.constant 256 : index
    %32 = vector.load %arg25[%c0_36, %c256_37] : memref<304x640xbf16, #tpu.memory_space<vmem>>, vector<300x128xbf16>
    tpu.vector_store %arg25[%c0_36, %c256_37], %31 {strides = array<i32>} : memref<304x640xbf16, #tpu.memory_space<vmem>>, vector<300x128xbf16>,
    %c0_38 = arith.constant 0 : index
    %c0_39 = arith.constant 0 : index
    %33 = vector.load %arg25[%c0_38, %c0_39] : memref<304x640xbf16, #tpu.memory_space<vmem>>, vector<300x384xbf16>
    %c0_40 = arith.constant 0 : index
    %c0_41 = arith.constant 0 : index
    %34 = vector.load %arg3[%c0_40, %c0_41] : memref<384x128xbf16, #tpu.memory_space<vmem>>, vector<384x128xbf16>
    %cst_42 = arith.constant dense<0.000000e+00> : vector<300x128xf32>
    %35 = tpu.matmul %33, %34, %cst_42 {dimension_numbers = #tpu.dot_dimension_numbers<[1], [0], [0], [1], [0, 0, 1, 1], [], []>} : vector<300x384xbf16>, vector<384x128xbf16>, vector<300x128xf32> -> vector<300x128xf32>
    %c0_43 = arith.constant 0 : index
    %c0_44 = arith.constant 0 : index
    %36 = vector.load %arg4[%c0_43, %c0_44] : memref<1x128xf32, #tpu.memory_space<vmem>>, vector<1x128xf32>
    %37 = vector.broadcast %36 : vector<1x128xf32> to vector<300x128xf32>
    %38 = arith.addf %35, %37 : vector<300x128xf32>
    %c8_45 = arith.constant 8 : index
    %c0_46 = arith.constant 0 : index
    %39 = vector.load %arg24[%c8_45, %c0_46] : memref<320x128xf32, #tpu.memory_space<vmem>>, vector<300x128xf32>
    tpu.vector_store %arg24[%c8_45, %c0_46], %38 {strides = array<i32>} : memref<320x128xf32, #tpu.memory_space<vmem>>, vector<300x128xf32>,
    %cst_47 = arith.constant 0.000000e+00 : f32
    %40 = vector.broadcast %cst_47 : f32 to vector<2x128xf32>
    %c308_48 = arith.constant 308 : index
    %c0_49 = arith.constant 0 : index
    %41 = vector.load %arg24[%c308_48, %c0_49] : memref<320x128xf32, #tpu.memory_space<vmem>>, vector<2x128xf32>
    tpu.vector_store %arg24[%c308_48, %c0_49], %40 {strides = array<i32>} : memref<320x128xf32, #tpu.memory_space<vmem>>, vector<2x128xf32>,
    %c6_50 = arith.constant 6 : index
    %c0_51 = arith.constant 0 : index
    %42 = vector.load %arg24[%c6_50, %c0_51] : memref<320x128xf32, #tpu.memory_space<vmem>>, vector<300x128xf32>
    %43 = arith.truncf %42 : vector<300x128xf32> to vector<300x128xbf16>
    %c0_52 = arith.constant 0 : index
    %c0_53 = arith.constant 0 : index
    %44 = vector.load %arg25[%c0_52, %c0_53] : memref<304x640xbf16, #tpu.memory_space<vmem>>, vector<300x128xbf16>
    tpu.vector_store %arg25[%c0_52, %c0_53], %43 {strides = array<i32>} : memref<304x640xbf16, #tpu.memory_space<vmem>>, vector<300x128xbf16>,
    %c7 = arith.constant 7 : index
    %c0_54 = arith.constant 0 : index
    %45 = vector.load %arg24[%c7, %c0_54] : memref<320x128xf32, #tpu.memory_space<vmem>>, vector<300x128xf32>
    %46 = arith.truncf %45 : vector<300x128xf32> to vector<300x128xbf16>
    %c0_55 = arith.constant 0 : index
    %c128_56 = arith.constant 128 : index
    %47 = vector.load %arg25[%c0_55, %c128_56] : memref<304x640xbf16, #tpu.memory_space<vmem>>, vector<300x128xbf16>
    tpu.vector_store %arg25[%c0_55, %c128_56], %46 {strides = array<i32>} : memref<304x640xbf16, #tpu.memory_space<vmem>>, vector<300x128xbf16>,
    %c8_57 = arith.constant 8 : index
    %c0_58 = arith.constant 0 : index
    %48 = vector.load %arg24[%c8_57, %c0_58] : memref<320x128xf32, #tpu.memory_space<vmem>>, vector<300x128xf32>
    %49 = arith.truncf %48 : vector<300x128xf32> to vector<300x128xbf16>
    %c0_59 = arith.constant 0 : index
    %c256_60 = arith.constant 256 : index
    %50 = vector.load %arg25[%c0_59, %c256_60] : memref<304x640xbf16, #tpu.memory_space<vmem>>, vector<300x128xbf16>
    tpu.vector_store %arg25[%c0_59, %c256_60], %49 {strides = array<i32>} : memref<304x640xbf16, #tpu.memory_space<vmem>>, vector<300x128xbf16>,
    %c9 = arith.constant 9 : index
    %c0_61 = arith.constant 0 : index
    %51 = vector.load %arg24[%c9, %c0_61] : memref<320x128xf32, #tpu.memory_space<vmem>>, vector<300x128xf32>
    %52 = arith.truncf %51 : vector<300x128xf32> to vector<300x128xbf16>
    %c0_62 = arith.constant 0 : index
    %c384 = arith.constant 384 : index
    %53 = vector.load %arg25[%c0_62, %c384] : memref<304x640xbf16, #tpu.memory_space<vmem>>, vector<300x128xbf16>
    tpu.vector_store %arg25[%c0_62, %c384], %52 {strides = array<i32>} : memref<304x640xbf16, #tpu.memory_space<vmem>>, vector<300x128xbf16>,
    %c10_63 = arith.constant 10 : index
    %c0_64 = arith.constant 0 : index
    %54 = vector.load %arg24[%c10_63, %c0_64] : memref<320x128xf32, #tpu.memory_space<vmem>>, vector<300x128xf32>
    %55 = arith.truncf %54 : vector<300x128xf32> to vector<300x128xbf16>
    %c0_65 = arith.constant 0 : index
    %c512 = arith.constant 512 : index
    %56 = vector.load %arg25[%c0_65, %c512] : memref<304x640xbf16, #tpu.memory_space<vmem>>, vector<300x128xbf16>
    tpu.vector_store %arg25[%c0_65, %c512], %55 {strides = array<i32>} : memref<304x640xbf16, #tpu.memory_space<vmem>>, vector<300x128xbf16>,
    %c0_66 = arith.constant 0 : index
    %c0_67 = arith.constant 0 : index
    %57 = vector.load %arg25[%c0_66, %c0_67] : memref<304x640xbf16, #tpu.memory_space<vmem>>, vector<300x640xbf16>
    %c0_68 = arith.constant 0 : index
    %c0_69 = arith.constant 0 : index
    %58 = vector.load %arg5[%c0_68, %c0_69] : memref<640x128xbf16, #tpu.memory_space<vmem>>, vector<640x128xbf16>
    %cst_70 = arith.constant dense<0.000000e+00> : vector<300x128xf32>
    %59 = tpu.matmul %57, %58, %cst_70 {dimension_numbers = #tpu.dot_dimension_numbers<[1], [0], [0], [1], [0, 0, 1, 1], [], []>} : vector<300x640xbf16>, vector<640x128xbf16>, vector<300x128xf32> -> vector<300x128xf32>
    %c8_71 = arith.constant 8 : index
    %c0_72 = arith.constant 0 : index
    %60 = vector.load %arg24[%c8_71, %c0_72] : memref<320x128xf32, #tpu.memory_space<vmem>>, vector<300x128xf32>
    tpu.vector_store %arg24[%c8_71, %c0_72], %59 {strides = array<i32>} : memref<320x128xf32, #tpu.memory_space<vmem>>, vector<300x128xf32>,
    %c8_73 = arith.constant 8 : index
    %c0_74 = arith.constant 0 : index
    %61 = tpu.strided_load %arg24[%c8_73, %c0_74] {strides = array<i32: 2, 1>} : memref<320x128xf32, #tpu.memory_space<vmem>>, vector<150x128xf32>
    %c9_75 = arith.constant 9 : index
    %c0_76 = arith.constant 0 : index
    %62 = tpu.strided_load %arg24[%c9_75, %c0_76] {strides = array<i32: 2, 1>} : memref<320x128xf32, #tpu.memory_space<vmem>>, vector<150x128xf32>
    %63 = arith.addf %61, %62 : vector<150x128xf32>
    %cst_77 = arith.constant 5.000000e-01 : f32
    %64 = vector.broadcast %cst_77 : f32 to vector<150x128xf32>
    %65 = arith.mulf %64, %63 : vector<150x128xf32>
    %c0_78 = arith.constant 0 : index
    %c0_79 = arith.constant 0 : index
    %66 = vector.load %arg6[%c0_78, %c0_79] : memref<1x128xf32, #tpu.memory_space<vmem>>, vector<1x128xf32>
    %67 = vector.broadcast %66 : vector<1x128xf32> to vector<150x128xf32>
    %68 = arith.addf %65, %67 : vector<150x128xf32>
    %c8_80 = arith.constant 8 : index
    %c0_81 = arith.constant 0 : index
    %69 = vector.load %arg24[%c8_80, %c0_81] : memref<320x128xf32, #tpu.memory_space<vmem>>, vector<150x128xf32>
    tpu.vector_store %arg24[%c8_80, %c0_81], %68 {strides = array<i32>} : memref<320x128xf32, #tpu.memory_space<vmem>>, vector<150x128xf32>,
    %cst_82 = arith.constant 0.000000e+00 : f32
    %70 = vector.broadcast %cst_82 : f32 to vector<4x128xf32>
    %c158 = arith.constant 158 : index
    %c0_83 = arith.constant 0 : index
    %71 = vector.load %arg24[%c158, %c0_83] : memref<320x128xf32, #tpu.memory_space<vmem>>, vector<4x128xf32>
    tpu.vector_store %arg24[%c158, %c0_83], %70 {strides = array<i32>} : memref<320x128xf32, #tpu.memory_space<vmem>>, vector<4x128xf32>,
    %c4 = arith.constant 4 : index
    %c0_84 = arith.constant 0 : index
    %72 = vector.load %arg24[%c4, %c0_84] : memref<320x128xf32, #tpu.memory_space<vmem>>, vector<150x128xf32>
    %73 = arith.truncf %72 : vector<150x128xf32> to vector<150x128xbf16>
    %c0_85 = arith.constant 0 : index
    %c0_86 = arith.constant 0 : index
    %74 = vector.load %arg25[%c0_85, %c0_86] : memref<304x640xbf16, #tpu.memory_space<vmem>>, vector<150x128xbf16>
    tpu.vector_store %arg25[%c0_85, %c0_86], %73 {strides = array<i32>} : memref<304x640xbf16, #tpu.memory_space<vmem>>, vector<150x128xbf16>,
    %c8_87 = arith.constant 8 : index
    %c0_88 = arith.constant 0 : index
    %75 = vector.load %arg24[%c8_87, %c0_88] : memref<320x128xf32, #tpu.memory_space<vmem>>, vector<150x128xf32>
    %76 = arith.truncf %75 : vector<150x128xf32> to vector<150x128xbf16>
    %c0_89 = arith.constant 0 : index
    %c128_90 = arith.constant 128 : index
    %77 = vector.load %arg25[%c0_89, %c128_90] : memref<304x640xbf16, #tpu.memory_space<vmem>>, vector<150x128xbf16>
    tpu.vector_store %arg25[%c0_89, %c128_90], %76 {strides = array<i32>} : memref<304x640xbf16, #tpu.memory_space<vmem>>, vector<150x128xbf16>,
    %c12 = arith.constant 12 : index
    %c0_91 = arith.constant 0 : index
    %78 = vector.load %arg24[%c12, %c0_91] : memref<320x128xf32, #tpu.memory_space<vmem>>, vector<150x128xf32>
    %79 = arith.truncf %78 : vector<150x128xf32> to vector<150x128xbf16>
    %c0_92 = arith.constant 0 : index
    %c256_93 = arith.constant 256 : index
    %80 = vector.load %arg25[%c0_92, %c256_93] : memref<304x640xbf16, #tpu.memory_space<vmem>>, vector<150x128xbf16>
    tpu.vector_store %arg25[%c0_92, %c256_93], %79 {strides = array<i32>} : memref<304x640xbf16, #tpu.memory_space<vmem>>, vector<150x128xbf16>,
    %c0_94 = arith.constant 0 : index
    %c0_95 = arith.constant 0 : index
    %81 = vector.load %arg25[%c0_94, %c0_95] : memref<304x640xbf16, #tpu.memory_space<vmem>>, vector<150x384xbf16>
    %c0_96 = arith.constant 0 : index
    %c0_97 = arith.constant 0 : index
    %82 = vector.load %arg7[%c0_96, %c0_97] : memref<384x128xbf16, #tpu.memory_space<vmem>>, vector<384x128xbf16>
    %cst_98 = arith.constant dense<0.000000e+00> : vector<150x128xf32>
    %83 = tpu.matmul %81, %82, %cst_98 {dimension_numbers = #tpu.dot_dimension_numbers<[1], [0], [0], [1], [0, 0, 1, 1], [], []>} : vector<150x384xbf16>, vector<384x128xbf16>, vector<150x128xf32> -> vector<150x128xf32>
    %c0_99 = arith.constant 0 : index
    %c0_100 = arith.constant 0 : index
    %84 = vector.load %arg8[%c0_99, %c0_100] : memref<1x128xf32, #tpu.memory_space<vmem>>, vector<1x128xf32>
    %85 = vector.broadcast %84 : vector<1x128xf32> to vector<150x128xf32>
    %86 = arith.addf %83, %85 : vector<150x128xf32>
    %c8_101 = arith.constant 8 : index
    %c0_102 = arith.constant 0 : index
    %87 = vector.load %arg24[%c8_101, %c0_102] : memref<320x128xf32, #tpu.memory_space<vmem>>, vector<150x128xf32>
    tpu.vector_store %arg24[%c8_101, %c0_102], %86 {strides = array<i32>} : memref<320x128xf32, #tpu.memory_space<vmem>>, vector<150x128xf32>,
    %cst_103 = arith.constant 0.000000e+00 : f32
    %88 = vector.broadcast %cst_103 : f32 to vector<4x128xf32>
    %c158_104 = arith.constant 158 : index
    %c0_105 = arith.constant 0 : index
    %89 = vector.load %arg24[%c158_104, %c0_105] : memref<320x128xf32, #tpu.memory_space<vmem>>, vector<4x128xf32>
    tpu.vector_store %arg24[%c158_104, %c0_105], %88 {strides = array<i32>} : memref<320x128xf32, #tpu.memory_space<vmem>>, vector<4x128xf32>,
    %c4_106 = arith.constant 4 : index
    %c0_107 = arith.constant 0 : index
    %90 = vector.load %arg24[%c4_106, %c0_107] : memref<320x128xf32, #tpu.memory_space<vmem>>, vector<150x128xf32>
    %91 = arith.truncf %90 : vector<150x128xf32> to vector<150x128xbf16>
    %c0_108 = arith.constant 0 : index
    %c0_109 = arith.constant 0 : index
    %92 = vector.load %arg25[%c0_108, %c0_109] : memref<304x640xbf16, #tpu.memory_space<vmem>>, vector<150x128xbf16>
    tpu.vector_store %arg25[%c0_108, %c0_109], %91 {strides = array<i32>} : memref<304x640xbf16, #tpu.memory_space<vmem>>, vector<150x128xbf16>,
    %c8_110 = arith.constant 8 : index
    %c0_111 = arith.constant 0 : index
    %93 = vector.load %arg24[%c8_110, %c0_111] : memref<320x128xf32, #tpu.memory_space<vmem>>, vector<150x128xf32>
    %94 = arith.truncf %93 : vector<150x128xf32> to vector<150x128xbf16>
    %c0_112 = arith.constant 0 : index
    %c128_113 = arith.constant 128 : index
    %95 = vector.load %arg25[%c0_112, %c128_113] : memref<304x640xbf16, #tpu.memory_space<vmem>>, vector<150x128xbf16>
    tpu.vector_store %arg25[%c0_112, %c128_113], %94 {strides = array<i32>} : memref<304x640xbf16, #tpu.memory_space<vmem>>, vector<150x128xbf16>,
    %c12_114 = arith.constant 12 : index
    %c0_115 = arith.constant 0 : index
    %96 = vector.load %arg24[%c12_114, %c0_115] : memref<320x128xf32, #tpu.memory_space<vmem>>, vector<150x128xf32>
    %97 = arith.truncf %96 : vector<150x128xf32> to vector<150x128xbf16>
    %c0_116 = arith.constant 0 : index
    %c256_117 = arith.constant 256 : index
    %98 = vector.load %arg25[%c0_116, %c256_117] : memref<304x640xbf16, #tpu.memory_space<vmem>>, vector<150x128xbf16>
    tpu.vector_store %arg25[%c0_116, %c256_117], %97 {strides = array<i32>} : memref<304x640xbf16, #tpu.memory_space<vmem>>, vector<150x128xbf16>,
    %c0_118 = arith.constant 0 : index
    %c0_119 = arith.constant 0 : index
    %99 = vector.load %arg25[%c0_118, %c0_119] : memref<304x640xbf16, #tpu.memory_space<vmem>>, vector<150x384xbf16>
    %c0_120 = arith.constant 0 : index
    %c0_121 = arith.constant 0 : index
    %100 = vector.load %arg9[%c0_120, %c0_121] : memref<384x128xbf16, #tpu.memory_space<vmem>>, vector<384x128xbf16>
    %cst_122 = arith.constant dense<0.000000e+00> : vector<150x128xf32>
    %101 = tpu.matmul %99, %100, %cst_122 {dimension_numbers = #tpu.dot_dimension_numbers<[1], [0], [0], [1], [0, 0, 1, 1], [], []>} : vector<150x384xbf16>, vector<384x128xbf16>, vector<150x128xf32> -> vector<150x128xf32>
    %c0_123 = arith.constant 0 : index
    %c0_124 = arith.constant 0 : index
    %102 = vector.load %arg10[%c0_123, %c0_124] : memref<1x128xf32, #tpu.memory_space<vmem>>, vector<1x128xf32>
    %103 = vector.broadcast %102 : vector<1x128xf32> to vector<150x128xf32>
    %104 = arith.addf %101, %103 : vector<150x128xf32>
    %c8_125 = arith.constant 8 : index
    %c0_126 = arith.constant 0 : index
    %105 = vector.load %arg24[%c8_125, %c0_126] : memref<320x128xf32, #tpu.memory_space<vmem>>, vector<150x128xf32>
    tpu.vector_store %arg24[%c8_125, %c0_126], %104 {strides = array<i32>} : memref<320x128xf32, #tpu.memory_space<vmem>>, vector<150x128xf32>,
    %cst_127 = arith.constant 0.000000e+00 : f32
    %106 = vector.broadcast %cst_127 : f32 to vector<2x128xf32>
    %c158_128 = arith.constant 158 : index
    %c0_129 = arith.constant 0 : index
    %107 = vector.load %arg24[%c158_128, %c0_129] : memref<320x128xf32, #tpu.memory_space<vmem>>, vector<2x128xf32>
    tpu.vector_store %arg24[%c158_128, %c0_129], %106 {strides = array<i32>} : memref<320x128xf32, #tpu.memory_space<vmem>>, vector<2x128xf32>,
    %c6_130 = arith.constant 6 : index
    %c0_131 = arith.constant 0 : index
    %108 = vector.load %arg24[%c6_130, %c0_131] : memref<320x128xf32, #tpu.memory_space<vmem>>, vector<150x128xf32>
    %109 = arith.truncf %108 : vector<150x128xf32> to vector<150x128xbf16>
    %c0_132 = arith.constant 0 : index
    %c0_133 = arith.constant 0 : index
    %110 = vector.load %arg25[%c0_132, %c0_133] : memref<304x640xbf16, #tpu.memory_space<vmem>>, vector<150x128xbf16>
    tpu.vector_store %arg25[%c0_132, %c0_133], %109 {strides = array<i32>} : memref<304x640xbf16, #tpu.memory_space<vmem>>, vector<150x128xbf16>,
    %c7_134 = arith.constant 7 : index
    %c0_135 = arith.constant 0 : index
    %111 = vector.load %arg24[%c7_134, %c0_135] : memref<320x128xf32, #tpu.memory_space<vmem>>, vector<150x128xf32>
    %112 = arith.truncf %111 : vector<150x128xf32> to vector<150x128xbf16>
    %c0_136 = arith.constant 0 : index
    %c128_137 = arith.constant 128 : index
    %113 = vector.load %arg25[%c0_136, %c128_137] : memref<304x640xbf16, #tpu.memory_space<vmem>>, vector<150x128xbf16>
    tpu.vector_store %arg25[%c0_136, %c128_137], %112 {strides = array<i32>} : memref<304x640xbf16, #tpu.memory_space<vmem>>, vector<150x128xbf16>,
    %c8_138 = arith.constant 8 : index
    %c0_139 = arith.constant 0 : index
    %114 = vector.load %arg24[%c8_138, %c0_139] : memref<320x128xf32, #tpu.memory_space<vmem>>, vector<150x128xf32>
    %115 = arith.truncf %114 : vector<150x128xf32> to vector<150x128xbf16>
    %c0_140 = arith.constant 0 : index
    %c256_141 = arith.constant 256 : index
    %116 = vector.load %arg25[%c0_140, %c256_141] : memref<304x640xbf16, #tpu.memory_space<vmem>>, vector<150x128xbf16>
    tpu.vector_store %arg25[%c0_140, %c256_141], %115 {strides = array<i32>} : memref<304x640xbf16, #tpu.memory_space<vmem>>, vector<150x128xbf16>,
    %c9_142 = arith.constant 9 : index
    %c0_143 = arith.constant 0 : index
    %117 = vector.load %arg24[%c9_142, %c0_143] : memref<320x128xf32, #tpu.memory_space<vmem>>, vector<150x128xf32>
    %118 = arith.truncf %117 : vector<150x128xf32> to vector<150x128xbf16>
    %c0_144 = arith.constant 0 : index
    %c384_145 = arith.constant 384 : index
    %119 = vector.load %arg25[%c0_144, %c384_145] : memref<304x640xbf16, #tpu.memory_space<vmem>>, vector<150x128xbf16>
    tpu.vector_store %arg25[%c0_144, %c384_145], %118 {strides = array<i32>} : memref<304x640xbf16, #tpu.memory_space<vmem>>, vector<150x128xbf16>,
    %c10_146 = arith.constant 10 : index
    %c0_147 = arith.constant 0 : index
    %120 = vector.load %arg24[%c10_146, %c0_147] : memref<320x128xf32, #tpu.memory_space<vmem>>, vector<150x128xf32>
    %121 = arith.truncf %120 : vector<150x128xf32> to vector<150x128xbf16>
    %c0_148 = arith.constant 0 : index
    %c512_149 = arith.constant 512 : index
    %122 = vector.load %arg25[%c0_148, %c512_149] : memref<304x640xbf16, #tpu.memory_space<vmem>>, vector<150x128xbf16>
    tpu.vector_store %arg25[%c0_148, %c512_149], %121 {strides = array<i32>} : memref<304x640xbf16, #tpu.memory_space<vmem>>, vector<150x128xbf16>,
    %c0_150 = arith.constant 0 : index
    %c0_151 = arith.constant 0 : index
    %123 = vector.load %arg25[%c0_150, %c0_151] : memref<304x640xbf16, #tpu.memory_space<vmem>>, vector<150x640xbf16>
    %c0_152 = arith.constant 0 : index
    %c0_153 = arith.constant 0 : index
    %124 = vector.load %arg11[%c0_152, %c0_153] : memref<640x128xbf16, #tpu.memory_space<vmem>>, vector<640x128xbf16>
    %cst_154 = arith.constant dense<0.000000e+00> : vector<150x128xf32>
    %125 = tpu.matmul %123, %124, %cst_154 {dimension_numbers = #tpu.dot_dimension_numbers<[1], [0], [0], [1], [0, 0, 1, 1], [], []>} : vector<150x640xbf16>, vector<640x128xbf16>, vector<150x128xf32> -> vector<150x128xf32>
    %c8_155 = arith.constant 8 : index
    %c0_156 = arith.constant 0 : index
    %126 = vector.load %arg24[%c8_155, %c0_156] : memref<320x128xf32, #tpu.memory_space<vmem>>, vector<150x128xf32>
    tpu.vector_store %arg24[%c8_155, %c0_156], %125 {strides = array<i32>} : memref<320x128xf32, #tpu.memory_space<vmem>>, vector<150x128xf32>,
    %c8_157 = arith.constant 8 : index
    %c0_158 = arith.constant 0 : index
    %127 = tpu.strided_load %arg24[%c8_157, %c0_158] {strides = array<i32: 4, 1>} : memref<320x128xf32, #tpu.memory_space<vmem>>, vector<37x128xf32>
    %c10_159 = arith.constant 10 : index
    %c0_160 = arith.constant 0 : index
    %128 = tpu.strided_load %arg24[%c10_159, %c0_160] {strides = array<i32: 4, 1>} : memref<320x128xf32, #tpu.memory_space<vmem>>, vector<37x128xf32>
    %129 = arith.addf %127, %128 : vector<37x128xf32>
    %cst_161 = arith.constant 5.000000e-01 : f32
    %130 = vector.broadcast %cst_161 : f32 to vector<37x128xf32>
    %131 = arith.mulf %130, %129 : vector<37x128xf32>
    %c0_162 = arith.constant 0 : index
    %c0_163 = arith.constant 0 : index
    %132 = vector.load %arg12[%c0_162, %c0_163] : memref<1x128xf32, #tpu.memory_space<vmem>>, vector<1x128xf32>
    %133 = vector.broadcast %132 : vector<1x128xf32> to vector<37x128xf32>
    %134 = arith.addf %131, %133 : vector<37x128xf32>
    %c8_164 = arith.constant 8 : index
    %c0_165 = arith.constant 0 : index
    %135 = vector.load %arg24[%c8_164, %c0_165] : memref<320x128xf32, #tpu.memory_space<vmem>>, vector<37x128xf32>
    tpu.vector_store %arg24[%c8_164, %c0_165], %134 {strides = array<i32>} : memref<320x128xf32, #tpu.memory_space<vmem>>, vector<37x128xf32>,
    %cst_166 = arith.constant 0.000000e+00 : f32
    %136 = vector.broadcast %cst_166 : f32 to vector<8x128xf32>
    %c45 = arith.constant 45 : index
    %c0_167 = arith.constant 0 : index
    %137 = vector.load %arg24[%c45, %c0_167] : memref<320x128xf32, #tpu.memory_space<vmem>>, vector<8x128xf32>
    tpu.vector_store %arg24[%c45, %c0_167], %136 {strides = array<i32>} : memref<320x128xf32, #tpu.memory_space<vmem>>, vector<8x128xf32>,
    %c0_168 = arith.constant 0 : index
    %c0_169 = arith.constant 0 : index
    %138 = vector.load %arg24[%c0_168, %c0_169] : memref<320x128xf32, #tpu.memory_space<vmem>>, vector<37x128xf32>
    %139 = arith.truncf %138 : vector<37x128xf32> to vector<37x128xbf16>
    %c0_170 = arith.constant 0 : index
    %c0_171 = arith.constant 0 : index
    %140 = vector.load %arg25[%c0_170, %c0_171] : memref<304x640xbf16, #tpu.memory_space<vmem>>, vector<37x128xbf16>
    tpu.vector_store %arg25[%c0_170, %c0_171], %139 {strides = array<i32>} : memref<304x640xbf16, #tpu.memory_space<vmem>>, vector<37x128xbf16>,
    %c8_172 = arith.constant 8 : index
    %c0_173 = arith.constant 0 : index
    %141 = vector.load %arg24[%c8_172, %c0_173] : memref<320x128xf32, #tpu.memory_space<vmem>>, vector<37x128xf32>
    %142 = arith.truncf %141 : vector<37x128xf32> to vector<37x128xbf16>
    %c0_174 = arith.constant 0 : index
    %c128_175 = arith.constant 128 : index
    %143 = vector.load %arg25[%c0_174, %c128_175] : memref<304x640xbf16, #tpu.memory_space<vmem>>, vector<37x128xbf16>
    tpu.vector_store %arg25[%c0_174, %c128_175], %142 {strides = array<i32>} : memref<304x640xbf16, #tpu.memory_space<vmem>>, vector<37x128xbf16>,
    %c16 = arith.constant 16 : index
    %c0_176 = arith.constant 0 : index
    %144 = vector.load %arg24[%c16, %c0_176] : memref<320x128xf32, #tpu.memory_space<vmem>>, vector<37x128xf32>
    %145 = arith.truncf %144 : vector<37x128xf32> to vector<37x128xbf16>
    %c0_177 = arith.constant 0 : index
    %c256_178 = arith.constant 256 : index
    %146 = vector.load %arg25[%c0_177, %c256_178] : memref<304x640xbf16, #tpu.memory_space<vmem>>, vector<37x128xbf16>
    tpu.vector_store %arg25[%c0_177, %c256_178], %145 {strides = array<i32>} : memref<304x640xbf16, #tpu.memory_space<vmem>>, vector<37x128xbf16>,
    %c0_179 = arith.constant 0 : index
    %c0_180 = arith.constant 0 : index
    %147 = vector.load %arg25[%c0_179, %c0_180] : memref<304x640xbf16, #tpu.memory_space<vmem>>, vector<37x384xbf16>
    %c0_181 = arith.constant 0 : index
    %c0_182 = arith.constant 0 : index
    %148 = vector.load %arg13[%c0_181, %c0_182] : memref<384x128xbf16, #tpu.memory_space<vmem>>, vector<384x128xbf16>
    %cst_183 = arith.constant dense<0.000000e+00> : vector<37x128xf32>
    %149 = tpu.matmul %147, %148, %cst_183 {dimension_numbers = #tpu.dot_dimension_numbers<[1], [0], [0], [1], [0, 0, 1, 1], [], []>} : vector<37x384xbf16>, vector<384x128xbf16>, vector<37x128xf32> -> vector<37x128xf32>
    %c0_184 = arith.constant 0 : index
    %c0_185 = arith.constant 0 : index
    %150 = vector.load %arg14[%c0_184, %c0_185] : memref<1x128xf32, #tpu.memory_space<vmem>>, vector<1x128xf32>
    %151 = vector.broadcast %150 : vector<1x128xf32> to vector<37x128xf32>
    %152 = arith.addf %149, %151 : vector<37x128xf32>
    %c8_186 = arith.constant 8 : index
    %c0_187 = arith.constant 0 : index
    %153 = vector.load %arg24[%c8_186, %c0_187] : memref<320x128xf32, #tpu.memory_space<vmem>>, vector<37x128xf32>
    tpu.vector_store %arg24[%c8_186, %c0_187], %152 {strides = array<i32>} : memref<320x128xf32, #tpu.memory_space<vmem>>, vector<37x128xf32>,
    %cst_188 = arith.constant 0.000000e+00 : f32
    %154 = vector.broadcast %cst_188 : f32 to vector<8x128xf32>
    %c45_189 = arith.constant 45 : index
    %c0_190 = arith.constant 0 : index
    %155 = vector.load %arg24[%c45_189, %c0_190] : memref<320x128xf32, #tpu.memory_space<vmem>>, vector<8x128xf32>
    tpu.vector_store %arg24[%c45_189, %c0_190], %154 {strides = array<i32>} : memref<320x128xf32, #tpu.memory_space<vmem>>, vector<8x128xf32>,
    %c0_191 = arith.constant 0 : index
    %c0_192 = arith.constant 0 : index
    %156 = vector.load %arg24[%c0_191, %c0_192] : memref<320x128xf32, #tpu.memory_space<vmem>>, vector<37x128xf32>
    %157 = arith.truncf %156 : vector<37x128xf32> to vector<37x128xbf16>
    %c0_193 = arith.constant 0 : index
    %c0_194 = arith.constant 0 : index
    %158 = vector.load %arg25[%c0_193, %c0_194] : memref<304x640xbf16, #tpu.memory_space<vmem>>, vector<37x128xbf16>
    tpu.vector_store %arg25[%c0_193, %c0_194], %157 {strides = array<i32>} : memref<304x640xbf16, #tpu.memory_space<vmem>>, vector<37x128xbf16>,
    %c8_195 = arith.constant 8 : index
    %c0_196 = arith.constant 0 : index
    %159 = vector.load %arg24[%c8_195, %c0_196] : memref<320x128xf32, #tpu.memory_space<vmem>>, vector<37x128xf32>
    %160 = arith.truncf %159 : vector<37x128xf32> to vector<37x128xbf16>
    %c0_197 = arith.constant 0 : index
    %c128_198 = arith.constant 128 : index
    %161 = vector.load %arg25[%c0_197, %c128_198] : memref<304x640xbf16, #tpu.memory_space<vmem>>, vector<37x128xbf16>
    tpu.vector_store %arg25[%c0_197, %c128_198], %160 {strides = array<i32>} : memref<304x640xbf16, #tpu.memory_space<vmem>>, vector<37x128xbf16>,
    %c16_199 = arith.constant 16 : index
    %c0_200 = arith.constant 0 : index
    %162 = vector.load %arg24[%c16_199, %c0_200] : memref<320x128xf32, #tpu.memory_space<vmem>>, vector<37x128xf32>
    %163 = arith.truncf %162 : vector<37x128xf32> to vector<37x128xbf16>
    %c0_201 = arith.constant 0 : index
    %c256_202 = arith.constant 256 : index
    %164 = vector.load %arg25[%c0_201, %c256_202] : memref<304x640xbf16, #tpu.memory_space<vmem>>, vector<37x128xbf16>
    tpu.vector_store %arg25[%c0_201, %c256_202], %163 {strides = array<i32>} : memref<304x640xbf16, #tpu.memory_space<vmem>>, vector<37x128xbf16>,
    %c0_203 = arith.constant 0 : index
    %c0_204 = arith.constant 0 : index
    %165 = vector.load %arg25[%c0_203, %c0_204] : memref<304x640xbf16, #tpu.memory_space<vmem>>, vector<37x384xbf16>
    %c0_205 = arith.constant 0 : index
    %c0_206 = arith.constant 0 : index
    %166 = vector.load %arg15[%c0_205, %c0_206] : memref<384x128xbf16, #tpu.memory_space<vmem>>, vector<384x128xbf16>
    %cst_207 = arith.constant dense<0.000000e+00> : vector<37x128xf32>
    %167 = tpu.matmul %165, %166, %cst_207 {dimension_numbers = #tpu.dot_dimension_numbers<[1], [0], [0], [1], [0, 0, 1, 1], [], []>} : vector<37x384xbf16>, vector<384x128xbf16>, vector<37x128xf32> -> vector<37x128xf32>
    %c0_208 = arith.constant 0 : index
    %c0_209 = arith.constant 0 : index
    %168 = vector.load %arg16[%c0_208, %c0_209] : memref<1x128xf32, #tpu.memory_space<vmem>>, vector<1x128xf32>
    %169 = vector.broadcast %168 : vector<1x128xf32> to vector<37x128xf32>
    %170 = arith.addf %167, %169 : vector<37x128xf32>
    %c8_210 = arith.constant 8 : index
    %c0_211 = arith.constant 0 : index
    %171 = vector.load %arg24[%c8_210, %c0_211] : memref<320x128xf32, #tpu.memory_space<vmem>>, vector<37x128xf32>
    tpu.vector_store %arg24[%c8_210, %c0_211], %170 {strides = array<i32>} : memref<320x128xf32, #tpu.memory_space<vmem>>, vector<37x128xf32>,
    %cst_212 = arith.constant 0.000000e+00 : f32
    %172 = vector.broadcast %cst_212 : f32 to vector<2x128xf32>
    %c45_213 = arith.constant 45 : index
    %c0_214 = arith.constant 0 : index
    %173 = vector.load %arg24[%c45_213, %c0_214] : memref<320x128xf32, #tpu.memory_space<vmem>>, vector<2x128xf32>
    tpu.vector_store %arg24[%c45_213, %c0_214], %172 {strides = array<i32>} : memref<320x128xf32, #tpu.memory_space<vmem>>, vector<2x128xf32>,
    %c6_215 = arith.constant 6 : index
    %c0_216 = arith.constant 0 : index
    %174 = vector.load %arg24[%c6_215, %c0_216] : memref<320x128xf32, #tpu.memory_space<vmem>>, vector<37x128xf32>
    %175 = arith.truncf %174 : vector<37x128xf32> to vector<37x128xbf16>
    %c0_217 = arith.constant 0 : index
    %c0_218 = arith.constant 0 : index
    %176 = vector.load %arg25[%c0_217, %c0_218] : memref<304x640xbf16, #tpu.memory_space<vmem>>, vector<37x128xbf16>
    tpu.vector_store %arg25[%c0_217, %c0_218], %175 {strides = array<i32>} : memref<304x640xbf16, #tpu.memory_space<vmem>>, vector<37x128xbf16>,
    %c7_219 = arith.constant 7 : index
    %c0_220 = arith.constant 0 : index
    %177 = vector.load %arg24[%c7_219, %c0_220] : memref<320x128xf32, #tpu.memory_space<vmem>>, vector<37x128xf32>
    %178 = arith.truncf %177 : vector<37x128xf32> to vector<37x128xbf16>
    %c0_221 = arith.constant 0 : index
    %c128_222 = arith.constant 128 : index
    %179 = vector.load %arg25[%c0_221, %c128_222] : memref<304x640xbf16, #tpu.memory_space<vmem>>, vector<37x128xbf16>
    tpu.vector_store %arg25[%c0_221, %c128_222], %178 {strides = array<i32>} : memref<304x640xbf16, #tpu.memory_space<vmem>>, vector<37x128xbf16>,
    %c8_223 = arith.constant 8 : index
    %c0_224 = arith.constant 0 : index
    %180 = vector.load %arg24[%c8_223, %c0_224] : memref<320x128xf32, #tpu.memory_space<vmem>>, vector<37x128xf32>
    %181 = arith.truncf %180 : vector<37x128xf32> to vector<37x128xbf16>
    %c0_225 = arith.constant 0 : index
    %c256_226 = arith.constant 256 : index
    %182 = vector.load %arg25[%c0_225, %c256_226] : memref<304x640xbf16, #tpu.memory_space<vmem>>, vector<37x128xbf16>
    tpu.vector_store %arg25[%c0_225, %c256_226], %181 {strides = array<i32>} : memref<304x640xbf16, #tpu.memory_space<vmem>>, vector<37x128xbf16>,
    %c9_227 = arith.constant 9 : index
    %c0_228 = arith.constant 0 : index
    %183 = vector.load %arg24[%c9_227, %c0_228] : memref<320x128xf32, #tpu.memory_space<vmem>>, vector<37x128xf32>
    %184 = arith.truncf %183 : vector<37x128xf32> to vector<37x128xbf16>
    %c0_229 = arith.constant 0 : index
    %c384_230 = arith.constant 384 : index
    %185 = vector.load %arg25[%c0_229, %c384_230] : memref<304x640xbf16, #tpu.memory_space<vmem>>, vector<37x128xbf16>
    tpu.vector_store %arg25[%c0_229, %c384_230], %184 {strides = array<i32>} : memref<304x640xbf16, #tpu.memory_space<vmem>>, vector<37x128xbf16>,
    %c10_231 = arith.constant 10 : index
    %c0_232 = arith.constant 0 : index
    %186 = vector.load %arg24[%c10_231, %c0_232] : memref<320x128xf32, #tpu.memory_space<vmem>>, vector<37x128xf32>
    %187 = arith.truncf %186 : vector<37x128xf32> to vector<37x128xbf16>
    %c0_233 = arith.constant 0 : index
    %c512_234 = arith.constant 512 : index
    %188 = vector.load %arg25[%c0_233, %c512_234] : memref<304x640xbf16, #tpu.memory_space<vmem>>, vector<37x128xbf16>
    tpu.vector_store %arg25[%c0_233, %c512_234], %187 {strides = array<i32>} : memref<304x640xbf16, #tpu.memory_space<vmem>>, vector<37x128xbf16>,
    %c0_235 = arith.constant 0 : index
    %c0_236 = arith.constant 0 : index
    %189 = vector.load %arg25[%c0_235, %c0_236] : memref<304x640xbf16, #tpu.memory_space<vmem>>, vector<37x640xbf16>
    %c0_237 = arith.constant 0 : index
    %c0_238 = arith.constant 0 : index
    %190 = vector.load %arg17[%c0_237, %c0_238] : memref<640x128xbf16, #tpu.memory_space<vmem>>, vector<640x128xbf16>
    %cst_239 = arith.constant dense<0.000000e+00> : vector<37x128xf32>
    %191 = tpu.matmul %189, %190, %cst_239 {dimension_numbers = #tpu.dot_dimension_numbers<[1], [0], [0], [1], [0, 0, 1, 1], [], []>} : vector<37x640xbf16>, vector<640x128xbf16>, vector<37x128xf32> -> vector<37x128xf32>
    %c8_240 = arith.constant 8 : index
    %c0_241 = arith.constant 0 : index
    %192 = vector.load %arg24[%c8_240, %c0_241] : memref<320x128xf32, #tpu.memory_space<vmem>>, vector<37x128xf32>
    tpu.vector_store %arg24[%c8_240, %c0_241], %191 {strides = array<i32>} : memref<320x128xf32, #tpu.memory_space<vmem>>, vector<37x128xf32>,
    %c8_242 = arith.constant 8 : index
    %c0_243 = arith.constant 0 : index
    %193 = tpu.strided_load %arg24[%c8_242, %c0_243] {strides = array<i32: 8, 1>} : memref<320x128xf32, #tpu.memory_space<vmem>>, vector<5x128xf32>
    %c12_244 = arith.constant 12 : index
    %c0_245 = arith.constant 0 : index
    %194 = tpu.strided_load %arg24[%c12_244, %c0_245] {strides = array<i32: 8, 1>} : memref<320x128xf32, #tpu.memory_space<vmem>>, vector<5x128xf32>
    %195 = arith.addf %193, %194 : vector<5x128xf32>
    %cst_246 = arith.constant 5.000000e-01 : f32
    %196 = vector.broadcast %cst_246 : f32 to vector<5x128xf32>
    %197 = arith.mulf %196, %195 : vector<5x128xf32>
    %c0_247 = arith.constant 0 : index
    %c0_248 = arith.constant 0 : index
    %198 = vector.load %arg18[%c0_247, %c0_248] : memref<1x128xf32, #tpu.memory_space<vmem>>, vector<1x128xf32>
    %199 = vector.broadcast %198 : vector<1x128xf32> to vector<5x128xf32>
    %200 = arith.addf %197, %199 : vector<5x128xf32>
    %201 = vector.extract_strided_slice %200 {offsets = [0, 0], sizes = [1, 128], strides = [1, 1]} : vector<5x128xf32> to vector<1x128xf32>
    %202 = arith.truncf %201 : vector<1x128xf32> to vector<1x128xbf16>
    %c0_249 = arith.constant 0 : index
    %c0_250 = arith.constant 0 : index
    %203 = vector.load %arg25[%c0_249, %c0_250] : memref<304x640xbf16, #tpu.memory_space<vmem>>, vector<1x128xbf16>
    tpu.vector_store %arg25[%c0_249, %c0_250], %202 {strides = array<i32>} : memref<304x640xbf16, #tpu.memory_space<vmem>>, vector<1x128xbf16>,
    %204 = vector.extract_strided_slice %200 {offsets = [1, 0], sizes = [1, 128], strides = [1, 1]} : vector<5x128xf32> to vector<1x128xf32>
    %205 = arith.truncf %204 : vector<1x128xf32> to vector<1x128xbf16>
    %c0_251 = arith.constant 0 : index
    %c128_252 = arith.constant 128 : index
    %206 = vector.load %arg25[%c0_251, %c128_252] : memref<304x640xbf16, #tpu.memory_space<vmem>>, vector<1x128xbf16>
    tpu.vector_store %arg25[%c0_251, %c128_252], %205 {strides = array<i32>} : memref<304x640xbf16, #tpu.memory_space<vmem>>, vector<1x128xbf16>,
    %207 = vector.extract_strided_slice %200 {offsets = [2, 0], sizes = [1, 128], strides = [1, 1]} : vector<5x128xf32> to vector<1x128xf32>
    %208 = arith.truncf %207 : vector<1x128xf32> to vector<1x128xbf16>
    %c0_253 = arith.constant 0 : index
    %c256_254 = arith.constant 256 : index
    %209 = vector.load %arg25[%c0_253, %c256_254] : memref<304x640xbf16, #tpu.memory_space<vmem>>, vector<1x128xbf16>
    tpu.vector_store %arg25[%c0_253, %c256_254], %208 {strides = array<i32>} : memref<304x640xbf16, #tpu.memory_space<vmem>>, vector<1x128xbf16>,
    %210 = vector.extract_strided_slice %200 {offsets = [3, 0], sizes = [1, 128], strides = [1, 1]} : vector<5x128xf32> to vector<1x128xf32>
    %211 = arith.truncf %210 : vector<1x128xf32> to vector<1x128xbf16>
    %c0_255 = arith.constant 0 : index
    %c384_256 = arith.constant 384 : index
    %212 = vector.load %arg25[%c0_255, %c384_256] : memref<304x640xbf16, #tpu.memory_space<vmem>>, vector<1x128xbf16>
    tpu.vector_store %arg25[%c0_255, %c384_256], %211 {strides = array<i32>} : memref<304x640xbf16, #tpu.memory_space<vmem>>, vector<1x128xbf16>,
    %213 = vector.extract_strided_slice %200 {offsets = [4, 0], sizes = [1, 128], strides = [1, 1]} : vector<5x128xf32> to vector<1x128xf32>
    %214 = arith.truncf %213 : vector<1x128xf32> to vector<1x128xbf16>
    %c0_257 = arith.constant 0 : index
    %c512_258 = arith.constant 512 : index
    %215 = vector.load %arg25[%c0_257, %c512_258] : memref<304x640xbf16, #tpu.memory_space<vmem>>, vector<1x128xbf16>
    tpu.vector_store %arg25[%c0_257, %c512_258], %214 {strides = array<i32>} : memref<304x640xbf16, #tpu.memory_space<vmem>>, vector<1x128xbf16>,
    %c0_259 = arith.constant 0 : index
    %c0_260 = arith.constant 0 : index
    %216 = vector.load %arg25[%c0_259, %c0_260] : memref<304x640xbf16, #tpu.memory_space<vmem>>, vector<1x640xbf16>
    %c0_261 = arith.constant 0 : index
    %c0_262 = arith.constant 0 : index
    %217 = vector.load %arg19[%c0_261, %c0_262] : memref<640x128xbf16, #tpu.memory_space<vmem>>, vector<640x128xbf16>
    %cst_263 = arith.constant dense<0.000000e+00> : vector<1x128xf32>
    %218 = tpu.matmul %216, %217, %cst_263 {dimension_numbers = #tpu.dot_dimension_numbers<[1], [0], [0], [1], [0, 0, 1, 1], [], []>} : vector<1x640xbf16>, vector<640x128xbf16>, vector<1x128xf32> -> vector<1x128xf32>
    %c0_264 = arith.constant 0 : index
    %c0_265 = arith.constant 0 : index
    %219 = vector.load %arg20[%c0_264, %c0_265] : memref<1x128xf32, #tpu.memory_space<vmem>>, vector<1x128xf32>
    %220 = arith.addf %218, %219 : vector<1x128xf32>
    %221 = arith.truncf %220 : vector<1x128xf32> to vector<1x128xbf16>
    %c0_266 = arith.constant 0 : index
    %c0_267 = arith.constant 0 : index
    %222 = vector.load %arg21[%c0_266, %c0_267] : memref<128x128xbf16, #tpu.memory_space<vmem>>, vector<128x128xbf16>
    %cst_268 = arith.constant dense<0.000000e+00> : vector<1x128xf32>
    %223 = tpu.matmul %221, %222, %cst_268 {dimension_numbers = #tpu.dot_dimension_numbers<[1], [0], [0], [1], [0, 0, 1, 1], [], []>} : vector<1x128xbf16>, vector<128x128xbf16>, vector<1x128xf32> -> vector<1x128xf32>
    %c0_269 = arith.constant 0 : index
    %c0_270 = arith.constant 0 : index
    %224 = vector.load %arg22[%c0_269, %c0_270] : memref<1x128xf32, #tpu.memory_space<vmem>>, vector<1x128xf32>
    %225 = arith.addf %223, %224 : vector<1x128xf32>
    %c0_271 = arith.constant 0 : index
    %c0_272 = arith.constant 0 : index
    %226 = vector.load %arg23[%c0_271, %c0_272] : memref<1x128xf32, #tpu.memory_space<vmem>>, vector<1x128xf32>
    tpu.vector_store %arg23[%c0_271, %c0_272], %225 {strides = array<i32>} : memref<1x128xf32, #tpu.memory_space<vmem>>, vector<1x128xf32>,
    return
  }
}

</mosaic_0001>

<bundles_post_ra>
// kernel: temponet_forward.1
= control target key start
LH: loop header
LB: loop body
LE: loop exit
PB: predicated region body
PF: predicated region fallthrough
CT: control target
= control target key end

     0   :  { %s18340_s0 = inlined_call_operand.vmem [shape: f32[300,128], index: 0, kind: input, shape index: {}]   ;;  %s18341_s1 = inlined_call_operand.vmem [shape: bf16[384,128], index: 1, kind: input, shape index: {}]   ;;  %s18342_s2 = inlined_call_operand.vmem [shape: f32[1,128], index: 2, kind: input, shape index: {}]   ;;  %s18343_s3 = inlined_call_operand.hbm [shape: bf16[384,128], index: 3, kind: input, shape index: {}]   ;;  %s18344_s4 = inlined_call_operand.vmem [shape: f32[1,128], index: 4, kind: input, shape index: {}]   ;;  %s18345_s5 = inlined_call_operand.vmem [shape: bf16[640,128], index: 5, kind: input, shape index: {}]   ;;  %s18346_s6 = inlined_call_operand.vmem [shape: f32[1,128], index: 6, kind: input, shape index: {}]   ;;  %s18347_s7 = inlined_call_operand.hbm [shape: bf16[384,128], index: 7, kind: input, shape index: {}]   ;;  %s18348_s8 = inlined_call_operand.vmem [shape: f32[1,128], index: 8, kind: input, shape index: {}]   ;;  %s18349_s9 = inlined_call_operand.hbm [shape: bf16[384,128], index: 9, kind: input, shape index: {}]   ;;  %s18350_s10 = inlined_call_operand.vmem [shape: f32[1,128], index: 10, kind: input, shape index: {}]   ;;  %s18351_s11 = inlined_call_operand.vmem [shape: bf16[640,128], index: 11, kind: input, shape index: {}]   ;;  %s18352_s12 = inlined_call_operand.vmem [shape: f32[1,128], index: 12, kind: input, shape index: {}]   ;;  %s18353_s13 = inlined_call_operand.hbm [shape: bf16[384,128], index: 13, kind: input, shape index: {}]   ;;  %s18354_s14 = inlined_call_operand.vmem [shape: f32[1,128], index: 14, kind: input, shape index: {}]   ;;  %s18355_s15 = inlined_call_operand.hbm [shape: bf16[384,128], index: 15, kind: input, shape index: {}]   ;;  %s18356_s16 = inlined_call_operand.vmem [shape: f32[1,128], index: 16, kind: input, shape index: {}]   ;;  %s18357_s17 = inlined_call_operand.vmem [shape: bf16[640,128], index: 17, kind: input, shape index: {}]   ;;  %s18358_s18 = inlined_call_operand.vmem [shape: f32[1,128], index: 18, kind: input, shape index: {}]   ;;  %s18359_s19 = inlined_call_operand.vmem [shape: bf16[640,128], index: 19, kind: input, shape index: {}]   ;;  %s18360_s20 = inlined_call_operand.vmem [shape: f32[1,128], index: 20, kind: input, shape index: {}]   ;;  %s18361_s21 = inlined_call_operand.vmem [shape: bf16[128,128], index: 21, kind: input, shape index: {}]   ;;  %s18362_s22 = inlined_call_operand.vmem [shape: f32[1,128], index: 22, kind: input, shape index: {}]   ;;  %s18363_s23 = inlined_call_operand.vmem [shape: f32[1,128], index: 23, kind: output, shape index: {}]  }
   0x1   :  { %18370 = sst [smem:[#allocation26_spill]] %s18340_s0 }
   0x2   :  { %18371 = sst [smem:[#allocation27_spill]] %s18341_s1 }
   0x3   :  { %18372 = sst [smem:[#allocation28_spill]] %s18342_s2 }
   0x4   :  { %18373 = sst [smem:[#allocation29_spill]] %s18343_s3 }
   0x5   :  { %18374 = sst [smem:[#allocation30_spill]] %s18344_s4 }
   0x6   :  { %18375 = sst [smem:[#allocation31_spill]] %s18345_s5 }
   0x7   :  { %18376 = sst [smem:[#allocation32_spill]] %s18346_s6 }
   0x8   :  { %18377 = sst [smem:[#allocation33_spill]] %s18347_s7 }
   0x9   :  { %28 = vsyncpa [#allocation5], 0 }
   0xa   :  { %29 = vsyncpa [#allocation7], 0 }
   0xb   :  { %30 = vsyncpa [#allocation10], 0  ;;  %s16443_s4 = smov [#allocation6]   ;;  %s16444_s24 = smov [#allocation9]  }
   0xc   :  { %s60_s30 = sshll.u32 %s16443_s4, 4  ;;  %s92_s25 = sshll.u32 %s16444_s24, 4  ;;  %s61_s30 = int_to_ptr.vmem [resolvable:$true] %s60_s30  ;;  %s93_s25 = int_to_ptr.vmem [resolvable:$true] %s92_s25 }
   0xd   :  { %s16345_s5 = scalar_lea.vmem %s61_s30, 3072  ;;  %p16350_p1 = scmp.lt.s32.totalorder %s61_s30, %s61_s30 }
   0xe   :  { %p16346_p0 = scmp.ne.s32.totalorder %s61_s30, %s16345_s5  ;;  %p16351_p2 = scmp.lt.s32.totalorder %s16345_s5, %s16345_s5 }
  0x10   :  { %p16352_p3 = por %p16351_p2, %p16350_p1 }
  0x12   :  { %p16353_p4 = pnand %p16352_p3, %p16346_p0 }
  0x14   :  { %16356 = shalt.err (!%p16353_p4)
}
  0x15   :  { %s16445_s1 = smov 64   ;;  %s16446_s26 = smov 4  }
  0x16   :  { %s18378_s27 = sld [smem:[#allocation33_spill]]  ;;  %s16365_s7 = scalar_lea.vmem %s93_s25, 3072 }
  0x17   :  { %p16366_p5 = scmp.ne.s32.totalorder %s93_s25, %s16365_s7  ;;  %p16370_p6 = scmp.lt.s32.totalorder %s93_s25, %s93_s25 }
  0x18   :  { %p16371_p7 = scmp.lt.s32.totalorder %s16365_s7, %s16365_s7 }
  0x1a   :  { %p16372_p8 = por %p16371_p7, %p16370_p6 }
  0x1c   :  { %66 = dma.hbm_to_vmem [thread:$0]  %s18378_s27, 3072, %s61_s30, [#allocation7], %s16445_s1, %s16445_s1, %s16446_s26  }
  0x1d   :  { %p16373_p9 = pnand %p16372_p8, %p16366_p5 }
  0x1f   :  { %16376 = shalt.err (!%p16373_p9)
}
  0x20   :  { %98 = dma.hbm_to_vmem [thread:$0]  %s18353_s13, 3072, %s93_s25, [#allocation10], %s16445_s1, %s16445_s1, %s16446_s26  }
  0x21   :  { %s16447_s3 = smov [#allocation4]   ;;  %s16448_s4 = smov [#allocation8]  }
  0x22   :  { %s42_s0 = sshll.u32 %s16447_s3, 4  ;;  %s74_s24 = sshll.u32 %s16448_s4, 4  ;;  %s43_s0 = int_to_ptr.vmem [resolvable:$true] %s42_s0  ;;  %s75_s24 = int_to_ptr.vmem [resolvable:$true] %s74_s24 }
  0x23   :  { %s16385_s30 = scalar_lea.vmem %s43_s0, 3072  ;;  %p16390_p11 = scmp.lt.s32.totalorder %s43_s0, %s43_s0 }
  0x24   :  { %p16386_p10 = scmp.ne.s32.totalorder %s43_s0, %s16385_s30  ;;  %p16391_p12 = scmp.lt.s32.totalorder %s16385_s30, %s16385_s30 }
  0x26   :  { %p16392_p13 = por %p16391_p12, %p16390_p11 }
  0x28   :  { %p16393_p0 = pnand %p16392_p13, %p16386_p10 }
  0x2a   :  { %16396 = shalt.err (!%p16393_p0)
}
  0x2b   :  { %s18379_s6 = sld [smem:[#allocation29_spill]]  ;;  %s16405_s13 = scalar_lea.vmem %s75_s24, 3072 }
  0x2c   :  { %p16406_p1 = scmp.ne.s32.totalorder %s75_s24, %s16405_s13  ;;  %p16410_p2 = scmp.lt.s32.totalorder %s75_s24, %s75_s24 }
  0x2d   :  { %p16411_p3 = scmp.lt.s32.totalorder %s16405_s13, %s16405_s13 }
  0x2f   :  { %p16412_p4 = por %p16411_p3, %p16410_p2 }
  0x31   :  { %48 = dma.hbm_to_vmem [thread:$0]  %s18379_s6, 3072, %s43_s0, [#allocation5], %s16445_s1, %s16445_s1, %s16446_s26  }
  0x32   :  { %p16413_p5 = pnand %p16412_p4, %p16406_p1 }
  0x34   :  { %16416 = shalt.err (!%p16413_p5)
}
  0x35   :  { %80 = dma.hbm_to_vmem [thread:$0]  %s18349_s9, 3072, %s75_s24, [#allocation7], %s16445_s1, %s16445_s1, %s16446_s26  }
  0x36   :  { %s16449_s7 = smov [#allocation11]  }
  0x37   :  { %s106_s28 = sshll.u32 %s16449_s7, 4  ;;  %s107_s28 = int_to_ptr.vmem [resolvable:$true] %s106_s28 }
  0x38   :  { %s16425_s29 = scalar_lea.vmem %s107_s28, 3072  ;;  %p16430_p7 = scmp.lt.s32.totalorder %s107_s28, %s107_s28 }
  0x39   :  { %p16426_p6 = scmp.ne.s32.totalorder %s107_s28, %s16425_s29  ;;  %p16431_p8 = scmp.lt.s32.totalorder %s16425_s29, %s16425_s29 }
  0x3b   :  { %p16432_p9 = por %p16431_p8, %p16430_p7 }
  0x3d   :  { %p16433_p10 = pnand %p16432_p9, %p16426_p6 }
  0x3f   :  { %16436 = shalt.err (!%p16433_p10)
}
  0x40   :  { %112 = dma.hbm_to_vmem [thread:$0]  %s18355_s15, 3072, %s107_s28, [#allocation10], %s16445_s1, %s16445_s1, %s16446_s26  }
  0x41   :  { %16437 = dma.done.wait [#allocation5], 3072  }
  0x42   :  { %16438 = vsyncadd [#allocation5], 4294964224 }
  0x43   :  { %16439 = dma.done.wait [#allocation7], 6144  }
  0x44   :  { %16440 = vsyncadd [#allocation7], 4294961152 }
  0x45   :  { %16441 = dma.done.wait [#allocation10], 6144  }
  0x46   :  { %16442 = vsyncadd [#allocation10], 4294961152  ;;  %v16450_v0 = vmov 0.0   ;;  %v16451_v1 = vmov 0   ;;  %vm16452_vm0 = vmmov 0   ;;  %s18380_s1 = sld [smem:[#allocation27_spill]] }
  0x47   :  { %182 = vst [vmem:[#allocation2 + $0x138] sm:$0xff] %v16450_v0  ;;  %143 = vst [vmem:[#allocation2] sm:$0xff] %v16450_v0  ;;  %1523 = vmatprep.subr.bf16.mxu0 %v16451_v1  ;;  %15021 = vmatprep.subr.bf16.mxu1 %v16450_v0  ;;  %s18381_s13 = sld [smem:[#allocation26_spill]]  ;;  %vm10019_vm1 = vcmask 1042432   ;;  %vm10020_vm2 = vsmask.f32 2304 }
  0x48   :  { %181 = vst [vmem:[#allocation2 + $0x130] sm:$0xff] %v16450_v0  ;;  %15037 = vmatprep.mubr.msk.bf16.mxu1 %vm16452_vm0, %v16450_v0  ;;  %s18382_s25 = sld [smem:[#allocation28_spill]]  ;;  %vm17957_vm3 = vmand %vm10019_vm1, %vm10020_vm2  ;;  %vm11691_vm4 = vcmask 1040384   ;;  %vm11692_vm5 = vsmask.f32 256 }
  0x49   :  { %259 = vst [vmem:[#allocation2 + $0x134] sm:$0x3] %v16450_v0  ;;  %s18383_s28 = sld [smem:[#allocation31_spill]]  ;;  %vm18251_vm6 = vmand %vm11691_vm4, %vm11692_vm5 }
  0x4a   :  { %s18384_s29 = sld [smem:[#allocation30_spill]] }
  0x4b   :  { %s18385_s9 = sld [smem:[#allocation32_spill]] }
  0x4c   :  { %v15539_v2 = vld [vmem:[%s18380_s1 + $0x38] sm:$0xff]   ;;  %v15540_v3 = vld [vmem:[%s18380_s1 + $0x30] sm:$0xff]   ;;  %v15541_v4 = vld [vmem:[%s18380_s1 + $0x28] sm:$0xff]  }
  0x4d   :  { %1524 = vmatpush1.bf16.msra.mxu0 %v15539_v2  ;;  %v15547_v5 = vld [vmem:[%s18380_s1 + $0xb8] sm:$0xff]   ;;  %v15542_v6 = vld [vmem:[%s18380_s1 + $0x20] sm:$0xff]   ;;  %v15549_v7 = vld [vmem:[%s18380_s1 + $0xb0] sm:$0xff]  }
  0x4e   :  { %1525 = vmatprep.subr.bf16.mxu0 %v16451_v1  ;;  %15022 = vmatpush3.bf16.msra.mxu1 %v15547_v5  ;;  %v15543_v8 = vld [vmem:[%s18380_s1 + $0x18] sm:$0xff]   ;;  %v15551_v9 = vld [vmem:[%s18380_s1 + $0xa8] sm:$0xff]   ;;  %v15544_v10 = vld [vmem:[%s18380_s1 + $0x10] sm:$0xff]  }
  0x4f   :  { %15023 = vmatprep.subr.bf16.mxu1 %v16450_v0  ;;  %v15553_v11 = vld [vmem:[%s18380_s1 + $0xa0] sm:$0xff]   ;;  %v15545_v12 = vld [vmem:[%s18380_s1 + $0x8] sm:$0xff]   ;;  %v15555_v13 = vld [vmem:[%s18380_s1 + $0x98] sm:$0xff]  }
  0x50   :  { %v183_v14 = vld [vmem:[%s18381_s13] sm:$0xff]  ;;  %v184_v15 = vld [vmem:[%s18381_s13 + $0x8] sm:$0xff]  ;;  %v185_v16 = vld [vmem:[%s18381_s13 + $0x10] sm:$0xff] }
  0x51   :  { %1526 = vmatpush1.bf16.msra.mxu0 %v15540_v3  ;;  %v15546_v17 = vld [vmem:[%s18380_s1] sm:$0xff]   ;;  %v15557_v18 = vld [vmem:[%s18380_s1 + $0x90] sm:$0xff]   ;;  %221 = vst [vmem:[#allocation2 + $0x8] sm:$0xff] %v183_v14  ;;  %222 = vst [vmem:[#allocation2 + $0x10] sm:$0xff] %v184_v15  ;;  %v13706_v19 = vpack.c.bf16 %v183_v14, %v183_v14  ;;  %v13707_v20 = vpack.c.bf16 %v184_v15, %v184_v15  ;;  %v13708_v21 = vpack.c.bf16 %v185_v16, %v185_v16 }
  0x52   :  { %1527 = vmatprep.subr.bf16.mxu0 %v16451_v1  ;;  %15024 = vmatpush3.bf16.msra.mxu1 %v15549_v7  ;;  %223 = vst [vmem:[#allocation2 + $0x18] sm:$0xff] %v185_v16  ;;  %v186_v22 = vld [vmem:[%s18381_s13 + $0x18] sm:$0xff]  ;;  %v187_v23 = vld [vmem:[%s18381_s13 + $0x20] sm:$0xff]  ;;  %v188_v24 = vld [vmem:[%s18381_s13 + $0x28] sm:$0xff] }
  0x53   :  { %15025 = vmatprep.subr.bf16.mxu1 %v16450_v0  ;;  %678 = vst [vmem:[#allocation3 + $0x4] sm:$0xf] %v13706_v19  ;;  %679 = vst [vmem:[#allocation3 + $0x18] sm:$0xf] %v13707_v20  ;;  %v13709_v25 = vpack.c.bf16 %v186_v22, %v186_v22  ;;  %v189_v26 = vld [vmem:[%s18381_s13 + $0x30] sm:$0xff]  ;;  %v13710_v27 = vpack.c.bf16 %v187_v23, %v187_v23  ;;  %v13711_v28 = vpack.c.bf16 %v188_v24, %v188_v24  ;;  %v190_v29 = vld [vmem:[%s18381_s13 + $0x38] sm:$0xff] }
  0x54   :  { %224 = vst [vmem:[#allocation2 + $0x20] sm:$0xff] %v186_v22  ;;  %225 = vst [vmem:[#allocation2 + $0x28] sm:$0xff] %v187_v23  ;;  %v191_v30 = vld [vmem:[%s18381_s13 + $0x40] sm:$0xff]  ;;  %v13712_v31 = vpack.c.bf16 %v189_v26, %v189_v26  ;;  %v13713_v32 = vpack.c.bf16 %v190_v29, %v190_v29  ;;  %v192_v33 = vld [vmem:[%s18381_s13 + $0x48] sm:$0xff] }
  0x55   :  { %1528 = vmatpush1.bf16.msra.mxu0 %v15541_v4  ;;  %680 = vst [vmem:[#allocation3 + $0x2c] sm:$0xf] %v13708_v21  ;;  %226 = vst [vmem:[#allocation2 + $0x30] sm:$0xff] %v188_v24  ;;  %v193_v34 = vld [vmem:[%s18381_s13 + $0x50] sm:$0xff]  ;;  %v13714_v35 = vpack.c.bf16 %v191_v30, %v191_v30  ;;  %v194_v36 = vld [vmem:[%s18381_s13 + $0x58] sm:$0xff]  ;;  %v13715_v39 = vpack.c.bf16 %v192_v33, %v192_v33 }
  0x56   :  { %1529 = vmatprep.subr.bf16.mxu0 %v16451_v1  ;;  %15026 = vmatpush3.bf16.msra.mxu1 %v15551_v9  ;;  %227 = vst [vmem:[#allocation2 + $0x38] sm:$0xff] %v189_v26  ;;  %228 = vst [vmem:[#allocation2 + $0x40] sm:$0xff] %v190_v29  ;;  %v16704_v37 = vld [vmem:[%s18380_s1 + $0x78] sm:$0xff]   ;;  %v16709_v38 = vld [vmem:[%s18380_s1 + $0x88] sm:$0xff]   ;;  %v13716_v41 = vpack.c.bf16 %v193_v34, %v193_v34  ;;  %v13717_v42 = vpack.c.bf16 %v194_v36, %v194_v36 }
  0x57   :  { %15027 = vmatprep.subr.bf16.mxu1 %v16450_v0  ;;  %229 = vst [vmem:[#allocation2 + $0x48] sm:$0xff] %v191_v30  ;;  %681 = vst [vmem:[#allocation3 + $0x40] sm:$0xf] %v13709_v25  ;;  %v195_v40 = vld [vmem:[%s18381_s13 + $0x60] sm:$0xff]  ;;  %v196_v43 = vld [vmem:[%s18381_s13 + $0x68] sm:$0xff] }
  0x58   :  { %682 = vst [vmem:[#allocation3 + $0x54] sm:$0xf] %v13710_v27  ;;  %683 = vst [vmem:[#allocation3 + $0x68] sm:$0xf] %v13711_v28  ;;  %v197_v44 = vld [vmem:[%s18381_s13 + $0x70] sm:$0xff]  ;;  %v13718_v45 = vpack.c.bf16 %v195_v40, %v195_v40  ;;  %v13719_v46 = vpack.c.bf16 %v196_v43, %v196_v43  ;;  %v198_v47 = vld [vmem:[%s18381_s13 + $0x78] sm:$0xff] }
  0x59   :  { %1530 = vmatpush1.bf16.msra.mxu0 %v15542_v6  ;;  %230 = vst [vmem:[#allocation2 + $0x50] sm:$0xff] %v192_v33  ;;  %231 = vst [vmem:[#allocation2 + $0x58] sm:$0xff] %v193_v34  ;;  %v199_v48 = vld [vmem:[%s18381_s13 + $0x80] sm:$0xff]  ;;  %v13720_v49 = vpack.c.bf16 %v197_v44, %v197_v44  ;;  %v200_v50 = vld [vmem:[%s18381_s13 + $0x88] sm:$0xff]  ;;  %v13721_v51 = vpack.c.bf16 %v198_v47, %v198_v47 }
  0x5a   :  { %1531 = vmatprep.subr.bf16.mxu0 %v16451_v1  ;;  %15028 = vmatpush3.bf16.msra.mxu1 %v15553_v11  ;;  %232 = vst [vmem:[#allocation2 + $0x60] sm:$0xff] %v194_v36  ;;  %684 = vst [vmem:[#allocation3 + $0x7c] sm:$0xf] %v13712_v31  ;;  %v201_v52 = vld [vmem:[%s18381_s13 + $0x90] sm:$0xff]  ;;  %v13722_v53 = vpack.c.bf16 %v199_v48, %v199_v48  ;;  %v13723_v54 = vpack.c.bf16 %v200_v50, %v200_v50  ;;  %v202_v55 = vld [vmem:[%s18381_s13 + $0x98] sm:$0xff] }
  0x5b   :  { %15029 = vmatprep.subr.bf16.mxu1 %v16450_v0  ;;  %685 = vst [vmem:[#allocation3 + $0x90] sm:$0xf] %v13713_v32  ;;  %686 = vst [vmem:[#allocation3 + $0xa4] sm:$0xf] %v13714_v35  ;;  %v203_v56 = vld [vmem:[%s18381_s13 + $0xa0] sm:$0xff]  ;;  %v716_v57 = vld [vmem:[#allocation2 + $0xa] sm:$0xff]  ;;  %v13724_v60 = vpack.c.bf16 %v201_v52, %v201_v52  ;;  %v13725_v61 = vpack.c.bf16 %v202_v55, %v202_v55 }
  0x5c   :  { %233 = vst [vmem:[#allocation2 + $0x68] sm:$0xff] %v195_v40  ;;  %234 = vst [vmem:[#allocation2 + $0x70] sm:$0xff] %v196_v43  ;;  %v717_v58 = vld [vmem:[#allocation2 + $0x12] sm:$0xff]  ;;  %v260_v59 = vld [vmem:[#allocation2 + $0x6] sm:$0xff]  ;;  %v13726_v62 = vpack.c.bf16 %v203_v56, %v203_v56  ;;  %v13744_v3 = vpack.c.bf16 %v716_v57, %v716_v57 }
  0x5d   :  { %1532 = vmatpush1.bf16.msra.mxu0 %v15543_v8  ;;  %235 = vst [vmem:[#allocation2 + $0x78] sm:$0xff] %v197_v44  ;;  %687 = vst [vmem:[#allocation3 + $0xb8] sm:$0xf] %v13715_v39  ;;  %v15550_v63 = vld [vmem:[%s18380_s1 + $0x70] sm:$0xff]   ;;  %v15561_v2 = vld [vmem:[%s18380_s1 + $0x80] sm:$0xff]   ;;  %v13745_v4 = vpack.c.bf16 %v717_v58, %v717_v58  ;;  %v13668_v6 = vpack.c.bf16 %v260_v59, %v260_v59 }
  0x5e   :  { %1533 = vmatprep.subr.bf16.mxu0 %v16451_v1  ;;  %15030 = vmatpush3.bf16.msra.mxu1 %v15555_v13  ;;  %688 = vst [vmem:[#allocation3 + $0xcc] sm:$0xf] %v13716_v41  ;;  %689 = vst [vmem:[#allocation3 + $0xe0] sm:$0xf] %v13717_v42  ;;  %v261_v5 = vld [vmem:[#allocation2 + $0xe] sm:$0xff]  ;;  %v262_v7 = vld [vmem:[#allocation2 + $0x16] sm:$0xff] }
  0x5f   :  { %15031 = vmatprep.subr.bf16.mxu1 %v16450_v0  ;;  %236 = vst [vmem:[#allocation2 + $0x80] sm:$0xff] %v198_v47  ;;  %237 = vst [vmem:[#allocation2 + $0x88] sm:$0xff] %v199_v48  ;;  %v13669_v8 = vpack.c.bf16 %v261_v5, %v261_v5  ;;  %v264_v9 = vld [vmem:[#allocation2 + $0x26] sm:$0xff]  ;;  %v263_v15 = vld [vmem:[#allocation2 + $0x1e] sm:$0xff] }
  0x60   :  { %238 = vst [vmem:[#allocation2 + $0x90] sm:$0xff] %v200_v50  ;;  %690 = vst [vmem:[#allocation3 + $0xf4] sm:$0xf] %v13718_v45  ;;  %v719_v11 = vld [vmem:[#allocation2 + $0x22] sm:$0xff]  ;;  %v720_v16 = vld [vmem:[#allocation2 + $0x2a] sm:$0xff]  ;;  %v13671_v19 = vpack.c.bf16 %v263_v15, %v263_v15 }
  0x61   :  { %1534 = vmatpush1.bf16.msra.mxu0 %v15544_v10  ;;  %691 = vst [vmem:[#allocation3 + $0x108] sm:$0xf] %v13719_v46  ;;  %692 = vst [vmem:[#allocation3 + $0x11c] sm:$0xf] %v13720_v49  ;;  %v718_v10 = vld [vmem:[#allocation2 + $0x1a] sm:$0xff]  ;;  %v13747_v14 = vpack.c.bf16 %v719_v11, %v719_v11  ;;  %v13748_v20 = vpack.c.bf16 %v720_v16, %v720_v16  ;;  %v265_v22 = vld [vmem:[#allocation2 + $0x2e] sm:$0xff] }
  0x62   :  { %1535 = vmatprep.subr.bf16.mxu0 %v16451_v1  ;;  %15032 = vmatpush3.bf16.msra.mxu1 %v15557_v18  ;;  %239 = vst [vmem:[#allocation2 + $0x98] sm:$0xff] %v201_v52  ;;  %240 = vst [vmem:[#allocation2 + $0xa0] sm:$0xff] %v202_v55  ;;  %v13746_v13 = vpack.c.bf16 %v718_v10, %v718_v10  ;;  %v13672_v18 = vpack.c.bf16 %v264_v9, %v264_v9  ;;  %v722_v23 = vld [vmem:[#allocation2 + $0x3a] sm:$0xff]  ;;  %v723_v24 = vld [vmem:[#allocation2 + $0x42] sm:$0xff] }
  0x63   :  { %15033 = vmatprep.subr.bf16.mxu1 %v16450_v0  ;;  %241 = vst [vmem:[#allocation2 + $0xa8] sm:$0xff] %v203_v56  ;;  %693 = vst [vmem:[#allocation3 + $0x130] sm:$0xf] %v13721_v51  ;;  %v15552_v25 = vld [vmem:[%s18380_s1 + $0x68] sm:$0xff]   ;;  %v13673_v26 = vpack.c.bf16 %v265_v22, %v265_v22  ;;  %v13750_v27 = vpack.c.bf16 %v722_v23, %v722_v23  ;;  %v13751_v28 = vpack.c.bf16 %v723_v24, %v723_v24  ;;  %v266_v29 = vld [vmem:[#allocation2 + $0x36] sm:$0xff] }
  0x64   :  { %694 = vst [vmem:[#allocation3 + $0x144] sm:$0xf] %v13722_v53  ;;  %695 = vst [vmem:[#allocation3 + $0x158] sm:$0xf] %v13723_v54  ;;  %v267_v30 = vld [vmem:[#allocation2 + $0x3e] sm:$0xff]  ;;  %v724_v31 = vld [vmem:[#allocation2 + $0x4a] sm:$0xff]  ;;  %v13674_v32 = vpack.c.bf16 %v266_v29, %v266_v29 }
  0x65   :  { %1536 = vmatpush1.bf16.msra.mxu0 %v15545_v12  ;;  %v13670_v12 = vpack.c.bf16 %v262_v7, %v262_v7  ;;  %696 = vst [vmem:[#allocation3 + $0x16c] sm:$0xf] %v13724_v60  ;;  %697 = vst [vmem:[#allocation3 + $0x180] sm:$0xf] %v13725_v61  ;;  %v13675_v33 = vpack.c.bf16 %v267_v30, %v267_v30  ;;  %v725_v34 = vld [vmem:[#allocation2 + $0x52] sm:$0xff]  ;;  %v13752_v35 = vpack.c.bf16 %v724_v31, %v724_v31  ;;  %v268_v36 = vld [vmem:[#allocation2 + $0x46] sm:$0xff] }
  0x66   :  { %1537 = vmatprep.subr.bf16.mxu0 %v16451_v1  ;;  %698 = vst [vmem:[#allocation3 + $0x194] sm:$0xf] %v13726_v62  ;;  %15034 = vmatpush3.bf16.msra.mxu1 %v16709_v38  ;;  %906 = vst [vmem:[#allocation3 + $0x8] sm:$0xf] %v13744_v3  ;;  %v13753_v38 = vpack.c.bf16 %v725_v34, %v725_v34  ;;  %v13676_v39 = vpack.c.bf16 %v268_v36, %v268_v36  ;;  %v726_v41 = vld [vmem:[#allocation2 + $0x5a] sm:$0xff]  ;;  %v727_v42 = vld [vmem:[#allocation2 + $0x62] sm:$0xff] }
  0x67   :  { %907 = vst [vmem:[#allocation3 + $0x1c] sm:$0xf] %v13745_v4  ;;  %450 = vst [vmem:[#allocation3] sm:$0xf] %v13668_v6  ;;  %15035 = vmatprep.subr.bf16.mxu1 %v16450_v0  ;;  %v270_v43 = vld [vmem:[#allocation2 + $0x56] sm:$0xff]  ;;  %v13754_v44 = vpack.c.bf16 %v726_v41, %v726_v41  ;;  %v13755_v45 = vpack.c.bf16 %v727_v42, %v727_v42  ;;  %v271_v46 = vld [vmem:[#allocation2 + $0x5e] sm:$0xff] }
  0x68   :  { %451 = vst [vmem:[#allocation3 + $0x14] sm:$0xf] %v13669_v8  ;;  %452 = vst [vmem:[#allocation3 + $0x28] sm:$0xf] %v13670_v12  ;;  %v13678_v47 = vpack.c.bf16 %v270_v43, %v270_v43  ;;  %v728_v48 = vld [vmem:[#allocation2 + $0x6a] sm:$0xff]  ;;  %v729_v49 = vld [vmem:[#allocation2 + $0x72] sm:$0xff]  ;;  %v13679_v51 = vpack.c.bf16 %v271_v46, %v271_v46 }
  0x69   :  { %1538 = vmatpush1.bf16.msra.mxu0 %v15546_v17  ;;  %v721_v17 = vld [vmem:[#allocation2 + $0x32] sm:$0xff]  ;;  %908 = vst [vmem:[#allocation3 + $0x30] sm:$0xf] %v13746_v13  ;;  %909 = vst [vmem:[#allocation3 + $0x44] sm:$0xf] %v13747_v14  ;;  %v15554_v50 = vld [vmem:[%s18380_s1 + $0x60] sm:$0xff]   ;;  %v13756_v52 = vpack.c.bf16 %v728_v48, %v728_v48  ;;  %v13757_v53 = vpack.c.bf16 %v729_v49, %v729_v49 }
  0x6a   :  { %1539 = vmatprep.subr.bf16.mxu0 %v16451_v1  ;;  %v13749_v21 = vpack.c.bf16 %v721_v17, %v721_v17  ;;  %454 = vst [vmem:[#allocation3 + $0x50] sm:$0xf] %v13672_v18  ;;  %453 = vst [vmem:[#allocation3 + $0x3c] sm:$0xf] %v13671_v19  ;;  %15036 = vmatpush3.bf16.msra.mxu1 %v15561_v2  ;;  %v272_v54 = vld [vmem:[#allocation2 + $0x66] sm:$0xff]  ;;  %v273_v55 = vld [vmem:[#allocation2 + $0x6e] sm:$0xff] }
  0x6b   :  { %910 = vst [vmem:[#allocation3 + $0x58] sm:$0xf] %v13748_v20  ;;  %455 = vst [vmem:[#allocation3 + $0x64] sm:$0xf] %v13673_v26  ;;  %3195 = vmatprep.subr.bf16.mxu1 %v16451_v1  ;;  %v730_v56 = vld [vmem:[#allocation2 + $0x7a] sm:$0xff]  ;;  %v13680_v58 = vpack.c.bf16 %v272_v54, %v272_v54  ;;  %v13681_v59 = vpack.c.bf16 %v273_v55, %v273_v55  ;;  %v15558_v2 = vld [vmem:[%s18380_s1 + $0x50] sm:$0xff]  }
  0x6c   :  { %911 = vst [vmem:[#allocation3 + $0x6c] sm:$0xf] %v13749_v21  ;;  %912 = vst [vmem:[#allocation3 + $0x80] sm:$0xf] %v13750_v27  ;;  %v13758_v60 = vpack.c.bf16 %v730_v56, %v730_v56  ;;  %v15564_v61 = vld [vmem:[#allocation3 + $0x4] ss:$20 sps:$4 sm:$0xff]  }
  0x6d   :  { %1540 = vmatpush2.bf16.msra.mxu0 %v16704_v37  ;;  %v269_v37 = vld [vmem:[#allocation2 + $0x4e] sm:$0xff]  ;;  %913 = vst [vmem:[#allocation3 + $0x94] sm:$0xf] %v13751_v28  ;;  %456 = vst [vmem:[#allocation3 + $0x78] sm:$0xf] %v13674_v32  ;;  %1555 = vmatprep.mubr.bf16.mxu0 %v15564_v61  ;;  %v15556_v62 = vld [vmem:[%s18380_s1 + $0x58] sm:$0xff]  }
  0x6e   :  { %1541 = vmatprep.subr.bf16.mxu0 %v16451_v1  ;;  %v13677_v40 = vpack.c.bf16 %v269_v37, %v269_v37  ;;  %457 = vst [vmem:[#allocation3 + $0x8c] sm:$0xf] %v13675_v33  ;;  %914 = vst [vmem:[#allocation3 + $0xa8] sm:$0xf] %v13752_v35  ;;  %v15562_v57 = vld [vmem:[#allocation3 + $0x8] ss:$20 sps:$4 sm:$0xff]  }
  0x6f   :  { %915 = vst [vmem:[#allocation3 + $0xbc] sm:$0xf] %v13753_v38  ;;  %458 = vst [vmem:[#allocation3 + $0xa0] sm:$0xf] %v13676_v39  ;;  %15038 = vmatmul.mubr.bf16.vlgmr.msra.gmra.mxu1 %v15562_v57  ;;  %v15560_v3 = vld [vmem:[%s18380_s1 + $0x48] sm:$0xff]   ;;  %v15563_v5 = vld [vmem:[%s18380_s1 + $0x40] sm:$0xff]  }
  0x70   :  { %459 = vst [vmem:[#allocation3 + $0xb4] sm:$0xf] %v13677_v40  ;;  %916 = vst [vmem:[#allocation3 + $0xd0] sm:$0xf] %v13754_v44  ;;  %15041 = vmatprep.mubr.msk.bf16.mxu1 %vm16452_vm0, %v16450_v0  ;;  %v731_v6 = vld [vmem:[#allocation2 + $0x82] sm:$0xff]  ;;  %v274_v8 = vld [vmem:[#allocation2 + $0x76] sm:$0xff] }
  0x71   :  { %1542 = vmatpush2.bf16.msra.mxu0 %v15550_v63  ;;  %917 = vst [vmem:[#allocation3 + $0xe4] sm:$0xf] %v13755_v45  ;;  %460 = vst [vmem:[#allocation3 + $0xc8] sm:$0xf] %v13678_v47  ;;  %v15567_v63 = vld [vmem:[#allocation3 + $0x30] ss:$20 sps:$4 sm:$0xff]   ;;  %v13759_v7 = vpack.c.bf16 %v731_v6, %v731_v6  ;;  %v13682_v12 = vpack.c.bf16 %v274_v8, %v274_v8 }
  0x72   :  { %1543 = vmatprep.subr.bf16.mxu0 %v16451_v1  ;;  %461 = vst [vmem:[#allocation3 + $0xdc] sm:$0xf] %v13679_v51  ;;  %918 = vst [vmem:[#allocation3 + $0xf8] sm:$0xf] %v13756_v52  ;;  %v275_v9 = vld [vmem:[#allocation2 + $0x7e] sm:$0xff]  ;;  %v732_v10 = vld [vmem:[#allocation2 + $0x8a] sm:$0xff] }
  0x73   :  { %919 = vst [vmem:[#allocation3 + $0x10c] sm:$0xf] %v13757_v53  ;;  %462 = vst [vmem:[#allocation3 + $0xf0] sm:$0xf] %v13680_v58  ;;  %v15571_v4 = vld [vmem:[#allocation3 + $0x58] ss:$20 sps:$4 sm:$0xff]   ;;  %v13683_v13 = vpack.c.bf16 %v275_v9, %v275_v9  ;;  %v13760_v15 = vpack.c.bf16 %v732_v10, %v732_v10 }
  0x74   :  { %463 = vst [vmem:[#allocation3 + $0x104] sm:$0xf] %v13681_v59  ;;  %920 = vst [vmem:[#allocation3 + $0x120] sm:$0xf] %v13758_v60  ;;  %v15566_v11 = vld [vmem:[#allocation3] ss:$20 sps:$4 sm:$0xff]  }
  0x75   :  { %1544 = vmatpush2.bf16.msra.mxu0 %v15552_v25  ;;  %v733_v14 = vld [vmem:[#allocation2 + $0x92] sm:$0xff]  ;;  %v276_v16 = vld [vmem:[#allocation2 + $0x86] sm:$0xff]  ;;  %921 = vst [vmem:[#allocation3 + $0x134] sm:$0xf] %v13759_v7  ;;  %v734_v22 = vld [vmem:[#allocation2 + $0x9a] sm:$0xff] }
  0x76   :  { %1545 = vmatprep.subr.bf16.mxu0 %v16451_v1  ;;  %v277_v17 = vld [vmem:[#allocation2 + $0x8e] sm:$0xff]  ;;  %v13761_v19 = vpack.c.bf16 %v733_v14, %v733_v14  ;;  %v13684_v20 = vpack.c.bf16 %v276_v16, %v276_v16  ;;  %v735_v23 = vld [vmem:[#allocation2 + $0xa2] sm:$0xff]  ;;  %v278_v24 = vld [vmem:[#allocation2 + $0x96] sm:$0xff]  ;;  %464 = vst [vmem:[#allocation3 + $0x118] sm:$0xf] %v13682_v12  ;;  %v13762_v26 = vpack.c.bf16 %v734_v22, %v734_v22 }
  0x77   :  { %15042 = vmatmul.mubr.bf16.gmra.mxu1 %v15567_v63  ;;  %v15568_v18 = vld [vmem:[#allocation3 + $0x2c] ss:$20 sps:$4 sm:$0xff]   ;;  %v13685_v21 = vpack.c.bf16 %v277_v17, %v277_v17  ;;  %465 = vst [vmem:[#allocation3 + $0x12c] sm:$0xf] %v13683_v13  ;;  %922 = vst [vmem:[#allocation3 + $0x148] sm:$0xf] %v13760_v15  ;;  %v13763_v27 = vpack.c.bf16 %v735_v23, %v735_v23  ;;  %v13686_v29 = vpack.c.bf16 %v278_v24, %v278_v24 }
  0x78   :  { %15045 = vmatprep.mubr.msk.bf16.mxu1 %vm16452_vm0, %v16450_v0  ;;  %v15575_v25 = vld [vmem:[#allocation3 + $0x80] ss:$20 sps:$4 sm:$0xff]   ;;  %923 = vst [vmem:[#allocation3 + $0x15c] sm:$0xf] %v13761_v19  ;;  %466 = vst [vmem:[#allocation3 + $0x140] sm:$0xf] %v13684_v20 }
  0x79   :  { %1546 = vmatpush2.bf16.msra.mxu0 %v15554_v50  ;;  %v279_v28 = vld [vmem:[#allocation2 + $0x9e] sm:$0xff]  ;;  %v15602_v30 = vld [vmem:[#allocation4 + $0x38] sm:$0xff]   ;;  %467 = vst [vmem:[#allocation3 + $0x154] sm:$0xf] %v13685_v21  ;;  %924 = vst [vmem:[#allocation3 + $0x170] sm:$0xf] %v13762_v26 }
  0x7a   :  { %1547 = vmatprep.subr.bf16.mxu0 %v16451_v1  ;;  %v13687_v31 = vpack.c.bf16 %v279_v28, %v279_v28  ;;  %v15604_v32 = vld [vmem:[#allocation4 + $0xb8] sm:$0xff]   ;;  %925 = vst [vmem:[#allocation3 + $0x184] sm:$0xf] %v13763_v27  ;;  %468 = vst [vmem:[#allocation3 + $0x168] sm:$0xf] %v13686_v29  ;;  %3196 = vmatpush1.bf16.msra.mxu1 %v15602_v30  ;;  %v204_v33 = vld [vmem:[%s18381_s13 + $0xa8] sm:$0xff] }
  0x7b   :  { %v205_v34 = vld [vmem:[%s18381_s13 + $0xb0] sm:$0xff]  ;;  %v280_v35 = vld [vmem:[#allocation2 + $0xa6] sm:$0xff]  ;;  %242 = vst [vmem:[#allocation2 + $0xb0] sm:$0xff] %v204_v33  ;;  %v13727_v37 = vpack.c.bf16 %v204_v33, %v204_v33  ;;  %3197 = vmatprep.subr.bf16.mxu1 %v16451_v1  ;;  %v206_v40 = vld [vmem:[%s18381_s13 + $0xb8] sm:$0xff] }
  0x7c   :  { %469 = vst [vmem:[#allocation3 + $0x17c] sm:$0xf] %v13687_v31  ;;  %243 = vst [vmem:[#allocation2 + $0xb8] sm:$0xff] %v205_v34  ;;  %v13688_v36 = vpack.c.bf16 %v280_v35, %v280_v35  ;;  %v15609_v38 = vld [vmem:[#allocation4 + $0x30] sm:$0xff]   ;;  %v13728_v39 = vpack.c.bf16 %v205_v34, %v205_v34  ;;  %v207_v41 = vld [vmem:[%s18381_s13 + $0xc0] sm:$0xff]  ;;  %v13729_v42 = vpack.c.bf16 %v206_v40, %v206_v40 }
  0x7d   :  { %1548 = vmatpush2.bf16.msra.mxu0 %v15556_v62  ;;  %699 = vst [vmem:[#allocation3 + $0x1a8] sm:$0xf] %v13727_v37  ;;  %244 = vst [vmem:[#allocation2 + $0xc0] sm:$0xff] %v206_v40  ;;  %v208_v43 = vld [vmem:[%s18381_s13 + $0xc8] sm:$0xff]  ;;  %v13730_v44 = vpack.c.bf16 %v207_v41, %v207_v41  ;;  %v209_v45 = vld [vmem:[%s18381_s13 + $0xd0] sm:$0xff] }
  0x7e   :  { %1549 = vmatprep.subr.bf16.mxu0 %v16451_v1  ;;  %470 = vst [vmem:[#allocation3 + $0x190] sm:$0xf] %v13688_v36  ;;  %245 = vst [vmem:[#allocation2 + $0xc8] sm:$0xff] %v207_v41  ;;  %v13731_v46 = vpack.c.bf16 %v208_v43, %v208_v43  ;;  %3198 = vmatpush1.bf16.msra.mxu1 %v15609_v38  ;;  %v15614_v47 = vld [vmem:[#allocation4 + $0x28] sm:$0xff]   ;;  %v13732_v48 = vpack.c.bf16 %v209_v45, %v209_v45  ;;  %v15570_v49 = vld [vmem:[#allocation3 + $0x28] ss:$20 sps:$4 sm:$0xff]  }
  0x7f   :  { %15046 = vmatmul.mubr.bf16.gmra.mxu1 %v15571_v4  ;;  %700 = vst [vmem:[#allocation3 + $0x1bc] sm:$0xf] %v13728_v39  ;;  %246 = vst [vmem:[#allocation2 + $0xd0] sm:$0xff] %v208_v43  ;;  %3199 = vmatprep.subr.bf16.mxu1 %v16451_v1  ;;  %v15572_v50 = vld [vmem:[#allocation3 + $0x54] ss:$20 sps:$4 sm:$0xff]   ;;  %v210_v16 = vld [vmem:[%s18381_s13 + $0xd8] sm:$0xff] }
  0x80   :  { %15049 = vmatprep.mubr.msk.bf16.mxu1 %vm16452_vm0, %v16450_v0  ;;  %701 = vst [vmem:[#allocation3 + $0x1d0] sm:$0xf] %v13729_v42  ;;  %247 = vst [vmem:[#allocation2 + $0xd8] sm:$0xff] %v209_v45  ;;  %v15579_v51 = vld [vmem:[#allocation3 + $0xa8] ss:$20 sps:$4 sm:$0xff]   ;;  %v211_v17 = vld [vmem:[%s18381_s13 + $0xe0] sm:$0xff]  ;;  %v13733_v20 = vpack.c.bf16 %v210_v16, %v210_v16 }
  0x81   :  { %1550 = vmatpush2.bf16.msra.mxu0 %v15558_v2  ;;  %702 = vst [vmem:[#allocation3 + $0x1e4] sm:$0xf] %v13730_v44  ;;  %703 = vst [vmem:[#allocation3 + $0x1f8] sm:$0xf] %v13731_v46  ;;  %v15574_v55 = vld [vmem:[#allocation3 + $0x50] ss:$20 sps:$4 sm:$0xff]   ;;  %v13734_v21 = vpack.c.bf16 %v211_v17, %v211_v17 }
  0x82   :  { %1551 = vmatprep.subr.bf16.mxu0 %v16451_v1  ;;  %704 = vst [vmem:[#allocation3 + $0x20c] sm:$0xf] %v13732_v48  ;;  %3200 = vmatpush1.bf16.msra.mxu1 %v15614_v47  ;;  %v736_v52 = vld [vmem:[#allocation2 + $0xaa] sm:$0xff]  ;;  %248 = vst [vmem:[#allocation2 + $0xe0] sm:$0xff] %v210_v16  ;;  %v15629_v28 = vld [vmem:[#allocation4 + $0xa8] sm:$0xff]  }
  0x83   :  { %3201 = vmatprep.subr.bf16.mxu1 %v16451_v1  ;;  %v737_v53 = vld [vmem:[#allocation2 + $0xb2] sm:$0xff]  ;;  %v13764_v56 = vpack.c.bf16 %v736_v52, %v736_v52  ;;  %249 = vst [vmem:[#allocation2 + $0xe8] sm:$0xff] %v211_v17  ;;  %v212_v23 = vld [vmem:[%s18381_s13 + $0xe8] sm:$0xff]  ;;  %705 = vst [vmem:[#allocation3 + $0x220] sm:$0xf] %v13733_v20 }
  0x84   :  { %v281_v54 = vld [vmem:[#allocation2 + $0xae] sm:$0xff]  ;;  %v13765_v57 = vpack.c.bf16 %v737_v53, %v737_v53  ;;  %v738_v59 = vld [vmem:[#allocation2 + $0xba] sm:$0xff]  ;;  %250 = vst [vmem:[#allocation2 + $0xf0] sm:$0xff] %v212_v23  ;;  %v13735_v26 = vpack.c.bf16 %v212_v23, %v212_v23  ;;  %706 = vst [vmem:[#allocation3 + $0x234] sm:$0xf] %v13734_v21 }
  0x85   :  { %1552 = vmatpush2.bf16.msra.mxu0 %v15560_v3  ;;  %v13689_v58 = vpack.c.bf16 %v281_v54, %v281_v54  ;;  %v739_v60 = vld [vmem:[#allocation2 + $0xc2] sm:$0xff]  ;;  %v15576_v61 = vld [vmem:[#allocation3 + $0x7c] ss:$20 sps:$4 sm:$0xff]   ;;  %v13766_v62 = vpack.c.bf16 %v738_v59, %v738_v59  ;;  %926 = vst [vmem:[#allocation3 + $0x198] sm:$0xf] %v13764_v56 }
  0x86   :  { %1553 = vmatprep.subr.bf16.mxu0 %v16451_v1  ;;  %v13767_v63 = vpack.c.bf16 %v739_v60, %v739_v60  ;;  %v282_v2 = vld [vmem:[#allocation2 + $0xb6] sm:$0xff]  ;;  %v283_v3 = vld [vmem:[#allocation2 + $0xbe] sm:$0xff]  ;;  %v740_v4 = vld [vmem:[#allocation2 + $0xca] sm:$0xff]  ;;  %927 = vst [vmem:[#allocation3 + $0x1ac] sm:$0xf] %v13765_v57 }
  0x87   :  { %15050 = vmatmul.mubr.bf16.gmra.mxu1 %v15575_v25  ;;  %471 = vst [vmem:[#allocation3 + $0x1a4] sm:$0xf] %v13689_v58  ;;  %v13690_v6 = vpack.c.bf16 %v282_v2, %v282_v2  ;;  %v13691_v7 = vpack.c.bf16 %v283_v3, %v283_v3  ;;  %v741_v8 = vld [vmem:[#allocation2 + $0xd2] sm:$0xff]  ;;  %v13768_v9 = vpack.c.bf16 %v740_v4, %v740_v4  ;;  %928 = vst [vmem:[#allocation3 + $0x1c0] sm:$0xf] %v13766_v62  ;;  %v284_v12 = vld [vmem:[#allocation2 + $0xc6] sm:$0xff] }
  0x88   :  { %15053 = vmatprep.mubr.msk.bf16.mxu1 %vm16452_vm0, %v16450_v0  ;;  %929 = vst [vmem:[#allocation3 + $0x1d4] sm:$0xf] %v13767_v63  ;;  %v13769_v10 = vpack.c.bf16 %v741_v8, %v741_v8  ;;  %v285_v13 = vld [vmem:[#allocation2 + $0xce] sm:$0xff]  ;;  %v13692_v14 = vpack.c.bf16 %v284_v12, %v284_v12  ;;  %v286_v19 = vld [vmem:[#allocation2 + $0xd6] sm:$0xff]  ;;  %707 = vst [vmem:[#allocation3 + $0x248] sm:$0xf] %v13735_v26 }
  0x89   :  { %1554 = vmatpush2.bf16.msra.mxu0 %v15563_v5  ;;  %v15583_v5 = vld [vmem:[#allocation3 + $0xd0] ss:$20 sps:$4 sm:$0xff]   ;;  %472 = vst [vmem:[#allocation3 + $0x1b8] sm:$0xf] %v13690_v6  ;;  %473 = vst [vmem:[#allocation3 + $0x1cc] sm:$0xf] %v13691_v7  ;;  %v13693_v15 = vpack.c.bf16 %v285_v13, %v285_v13  ;;  %v13694_v22 = vpack.c.bf16 %v286_v19, %v286_v19 }
  0x8a   :  { %15113 = vmatprep.subr.bf16.mxu0 %v16450_v0  ;;  %930 = vst [vmem:[#allocation3 + $0x1e8] sm:$0xf] %v13768_v9  ;;  %931 = vst [vmem:[#allocation3 + $0x1fc] sm:$0xf] %v13769_v10  ;;  %v213_v24 = vld [vmem:[%s18381_s13 + $0xf0] sm:$0xff]  ;;  %v214_v29 = vld [vmem:[%s18381_s13 + $0xf8] sm:$0xff] }
  0x8b   :  { %474 = vst [vmem:[#allocation3 + $0x1e0] sm:$0xf] %v13692_v14  ;;  %475 = vst [vmem:[#allocation3 + $0x1f4] sm:$0xf] %v13693_v15  ;;  %v15626_v25 = vld [vmem:[#allocation4 + $0x18] sm:$0xff]   ;;  %v13736_v27 = vpack.c.bf16 %v213_v24, %v213_v24  ;;  %v16825_v30 = vld [vmem:[#allocation2 + $0x138] sm:$0xff] }
  0x8c   :  { %1556 = vmatmul.mubr.bf16.vlgmr.msra.gmra.mxu0 %v15566_v11  ;;  %v15616_v11 = vld [vmem:[#allocation4 + $0xb0] sm:$0xff]   ;;  %251 = vst [vmem:[#allocation2 + $0xf8] sm:$0xff] %v213_v24  ;;  %476 = vst [vmem:[#allocation3 + $0x208] sm:$0xf] %v13694_v22  ;;  %v742_v34 = vld [vmem:[#allocation2 + $0xda] sm:$0xff] }
  0x8d   :  { %1563 = vmatprep.mubr.bf16.mxu0 %v15568_v18  ;;  %15114 = vmatpush3.bf16.msra.mxu0 %v15604_v32  ;;  %v15621_v18 = vld [vmem:[#allocation4 + $0x20] sm:$0xff]   ;;  %252 = vst [vmem:[#allocation2 + $0x100] sm:$0xff] %v214_v29  ;;  %708 = vst [vmem:[#allocation3 + $0x25c] sm:$0xf] %v13736_v27  ;;  %v15582_v35 = vld [vmem:[#allocation3 + $0xa0] ss:$20 sps:$4 sm:$0xff]   ;;  %v13770_v37 = vpack.c.bf16 %v742_v34, %v742_v34 }
  0x8e   :  { %15115 = vmatprep.subr.bf16.mxu0 %v16450_v0  ;;  %3202 = vmatpush1.bf16.msra.mxu1 %v15621_v18  ;;  %v15578_v31 = vld [vmem:[#allocation3 + $0x78] ss:$20 sps:$4 sm:$0xff]   ;;  %v743_v36 = vld [vmem:[#allocation2 + $0xe2] sm:$0xff]  ;;  %v15592_v19 = vld [vmem:[#allocation3 + $0x11c] ss:$20 sps:$4 sm:$0xff]  }
  0x8f   :  { %15054 = vmatmul.mubr.bf16.gmra.mxu1 %v15579_v51  ;;  %3203 = vmatprep.subr.bf16.mxu1 %v16451_v1  ;;  %v15580_v32 = vld [vmem:[#allocation3 + $0xa4] ss:$20 sps:$4 sm:$0xff]   ;;  %v15584_v39 = vld [vmem:[#allocation3 + $0xcc] ss:$20 sps:$4 sm:$0xff]   ;;  %v13771_v40 = vpack.c.bf16 %v743_v36, %v743_v36  ;;  %932 = vst [vmem:[#allocation3 + $0x210] sm:$0xf] %v13770_v37 }
  0x90   :  { %15057 = vmatprep.mubr.msk.bf16.mxu1 %vm16452_vm0, %v16450_v0  ;;  %v15587_v33 = vld [vmem:[#allocation3 + $0xf8] ss:$20 sps:$4 sm:$0xff]   ;;  %v287_v38 = vld [vmem:[#allocation2 + $0xde] sm:$0xff]  ;;  %v220_v9 = vld [vmem:[%s18381_s13 + $0x128] sm:$0xf] }
  0x91   :  { %15116 = vmatpush3.bf16.msra.mxu0 %v15616_v11  ;;  %v13695_v41 = vpack.c.bf16 %v287_v38, %v287_v38  ;;  %v744_v42 = vld [vmem:[#allocation2 + $0xea] sm:$0xff]  ;;  %v15591_v45 = vld [vmem:[#allocation3 + $0x120] ss:$20 sps:$4 sm:$0xff]   ;;  %933 = vst [vmem:[#allocation3 + $0x224] sm:$0xf] %v13771_v40  ;;  %v15641_v3 = vld [vmem:[#allocation4 + $0xa0] sm:$0xff]  }
  0x92   :  { %15117 = vmatprep.subr.bf16.mxu0 %v16450_v0  ;;  %v13737_v0 = vpack.c.bf16 %v214_v29, %v214_v29  ;;  %3204 = vmatpush1.bf16.msra.mxu1 %v15626_v25  ;;  %v288_v44 = vld [vmem:[#allocation2 + $0xe6] sm:$0xff]  ;;  %v13772_v46 = vpack.c.bf16 %v744_v42, %v744_v42  ;;  %v289_v48 = vld [vmem:[#allocation2 + $0xee] sm:$0xff]  ;;  %v218_v4 = vld [vmem:[%s18381_s13 + $0x118] sm:$0xff]  ;;  %258 = vst [vmem:[#allocation2 + $0x130] sm:$0xf] %v220_v9 }
  0x93   :  { %3205 = vmatprep.subr.bf16.mxu1 %v16451_v1  ;;  %v745_v43 = vld [vmem:[#allocation2 + $0xf2] sm:$0xff]  ;;  %477 = vst [vmem:[#allocation3 + $0x21c] sm:$0xf] %v13695_v41  ;;  %v13697_v52 = vpack.c.bf16 %v289_v48, %v289_v48  ;;  %v15634_v59 = vld [vmem:[#allocation4 + $0x10] sm:$0xff]   ;;  %v15640_v63 = vld [vmem:[#allocation4 + $0x8] sm:$0xff]   ;;  %v13741_v7 = vpack.c.bf16 %v218_v4, %v218_v4 }
  0x94   :  { %1564 = vmatmul.mubr.bf16.gmra.mxu0 %v15570_v49  ;;  %709 = vst [vmem:[#allocation3 + $0x270] sm:$0xf] %v13737_v0  ;;  %v13773_v47 = vpack.c.bf16 %v745_v43, %v745_v43  ;;  %v13696_v49 = vpack.c.bf16 %v288_v44, %v288_v44  ;;  %v746_v51 = vld [vmem:[#allocation2 + $0xfa] sm:$0xff]  ;;  %934 = vst [vmem:[#allocation3 + $0x238] sm:$0xf] %v13772_v46  ;;  %v216_v60 = vld [vmem:[%s18381_s13 + $0x108] sm:$0xff] }
  0x95   :  { %1571 = vmatprep.mubr.bf16.mxu0 %v15572_v50  ;;  %15118 = vmatpush3.bf16.msra.mxu0 %v15629_v28  ;;  %v215_v50 = vld [vmem:[%s18381_s13 + $0x100] sm:$0xff]  ;;  %v13774_v53 = vpack.c.bf16 %v746_v51, %v746_v51  ;;  %v290_v54 = vld [vmem:[#allocation2 + $0xf6] sm:$0xff]  ;;  %479 = vst [vmem:[#allocation3 + $0x244] sm:$0xf] %v13697_v52  ;;  %254 = vst [vmem:[#allocation2 + $0x110] sm:$0xff] %v216_v60  ;;  %v13739_v62 = vpack.c.bf16 %v216_v60, %v216_v60 }
  0x96   :  { %15119 = vmatprep.subr.bf16.mxu0 %v16825_v30  ;;  %253 = vst [vmem:[#allocation2 + $0x108] sm:$0xff] %v215_v50  ;;  %v13738_v56 = vpack.c.bf16 %v215_v50, %v215_v50  ;;  %935 = vst [vmem:[#allocation3 + $0x24c] sm:$0xf] %v13773_v47  ;;  %v13698_v57 = vpack.c.bf16 %v290_v54, %v290_v54  ;;  %3206 = vmatpush1.bf16.msra.mxu1 %v15634_v59  ;;  %v15586_v6 = vld [vmem:[#allocation3 + $0xc8] ss:$20 sps:$4 sm:$0xff]   ;;  %v15651_v43 = vld [vmem:[#allocation4 + $0x78] sm:$0xff]  }
  0x97   :  { %15058 = vmatmul.mubr.bf16.gmra.mxu1 %v15583_v5  ;;  %478 = vst [vmem:[#allocation3 + $0x230] sm:$0xf] %v13696_v49  ;;  %936 = vst [vmem:[#allocation3 + $0x260] sm:$0xf] %v13774_v53  ;;  %3207 = vmatprep.subr.bf16.mxu1 %v16451_v1  ;;  %v219_v5 = vld [vmem:[%s18381_s13 + $0x120] sm:$0xff]  ;;  %v15646_v10 = vld [vmem:[#allocation4] sm:$0xff]  }
  0x98   :  { %15061 = vmatprep.mubr.msk.bf16.mxu1 %vm16452_vm0, %v16825_v30  ;;  %710 = vst [vmem:[#allocation3 + $0x284] sm:$0xf] %v13738_v56  ;;  %480 = vst [vmem:[#allocation3 + $0x258] sm:$0xf] %v13698_v57  ;;  %v13742_v8 = vpack.c.bf16 %v219_v5, %v219_v5  ;;  %v15588_v11 = vld [vmem:[#allocation3 + $0xf4] ss:$20 sps:$4 sm:$0xff]  }
  0x99   :  { %711 = vst [vmem:[#allocation3 + $0x298] sm:$0xf] %v13739_v62  ;;  %256 = vst [vmem:[#allocation2 + $0x120] sm:$0xff] %v218_v4  ;;  %15120 = vmatpush3.bf16.msra.mxu0 %v15641_v3  ;;  %v15595_v12 = vld [vmem:[#allocation3 + $0x148] ss:$20 sps:$4 sm:$0xff]   ;;  %v15654_v49 = vld [vmem:[#allocation4 + $0x68] sm:$0xff]  }
  0x9a   :  { %257 = vst [vmem:[#allocation2 + $0x128] sm:$0xff] %v219_v5  ;;  %3208 = vmatpush1.bf16.msra.mxu1 %v15640_v63  ;;  %713 = vst [vmem:[#allocation3 + $0x2c0] sm:$0xf] %v13741_v7  ;;  %15121 = vmatprep.subr.bf16.mxu0 %v16825_v30  ;;  %v15590_v15 = vld [vmem:[#allocation3 + $0xf0] ss:$20 sps:$4 sm:$0xff]   ;;  %v15653_v46 = vld [vmem:[#allocation4 + $0x70] sm:$0xff]  }
  0x9b   :  { %714 = vst [vmem:[#allocation3 + $0x2d4] sm:$0xf] %v13742_v8  ;;  %3209 = vmatprep.subr.bf16.mxu1 %v16451_v1  ;;  %v15599_v26 = vld [vmem:[#allocation3 + $0x170] ss:$20 sps:$4 sm:$0xff]   ;;  %v15594_v47 = vld [vmem:[#allocation3 + $0x118] ss:$20 sps:$4 sm:$0xff]  }
  0x9c   :  { %1572 = vmatmul.mubr.bf16.gmra.mxu0 %v15574_v55  ;;  %v291_v55 = vld [vmem:[#allocation2 + $0xfe] sm:$0xff]  ;;  %v525_v42 = vld [vmem:[#allocation2 + $0x130] sm:$0xf]  ;;  %v15655_v48 = vld [vmem:[#allocation4 + $0x90] sm:$0xff]  }
  0x9d   :  { %1579 = vmatprep.mubr.bf16.mxu0 %v15576_v61  ;;  %v13699_v58 = vpack.c.bf16 %v291_v55, %v291_v55  ;;  %v217_v61 = vld [vmem:[%s18381_s13 + $0x110] sm:$0xff]  ;;  %v747_v13 = vld [vmem:[#allocation2 + $0x102] sm:$0xff]  ;;  %v13743_v44 = vpack.c.bf16 %v525_v42, %v525_v42  ;;  %v15605_v51 = vld [vmem:[#allocation3 + $0x198] ss:$20 sps:$4 sm:$0xff]  }
  0x9e   :  { %255 = vst [vmem:[#allocation2 + $0x118] sm:$0xff] %v217_v61  ;;  %v13740_v2 = vpack.c.bf16 %v217_v61, %v217_v61  ;;  %3210 = vmatpush1.bf16.msra.mxu1 %v15646_v10  ;;  %v13775_v14 = vpack.c.bf16 %v747_v13, %v747_v13  ;;  %v748_v16 = vld [vmem:[#allocation2 + $0x10a] sm:$0xff]  ;;  %v15596_v50 = vld [vmem:[#allocation3 + $0x144] ss:$20 sps:$4 sm:$0xff]   ;;  %v15598_v52 = vld [vmem:[#allocation3 + $0x140] ss:$20 sps:$4 sm:$0xff]  }
  0x9f   :  { %15062 = vmatmul.mubr.bf16.gmra.mxu1 %v15587_v33  ;;  %481 = vst [vmem:[#allocation3 + $0x26c] sm:$0xf] %v13699_v58  ;;  %3211 = vmatprep.subr.bf16.mxu1 %v16451_v1  ;;  %v292_v18 = vld [vmem:[#allocation2 + $0x106] sm:$0xff]  ;;  %v13776_v20 = vpack.c.bf16 %v748_v16, %v748_v16  ;;  %v293_v22 = vld [vmem:[#allocation2 + $0x10e] sm:$0xff]  ;;  %715 = vst [vmem:[#allocation3 + $0x2e8] sm:$0x3] %v13743_v44 }
  0xa0   :  { %15065 = vmatprep.mubr.msk.bf16.mxu1 %vm16452_vm0, %v16825_v30  ;;  %712 = vst [vmem:[#allocation3 + $0x2ac] sm:$0xf] %v13740_v2  ;;  %937 = vst [vmem:[#allocation3 + $0x274] sm:$0xf] %v13775_v14  ;;  %v13700_v23 = vpack.c.bf16 %v292_v18, %v292_v18  ;;  %v13701_v27 = vpack.c.bf16 %v293_v22, %v293_v22  ;;  %v15656_v53 = vld [vmem:[#allocation4 + $0x60] sm:$0xff]   ;;  %v15657_v55 = vld [vmem:[#allocation4 + $0x58] sm:$0xff]  }
  0xa1   :  { %v751_v25 = vld [vmem:[#allocation2 + $0x122] sm:$0xff]  ;;  %938 = vst [vmem:[#allocation3 + $0x288] sm:$0xf] %v13776_v20  ;;  %v297_v38 = vld [vmem:[#allocation2 + $0x12e] sm:$0xf]  ;;  %v15661_v7 = vld [vmem:[#allocation4 + $0x80] sm:$0xff]  }
  0xa2   :  { %v13779_v29 = vpack.c.bf16 %v751_v25, %v751_v25  ;;  %482 = vst [vmem:[#allocation3 + $0x280] sm:$0xf] %v13700_v23  ;;  %v296_v37 = vld [vmem:[#allocation2 + $0x126] sm:$0xff]  ;;  %483 = vst [vmem:[#allocation3 + $0x294] sm:$0xf] %v13701_v27  ;;  %v13705_v41 = vpack.c.bf16 %v297_v38, %v297_v38  ;;  %3212 = vmatpush2.bf16.msra.mxu1 %v15651_v43  ;;  %v15662_v8 = vld [vmem:[#allocation4 + $0x40] sm:$0xff]  }
  0xa3   :  { %v13704_v40 = vpack.c.bf16 %v296_v37, %v296_v37  ;;  %3213 = vmatprep.subr.bf16.mxu1 %v16451_v1  ;;  %v15600_v54 = vld [vmem:[#allocation3 + $0x16c] ss:$20 sps:$4 sm:$0xff]   ;;  %v15603_v58 = vld [vmem:[#allocation3 + $0x168] ss:$20 sps:$4 sm:$0xff]   ;;  %v15608_v61 = vld [vmem:[#allocation3 + $0x190] ss:$20 sps:$4 sm:$0xff]  }
  0xa4   :  { %1580 = vmatmul.mubr.bf16.gmra.mxu0 %v15578_v31  ;;  %941 = vst [vmem:[#allocation3 + $0x2c4] sm:$0xf] %v13779_v29  ;;  %487 = vst [vmem:[#allocation3 + $0x2e4] sm:$0x3] %v13705_v41  ;;  %v15610_v56 = vld [vmem:[#allocation3 + $0x1c0] ss:$20 sps:$4 sm:$0xff]  }
  0xa5   :  { %1587 = vmatprep.mubr.bf16.mxu0 %v15580_v32  ;;  %v749_v17 = vld [vmem:[#allocation2 + $0x112] sm:$0xff]  ;;  %v750_v24 = vld [vmem:[#allocation2 + $0x11a] sm:$0xff]  ;;  %v752_v32 = vld [vmem:[#allocation2 + $0x12a] sm:$0xff]  ;;  %486 = vst [vmem:[#allocation3 + $0x2d0] sm:$0xf] %v13704_v40 }
  0xa6   :  { %v13777_v21 = vpack.c.bf16 %v749_v17, %v749_v17  ;;  %v13778_v28 = vpack.c.bf16 %v750_v24, %v750_v24  ;;  %v294_v0 = vld [vmem:[#allocation2 + $0x116] sm:$0xff]  ;;  %v295_v31 = vld [vmem:[#allocation2 + $0x11e] sm:$0xff]  ;;  %v13780_v36 = vpack.c.bf16 %v752_v32, %v752_v32  ;;  %3214 = vmatpush2.bf16.msra.mxu1 %v15653_v46  ;;  %v15659_v2 = vld [vmem:[#allocation4 + $0x50] sm:$0xff]  }
  0xa7   :  { %15066 = vmatmul.mubr.bf16.gmra.mxu1 %v15591_v45  ;;  %v13702_v33 = vpack.c.bf16 %v294_v0, %v294_v0  ;;  %v13703_v34 = vpack.c.bf16 %v295_v31, %v295_v31  ;;  %v15652_v45 = vld [vmem:[#allocation4 + $0x98] sm:$0xff]   ;;  %3215 = vmatprep.subr.bf16.mxu1 %v16451_v1  ;;  %v15658_v57 = vld [vmem:[#allocation4 + $0x88] sm:$0xff]   ;;  %v15615_v60 = vld [vmem:[#allocation3 + $0x1e8] ss:$20 sps:$4 sm:$0xff]  }
  0xa8   :  { %15069 = vmatprep.mubr.msk.bf16.mxu1 %vm16452_vm0, %v16825_v30  ;;  %939 = vst [vmem:[#allocation3 + $0x29c] sm:$0xf] %v13777_v21  ;;  %940 = vst [vmem:[#allocation3 + $0x2b0] sm:$0xf] %v13778_v28  ;;  %15122 = vmatpush3.bf16.msra.mxu0 %v15652_v45  ;;  %v15606_v59 = vld [vmem:[#allocation3 + $0x194] ss:$20 sps:$4 sm:$0xff]  }
  0xa9   :  { %484 = vst [vmem:[#allocation3 + $0x2a8] sm:$0xf] %v13702_v33  ;;  %485 = vst [vmem:[#allocation3 + $0x2bc] sm:$0xf] %v13703_v34  ;;  %15123 = vmatprep.subr.bf16.mxu0 %v16825_v30  ;;  %v15611_v62 = vld [vmem:[#allocation3 + $0x1bc] ss:$20 sps:$4 sm:$0xff]  }
  0xaa   :  { %942 = vst [vmem:[#allocation3 + $0x2d8] sm:$0xf] %v13780_v36  ;;  %3216 = vmatpush2.bf16.msra.mxu1 %v15654_v49  ;;  %v15620_v63 = vld [vmem:[#allocation3 + $0x210] ss:$20 sps:$4 sm:$0xff]   ;;  %v15613_v3 = vld [vmem:[#allocation3 + $0x1b8] ss:$20 sps:$4 sm:$0xff]  }
  0xab   :  { %3217 = vmatprep.subr.bf16.mxu1 %v16451_v1  ;;  %v15617_v4 = vld [vmem:[#allocation3 + $0x1e4] ss:$20 sps:$4 sm:$0xff]   ;;  %v15619_v9 = vld [vmem:[#allocation3 + $0x1e0] ss:$20 sps:$4 sm:$0xff]   ;;  %v15632_v16 = vld [vmem:[#allocation3 + $0x25c] ss:$20 sps:$4 sm:$0xff]  }
  0xac   :  { %1588 = vmatmul.mubr.bf16.gmra.mxu0 %v15582_v35  ;;  %v753_v35 = vld [vmem:[#allocation2 + $0x132] sm:$0xf]  ;;  %v15625_v5 = vld [vmem:[#allocation3 + $0x238] ss:$20 sps:$4 sm:$0xff]   ;;  %v16897_v36 = vld [vmem:[%s18382_s25] ss:$0 sm:$0xff] }
  0xad   :  { %1595 = vmatprep.mubr.bf16.mxu0 %v15584_v39  ;;  %v13781_v39 = vpack.c.bf16 %v753_v35, %v753_v35  ;;  %1931 = vst [vmem:[#allocation2 + $0x134] sm:$0x3] %v16825_v30  ;;  %15124 = vmatpush3.bf16.msra.mxu0 %v15655_v48  ;;  %v15622_v10 = vld [vmem:[#allocation3 + $0x20c] ss:$20 sps:$4 sm:$0xff]   ;;  %v15627_v13 = vld [vmem:[#allocation3 + $0x234] ss:$20 sps:$4 sm:$0xff]  }
  0xae   :  { %15125 = vmatprep.subr.bf16.mxu0 %v16825_v30  ;;  %3218 = vmatpush2.bf16.msra.mxu1 %v15656_v53  ;;  %v15635_v18 = vld [vmem:[#allocation3 + $0x258] ss:$20 sps:$4 sm:$0xff]   ;;  %v15639_v21 = vld [vmem:[#allocation3 + $0x280] ss:$20 sps:$4 sm:$0xff]  }
  0xaf   :  { %15070 = vmatmul.mubr.bf16.gmra.mxu1 %v15595_v12  ;;  %943 = vst [vmem:[#allocation3 + $0x2ec] sm:$0x3] %v13781_v39  ;;  %3219 = vmatprep.subr.bf16.mxu1 %v16451_v1  ;;  %v15624_v12 = vld [vmem:[#allocation3 + $0x208] ss:$20 sps:$4 sm:$0xff]   ;;  %v15642_v17 = vld [vmem:[#allocation3 + $0x2b0] ss:$20 sps:$4 sm:$0xff]  }
  0xb0   :  { %15073 = vmatprep.mubr.msk.bf16.mxu1 %vm16452_vm0, %v16825_v30  ;;  %v15636_v14 = vld [vmem:[#allocation3 + $0x288] ss:$20 sps:$4 sm:$0xff]   ;;  %v15643_v22 = vld [vmem:[#allocation3 + $0x2ac] ss:$20 sps:$4 sm:$0xff]  }
  0xb1   :  { %15126 = vmatpush3.bf16.msra.mxu0 %v15658_v57  ;;  %v15645_v23 = vld [vmem:[#allocation3 + $0x2a8] ss:$20 sps:$4 sm:$0xff]   ;;  %v15650_v25 = vld [vmem:[#allocation3 + $0x2d0] ss:$20 sps:$4 sm:$0x3f]  }
  0xb2   :  { %3220 = vmatpush2.bf16.msra.mxu1 %v15657_v55  ;;  %15127 = vmatprep.subr.bf16.mxu0 %v16825_v30  ;;  %v15648_v24 = vld [vmem:[#allocation3 + $0x2d4] ss:$20 sps:$4 sm:$0x3f]  }
  0xb3   :  { %3221 = vmatprep.subr.bf16.mxu1 %v16451_v1 }
  0xb4   :  { %1596 = vmatmul.mubr.bf16.gmra.mxu0 %v15586_v6  ;;  %v15660_v6 = vld [vmem:[#allocation4 + $0x48] sm:$0xff]  }
  0xb5   :  { %1603 = vmatprep.mubr.bf16.mxu0 %v15588_v11  ;;  %15128 = vmatpush3.bf16.msra.mxu0 %v15661_v7  ;;  %v15631_v11 = vld [vmem:[#allocation3 + $0x260] ss:$20 sps:$4 sm:$0xff]  }
  0xb6   :  { %3222 = vmatpush2.bf16.msra.mxu1 %v15659_v2  ;;  %5857 = vmatprep.subr.bf16.mxu0 %v16451_v1  ;;  %v15647_v20 = vld [vmem:[#allocation3 + $0x2d8] ss:$20 sps:$4 sm:$0x3f]  }
  0xb7   :  { %15074 = vmatmul.mubr.bf16.gmra.mxu1 %v15599_v26  ;;  %3223 = vmatprep.subr.bf16.mxu1 %v16451_v1  ;;  %v16890_v26 = vld [vmem:[#allocation2 + $0x138] sm:$0xff] }
  0xb8   :  { %15077 = vmatprep.mubr.msk.bf16.mxu1 %vm16452_vm0, %v16825_v30 }
  0xba   :  { %3224 = vmatpush2.bf16.msra.mxu1 %v15660_v6 }
  0xbb   :  { %3225 = vmatprep.subr.bf16.mxu1 %v16451_v1 }
  0xbc   :  { %1604 = vmatmul.mubr.bf16.gmra.mxu0 %v15590_v15  ;;  %v15630_v15 = vld [vmem:[#allocation3 + $0x230] ss:$20 sps:$4 sm:$0xff]  }
  0xbd   :  { %1611 = vmatprep.mubr.bf16.mxu0 %v15592_v19  ;;  %v15637_v19 = vld [vmem:[#allocation3 + $0x284] ss:$20 sps:$4 sm:$0xff]  }
  0xbe   :  { %3226 = vmatpush2.bf16.msra.mxu1 %v15662_v8 }
  0xbf   :  { %15078 = vmatmul.mubr.bf16.gmra.mxu1 %v15605_v51  ;;  %5672 = vmatprep.subr.bf16.mxu1 %v16451_v1 }
  0xc0   :  { %15081 = vmatprep.mubr.msk.bf16.mxu1 %vm16452_vm0, %v16825_v30 }
  0xc4   :  { %1612 = vmatmul.mubr.bf16.gmra.mxu0 %v15594_v47 }
  0xc5   :  { %1619 = vmatprep.mubr.bf16.mxu0 %v15596_v50 }
  0xc7   :  { %15082 = vmatmul.mubr.bf16.gmra.mxu1 %v15610_v56 }
  0xc8   :  { %15085 = vmatprep.mubr.msk.bf16.mxu1 %vm16452_vm0, %v16825_v30 }
  0xcc   :  { %1620 = vmatmul.mubr.bf16.gmra.mxu0 %v15598_v52 }
  0xcd   :  { %1627 = vmatprep.mubr.bf16.mxu0 %v15600_v54 }
  0xcf   :  { %15086 = vmatmul.mubr.bf16.gmra.mxu1 %v15615_v60 }
  0xd0   :  { %15089 = vmatprep.mubr.msk.bf16.mxu1 %vm16452_vm0, %v16825_v30 }
  0xd4   :  { %1628 = vmatmul.mubr.bf16.gmra.mxu0 %v15603_v58 }
  0xd5   :  { %1635 = vmatprep.mubr.bf16.mxu0 %v15606_v59 }
  0xd7   :  { %15090 = vmatmul.mubr.bf16.gmra.mxu1 %v15620_v63 }
  0xd8   :  { %15093 = vmatprep.mubr.msk.bf16.mxu1 %vm16452_vm0, %v16825_v30 }
  0xdc   :  { %1636 = vmatmul.mubr.bf16.gmra.mxu0 %v15608_v61 }
  0xdd   :  { %1643 = vmatprep.mubr.bf16.mxu0 %v15611_v62 }
  0xdf   :  { %15094 = vmatmul.mubr.bf16.gmra.mxu1 %v15625_v5 }
  0xe0   :  { %15097 = vmatprep.mubr.msk.bf16.mxu1 %vm16452_vm0, %v16825_v30 }
  0xe4   :  { %1644 = vmatmul.mubr.bf16.gmra.mxu0 %v15613_v3 }
  0xe5   :  { %1651 = vmatprep.mubr.bf16.mxu0 %v15617_v4 }
  0xe7   :  { %15098 = vmatmul.mubr.bf16.gmra.mxu1 %v15631_v11 }
  0xe8   :  { %15101 = vmatprep.mubr.msk.bf16.mxu1 %vm16452_vm0, %v16825_v30 }
  0xec   :  { %1652 = vmatmul.mubr.bf16.gmra.mxu0 %v15619_v9 }
  0xed   :  { %1659 = vmatprep.mubr.bf16.mxu0 %v15622_v10 }
  0xef   :  { %15102 = vmatmul.mubr.bf16.gmra.mxu1 %v15636_v14 }
  0xf0   :  { %15105 = vmatprep.mubr.msk.bf16.mxu1 %vm16452_vm0, %v16825_v30 }
  0xf4   :  { %1660 = vmatmul.mubr.bf16.gmra.mxu0 %v15624_v12 }
  0xf5   :  { %1667 = vmatprep.mubr.bf16.mxu0 %v15627_v13 }
  0xf7   :  { %15106 = vmatmul.mubr.bf16.gmra.mxu1 %v15642_v17 }
  0xf8   :  { %15109 = vmatprep.mubr.msk.bf16.mxu1 %vm16452_vm0, %v16825_v30 }
  0xfc   :  { %1668 = vmatmul.mubr.bf16.gmra.mxu0 %v15630_v15 }
  0xfd   :  { %1675 = vmatprep.mubr.bf16.mxu0 %v15632_v16 }
  0xff   :  { %15110 = vmatmul.mubr.bf16.gmra.mxu1 %v15647_v20 }
 0x104   :  { %1676 = vmatmul.mubr.bf16.gmra.mxu0 %v15635_v18 }
 0x105   :  { %1683 = vmatprep.mubr.bf16.mxu0 %v15637_v19 }
 0x10c   :  { %1684 = vmatmul.mubr.bf16.gmra.mxu0 %v15639_v21 }
 0x10d   :  { %1691 = vmatprep.mubr.bf16.mxu0 %v15643_v22 }
 0x114   :  { %1692 = vmatmul.mubr.bf16.gmra.mxu0 %v15645_v23 }
 0x115   :  { %1699 = vmatprep.mubr.bf16.mxu0 %v15648_v24 }
 0x11c   :  { %1700 = vmatmul.mubr.bf16.gmra.mxu0 %v15650_v25 }
 0x11d   :  { %15129 = vmatprep.mubr.msk.bf16.mxu0 %vm16452_vm0, %v16890_v26 }
 0x12f   :  { %v1742_v30 = vpop.f32.mrf.mxu1 }
 0x131   :  { %v15039_v27 = vpop.f32.mrf.mxu1 }
 0x133   :  { %v1745_v28 = vpop.f32.mrf.mxu1 }
 0x135   :  { %v15040_v29 = vpop.f32.mrf.mxu1 }
 0x137   :  { %v1750_v0 = vpop.f32.mrf.mxu1 }
 0x139   :  { %v15043_v31 = vpop.f32.mrf.mxu1 }
 0x13b   :  { %v1753_v32 = vpop.f32.mrf.mxu1 }
 0x13d   :  { %v15044_v33 = vpop.f32.mrf.mxu1 }
 0x13f   :  { %v1758_v34 = vpop.f32.mrf.mxu1 }
 0x141   :  { %v15047_v35 = vpop.f32.mrf.mxu1 }
 0x142   :  { %v15701_v35 = vld [vmem:[%s18383_s28 + $0x38] sm:$0xff]  }
 0x143   :  { %v16899_v37 = vpop.f32.mrf.mxu1 }
 0x145   :  { %v15048_v39 = vpop.f32.mrf.mxu1 }
 0x147   :  { %v16902_v42 = vpop.f32.mrf.mxu1 }
 0x149   :  { %v15051_v45 = vpop.f32.mrf.mxu1 }
 0x14b   :  { %v16905_v49 = vpop.f32.mrf.mxu1 }
 0x14c   :  { %v1557_v38 = vpop.f32.mrf.mxu0 }
 0x14d   :  { %v1558_v40 = vadd.f32 %v16897_v36, %v1557_v38  ;;  %v15052_v52 = vpop.f32.mrf.mxu1 }
 0x14e   :  { %v1559_v41 = vpop.f32.mrf.mxu0  ;;  %v15707_v52 = vld [vmem:[%s18383_s28 + $0x30] sm:$0xff]  }
 0x14f   :  { %v1743_v43 = vadd.f32 %v1742_v30, %v1558_v40  ;;  %v16908_v56 = vpop.f32.mrf.mxu1 }
 0x150   :  { %v1560_v44 = vpop.f32.mrf.mxu0 }
 0x151   :  { %1893 = vst [vmem:[#allocation2 + $0x8] sm:$0xff] %v1743_v43  ;;  %v13820_v46 = vpack.c.bf16 %v1743_v43, %v1743_v43  ;;  %v1561_v47 = vadd.f32 %v16897_v36, %v1560_v44  ;;  %v15055_v60 = vpop.f32.mrf.mxu1 }
 0x152   :  { %v1562_v48 = vpop.f32.mrf.mxu0 }
 0x153   :  { %2350 = vst [vmem:[#allocation3 + $0x4] sm:$0xf] %v13820_v46  ;;  %v1746_v50 = vadd.f32 %v1745_v28, %v1561_v47  ;;  %v16911_v3 = vpop.f32.mrf.mxu1 }
 0x154   :  { %v1565_v51 = vpop.f32.mrf.mxu0 }
 0x155   :  { %1894 = vst [vmem:[#allocation2 + $0x10] sm:$0xff] %v1746_v50  ;;  %v13821_v53 = vpack.c.bf16 %v1746_v50, %v1746_v50  ;;  %v1566_v54 = vadd.f32 %v16897_v36, %v1565_v51  ;;  %v15056_v8 = vpop.f32.mrf.mxu1 }
 0x156   :  { %v1567_v55 = vpop.f32.mrf.mxu0 }
 0x157   :  { %2351 = vst [vmem:[#allocation3 + $0x18] sm:$0xf] %v13821_v53  ;;  %v1751_v57 = vadd.f32 %v1750_v0, %v1566_v54  ;;  %v16914_v14 = vpop.f32.mrf.mxu1 }
 0x158   :  { %v1932_v58 = vld [vmem:[#allocation2 + $0x6] sm:$0xff]  ;;  %v1568_v59 = vpop.f32.mrf.mxu0 }
 0x159   :  { %v13782_v61 = vpack.c.bf16 %v1932_v58, %v1932_v58  ;;  %1895 = vst [vmem:[#allocation2 + $0x18] sm:$0xff] %v1751_v57  ;;  %v13822_v62 = vpack.c.bf16 %v1751_v57, %v1751_v57  ;;  %v1569_v63 = vadd.f32 %v16897_v36, %v1568_v59  ;;  %v15059_v19 = vpop.f32.mrf.mxu1 }
 0x15a   :  { %v1570_v2 = vpop.f32.mrf.mxu0 }
 0x15b   :  { %2122 = vst [vmem:[#allocation3] sm:$0xf] %v13782_v61  ;;  %2352 = vst [vmem:[#allocation3 + $0x2c] sm:$0xf] %v13822_v62  ;;  %v1754_v4 = vadd.f32 %v1753_v32, %v1569_v63  ;;  %v16917_v25 = vpop.f32.mrf.mxu1  ;;  %v15712_v61 = vld [vmem:[%s18383_s28 + $0x28] sm:$0xff]  }
 0x15c   :  { %v1933_v5 = vld [vmem:[#allocation2 + $0xe] sm:$0xff]  ;;  %v1573_v7 = vpop.f32.mrf.mxu0 }
 0x15d   :  { %v2388_v6 = vld [vmem:[#allocation2 + $0xa] sm:$0xff]  ;;  %1896 = vst [vmem:[#allocation2 + $0x20] sm:$0xff] %v1754_v4  ;;  %v13823_v9 = vpack.c.bf16 %v1754_v4, %v1754_v4  ;;  %v1574_v10 = vadd.f32 %v16897_v36, %v1573_v7  ;;  %v13783_v11 = vpack.c.bf16 %v1933_v5, %v1933_v5  ;;  %v15060_v0 = vpop.f32.mrf.mxu1 }
 0x15e   :  { %v13858_v12 = vpack.c.bf16 %v2388_v6, %v2388_v6  ;;  %v1575_v13 = vpop.f32.mrf.mxu0  ;;  %v15663_v39 = vld [vmem:[#allocation3 + $0x4] ss:$20 sps:$4 sm:$0xff]  }
 0x15f   :  { %2353 = vst [vmem:[#allocation3 + $0x40] sm:$0xf] %v13823_v9  ;;  %v1759_v15 = vadd.f32 %v1758_v34, %v1574_v10  ;;  %2123 = vst [vmem:[#allocation3 + $0x14] sm:$0xf] %v13783_v11  ;;  %3227 = vmatprep.mubr.bf16.mxu1 %v15663_v39 }
 0x160   :  { %2578 = vst [vmem:[#allocation3 + $0x8] sm:$0xf] %v13858_v12  ;;  %v1934_v16 = vld [vmem:[#allocation2 + $0x16] sm:$0xff]  ;;  %v1576_v18 = vpop.f32.mrf.mxu0 }
 0x161   :  { %v2389_v17 = vld [vmem:[#allocation2 + $0x12] sm:$0xff]  ;;  %1897 = vst [vmem:[#allocation2 + $0x28] sm:$0xff] %v1759_v15  ;;  %v13824_v20 = vpack.c.bf16 %v1759_v15, %v1759_v15  ;;  %v1577_v21 = vadd.f32 %v16897_v36, %v1576_v18  ;;  %v13784_v23 = vpack.c.bf16 %v1934_v16, %v1934_v16 }
 0x162   :  { %v13859_v22 = vpack.c.bf16 %v2389_v17, %v2389_v17  ;;  %v1578_v24 = vpop.f32.mrf.mxu0 }
 0x163   :  { %2354 = vst [vmem:[#allocation3 + $0x54] sm:$0xf] %v13824_v20  ;;  %v1762_v30 = vadd.f32 %v16899_v37, %v1577_v21  ;;  %2124 = vst [vmem:[#allocation3 + $0x28] sm:$0xf] %v13784_v23  ;;  %v16924_v37 = vpop.f32.mrf.mxu1 }
 0x164   :  { %2579 = vst [vmem:[#allocation3 + $0x1c] sm:$0xf] %v13859_v22  ;;  %v1935_v27 = vld [vmem:[#allocation2 + $0x1e] sm:$0xff]  ;;  %v1581_v29 = vpop.f32.mrf.mxu0 }
 0x165   :  { %v2390_v28 = vld [vmem:[#allocation2 + $0x1a] sm:$0xff]  ;;  %1898 = vst [vmem:[#allocation2 + $0x30] sm:$0xff] %v1762_v30  ;;  %v13825_v31 = vpack.c.bf16 %v1762_v30, %v1762_v30  ;;  %v1582_v32 = vadd.f32 %v16897_v36, %v1581_v29  ;;  %v13785_v33 = vpack.c.bf16 %v1935_v27, %v1935_v27  ;;  %v15063_v46 = vpop.f32.mrf.mxu1 }
 0x166   :  { %v13860_v34 = vpack.c.bf16 %v2390_v28, %v2390_v28  ;;  %v1583_v38 = vpop.f32.mrf.mxu0  ;;  %v15665_v40 = vld [vmem:[#allocation3] ss:$20 sps:$4 sm:$0xff]   ;;  %v15723_v27 = vld [vmem:[%s18383_s28 + $0x18] sm:$0xff]  }
 0x167   :  { %2355 = vst [vmem:[#allocation3 + $0x68] sm:$0xf] %v13825_v31  ;;  %v1767_v41 = vadd.f32 %v16902_v42, %v1582_v32  ;;  %2125 = vst [vmem:[#allocation3 + $0x3c] sm:$0xf] %v13785_v33  ;;  %3228 = vmatmul.mubr.bf16.vlgmr.msra.gmra.mxu1 %v15665_v40  ;;  %v16931_v54 = vpop.f32.mrf.mxu1  ;;  %v15667_v5 = vld [vmem:[#allocation3 + $0x2c] ss:$20 sps:$4 sm:$0xff]  }
 0x168   :  { %2580 = vst [vmem:[#allocation3 + $0x30] sm:$0xf] %v13860_v34  ;;  %v1936_v43 = vld [vmem:[#allocation2 + $0x26] sm:$0xff]  ;;  %v1584_v45 = vpop.f32.mrf.mxu0  ;;  %5673 = vmatpush1.bf16.msra.mxu1 %v15701_v35  ;;  %3235 = vmatprep.mubr.bf16.mxu1 %v15667_v5 }
 0x169   :  { %v2391_v44 = vld [vmem:[#allocation2 + $0x22] sm:$0xff]  ;;  %1899 = vst [vmem:[#allocation2 + $0x38] sm:$0xff] %v1767_v41  ;;  %v13826_v47 = vpack.c.bf16 %v1767_v41, %v1767_v41  ;;  %v1585_v48 = vadd.f32 %v16897_v36, %v1584_v45  ;;  %v13786_v51 = vpack.c.bf16 %v1936_v43, %v1936_v43  ;;  %5674 = vmatprep.subr.bf16.mxu1 %v16451_v1  ;;  %v15064_v60 = vpop.f32.mrf.mxu1  ;;  %v15730_v43 = vld [vmem:[%s18383_s28 + $0x10] sm:$0xff]  }
 0x16a   :  { %v13861_v50 = vpack.c.bf16 %v2391_v44, %v2391_v44  ;;  %v1586_v53 = vpop.f32.mrf.mxu0 }
 0x16b   :  { %v15666_v42 = vld [vmem:[#allocation3 + $0x8] ss:$20 sps:$4 sm:$0xff]   ;;  %2356 = vst [vmem:[#allocation3 + $0x7c] sm:$0xf] %v13826_v47  ;;  %v1770_v55 = vadd.f32 %v16905_v49, %v1585_v48  ;;  %2126 = vst [vmem:[#allocation3 + $0x50] sm:$0xf] %v13786_v51  ;;  %v16941_v7 = vpop.f32.mrf.mxu1 }
 0x16c   :  { %2581 = vst [vmem:[#allocation3 + $0x44] sm:$0xf] %v13861_v50  ;;  %v1937_v57 = vld [vmem:[#allocation2 + $0x2e] sm:$0xff]  ;;  %v1589_v59 = vpop.f32.mrf.mxu0  ;;  %15130 = vmatmul.mubr.bf16.vlgmr.msra.gmra.mxu0 %v15666_v42  ;;  %5675 = vmatpush1.bf16.msra.mxu1 %v15707_v52 }
 0x16d   :  { %v2392_v58 = vld [vmem:[#allocation2 + $0x2a] sm:$0xff]  ;;  %1900 = vst [vmem:[#allocation2 + $0x40] sm:$0xff] %v1770_v55  ;;  %v13827_v62 = vpack.c.bf16 %v1770_v55, %v1770_v55  ;;  %v1590_v63 = vadd.f32 %v16897_v36, %v1589_v59  ;;  %15133 = vmatprep.mubr.msk.bf16.mxu0 %vm16452_vm0, %v16890_v26  ;;  %v13787_v49 = vpack.c.bf16 %v1937_v57, %v1937_v57  ;;  %v15067_v12 = vpop.f32.mrf.mxu1 }
 0x16e   :  { %v13862_v2 = vpack.c.bf16 %v2392_v58, %v2392_v58  ;;  %v1591_v4 = vpop.f32.mrf.mxu0  ;;  %v15669_v6 = vld [vmem:[#allocation3 + $0x28] ss:$20 sps:$4 sm:$0xff]   ;;  %5676 = vmatprep.subr.bf16.mxu1 %v16451_v1 }
 0x16f   :  { %2357 = vst [vmem:[#allocation3 + $0x90] sm:$0xf] %v13827_v62  ;;  %v1775_v8 = vadd.f32 %v16908_v56, %v1590_v63  ;;  %2127 = vst [vmem:[#allocation3 + $0x64] sm:$0xf] %v13787_v49  ;;  %3236 = vmatmul.mubr.bf16.gmra.mxu1 %v15669_v6  ;;  %v15718_v56 = vld [vmem:[%s18383_s28 + $0x20] sm:$0xff]   ;;  %v16949_v20 = vpop.f32.mrf.mxu1 }
 0x170   :  { %2582 = vst [vmem:[#allocation3 + $0x58] sm:$0xf] %v13862_v2  ;;  %v1938_v9 = vld [vmem:[#allocation2 + $0x36] sm:$0xff]  ;;  %v1592_v11 = vpop.f32.mrf.mxu0  ;;  %5677 = vmatpush1.bf16.msra.mxu1 %v15712_v61 }
 0x171   :  { %v2393_v10 = vld [vmem:[#allocation2 + $0x32] sm:$0xff]  ;;  %1901 = vst [vmem:[#allocation2 + $0x48] sm:$0xff] %v1775_v8  ;;  %v13828_v13 = vpack.c.bf16 %v1775_v8, %v1775_v8  ;;  %v1593_v15 = vadd.f32 %v16897_v36, %v1592_v11  ;;  %v13788_v17 = vpack.c.bf16 %v1938_v9, %v1938_v9  ;;  %5678 = vmatprep.subr.bf16.mxu1 %v16451_v1  ;;  %v15068_v30 = vpop.f32.mrf.mxu1 }
 0x172   :  { %v13863_v16 = vpack.c.bf16 %v2393_v10, %v2393_v10  ;;  %v1594_v18 = vpop.f32.mrf.mxu0  ;;  %v15671_v32 = vld [vmem:[#allocation3 + $0x54] ss:$20 sps:$4 sm:$0xff]   ;;  %v15749_v61 = vld [vmem:[%s18383_s28 + $0xb8] sm:$0xff]  }
 0x173   :  { %v15670_v19 = vld [vmem:[#allocation3 + $0x30] ss:$20 sps:$4 sm:$0xff]   ;;  %2358 = vst [vmem:[#allocation3 + $0xa4] sm:$0xf] %v13828_v13  ;;  %v1778_v21 = vadd.f32 %v16911_v3, %v1593_v15  ;;  %2128 = vst [vmem:[#allocation3 + $0x78] sm:$0xf] %v13788_v17  ;;  %v16959_v34 = vpop.f32.mrf.mxu1  ;;  %3243 = vmatprep.mubr.bf16.mxu1 %v15671_v32  ;;  %5858 = vmatpush1.bf16.msra.mxu0 %v15749_v61 }
 0x174   :  { %2583 = vst [vmem:[#allocation3 + $0x6c] sm:$0xf] %v13863_v16  ;;  %v1939_v22 = vld [vmem:[#allocation2 + $0x3e] sm:$0xff]  ;;  %v1597_v24 = vpop.f32.mrf.mxu0  ;;  %15134 = vmatmul.mubr.bf16.gmra.mxu0 %v15670_v19  ;;  %5679 = vmatpush1.bf16.msra.mxu1 %v15718_v56  ;;  %v15752_v18 = vld [vmem:[%s18383_s28 + $0xa8] sm:$0xff]   ;;  %v15756_v61 = vld [vmem:[%s18383_s28 + $0x90] sm:$0xff]  }
 0x175   :  { %v2394_v23 = vld [vmem:[#allocation2 + $0x3a] sm:$0xff]  ;;  %1902 = vst [vmem:[#allocation2 + $0x50] sm:$0xff] %v1778_v21  ;;  %v13829_v28 = vpack.c.bf16 %v1778_v21, %v1778_v21  ;;  %v1598_v29 = vadd.f32 %v16897_v36, %v1597_v24  ;;  %15137 = vmatprep.mubr.msk.bf16.mxu0 %vm16452_vm0, %v16890_v26  ;;  %v13789_v3 = vpack.c.bf16 %v1939_v22, %v1939_v22  ;;  %v15071_v41 = vpop.f32.mrf.mxu1 }
 0x176   :  { %v13864_v0 = vpack.c.bf16 %v2394_v23, %v2394_v23  ;;  %v1599_v31 = vpop.f32.mrf.mxu0  ;;  %v15673_v33 = vld [vmem:[#allocation3 + $0x50] ss:$20 sps:$4 sm:$0xff]   ;;  %5680 = vmatprep.subr.bf16.mxu1 %v16451_v1  ;;  %5859 = vmatprep.subr.bf16.mxu0 %v16451_v1  ;;  %v15747_v24 = vld [vmem:[%s18383_s28 + $0x78] sm:$0xff]  }
 0x177   :  { %2359 = vst [vmem:[#allocation3 + $0xb8] sm:$0xf] %v13829_v28  ;;  %v1783_v35 = vadd.f32 %v16914_v14, %v1598_v29  ;;  %2129 = vst [vmem:[#allocation3 + $0x8c] sm:$0xf] %v13789_v3  ;;  %3244 = vmatmul.mubr.bf16.gmra.mxu1 %v15673_v33  ;;  %v16967_v50 = vpop.f32.mrf.mxu1  ;;  %v15675_v63 = vld [vmem:[#allocation3 + $0x7c] ss:$20 sps:$4 sm:$0xff]  }
 0x178   :  { %2584 = vst [vmem:[#allocation3 + $0x80] sm:$0xf] %v13864_v0  ;;  %v1940_v38 = vld [vmem:[#allocation2 + $0x46] sm:$0xff]  ;;  %v1600_v40 = vpop.f32.mrf.mxu0  ;;  %5681 = vmatpush1.bf16.msra.mxu1 %v15723_v27  ;;  %3251 = vmatprep.mubr.bf16.mxu1 %v15675_v63  ;;  %v17004_v27 = vld [vmem:[#allocation2 + $0x138] sm:$0xff] }
 0x179   :  { %v2395_v39 = vld [vmem:[#allocation2 + $0x42] sm:$0xff]  ;;  %1903 = vst [vmem:[#allocation2 + $0x58] sm:$0xff] %v1783_v35  ;;  %v13830_v44 = vpack.c.bf16 %v1783_v35, %v1783_v35  ;;  %v1601_v45 = vadd.f32 %v16897_v36, %v1600_v40  ;;  %v13790_v14 = vpack.c.bf16 %v1940_v38, %v1940_v38  ;;  %5682 = vmatprep.subr.bf16.mxu1 %v16451_v1  ;;  %v15072_v55 = vpop.f32.mrf.mxu1 }
 0x17a   :  { %v13865_v46 = vpack.c.bf16 %v2395_v39, %v2395_v39  ;;  %v1602_v47 = vpop.f32.mrf.mxu0  ;;  %v15741_v13 = vld [vmem:[%s18383_s28] sm:$0xff]  }
 0x17b   :  { %v15674_v48 = vld [vmem:[#allocation3 + $0x58] ss:$20 sps:$4 sm:$0xff]   ;;  %2360 = vst [vmem:[#allocation3 + $0xcc] sm:$0xf] %v13830_v44  ;;  %v1786_v51 = vadd.f32 %v16917_v25, %v1601_v45  ;;  %2130 = vst [vmem:[#allocation3 + $0xa0] sm:$0xf] %v13790_v14  ;;  %v16980_v2 = vpop.f32.mrf.mxu1 }
 0x17c   :  { %2585 = vst [vmem:[#allocation3 + $0x94] sm:$0xf] %v13865_v46  ;;  %v1941_v52 = vld [vmem:[#allocation2 + $0x4e] sm:$0xff]  ;;  %v1605_v42 = vpop.f32.mrf.mxu0  ;;  %15138 = vmatmul.mubr.bf16.gmra.mxu0 %v15674_v48  ;;  %5683 = vmatpush1.bf16.msra.mxu1 %v15730_v43  ;;  %v15754_v3 = vld [vmem:[%s18383_s28 + $0xa0] sm:$0xff]   ;;  %v15755_v14 = vld [vmem:[%s18383_s28 + $0x98] sm:$0xff]  }
 0x17d   :  { %v2396_v53 = vld [vmem:[#allocation2 + $0x4a] sm:$0xff]  ;;  %1904 = vst [vmem:[#allocation2 + $0x60] sm:$0xff] %v1786_v51  ;;  %v13831_v57 = vpack.c.bf16 %v1786_v51, %v1786_v51  ;;  %v1606_v58 = vadd.f32 %v16897_v36, %v1605_v42  ;;  %15141 = vmatprep.mubr.msk.bf16.mxu0 %vm16452_vm0, %v16890_v26  ;;  %v13791_v59 = vpack.c.bf16 %v1941_v52, %v1941_v52  ;;  %v15075_v9 = vpop.f32.mrf.mxu1 }
 0x17e   :  { %v13866_v60 = vpack.c.bf16 %v2396_v53, %v2396_v53  ;;  %v15736_v25 = vld [vmem:[%s18383_s28 + $0x8] sm:$0xff]   ;;  %v1607_v62 = vpop.f32.mrf.mxu0  ;;  %5684 = vmatprep.subr.bf16.mxu1 %v16451_v1  ;;  %v15751_v26 = vld [vmem:[%s18383_s28 + $0xb0] sm:$0xff]   ;;  %v15679_v31 = vld [vmem:[#allocation3 + $0xa4] ss:$20 sps:$4 sm:$0xff]  }
 0x17f   :  { %v15677_v49 = vld [vmem:[#allocation3 + $0x78] ss:$20 sps:$4 sm:$0xff]   ;;  %2361 = vst [vmem:[#allocation3 + $0xe0] sm:$0xf] %v13831_v57  ;;  %v1791_v4 = vadd.f32 %v16924_v37, %v1606_v58  ;;  %2131 = vst [vmem:[#allocation3 + $0xb4] sm:$0xf] %v13791_v59  ;;  %v16992_v17 = vpop.f32.mrf.mxu1  ;;  %5860 = vmatpush1.bf16.msra.mxu0 %v15751_v26 }
 0x180   :  { %2586 = vst [vmem:[#allocation3 + $0xa8] sm:$0xf] %v13866_v60  ;;  %v1942_v5 = vld [vmem:[#allocation2 + $0x56] sm:$0xff]  ;;  %v1608_v8 = vpop.f32.mrf.mxu0  ;;  %3252 = vmatmul.mubr.bf16.gmra.mxu1 %v15677_v49  ;;  %5861 = vmatprep.subr.bf16.mxu0 %v16451_v1  ;;  %v15750_v58 = vld [vmem:[%s18383_s28 + $0x68] sm:$0xff]  }
 0x181   :  { %v2397_v6 = vld [vmem:[#allocation2 + $0x52] sm:$0xff]  ;;  %1905 = vst [vmem:[#allocation2 + $0x68] sm:$0xff] %v1791_v4  ;;  %v13832_v10 = vpack.c.bf16 %v1791_v4, %v1791_v4  ;;  %v1609_v37 = vadd.f32 %v16897_v36, %v1608_v8  ;;  %v13792_v12 = vpack.c.bf16 %v1942_v5, %v1942_v5  ;;  %5685 = vmatpush1.bf16.msra.mxu1 %v15736_v25  ;;  %v15076_v23 = vpop.f32.mrf.mxu1 }
 0x182   :  { %v13867_v11 = vpack.c.bf16 %v2397_v6, %v2397_v6  ;;  %v1610_v15 = vpop.f32.mrf.mxu0  ;;  %5686 = vmatprep.subr.bf16.mxu1 %v16451_v1  ;;  %3259 = vmatprep.mubr.bf16.mxu1 %v15679_v31  ;;  %v15748_v43 = vld [vmem:[%s18383_s28 + $0x70] sm:$0xff]  }
 0x183   :  { %v15678_v16 = vld [vmem:[#allocation3 + $0x80] ss:$20 sps:$4 sm:$0xff]   ;;  %2362 = vst [vmem:[#allocation3 + $0xf4] sm:$0xf] %v13832_v10  ;;  %v1794_v56 = vadd.f32 %v16931_v54, %v1609_v37  ;;  %2132 = vst [vmem:[#allocation3 + $0xc8] sm:$0xf] %v13792_v12  ;;  %v17011_v33 = vpop.f32.mrf.mxu1  ;;  %5862 = vmatpush1.bf16.msra.mxu0 %v15752_v18 }
 0x184   :  { %2587 = vst [vmem:[#allocation3 + $0xbc] sm:$0xf] %v13867_v11  ;;  %v1943_v19 = vld [vmem:[#allocation2 + $0x5e] sm:$0xff]  ;;  %v1613_v22 = vpop.f32.mrf.mxu0  ;;  %15142 = vmatmul.mubr.bf16.gmra.mxu0 %v15678_v16  ;;  %5863 = vmatprep.subr.bf16.mxu0 %v16451_v1 }
 0x185   :  { %v2398_v21 = vld [vmem:[#allocation2 + $0x5a] sm:$0xff]  ;;  %1906 = vst [vmem:[#allocation2 + $0x70] sm:$0xff] %v1794_v56  ;;  %v13833_v54 = vpack.c.bf16 %v1794_v56, %v1794_v56  ;;  %v1614_v30 = vadd.f32 %v16897_v36, %v1613_v22  ;;  %15145 = vmatprep.mubr.msk.bf16.mxu0 %vm16452_vm0, %v17004_v27  ;;  %v13793_v28 = vpack.c.bf16 %v1943_v19, %v1943_v19  ;;  %v15079_v41 = vpop.f32.mrf.mxu1 }
 0x186   :  { %v13868_v29 = vpack.c.bf16 %v2398_v21, %v2398_v21  ;;  %v1615_v0 = vpop.f32.mrf.mxu0  ;;  %v15681_v32 = vld [vmem:[#allocation3 + $0xa0] ss:$20 sps:$4 sm:$0xff]   ;;  %5687 = vmatpush1.bf16.msra.mxu1 %v15741_v13  ;;  %v15758_v13 = vld [vmem:[%s18383_s28 + $0x88] sm:$0xff]  }
 0x187   :  { %2363 = vst [vmem:[#allocation3 + $0x108] sm:$0xf] %v13833_v54  ;;  %v1799_v35 = vadd.f32 %v16941_v7, %v1614_v30  ;;  %2133 = vst [vmem:[#allocation3 + $0xdc] sm:$0xf] %v13793_v28  ;;  %5688 = vmatprep.subr.bf16.mxu1 %v16451_v1  ;;  %v17023_v51 = vpop.f32.mrf.mxu1  ;;  %5864 = vmatpush1.bf16.msra.mxu0 %v15754_v3  ;;  %v15683_v63 = vld [vmem:[#allocation3 + $0xcc] ss:$20 sps:$4 sm:$0xff]  }
 0x188   :  { %2588 = vst [vmem:[#allocation3 + $0xd0] sm:$0xf] %v13868_v29  ;;  %v1944_v38 = vld [vmem:[#allocation2 + $0x66] sm:$0xff]  ;;  %v1616_v40 = vpop.f32.mrf.mxu0  ;;  %3260 = vmatmul.mubr.bf16.gmra.mxu1 %v15681_v32  ;;  %5865 = vmatprep.subr.bf16.mxu0 %v16451_v1  ;;  %v17068_v41 = vld [vmem:[%s18382_s25] ss:$0 sm:$0xff] }
 0x189   :  { %v2399_v39 = vld [vmem:[#allocation2 + $0x62] sm:$0xff]  ;;  %1907 = vst [vmem:[#allocation2 + $0x78] sm:$0xff] %v1799_v35  ;;  %v13834_v44 = vpack.c.bf16 %v1799_v35, %v1799_v35  ;;  %v1617_v7 = vadd.f32 %v16897_v36, %v1616_v40  ;;  %v13794_v46 = vpack.c.bf16 %v1944_v38, %v1944_v38  ;;  %v15080_v57 = vpop.f32.mrf.mxu1  ;;  %3267 = vmatprep.mubr.bf16.mxu1 %v15683_v63 }
 0x18a   :  { %v13869_v45 = vpack.c.bf16 %v2399_v39, %v2399_v39  ;;  %v1618_v47 = vpop.f32.mrf.mxu0  ;;  %5689 = vmatpush2.bf16.msra.mxu1 %v15747_v24  ;;  %v15753_v10 = vld [vmem:[%s18383_s28 + $0x60] sm:$0xff]   ;;  %v15757_v24 = vld [vmem:[%s18383_s28 + $0x58] sm:$0xff]  }
 0x18b   :  { %v15682_v48 = vld [vmem:[#allocation3 + $0xa8] ss:$20 sps:$4 sm:$0xff]   ;;  %2364 = vst [vmem:[#allocation3 + $0x11c] sm:$0xf] %v13834_v44  ;;  %v1802_v52 = vadd.f32 %v16949_v20, %v1617_v7  ;;  %2134 = vst [vmem:[#allocation3 + $0xf0] sm:$0xf] %v13794_v46  ;;  %5690 = vmatprep.subr.bf16.mxu1 %v16451_v1  ;;  %v17037_v4 = vpop.f32.mrf.mxu1  ;;  %5866 = vmatpush1.bf16.msra.mxu0 %v15755_v14 }
 0x18c   :  { %2589 = vst [vmem:[#allocation3 + $0xe4] sm:$0xf] %v13869_v45  ;;  %v1945_v53 = vld [vmem:[#allocation2 + $0x6e] sm:$0xff]  ;;  %v1621_v55 = vpop.f32.mrf.mxu0  ;;  %15146 = vmatmul.mubr.bf16.gmra.mxu0 %v15682_v48  ;;  %5867 = vmatprep.subr.bf16.mxu0 %v16451_v1 }
 0x18d   :  { %v2400_v42 = vld [vmem:[#allocation2 + $0x6a] sm:$0xff]  ;;  %1908 = vst [vmem:[#allocation2 + $0x80] sm:$0xff] %v1802_v52  ;;  %v13835_v59 = vpack.c.bf16 %v1802_v52, %v1802_v52  ;;  %v1622_v20 = vadd.f32 %v16897_v36, %v1621_v55  ;;  %15149 = vmatprep.mubr.msk.bf16.mxu0 %vm16452_vm0, %v17004_v27  ;;  %v13795_v60 = vpack.c.bf16 %v1945_v53, %v1945_v53  ;;  %v15083_v9 = vpop.f32.mrf.mxu1 }
 0x18e   :  { %v13870_v25 = vpack.c.bf16 %v2400_v42, %v2400_v42  ;;  %v1623_v62 = vpop.f32.mrf.mxu0  ;;  %v15685_v49 = vld [vmem:[#allocation3 + $0xc8] ss:$20 sps:$4 sm:$0xff]   ;;  %5691 = vmatpush2.bf16.msra.mxu1 %v15748_v43 }
 0x18f   :  { %2365 = vst [vmem:[#allocation3 + $0x130] sm:$0xf] %v13835_v59  ;;  %v1807_v26 = vadd.f32 %v16959_v34, %v1622_v20  ;;  %2135 = vst [vmem:[#allocation3 + $0x104] sm:$0xf] %v13795_v60  ;;  %5692 = vmatprep.subr.bf16.mxu1 %v16451_v1  ;;  %v17049_v56 = vpop.f32.mrf.mxu1  ;;  %5868 = vmatpush1.bf16.msra.mxu0 %v15756_v61  ;;  %v15687_v3 = vld [vmem:[#allocation3 + $0xf4] ss:$20 sps:$4 sm:$0xff]  }
 0x190   :  { %2590 = vst [vmem:[#allocation3 + $0xf8] sm:$0xf] %v13870_v25  ;;  %v1946_v5 = vld [vmem:[#allocation2 + $0x76] sm:$0xff]  ;;  %v1624_v8 = vpop.f32.mrf.mxu0  ;;  %3268 = vmatmul.mubr.bf16.gmra.mxu1 %v15685_v49  ;;  %5869 = vmatprep.subr.bf16.mxu0 %v16451_v1 }
 0x191   :  { %v2401_v6 = vld [vmem:[#allocation2 + $0x72] sm:$0xff]  ;;  %1909 = vst [vmem:[#allocation2 + $0x88] sm:$0xff] %v1807_v26  ;;  %v13836_v37 = vpack.c.bf16 %v1807_v26, %v1807_v26  ;;  %v1625_v34 = vadd.f32 %v16897_v36, %v1624_v8  ;;  %v13796_v12 = vpack.c.bf16 %v1946_v5, %v1946_v5  ;;  %v15084_v23 = vpop.f32.mrf.mxu1  ;;  %3275 = vmatprep.mubr.bf16.mxu1 %v15687_v3 }
 0x192   :  { %v13871_v11 = vpack.c.bf16 %v2401_v6, %v2401_v6  ;;  %v1626_v15 = vpop.f32.mrf.mxu0  ;;  %5693 = vmatpush2.bf16.msra.mxu1 %v15750_v58 }
 0x193   :  { %v15686_v16 = vld [vmem:[#allocation3 + $0xd0] ss:$20 sps:$4 sm:$0xff]   ;;  %2366 = vst [vmem:[#allocation3 + $0x144] sm:$0xf] %v13836_v37  ;;  %v1810_v18 = vadd.f32 %v16967_v50, %v1625_v34  ;;  %2136 = vst [vmem:[#allocation3 + $0x118] sm:$0xf] %v13796_v12  ;;  %5694 = vmatprep.subr.bf16.mxu1 %v16451_v1  ;;  %v17060_v31 = vpop.f32.mrf.mxu1  ;;  %5870 = vmatpush1.bf16.msra.mxu0 %v15758_v13 }
 0x194   :  { %2591 = vst [vmem:[#allocation3 + $0x10c] sm:$0xf] %v13871_v11  ;;  %v1947_v19 = vld [vmem:[#allocation2 + $0x7e] sm:$0xff]  ;;  %v1629_v22 = vpop.f32.mrf.mxu0  ;;  %15150 = vmatmul.mubr.bf16.gmra.mxu0 %v15686_v16  ;;  %5871 = vmatprep.subr.bf16.mxu0 %v16451_v1 }
 0x195   :  { %v2402_v21 = vld [vmem:[#allocation2 + $0x7a] sm:$0xff]  ;;  %1910 = vst [vmem:[#allocation2 + $0x90] sm:$0xff] %v1810_v18  ;;  %v13837_v54 = vpack.c.bf16 %v1810_v18, %v1810_v18  ;;  %v1630_v50 = vadd.f32 %v16897_v36, %v1629_v22  ;;  %15153 = vmatprep.mubr.msk.bf16.mxu0 %vm16452_vm0, %v17004_v27  ;;  %v13797_v30 = vpack.c.bf16 %v1947_v19, %v1947_v19  ;;  %v15087_v39 = vpop.f32.mrf.mxu1 }
 0x196   :  { %v13872_v28 = vpack.c.bf16 %v2402_v21, %v2402_v21  ;;  %v1631_v29 = vpop.f32.mrf.mxu0  ;;  %v15689_v0 = vld [vmem:[#allocation3 + $0xf0] ss:$20 sps:$4 sm:$0xff]   ;;  %5695 = vmatpush2.bf16.msra.mxu1 %v15753_v10 }
 0x197   :  { %2367 = vst [vmem:[#allocation3 + $0x158] sm:$0xf] %v13837_v54  ;;  %v1815_v32 = vadd.f32 %v16980_v2, %v1630_v50  ;;  %2137 = vst [vmem:[#allocation3 + $0x12c] sm:$0xf] %v13797_v30  ;;  %5696 = vmatprep.subr.bf16.mxu1 %v16451_v1  ;;  %v17071_v46 = vpop.f32.mrf.mxu1  ;;  %v15759_v29 = vld [vmem:[%s18383_s28 + $0x80] sm:$0xff]  }
 0x198   :  { %2592 = vst [vmem:[#allocation3 + $0x120] sm:$0xf] %v13872_v28  ;;  %v1948_v36 = vld [vmem:[#allocation2 + $0x86] sm:$0xff]  ;;  %v1632_v38 = vpop.f32.mrf.mxu0  ;;  %3276 = vmatmul.mubr.bf16.gmra.mxu1 %v15689_v0  ;;  %5872 = vmatpush1.bf16.msra.mxu0 %v15759_v29  ;;  %v15760_v29 = vld [vmem:[%s18383_s28 + $0x50] sm:$0xff]  }
 0x199   :  { %v2403_v35 = vld [vmem:[#allocation2 + $0x82] sm:$0xff]  ;;  %1911 = vst [vmem:[#allocation2 + $0x98] sm:$0xff] %v1815_v32  ;;  %v13838_v40 = vpack.c.bf16 %v1815_v32, %v1815_v32  ;;  %v1633_v2 = vadd.f32 %v17068_v41, %v1632_v38  ;;  %v13798_v44 = vpack.c.bf16 %v1948_v36, %v1948_v36  ;;  %v15088_v53 = vpop.f32.mrf.mxu1  ;;  %5873 = vmatprep.subr.bf16.mxu0 %v16451_v1 }
 0x19a   :  { %v13873_v43 = vpack.c.bf16 %v2403_v35, %v2403_v35  ;;  %v1634_v7 = vpop.f32.mrf.mxu0  ;;  %5697 = vmatpush2.bf16.msra.mxu1 %v15757_v24 }
 0x19b   :  { %v15690_v45 = vld [vmem:[#allocation3 + $0xf8] ss:$20 sps:$4 sm:$0xff]   ;;  %2368 = vst [vmem:[#allocation3 + $0x16c] sm:$0xf] %v13838_v40  ;;  %v1818_v14 = vadd.f32 %v16992_v17, %v1633_v2  ;;  %2138 = vst [vmem:[#allocation3 + $0x140] sm:$0xf] %v13798_v44  ;;  %5698 = vmatprep.subr.bf16.mxu1 %v16451_v1  ;;  %v17078_v60 = vpop.f32.mrf.mxu1 }
 0x19c   :  { %2593 = vst [vmem:[#allocation3 + $0x134] sm:$0xf] %v13873_v43  ;;  %v1949_v47 = vld [vmem:[#allocation2 + $0x8e] sm:$0xff]  ;;  %v1637_v52 = vpop.f32.mrf.mxu0  ;;  %15154 = vmatmul.mubr.bf16.gmra.mxu0 %v15690_v45  ;;  %v15761_v7 = vld [vmem:[%s18383_s28 + $0xf8] sm:$0xff]  }
 0x19d   :  { %v2404_v48 = vld [vmem:[#allocation2 + $0x8a] sm:$0xff]  ;;  %1912 = vst [vmem:[#allocation2 + $0xa0] sm:$0xff] %v1818_v14  ;;  %v1638_v42 = vadd.f32 %v17068_v41, %v1637_v52  ;;  %15157 = vmatprep.mubr.msk.bf16.mxu0 %vm16452_vm0, %v17004_v27  ;;  %v13799_v55 = vpack.c.bf16 %v1949_v47, %v1949_v47  ;;  %v13839_v58 = vpack.c.bf16 %v1818_v14, %v1818_v14  ;;  %v15091_v49 = vpop.f32.mrf.mxu1 }
 0x19e   :  { %v13874_v57 = vpack.c.bf16 %v2404_v48, %v2404_v48  ;;  %v1639_v59 = vpop.f32.mrf.mxu0  ;;  %v15691_v17 = vld [vmem:[#allocation3 + $0x11c] ss:$20 sps:$4 sm:$0xff]   ;;  %v15693_v20 = vld [vmem:[#allocation3 + $0x118] ss:$20 sps:$4 sm:$0xff]   ;;  %5874 = vmatpush2.bf16.msra.mxu0 %v15761_v7  ;;  %5699 = vmatpush2.bf16.msra.mxu1 %v15760_v29 }
 0x19f   :  { %v1823_v25 = vadd.f32 %v17011_v33, %v1638_v42  ;;  %2139 = vst [vmem:[#allocation3 + $0x154] sm:$0xf] %v13799_v55  ;;  %2369 = vst [vmem:[#allocation3 + $0x180] sm:$0xf] %v13839_v58  ;;  %3283 = vmatprep.mubr.bf16.mxu1 %v15691_v17  ;;  %v17082_v37 = vpop.f32.mrf.mxu1  ;;  %v15695_v22 = vld [vmem:[#allocation3 + $0x144] ss:$20 sps:$4 sm:$0xff]   ;;  %5875 = vmatprep.subr.bf16.mxu0 %v16451_v1 }
 0x1a0   :  { %2594 = vst [vmem:[#allocation3 + $0x148] sm:$0xf] %v13874_v57  ;;  %v1950_v61 = vld [vmem:[#allocation2 + $0x96] sm:$0xff]  ;;  %v1640_v63 = vpop.f32.mrf.mxu0  ;;  %3284 = vmatmul.mubr.bf16.gmra.mxu1 %v15693_v20  ;;  %5700 = vmatprep.subr.bf16.mxu1 %v16451_v1 }
 0x1a1   :  { %v2405_v62 = vld [vmem:[#allocation2 + $0x92] sm:$0xff]  ;;  %1913 = vst [vmem:[#allocation2 + $0xa8] sm:$0xff] %v1823_v25  ;;  %v1641_v26 = vadd.f32 %v17068_v41, %v1640_v63  ;;  %v13800_v6 = vpack.c.bf16 %v1950_v61, %v1950_v61  ;;  %v13840_v8 = vpack.c.bf16 %v1823_v25, %v1823_v25  ;;  %v15092_v13 = vpop.f32.mrf.mxu1  ;;  %3291 = vmatprep.mubr.bf16.mxu1 %v15695_v22 }
 0x1a2   :  { %v13875_v5 = vpack.c.bf16 %v2405_v62, %v2405_v62  ;;  %v1642_v9 = vpop.f32.mrf.mxu0  ;;  %v15762_v20 = vld [vmem:[%s18383_s28 + $0xf0] sm:$0xff]  }
 0x1a3   :  { %v15694_v10 = vld [vmem:[#allocation3 + $0x120] ss:$20 sps:$4 sm:$0xff]   ;;  %v1826_v33 = vadd.f32 %v17023_v51, %v1641_v26  ;;  %2140 = vst [vmem:[#allocation3 + $0x168] sm:$0xf] %v13800_v6  ;;  %2370 = vst [vmem:[#allocation3 + $0x194] sm:$0xf] %v13840_v8  ;;  %v17088_v23 = vpop.f32.mrf.mxu1  ;;  %5876 = vmatpush2.bf16.msra.mxu0 %v15762_v20 }
 0x1a4   :  { %2595 = vst [vmem:[#allocation3 + $0x15c] sm:$0xf] %v13875_v5  ;;  %v2406_v34 = vld [vmem:[#allocation2 + $0x9a] sm:$0xff]  ;;  %v1645_v11 = vpop.f32.mrf.mxu0  ;;  %15158 = vmatmul.mubr.bf16.gmra.mxu0 %v15694_v10  ;;  %5877 = vmatprep.subr.bf16.mxu0 %v16451_v1 }
 0x1a5   :  { %v1951_v12 = vld [vmem:[#allocation2 + $0x9e] sm:$0xff]  ;;  %1914 = vst [vmem:[#allocation2 + $0xb0] sm:$0xff] %v1826_v33  ;;  %v1646_v15 = vadd.f32 %v17068_v41, %v1645_v11  ;;  %15161 = vmatprep.mubr.msk.bf16.mxu0 %vm16452_vm0, %v17004_v27  ;;  %v13876_v18 = vpack.c.bf16 %v2406_v34, %v2406_v34  ;;  %v13841_v19 = vpack.c.bf16 %v1826_v33, %v1826_v33  ;;  %v15095_v28 = vpop.f32.mrf.mxu1  ;;  %v15764_v33 = vld [vmem:[%s18383_s28 + $0xe8] sm:$0xff]  }
 0x1a6   :  { %v13801_v16 = vpack.c.bf16 %v1951_v12, %v1951_v12  ;;  %v1647_v21 = vpop.f32.mrf.mxu0  ;;  %v15697_v51 = vld [vmem:[#allocation3 + $0x140] ss:$20 sps:$4 sm:$0xff]  }
 0x1a7   :  { %v1831_v24 = vadd.f32 %v17037_v4, %v1646_v15  ;;  %2596 = vst [vmem:[#allocation3 + $0x170] sm:$0xf] %v13876_v18  ;;  %2371 = vst [vmem:[#allocation3 + $0x1a8] sm:$0xf] %v13841_v19  ;;  %v17095_v38 = vpop.f32.mrf.mxu1  ;;  %v15699_v52 = vld [vmem:[#allocation3 + $0x16c] ss:$20 sps:$4 sm:$0xff]   ;;  %5878 = vmatpush2.bf16.msra.mxu0 %v15764_v33 }
 0x1a8   :  { %2141 = vst [vmem:[#allocation3 + $0x17c] sm:$0xf] %v13801_v16  ;;  %v1648_v54 = vpop.f32.mrf.mxu0  ;;  %v2407_v50 = vld [vmem:[#allocation2 + $0xa2] sm:$0xff]  ;;  %3292 = vmatmul.mubr.bf16.gmra.mxu1 %v15697_v51  ;;  %5879 = vmatprep.subr.bf16.mxu0 %v16451_v1 }
 0x1a9   :  { %v1952_v30 = vld [vmem:[#allocation2 + $0xa6] sm:$0xff]  ;;  %1915 = vst [vmem:[#allocation2 + $0xb8] sm:$0xff] %v1831_v24  ;;  %v1649_v3 = vadd.f32 %v17068_v41, %v1648_v54  ;;  %v13877_v0 = vpack.c.bf16 %v2407_v50, %v2407_v50  ;;  %v13842_v36 = vpack.c.bf16 %v1831_v24, %v1831_v24  ;;  %v15096_v44 = vpop.f32.mrf.mxu1  ;;  %3299 = vmatprep.mubr.bf16.mxu1 %v15699_v52 }
 0x1aa   :  { %v13802_v32 = vpack.c.bf16 %v1952_v30, %v1952_v30  ;;  %v1650_v4 = vpop.f32.mrf.mxu0  ;;  %v15765_v54 = vld [vmem:[%s18383_s28 + $0xe0] sm:$0xff]   ;;  %v15763_v52 = vld [vmem:[%s18383_s28 + $0x48] sm:$0xff]  }
 0x1ab   :  { %v15698_v35 = vld [vmem:[#allocation3 + $0x148] ss:$20 sps:$4 sm:$0xff]   ;;  %v1834_v39 = vadd.f32 %v17049_v56, %v1649_v3  ;;  %2597 = vst [vmem:[#allocation3 + $0x184] sm:$0xf] %v13877_v0  ;;  %2372 = vst [vmem:[#allocation3 + $0x1bc] sm:$0xf] %v13842_v36  ;;  %v17105_v42 = vpop.f32.mrf.mxu1  ;;  %5880 = vmatpush2.bf16.msra.mxu0 %v15765_v54  ;;  %5701 = vmatpush2.bf16.msra.mxu1 %v15763_v52 }
 0x1ac   :  { %2142 = vst [vmem:[#allocation3 + $0x190] sm:$0xf] %v13802_v32  ;;  %v1653_v40 = vpop.f32.mrf.mxu0  ;;  %15162 = vmatmul.mubr.bf16.gmra.mxu0 %v15698_v35  ;;  %v1953_v2 = vld [vmem:[#allocation2 + $0xae] sm:$0xff]  ;;  %5881 = vmatprep.subr.bf16.mxu0 %v16451_v1 }
 0x1ad   :  { %v2408_v43 = vld [vmem:[#allocation2 + $0xaa] sm:$0xff]  ;;  %1916 = vst [vmem:[#allocation2 + $0xc0] sm:$0xff] %v1834_v39  ;;  %v1654_v45 = vadd.f32 %v17068_v41, %v1653_v40  ;;  %15165 = vmatprep.mubr.msk.bf16.mxu0 %vm16452_vm0, %v17004_v27  ;;  %v13803_v56 = vpack.c.bf16 %v1953_v2, %v1953_v2  ;;  %v13843_v47 = vpack.c.bf16 %v1834_v39, %v1834_v39  ;;  %v15099_v17 = vpop.f32.mrf.mxu1  ;;  %v15766_v2 = vld [vmem:[%s18383_s28 + $0xd8] sm:$0xff]  }
 0x1ae   :  { %v13878_v14 = vpack.c.bf16 %v2408_v43, %v2408_v43  ;;  %v1655_v48 = vpop.f32.mrf.mxu0  ;;  %v15704_v15 = vld [vmem:[#allocation3 + $0x194] ss:$20 sps:$4 sm:$0xff]   ;;  %5702 = vmatprep.subr.bf16.mxu1 %v16451_v1 }
 0x1af   :  { %v15702_v53 = vld [vmem:[#allocation3 + $0x168] ss:$20 sps:$4 sm:$0xff]   ;;  %v1839_v55 = vadd.f32 %v17060_v31, %v1654_v45  ;;  %2143 = vst [vmem:[#allocation3 + $0x1a4] sm:$0xf] %v13803_v56  ;;  %2373 = vst [vmem:[#allocation3 + $0x1d0] sm:$0xf] %v13843_v47  ;;  %v17113_v26 = vpop.f32.mrf.mxu1  ;;  %5882 = vmatpush2.bf16.msra.mxu0 %v15766_v2 }
 0x1b0   :  { %2598 = vst [vmem:[#allocation3 + $0x198] sm:$0xf] %v13878_v14  ;;  %v1656_v57 = vpop.f32.mrf.mxu0  ;;  %v2409_v58 = vld [vmem:[#allocation2 + $0xb2] sm:$0xff]  ;;  %3300 = vmatmul.mubr.bf16.gmra.mxu1 %v15702_v53  ;;  %5883 = vmatprep.subr.bf16.mxu0 %v16451_v1 }
 0x1b1   :  { %v1954_v59 = vld [vmem:[#allocation2 + $0xb6] sm:$0xff]  ;;  %1917 = vst [vmem:[#allocation2 + $0xc8] sm:$0xff] %v1839_v55  ;;  %v1657_v25 = vadd.f32 %v17068_v41, %v1656_v57  ;;  %v13879_v61 = vpack.c.bf16 %v2409_v58, %v2409_v58  ;;  %v13844_v62 = vpack.c.bf16 %v1839_v55, %v1839_v55  ;;  %v15100_v10 = vpop.f32.mrf.mxu1  ;;  %3307 = vmatprep.mubr.bf16.mxu1 %v15704_v15 }
 0x1b2   :  { %v13804_v31 = vpack.c.bf16 %v1954_v59, %v1954_v59  ;;  %v1658_v63 = vpop.f32.mrf.mxu0  ;;  %v15703_v49 = vld [vmem:[#allocation3 + $0x170] ss:$20 sps:$4 sm:$0xff]  }
 0x1b3   :  { %v1842_v5 = vadd.f32 %v17071_v46, %v1657_v25  ;;  %2599 = vst [vmem:[#allocation3 + $0x1ac] sm:$0xf] %v13879_v61  ;;  %2374 = vst [vmem:[#allocation3 + $0x1e4] sm:$0xf] %v13844_v62  ;;  %v17123_v18 = vpop.f32.mrf.mxu1  ;;  %v15768_v59 = vld [vmem:[%s18383_s28 + $0xd0] sm:$0xff]  }
 0x1b4   :  { %2144 = vst [vmem:[#allocation3 + $0x1b8] sm:$0xf] %v13804_v31  ;;  %v1661_v6 = vpop.f32.mrf.mxu0  ;;  %15166 = vmatmul.mubr.bf16.gmra.mxu0 %v15703_v49  ;;  %v1955_v8 = vld [vmem:[#allocation2 + $0xbe] sm:$0xff] }
 0x1b5   :  { %v2410_v9 = vld [vmem:[#allocation2 + $0xba] sm:$0xff]  ;;  %1918 = vst [vmem:[#allocation2 + $0xd0] sm:$0xff] %v1842_v5  ;;  %v1662_v34 = vadd.f32 %v17068_v41, %v1661_v6  ;;  %15169 = vmatprep.mubr.msk.bf16.mxu0 %vm16452_vm0, %v17004_v27  ;;  %v13805_v46 = vpack.c.bf16 %v1955_v8, %v1955_v8  ;;  %v13845_v12 = vpack.c.bf16 %v1842_v5, %v1842_v5  ;;  %v15103_v24 = vpop.f32.mrf.mxu1 }
 0x1b6   :  { %v13880_v11 = vpack.c.bf16 %v2410_v9, %v2410_v9  ;;  %v1663_v13 = vpop.f32.mrf.mxu0  ;;  %v15706_v16 = vld [vmem:[#allocation3 + $0x190] ss:$20 sps:$4 sm:$0xff]   ;;  %5884 = vmatpush2.bf16.msra.mxu0 %v15768_v59 }
 0x1b7   :  { %v1847_v19 = vadd.f32 %v17078_v60, %v1662_v34  ;;  %2145 = vst [vmem:[#allocation3 + $0x1cc] sm:$0xf] %v13805_v46  ;;  %2375 = vst [vmem:[#allocation3 + $0x1f8] sm:$0xf] %v13845_v12  ;;  %v17134_v32 = vpop.f32.mrf.mxu1  ;;  %v15709_v56 = vld [vmem:[#allocation3 + $0x1bc] ss:$20 sps:$4 sm:$0xff]   ;;  %5885 = vmatprep.subr.bf16.mxu0 %v16451_v1 }
 0x1b8   :  { %2600 = vst [vmem:[#allocation3 + $0x1c0] sm:$0xf] %v13880_v11  ;;  %v1664_v21 = vpop.f32.mrf.mxu0  ;;  %v2411_v22 = vld [vmem:[#allocation2 + $0xc2] sm:$0xff]  ;;  %3308 = vmatmul.mubr.bf16.gmra.mxu1 %v15706_v16 }
 0x1b9   :  { %v1956_v51 = vld [vmem:[#allocation2 + $0xc6] sm:$0xff]  ;;  %1919 = vst [vmem:[#allocation2 + $0xd8] sm:$0xff] %v1847_v19  ;;  %v1665_v50 = vadd.f32 %v17068_v41, %v1664_v21  ;;  %v13881_v30 = vpack.c.bf16 %v2411_v22, %v2411_v22  ;;  %v13846_v28 = vpack.c.bf16 %v1847_v19, %v1847_v19  ;;  %v15104_v40 = vpop.f32.mrf.mxu1  ;;  %3315 = vmatprep.mubr.bf16.mxu1 %v15709_v56 }
 0x1ba   :  { %v13806_v60 = vpack.c.bf16 %v1956_v51, %v1956_v51  ;;  %v1666_v3 = vpop.f32.mrf.mxu0  ;;  %v15708_v0 = vld [vmem:[#allocation3 + $0x198] ss:$20 sps:$4 sm:$0xff]   ;;  %v15767_v9 = vld [vmem:[%s18383_s28 + $0x40] sm:$0xff]  }
 0x1bb   :  { %v1850_v36 = vadd.f32 %v17082_v37, %v1665_v50  ;;  %2601 = vst [vmem:[#allocation3 + $0x1d4] sm:$0xf] %v13881_v30  ;;  %2376 = vst [vmem:[#allocation3 + $0x20c] sm:$0xf] %v13846_v28  ;;  %v17145_v47 = vpop.f32.mrf.mxu1  ;;  %v15769_v46 = vld [vmem:[%s18383_s28 + $0xc8] sm:$0xff]   ;;  %5703 = vmatpush2.bf16.msra.mxu1 %v15767_v9  ;;  %v15774_v24 = vld [vmem:[%s18383_s28 + $0xc0] sm:$0xff]  }
 0x1bc   :  { %2146 = vst [vmem:[#allocation3 + $0x1e0] sm:$0xf] %v13806_v60  ;;  %v1669_v4 = vpop.f32.mrf.mxu0  ;;  %15170 = vmatmul.mubr.bf16.gmra.mxu0 %v15708_v0  ;;  %v1957_v35 = vld [vmem:[#allocation2 + $0xce] sm:$0xff]  ;;  %15205 = vmatprep.subr.bf16.mxu1 %v17004_v27 }
 0x1bd   :  { %v2412_v39 = vld [vmem:[#allocation2 + $0xca] sm:$0xff]  ;;  %1920 = vst [vmem:[#allocation2 + $0xe0] sm:$0xff] %v1850_v36  ;;  %v1670_v37 = vadd.f32 %v17068_v41, %v1669_v4  ;;  %15173 = vmatprep.mubr.msk.bf16.mxu0 %vm16452_vm0, %v17004_v27  ;;  %v13807_v43 = vpack.c.bf16 %v1957_v35, %v1957_v35  ;;  %v13847_v7 = vpack.c.bf16 %v1850_v36, %v1850_v36  ;;  %v15107_v58 = vpop.f32.mrf.mxu1 }
 0x1be   :  { %v13882_v44 = vpack.c.bf16 %v2412_v39, %v2412_v39  ;;  %v1671_v45 = vpop.f32.mrf.mxu0  ;;  %v15711_v14 = vld [vmem:[#allocation3 + $0x1b8] ss:$20 sps:$4 sm:$0xff]   ;;  %5886 = vmatpush2.bf16.msra.mxu0 %v15769_v46 }
 0x1bf   :  { %v1855_v48 = vadd.f32 %v17088_v23, %v1670_v37  ;;  %2147 = vst [vmem:[#allocation3 + $0x1f4] sm:$0xf] %v13807_v43  ;;  %2377 = vst [vmem:[#allocation3 + $0x220] sm:$0xf] %v13847_v7  ;;  %v17156_v62 = vpop.f32.mrf.mxu1  ;;  %v15714_v12 = vld [vmem:[#allocation3 + $0x1e4] ss:$20 sps:$4 sm:$0xff]   ;;  %5887 = vmatprep.subr.bf16.mxu0 %v16451_v1 }
 0x1c0   :  { %2602 = vst [vmem:[#allocation3 + $0x1e8] sm:$0xf] %v13882_v44  ;;  %v1672_v53 = vpop.f32.mrf.mxu0  ;;  %v2413_v55 = vld [vmem:[#allocation2 + $0xd2] sm:$0xff]  ;;  %3316 = vmatmul.mubr.bf16.gmra.mxu1 %v15711_v14 }
 0x1c1   :  { %v1958_v57 = vld [vmem:[#allocation2 + $0xd6] sm:$0xff]  ;;  %1921 = vst [vmem:[#allocation2 + $0xe8] sm:$0xff] %v1855_v48  ;;  %v1673_v23 = vadd.f32 %v17068_v41, %v1672_v53  ;;  %v13883_v17 = vpack.c.bf16 %v2413_v55, %v2413_v55  ;;  %v13848_v25 = vpack.c.bf16 %v1855_v48, %v1855_v48  ;;  %v15108_v8 = vpop.f32.mrf.mxu1  ;;  %3323 = vmatprep.mubr.bf16.mxu1 %v15714_v12 }
 0x1c2   :  { %v13808_v20 = vpack.c.bf16 %v1958_v57, %v1958_v57  ;;  %v1674_v61 = vpop.f32.mrf.mxu0  ;;  %v15713_v31 = vld [vmem:[#allocation3 + $0x1c0] ss:$20 sps:$4 sm:$0xff]   ;;  %5888 = vmatpush2.bf16.msra.mxu0 %v15774_v24 }
 0x1c3   :  { %v1858_v63 = vadd.f32 %v17095_v38, %v1673_v23  ;;  %2603 = vst [vmem:[#allocation3 + $0x1fc] sm:$0xf] %v13883_v17  ;;  %2378 = vst [vmem:[#allocation3 + $0x234] sm:$0xf] %v13848_v25  ;;  %v17170_v15 = vpop.f32.mrf.mxu1  ;;  %v17189_v17 = vld [vmem:[#allocation2 + $0x138] sm:$0xff] }
 0x1c4   :  { %2148 = vst [vmem:[#allocation3 + $0x208] sm:$0xf] %v13808_v20  ;;  %v1677_v49 = vpop.f32.mrf.mxu0  ;;  %15174 = vmatmul.mubr.bf16.gmra.mxu0 %v15713_v31  ;;  %v1959_v5 = vld [vmem:[#allocation2 + $0xde] sm:$0xff] }
 0x1c5   :  { %v2414_v6 = vld [vmem:[#allocation2 + $0xda] sm:$0xff]  ;;  %1922 = vst [vmem:[#allocation2 + $0xf0] sm:$0xff] %v1858_v63  ;;  %v1678_v10 = vadd.f32 %v17068_v41, %v1677_v49  ;;  %15177 = vmatprep.mubr.msk.bf16.mxu0 %vm16452_vm0, %v17004_v27  ;;  %v13809_v38 = vpack.c.bf16 %v1959_v5, %v1959_v5  ;;  %v13849_v34 = vpack.c.bf16 %v1858_v63, %v1858_v63  ;;  %v15111_v51 = vpop.f32.mrf.mxu1 }
 0x1c6   :  { %v13884_v33 = vpack.c.bf16 %v2414_v6, %v2414_v6  ;;  %v1679_v11 = vpop.f32.mrf.mxu0  ;;  %v15716_v13 = vld [vmem:[#allocation3 + $0x1e0] ss:$20 sps:$4 sm:$0xff]  }
 0x1c7   :  { %v1863_v16 = vadd.f32 %v17105_v42, %v1678_v10  ;;  %2149 = vst [vmem:[#allocation3 + $0x21c] sm:$0xf] %v13809_v38  ;;  %2379 = vst [vmem:[#allocation3 + $0x248] sm:$0xf] %v13849_v34  ;;  %v17179_v29 = vpop.f32.mrf.mxu1 }
 0x1c8   :  { %2604 = vst [vmem:[#allocation3 + $0x210] sm:$0xf] %v13884_v33  ;;  %v1680_v19 = vpop.f32.mrf.mxu0  ;;  %v2415_v21 = vld [vmem:[#allocation2 + $0xe2] sm:$0xff]  ;;  %3324 = vmatmul.mubr.bf16.gmra.mxu1 %v15716_v13 }
 0x1c9   :  { %v1960_v22 = vld [vmem:[#allocation2 + $0xe6] sm:$0xff]  ;;  %1923 = vst [vmem:[#allocation2 + $0xf8] sm:$0xff] %v1863_v16  ;;  %v1681_v42 = vadd.f32 %v17068_v41, %v1680_v19  ;;  %v13885_v54 = vpack.c.bf16 %v2415_v21, %v2415_v21  ;;  %v13850_v30 = vpack.c.bf16 %v1863_v16, %v1863_v16  ;;  %v15112_v4 = vpop.f32.mrf.mxu1 }
 0x1ca   :  { %v13810_v50 = vpack.c.bf16 %v1960_v22, %v1960_v22  ;;  %v1682_v60 = vpop.f32.mrf.mxu0  ;;  %v15717_v28 = vld [vmem:[#allocation3 + $0x1e8] ss:$20 sps:$4 sm:$0xff]  }
 0x1cb   :  { %v1866_v3 = vadd.f32 %v17113_v26, %v1681_v42  ;;  %2605 = vst [vmem:[#allocation3 + $0x224] sm:$0xf] %v13885_v54  ;;  %2380 = vst [vmem:[#allocation3 + $0x25c] sm:$0xf] %v13850_v30  ;;  %v15719_v26 = vld [vmem:[#allocation3 + $0x20c] ss:$20 sps:$4 sm:$0xff]  }
 0x1cc   :  { %2150 = vst [vmem:[#allocation3 + $0x230] sm:$0xf] %v13810_v50  ;;  %v1685_v1 = vpop.f32.mrf.mxu0  ;;  %15178 = vmatmul.mubr.bf16.gmra.mxu0 %v15717_v28  ;;  %v1961_v0 = vld [vmem:[#allocation2 + $0xee] sm:$0xff]  ;;  %3331 = vmatprep.mubr.bf16.mxu1 %v15719_v26 }
 0x1cd   :  { %v2416_v36 = vld [vmem:[#allocation2 + $0xea] sm:$0xff]  ;;  %1924 = vst [vmem:[#allocation2 + $0x100] sm:$0xff] %v1866_v3  ;;  %v1686_v35 = vadd.f32 %v17068_v41, %v1685_v1  ;;  %15181 = vmatprep.mubr.msk.bf16.mxu0 %vm16452_vm0, %v17004_v27  ;;  %v13811_v39 = vpack.c.bf16 %v1961_v0, %v1961_v0  ;;  %v13851_v2 = vpack.c.bf16 %v1866_v3, %v1866_v3 }
 0x1ce   :  { %v13886_v40 = vpack.c.bf16 %v2416_v36, %v2416_v36  ;;  %v1687_v37 = vpop.f32.mrf.mxu0  ;;  %v15721_v43 = vld [vmem:[#allocation3 + $0x208] ss:$20 sps:$4 sm:$0xff]  }
 0x1cf   :  { %v1871_v44 = vadd.f32 %v17123_v18, %v1686_v35  ;;  %2151 = vst [vmem:[#allocation3 + $0x244] sm:$0xf] %v13811_v39  ;;  %2381 = vst [vmem:[#allocation3 + $0x270] sm:$0xf] %v13851_v2 }
 0x1d0   :  { %2606 = vst [vmem:[#allocation3 + $0x238] sm:$0xf] %v13886_v40  ;;  %v1688_v7 = vpop.f32.mrf.mxu0  ;;  %v2417_v45 = vld [vmem:[#allocation2 + $0xf2] sm:$0xff]  ;;  %3332 = vmatmul.mubr.bf16.gmra.mxu1 %v15721_v43 }
 0x1d1   :  { %v1962_v56 = vld [vmem:[#allocation2 + $0xf6] sm:$0xff]  ;;  %1925 = vst [vmem:[#allocation2 + $0x108] sm:$0xff] %v1871_v44  ;;  %v1689_v14 = vadd.f32 %v17068_v41, %v1688_v7  ;;  %v13887_v27 = vpack.c.bf16 %v2417_v45, %v2417_v45  ;;  %v13852_v52 = vpack.c.bf16 %v1871_v44, %v1871_v44 }
 0x1d2   :  { %v13812_v48 = vpack.c.bf16 %v1962_v56, %v1962_v56  ;;  %v1690_v53 = vpop.f32.mrf.mxu0  ;;  %v15722_v55 = vld [vmem:[#allocation3 + $0x210] ss:$20 sps:$4 sm:$0xff]  }
 0x1d3   :  { %v1874_v57 = vadd.f32 %v17134_v32, %v1689_v14  ;;  %2607 = vst [vmem:[#allocation3 + $0x24c] sm:$0xf] %v13887_v27  ;;  %2382 = vst [vmem:[#allocation3 + $0x284] sm:$0xf] %v13852_v52  ;;  %v15724_v32 = vld [vmem:[#allocation3 + $0x234] ss:$20 sps:$4 sm:$0xff]  }
 0x1d4   :  { %2152 = vst [vmem:[#allocation3 + $0x258] sm:$0xf] %v13812_v48  ;;  %v1693_v18 = vpop.f32.mrf.mxu0  ;;  %15182 = vmatmul.mubr.bf16.gmra.mxu0 %v15722_v55  ;;  %v1963_v58 = vld [vmem:[#allocation2 + $0xfe] sm:$0xff]  ;;  %3339 = vmatprep.mubr.bf16.mxu1 %v15724_v32 }
 0x1d5   :  { %v2418_v59 = vld [vmem:[#allocation2 + $0xfa] sm:$0xff]  ;;  %1926 = vst [vmem:[#allocation2 + $0x110] sm:$0xff] %v1874_v57  ;;  %v1694_v23 = vadd.f32 %v17068_v41, %v1693_v18  ;;  %15185 = vmatprep.mubr.msk.bf16.mxu0 %vm16452_vm0, %v17189_v17  ;;  %v13813_v20 = vpack.c.bf16 %v1963_v58, %v1963_v58  ;;  %v13853_v61 = vpack.c.bf16 %v1874_v57, %v1874_v57 }
 0x1d6   :  { %v13888_v25 = vpack.c.bf16 %v2418_v59, %v2418_v59  ;;  %v1695_v31 = vpop.f32.mrf.mxu0  ;;  %v15726_v63 = vld [vmem:[#allocation3 + $0x230] ss:$20 sps:$4 sm:$0xff]  }
 0x1d7   :  { %v1879_v49 = vadd.f32 %v17145_v47, %v1694_v23  ;;  %2153 = vst [vmem:[#allocation3 + $0x26c] sm:$0xf] %v13813_v20  ;;  %2383 = vst [vmem:[#allocation3 + $0x298] sm:$0xf] %v13853_v61  ;;  %v15728_v24 = vld [vmem:[#allocation3 + $0x25c] ss:$20 sps:$4 sm:$0xff]  }
 0x1d8   :  { %2608 = vst [vmem:[#allocation3 + $0x260] sm:$0xf] %v13888_v25  ;;  %v1696_v5 = vpop.f32.mrf.mxu0  ;;  %v2419_v6 = vld [vmem:[#allocation2 + $0x102] sm:$0xff]  ;;  %3340 = vmatmul.mubr.bf16.gmra.mxu1 %v15726_v63  ;;  %v17212_v20 = vld [vmem:[%s18384_s29] ss:$0 sm:$0xff] }
 0x1d9   :  { %v1964_v8 = vld [vmem:[#allocation2 + $0x106] sm:$0xff]  ;;  %1927 = vst [vmem:[#allocation2 + $0x118] sm:$0xff] %v1879_v49  ;;  %v1697_v9 = vadd.f32 %v17068_v41, %v1696_v5  ;;  %v13889_v10 = vpack.c.bf16 %v2419_v6, %v2419_v6  ;;  %v13854_v33 = vpack.c.bf16 %v1879_v49, %v1879_v49  ;;  %3347 = vmatprep.mubr.bf16.mxu1 %v15728_v24 }
 0x1da   :  { %v13814_v38 = vpack.c.bf16 %v1964_v8, %v1964_v8  ;;  %v1698_v34 = vpop.f32.mrf.mxu0  ;;  %v15727_v46 = vld [vmem:[#allocation3 + $0x238] ss:$20 sps:$4 sm:$0xff]  }
 0x1db   :  { %v1882_v11 = vadd.f32 %v17156_v62, %v1697_v9  ;;  %2609 = vst [vmem:[#allocation3 + $0x274] sm:$0xf] %v13889_v10  ;;  %2384 = vst [vmem:[#allocation3 + $0x2ac] sm:$0xf] %v13854_v33 }
 0x1dc   :  { %2154 = vst [vmem:[#allocation3 + $0x280] sm:$0xf] %v13814_v38  ;;  %v1701_v47 = vpop.f32.mrf.mxu0  ;;  %15186 = vmatmul.mubr.bf16.gmra.mxu0 %v15727_v46  ;;  %v1965_v12 = vld [vmem:[#allocation2 + $0x10e] sm:$0xff] }
 0x1dd   :  { %v2420_v13 = vld [vmem:[#allocation2 + $0x10a] sm:$0xff]  ;;  %1928 = vst [vmem:[#allocation2 + $0x120] sm:$0xff] %v1882_v11  ;;  %v1702_v16 = vadd.f32 %v17068_v41, %v1701_v47  ;;  %15189 = vmatprep.mubr.msk.bf16.mxu0 %vm16452_vm0, %v17189_v17  ;;  %v13815_v19 = vpack.c.bf16 %v1965_v12, %v1965_v12  ;;  %v13855_v22 = vpack.c.bf16 %v1882_v11, %v1882_v11 }
 0x1de   :  { %v13890_v21 = vpack.c.bf16 %v2420_v13, %v2420_v13  ;;  %v1703_v51 = vpop.f32.mrf.mxu0  ;;  %v15731_v42 = vld [vmem:[#allocation3 + $0x258] ss:$20 sps:$4 sm:$0xff]  }
 0x1df   :  { %v1887_v62 = vadd.f32 %v17170_v15, %v1702_v16  ;;  %2155 = vst [vmem:[#allocation3 + $0x294] sm:$0xf] %v13815_v19  ;;  %2385 = vst [vmem:[#allocation3 + $0x2c0] sm:$0xf] %v13855_v22  ;;  %v15733_v40 = vld [vmem:[#allocation3 + $0x284] ss:$20 sps:$4 sm:$0xff]  }
 0x1e0   :  { %2610 = vst [vmem:[#allocation3 + $0x288] sm:$0xf] %v13890_v21  ;;  %v1704_v54 = vpop.f32.mrf.mxu0  ;;  %v2421_v50 = vld [vmem:[#allocation2 + $0x112] sm:$0xff]  ;;  %3348 = vmatmul.mubr.bf16.gmra.mxu1 %v15731_v42 }
 0x1e1   :  { %v1966_v30 = vld [vmem:[#allocation2 + $0x116] sm:$0xff]  ;;  %1929 = vst [vmem:[#allocation2 + $0x128] sm:$0xff] %v1887_v62  ;;  %v1705_v60 = vadd.f32 %v17068_v41, %v1704_v54  ;;  %v13891_v28 = vpack.c.bf16 %v2421_v50, %v2421_v50  ;;  %v13856_v1 = vpack.c.bf16 %v1887_v62, %v1887_v62  ;;  %3355 = vmatprep.mubr.bf16.mxu1 %v15733_v40 }
 0x1e2   :  { %v13816_v3 = vpack.c.bf16 %v1966_v30, %v1966_v30  ;;  %v1706_v0 = vpop.f32.mrf.mxu0  ;;  %v15732_v36 = vld [vmem:[#allocation3 + $0x260] ss:$20 sps:$4 sm:$0xff]  }
 0x1e3   :  { %v1890_v4 = vadd.f32 %v17179_v29, %v1705_v60  ;;  %2611 = vst [vmem:[#allocation3 + $0x29c] sm:$0xf] %v13891_v28  ;;  %2386 = vst [vmem:[#allocation3 + $0x2d4] sm:$0xf] %v13856_v1 }
 0x1e4   :  { %2156 = vst [vmem:[#allocation3 + $0x2a8] sm:$0xf] %v13816_v3  ;;  %15190 = vmatmul.mubr.bf16.gmra.mxu0 %v15732_v36  ;;  %v1967_v15 = vld [vmem:[#allocation2 + $0x11e] sm:$0xff] }
 0x1e5   :  { %v2422_v35 = vld [vmem:[#allocation2 + $0x11a] sm:$0xff]  ;;  %1930 = vst [vmem:[#allocation2 + $0x130] sm:$0xf] %v1890_v4  ;;  %15193 = vmatprep.mubr.msk.bf16.mxu0 %vm16452_vm0, %v17189_v17  ;;  %v13817_v39 = vpack.c.bf16 %v1967_v15, %v1967_v15 }
 0x1e6   :  { %v13892_v41 = vpack.c.bf16 %v2422_v35, %v2422_v35  ;;  %v15735_v2 = vld [vmem:[#allocation3 + $0x280] ss:$20 sps:$4 sm:$0xff]  }
 0x1e7   :  { %2157 = vst [vmem:[#allocation3 + $0x2bc] sm:$0xf] %v13817_v39  ;;  %v15738_v53 = vld [vmem:[#allocation3 + $0x2ac] ss:$20 sps:$4 sm:$0xff]  }
 0x1e8   :  { %2612 = vst [vmem:[#allocation3 + $0x2b0] sm:$0xf] %v13892_v41  ;;  %v2423_v37 = vld [vmem:[#allocation2 + $0x122] sm:$0xff]  ;;  %3356 = vmatmul.mubr.bf16.gmra.mxu1 %v15735_v2 }
 0x1e9   :  { %v1968_v26 = vld [vmem:[#allocation2 + $0x126] sm:$0xff]  ;;  %v13893_v29 = vpack.c.bf16 %v2423_v37, %v2423_v37  ;;  %3363 = vmatprep.mubr.bf16.mxu1 %v15738_v53 }
 0x1ea   :  { %v13818_v43 = vpack.c.bf16 %v1968_v26, %v1968_v26  ;;  %v15737_v44 = vld [vmem:[#allocation3 + $0x288] ss:$20 sps:$4 sm:$0xff]  }
 0x1eb   :  { %2613 = vst [vmem:[#allocation3 + $0x2c4] sm:$0xf] %v13893_v29 }
 0x1ec   :  { %2158 = vst [vmem:[#allocation3 + $0x2d0] sm:$0xf] %v13818_v43  ;;  %15194 = vmatmul.mubr.bf16.gmra.mxu0 %v15737_v44  ;;  %v1969_v7 = vld [vmem:[#allocation2 + $0x12e] sm:$0xf]  ;;  %v2425_v48 = vld [vmem:[#allocation2 + $0x132] sm:$0xf] }
 0x1ed   :  { %v2197_v45 = vld [vmem:[#allocation2 + $0x130] sm:$0xf]  ;;  %15197 = vmatprep.mubr.msk.bf16.mxu0 %vm16452_vm0, %v17189_v17  ;;  %v13819_v14 = vpack.c.bf16 %v1969_v7, %v1969_v7  ;;  %v13895_v57 = vpack.c.bf16 %v2425_v48, %v2425_v48  ;;  %3603 = vst [vmem:[#allocation2 + $0x134] sm:$0x3] %v17189_v17 }
 0x1ee   :  { %v2424_v56 = vld [vmem:[#allocation2 + $0x12a] sm:$0xff]  ;;  %v13857_v27 = vpack.c.bf16 %v2197_v45, %v2197_v45 }
 0x1ef   :  { %v13894_v52 = vpack.c.bf16 %v2424_v56, %v2424_v56  ;;  %v15740_v55 = vld [vmem:[#allocation3 + $0x2a8] ss:$20 sps:$4 sm:$0xff]   ;;  %2159 = vst [vmem:[#allocation3 + $0x2e4] sm:$0x3] %v13819_v14  ;;  %2615 = vst [vmem:[#allocation3 + $0x2ec] sm:$0x3] %v13895_v57 }
 0x1f0   :  { %2387 = vst [vmem:[#allocation3 + $0x2e8] sm:$0x3] %v13857_v27  ;;  %3364 = vmatmul.mubr.bf16.gmra.mxu1 %v15740_v55 }
 0x1f1   :  { %2614 = vst [vmem:[#allocation3 + $0x2d8] sm:$0xf] %v13894_v52 }
 0x1f2   :  { %v15742_v18 = vld [vmem:[#allocation3 + $0x2b0] ss:$20 sps:$4 sm:$0xff]  }
 0x1f4   :  { %15198 = vmatmul.mubr.bf16.gmra.mxu0 %v15742_v18 }
 0x1f5   :  { %15201 = vmatprep.mubr.msk.bf16.mxu0 %vm16452_vm0, %v17189_v17 }
 0x1f6   :  { %v15745_v59 = vld [vmem:[#allocation3 + $0x2d0] ss:$20 sps:$4 sm:$0x3f]  }
 0x1f7   :  { %v15743_v58 = vld [vmem:[#allocation3 + $0x2d4] ss:$20 sps:$4 sm:$0x3f]  }
 0x1f8   :  { %3371 = vmatprep.mubr.bf16.mxu1 %v15743_v58  ;;  %v15746_v23 = vld [vmem:[#allocation3 + $0x2d8] ss:$20 sps:$4 sm:$0x3f]  }
 0x1f9   :  { %3372 = vmatmul.mubr.bf16.gmra.mxu1 %v15745_v59 }
 0x1fc   :  { %15202 = vmatmul.mubr.bf16.gmra.mxu0 %v15746_v23 }
 0x227   :  { %v3229_v25 = vpop.f32.mrf.mxu1 }
 0x228   :  { %v3230_v61 = vadd.f32 %v17212_v20, %v3229_v25 }
 0x229   :  { %v3231_v31 = vpop.f32.mrf.mxu1 }
 0x22b   :  { %v3232_v49 = vpop.f32.mrf.mxu1 }
 0x22c   :  { %v3414_v32 = vpop.f32.mrf.mxu0  ;;  %v3233_v5 = vadd.f32 %v17212_v20, %v3232_v49 }
 0x22d   :  { %v3415_v63 = vadd.f32 %v3414_v32, %v3230_v61  ;;  %v3234_v9 = vpop.f32.mrf.mxu1 }
 0x22e   :  { %v15131_v6 = vpop.f32.mrf.mxu0 }
 0x22f   :  { %3565 = vst [vmem:[#allocation2 + $0x8] sm:$0xff] %v3415_v63  ;;  %v13972_v8 = vpack.c.bf16 %v3415_v63, %v3415_v63  ;;  %v3237_v33 = vpop.f32.mrf.mxu1 }
 0x230   :  { %v3417_v10 = vpop.f32.mrf.mxu0  ;;  %v3238_v34 = vadd.f32 %v17212_v20, %v3237_v33 }
 0x231   :  { %4250 = vst [vmem:[#allocation3 + $0x8] sm:$0xf] %v13972_v8  ;;  %v3418_v38 = vadd.f32 %v3417_v10, %v3233_v5  ;;  %v3239_v11 = vpop.f32.mrf.mxu1  ;;  %v15773_v5 = vld [vmem:[%s18383_s28 + $0x138] sm:$0xff]  }
 0x232   :  { %v15132_v46 = vpop.f32.mrf.mxu0 }
 0x233   :  { %3566 = vst [vmem:[#allocation2 + $0x10] sm:$0xff] %v3418_v38  ;;  %v13973_v47 = vpack.c.bf16 %v3418_v38, %v3418_v38  ;;  %v3240_v16 = vpop.f32.mrf.mxu1 }
 0x234   :  { %v3422_v12 = vpop.f32.mrf.mxu0  ;;  %v3241_v22 = vadd.f32 %v17212_v20, %v3240_v16 }
 0x235   :  { %v3423_v13 = vadd.f32 %v3422_v12, %v3238_v34  ;;  %4251 = vst [vmem:[#allocation3 + $0x1c] sm:$0xf] %v13973_v47  ;;  %v3242_v62 = vpop.f32.mrf.mxu1 }
 0x236   :  { %v3604_v19 = vld [vmem:[#allocation2 + $0x6] sm:$0xff]  ;;  %v15135_v51 = vpop.f32.mrf.mxu0 }
 0x237   :  { %v3832_v21 = vld [vmem:[#allocation2 + $0x7] sm:$0xff]  ;;  %v13896_v24 = vpack.c.bf16 %v3604_v19, %v3604_v19  ;;  %3567 = vst [vmem:[#allocation2 + $0x18] sm:$0xff] %v3423_v13  ;;  %v13974_v54 = vpack.c.bf16 %v3423_v13, %v3423_v13  ;;  %v3245_v60 = vpop.f32.mrf.mxu1 }
 0x238   :  { %v13934_v42 = vpack.c.bf16 %v3832_v21, %v3832_v21  ;;  %v3425_v50 = vpop.f32.mrf.mxu0  ;;  %v3246_v0 = vadd.f32 %v17212_v20, %v3245_v60 }
 0x239   :  { %3794 = vst [vmem:[#allocation3] sm:$0xf] %v13896_v24  ;;  %v3426_v30 = vadd.f32 %v3425_v50, %v3241_v22  ;;  %4252 = vst [vmem:[#allocation3 + $0x30] sm:$0xf] %v13974_v54  ;;  %v3247_v15 = vpop.f32.mrf.mxu1  ;;  %v15789_v54 = vld [vmem:[%s18383_s28 + $0x130] sm:$0xff]  }
 0x23a   :  { %4022 = vst [vmem:[#allocation3 + $0x4] sm:$0xf] %v13934_v42  ;;  %v3605_v28 = vld [vmem:[#allocation2 + $0xe] sm:$0xff]  ;;  %v15136_v36 = vpop.f32.mrf.mxu0 }
 0x23b   :  { %v3833_v3 = vld [vmem:[#allocation2 + $0xf] sm:$0xff]  ;;  %3568 = vst [vmem:[#allocation2 + $0x20] sm:$0xff] %v3426_v30  ;;  %v13897_v35 = vpack.c.bf16 %v3605_v28, %v3605_v28  ;;  %v13975_v40 = vpack.c.bf16 %v3426_v30, %v3426_v30  ;;  %v3248_v29 = vpop.f32.mrf.mxu1 }
 0x23c   :  { %v4288_v1 = vld [vmem:[#allocation2 + $0x9] sm:$0xff]  ;;  %v13935_v39 = vpack.c.bf16 %v3833_v3, %v3833_v3  ;;  %v3430_v2 = vpop.f32.mrf.mxu0  ;;  %v3249_v45 = vadd.f32 %v17212_v20, %v3248_v29 }
 0x23d   :  { %v4516_v4 = vld [vmem:[#allocation2 + $0xa] sm:$0xff]  ;;  %v14010_v41 = vpack.c.bf16 %v4288_v1, %v4288_v1  ;;  %v3431_v26 = vadd.f32 %v3430_v2, %v3246_v0  ;;  %3795 = vst [vmem:[#allocation3 + $0x14] sm:$0xf] %v13897_v35  ;;  %4253 = vst [vmem:[#allocation3 + $0x44] sm:$0xf] %v13975_v40  ;;  %v3250_v27 = vpop.f32.mrf.mxu1 }
 0x23e   :  { %v14048_v37 = vpack.c.bf16 %v4516_v4, %v4516_v4  ;;  %4023 = vst [vmem:[#allocation3 + $0x18] sm:$0xf] %v13935_v39  ;;  %v3606_v43 = vld [vmem:[#allocation2 + $0x16] sm:$0xff]  ;;  %v15139_v56 = vpop.f32.mrf.mxu0 }
 0x23f   :  { %4478 = vst [vmem:[#allocation3 + $0xc] sm:$0xf] %v14010_v41  ;;  %v3834_v44 = vld [vmem:[#allocation2 + $0x17] sm:$0xff]  ;;  %3569 = vst [vmem:[#allocation2 + $0x28] sm:$0xff] %v3431_v26  ;;  %v13898_v52 = vpack.c.bf16 %v3606_v43, %v3606_v43  ;;  %v13976_v55 = vpack.c.bf16 %v3431_v26, %v3431_v26  ;;  %v15803_v43 = vld [vmem:[%s18383_s28 + $0x128] sm:$0xff]  }
 0x240   :  { %v4289_v7 = vld [vmem:[#allocation2 + $0x11] sm:$0xff]  ;;  %4706 = vst [vmem:[#allocation3 + $0x10] sm:$0xf] %v14048_v37  ;;  %v13936_v53 = vpack.c.bf16 %v3834_v44, %v3834_v44  ;;  %v3433_v57 = vpop.f32.mrf.mxu0  ;;  %v3253_v59 = vpop.f32.mrf.mxu1  ;;  %v15777_v28 = vld [vmem:[#allocation3 + $0x8] ss:$20 sps:$4 sm:$0xff]  }
 0x241   :  { %v4517_v14 = vld [vmem:[#allocation2 + $0x12] sm:$0xff]  ;;  %v14011_v48 = vpack.c.bf16 %v4289_v7, %v4289_v7  ;;  %v3434_v58 = vadd.f32 %v3433_v57, %v3249_v45  ;;  %3796 = vst [vmem:[#allocation3 + $0x28] sm:$0xf] %v13898_v52  ;;  %4254 = vst [vmem:[#allocation3 + $0x58] sm:$0xf] %v13976_v55  ;;  %v3254_v31 = vadd.f32 %v17212_v20, %v3253_v59 }
 0x242   :  { %v14049_v18 = vpack.c.bf16 %v4517_v14, %v4517_v14  ;;  %4024 = vst [vmem:[#allocation3 + $0x2c] sm:$0xf] %v13936_v53  ;;  %v3607_v23 = vld [vmem:[#allocation2 + $0x1e] sm:$0xff]  ;;  %v15140_v32 = vpop.f32.mrf.mxu0  ;;  %v3255_v49 = vpop.f32.mrf.mxu1 }
 0x243   :  { %4479 = vst [vmem:[#allocation3 + $0x20] sm:$0xf] %v14011_v48  ;;  %v3835_v25 = vld [vmem:[#allocation2 + $0x1f] sm:$0xff]  ;;  %3570 = vst [vmem:[#allocation2 + $0x30] sm:$0xff] %v3434_v58  ;;  %v13899_v6 = vpack.c.bf16 %v3607_v23, %v3607_v23  ;;  %v13977_v10 = vpack.c.bf16 %v3434_v58, %v3434_v58 }
 0x244   :  { %v4290_v61 = vld [vmem:[#allocation2 + $0x19] sm:$0xff]  ;;  %4707 = vst [vmem:[#allocation3 + $0x24] sm:$0xf] %v14049_v18  ;;  %v13937_v8 = vpack.c.bf16 %v3835_v25, %v3835_v25  ;;  %v3438_v38 = vpop.f32.mrf.mxu0  ;;  %v3256_v47 = vpop.f32.mrf.mxu1  ;;  %v15783_v49 = vld [vmem:[#allocation3 + $0x30] ss:$20 sps:$4 sm:$0xff]  }
 0x245   :  { %v4518_v63 = vld [vmem:[#allocation2 + $0x1a] sm:$0xff]  ;;  %v14012_v9 = vpack.c.bf16 %v4290_v61, %v4290_v61  ;;  %v3439_v11 = vadd.f32 %v3438_v38, %v3254_v31  ;;  %3797 = vst [vmem:[#allocation3 + $0x3c] sm:$0xf] %v13899_v6  ;;  %4255 = vst [vmem:[#allocation3 + $0x6c] sm:$0xf] %v13977_v10  ;;  %v3257_v19 = vadd.f32 %v17212_v20, %v3256_v47 }
 0x246   :  { %v15770_v33 = vld [vmem:[#allocation3 + $0x4] ss:$20 sps:$4 sm:$0xff]   ;;  %v15772_v34 = vld [vmem:[#allocation3] ss:$20 sps:$4 sm:$0xff]   ;;  %v14050_v46 = vpack.c.bf16 %v4518_v63, %v4518_v63  ;;  %4025 = vst [vmem:[#allocation3 + $0x40] sm:$0xf] %v13937_v8  ;;  %v15143_v21 = vpop.f32.mrf.mxu0  ;;  %v3258_v51 = vpop.f32.mrf.mxu1 }
 0x247   :  { %4480 = vst [vmem:[#allocation3 + $0x34] sm:$0xf] %v14012_v9  ;;  %v3608_v12 = vld [vmem:[#allocation2 + $0x26] sm:$0xff]  ;;  %5704 = vmatprep.mubr.bf16.mxu1 %v15770_v33  ;;  %3571 = vst [vmem:[#allocation2 + $0x38] sm:$0xff] %v3439_v11  ;;  %v13978_v50 = vpack.c.bf16 %v3439_v11, %v3439_v11 }
 0x248   :  { %v3836_v13 = vld [vmem:[#allocation2 + $0x27] sm:$0xff]  ;;  %4708 = vst [vmem:[#allocation3 + $0x38] sm:$0xf] %v14050_v46  ;;  %5705 = vmatmul.mubr.bf16.vlgmr.msra.gmra.mxu1 %v15772_v34  ;;  %v13900_v42 = vpack.c.bf16 %v3608_v12, %v3608_v12  ;;  %v3441_v30 = vpop.f32.mrf.mxu0  ;;  %v3261_v0 = vpop.f32.mrf.mxu1 }
 0x249   :  { %v4291_v16 = vld [vmem:[#allocation2 + $0x21] sm:$0xff]  ;;  %v13938_v62 = vpack.c.bf16 %v3836_v13, %v3836_v13  ;;  %15206 = vmatpush3.bf16.msra.mxu1 %v15773_v5  ;;  %v3442_v1 = vadd.f32 %v3441_v30, %v3257_v19  ;;  %4256 = vst [vmem:[#allocation3 + $0x80] sm:$0xf] %v13978_v50  ;;  %v3262_v35 = vadd.f32 %v17212_v20, %v3261_v0 }
 0x24a   :  { %v4519_v22 = vld [vmem:[#allocation2 + $0x22] sm:$0xff]  ;;  %v14013_v24 = vpack.c.bf16 %v4291_v16, %v4291_v16  ;;  %3798 = vst [vmem:[#allocation3 + $0x50] sm:$0xf] %v13900_v42  ;;  %15207 = vmatprep.subr.bf16.mxu1 %v17189_v17  ;;  %v3609_v36 = vld [vmem:[#allocation2 + $0x2e] sm:$0xff]  ;;  %v15144_v39 = vpop.f32.mrf.mxu0  ;;  %v3263_v40 = vpop.f32.mrf.mxu1  ;;  %v15835_v16 = vld [vmem:[%s18383_s28 + $0x118] sm:$0xff]  }
 0x24b   :  { %v15775_v60 = vld [vmem:[#allocation3 + $0xc] ss:$20 sps:$4 sm:$0xff]   ;;  %v14051_v3 = vpack.c.bf16 %v4519_v22, %v4519_v22  ;;  %4026 = vst [vmem:[#allocation3 + $0x54] sm:$0xf] %v13938_v62  ;;  %3572 = vst [vmem:[#allocation2 + $0x40] sm:$0xff] %v3442_v1  ;;  %v13901_v2 = vpack.c.bf16 %v3609_v36, %v3609_v36  ;;  %v13979_v29 = vpack.c.bf16 %v3442_v1, %v3442_v1 }
 0x24c   :  { %4481 = vst [vmem:[#allocation3 + $0x48] sm:$0xf] %v14013_v24  ;;  %v3837_v4 = vld [vmem:[#allocation2 + $0x2f] sm:$0xff]  ;;  %5889 = vmatprep.mubr.bf16.mxu0 %v15775_v60  ;;  %v3446_v44 = vpop.f32.mrf.mxu0  ;;  %v15780_v45 = vld [vmem:[#allocation3 + $0x28] ss:$20 sps:$4 sm:$0xff]   ;;  %v3264_v27 = vpop.f32.mrf.mxu1  ;;  %v15819_v61 = vld [vmem:[%s18383_s28 + $0x120] sm:$0xff]  }
 0x24d   :  { %v4292_v15 = vld [vmem:[#allocation2 + $0x29] sm:$0xff]  ;;  %4709 = vst [vmem:[#allocation3 + $0x4c] sm:$0xf] %v14051_v3  ;;  %5890 = vmatmul.mubr.bf16.vlgmr.msra.gmra.mxu0 %v15777_v28  ;;  %v13939_v37 = vpack.c.bf16 %v3837_v4, %v3837_v4  ;;  %15208 = vmatpush3.bf16.msra.mxu1 %v15789_v54  ;;  %v3447_v14 = vadd.f32 %v3446_v44, %v3262_v35  ;;  %3799 = vst [vmem:[#allocation3 + $0x64] sm:$0xf] %v13901_v2 }
 0x24e   :  { %v4520_v41 = vld [vmem:[#allocation2 + $0x2a] sm:$0xff]  ;;  %v14014_v26 = vpack.c.bf16 %v4292_v15, %v4292_v15  ;;  %4257 = vst [vmem:[#allocation3 + $0x94] sm:$0xf] %v13979_v29  ;;  %15209 = vmatprep.subr.bf16.mxu1 %v17189_v17  ;;  %v3265_v48 = vadd.f32 %v17212_v20, %v3264_v27  ;;  %v15147_v52 = vpop.f32.mrf.mxu0  ;;  %v3610_v55 = vld [vmem:[#allocation2 + $0x36] sm:$0xff]  ;;  %v3266_v18 = vpop.f32.mrf.mxu1 }
 0x24f   :  { %v15778_v7 = vld [vmem:[#allocation3 + $0x2c] ss:$20 sps:$4 sm:$0xff]   ;;  %v14052_v56 = vpack.c.bf16 %v4520_v41, %v4520_v41  ;;  %4027 = vst [vmem:[#allocation3 + $0x68] sm:$0xf] %v13939_v37  ;;  %v4293_v53 = vld [vmem:[#allocation2 + $0x31] sm:$0xff]  ;;  %3573 = vst [vmem:[#allocation2 + $0x48] sm:$0xff] %v3447_v14  ;;  %v13902_v59 = vpack.c.bf16 %v3610_v55, %v3610_v55  ;;  %v13980_v25 = vpack.c.bf16 %v3447_v14, %v3447_v14 }
 0x250   :  { %4482 = vst [vmem:[#allocation3 + $0x5c] sm:$0xf] %v14014_v26  ;;  %5712 = vmatprep.mubr.bf16.mxu1 %v15778_v7  ;;  %v3838_v57 = vld [vmem:[#allocation2 + $0x37] sm:$0xff]  ;;  %v14015_v58 = vpack.c.bf16 %v4293_v53, %v4293_v53  ;;  %v3449_v32 = vpop.f32.mrf.mxu0  ;;  %v3269_v8 = vpop.f32.mrf.mxu1  ;;  %v15864_v53 = vld [vmem:[%s18383_s28 + $0x108] sm:$0xff]  }
 0x251   :  { %4710 = vst [vmem:[#allocation3 + $0x60] sm:$0xf] %v14052_v56  ;;  %5713 = vmatmul.mubr.bf16.gmra.mxu1 %v15780_v45  ;;  %v13940_v23 = vpack.c.bf16 %v3838_v57, %v3838_v57  ;;  %v4521_v31 = vld [vmem:[#allocation2 + $0x32] sm:$0xff]  ;;  %v3450_v6 = vadd.f32 %v3449_v32, %v3265_v48  ;;  %3800 = vst [vmem:[#allocation3 + $0x78] sm:$0xf] %v13902_v59  ;;  %v3270_v9 = vadd.f32 %v17212_v20, %v3269_v8 }
 0x252   :  { %15210 = vmatpush3.bf16.msra.mxu1 %v15803_v43  ;;  %v14053_v5 = vpack.c.bf16 %v4521_v31, %v4521_v31  ;;  %4483 = vst [vmem:[#allocation3 + $0x70] sm:$0xf] %v14015_v58  ;;  %4258 = vst [vmem:[#allocation3 + $0xa8] sm:$0xf] %v13980_v25  ;;  %v15148_v10 = vpop.f32.mrf.mxu0  ;;  %v3611_v38 = vld [vmem:[#allocation2 + $0x3e] sm:$0xff]  ;;  %v3271_v46 = vpop.f32.mrf.mxu1  ;;  %v15851_v15 = vld [vmem:[%s18383_s28 + $0x110] sm:$0xff]  }
 0x253   :  { %v15781_v63 = vld [vmem:[#allocation3 + $0x34] ss:$20 sps:$4 sm:$0xff]   ;;  %4028 = vst [vmem:[#allocation3 + $0x7c] sm:$0xf] %v13940_v23  ;;  %15211 = vmatprep.subr.bf16.mxu1 %v17189_v17  ;;  %v3839_v33 = vld [vmem:[#allocation2 + $0x3f] sm:$0xff]  ;;  %3574 = vst [vmem:[#allocation2 + $0x50] sm:$0xff] %v3450_v6  ;;  %v13903_v11 = vpack.c.bf16 %v3611_v38, %v3611_v38  ;;  %v13981_v13 = vpack.c.bf16 %v3450_v6, %v3450_v6 }
 0x254   :  { %5897 = vmatprep.mubr.bf16.mxu0 %v15781_v63  ;;  %v4294_v34 = vld [vmem:[#allocation2 + $0x39] sm:$0xff]  ;;  %4711 = vst [vmem:[#allocation3 + $0x74] sm:$0xf] %v14053_v5  ;;  %v13941_v47 = vpack.c.bf16 %v3839_v33, %v3839_v33  ;;  %v3454_v21 = vpop.f32.mrf.mxu0  ;;  %v15786_v51 = vld [vmem:[#allocation3 + $0x50] ss:$20 sps:$4 sm:$0xff]   ;;  %v3272_v62 = vpop.f32.mrf.mxu1 }
 0x255   :  { %5898 = vmatmul.mubr.bf16.gmra.mxu0 %v15783_v49  ;;  %v14016_v12 = vpack.c.bf16 %v4294_v34, %v4294_v34  ;;  %v4522_v19 = vld [vmem:[#allocation2 + $0x3a] sm:$0xff]  ;;  %v3455_v42 = vadd.f32 %v3454_v21, %v3270_v9  ;;  %3801 = vst [vmem:[#allocation3 + $0x8c] sm:$0xf] %v13903_v11  ;;  %4259 = vst [vmem:[#allocation3 + $0xbc] sm:$0xf] %v13981_v13  ;;  %v3273_v54 = vadd.f32 %v17212_v20, %v3272_v62 }
 0x256   :  { %v15784_v22 = vld [vmem:[#allocation3 + $0x54] ss:$20 sps:$4 sm:$0xff]   ;;  %15212 = vmatpush3.bf16.msra.mxu1 %v15819_v61  ;;  %v14054_v24 = vpack.c.bf16 %v4522_v19, %v4522_v19  ;;  %4029 = vst [vmem:[#allocation3 + $0x90] sm:$0xf] %v13941_v47  ;;  %v15151_v50 = vpop.f32.mrf.mxu0  ;;  %v3274_v3 = vpop.f32.mrf.mxu1  ;;  %v15790_v40 = vld [vmem:[#allocation3 + $0x58] ss:$20 sps:$4 sm:$0xff]  }
 0x257   :  { %4484 = vst [vmem:[#allocation3 + $0x84] sm:$0xf] %v14016_v12  ;;  %15213 = vmatprep.subr.bf16.mxu1 %v17189_v17  ;;  %5720 = vmatprep.mubr.bf16.mxu1 %v15784_v22  ;;  %v4295_v30 = vld [vmem:[#allocation2 + $0x41] sm:$0xff]  ;;  %3575 = vst [vmem:[#allocation2 + $0x58] sm:$0xff] %v3455_v42  ;;  %v13982_v4 = vpack.c.bf16 %v3455_v42, %v3455_v42 }
 0x258   :  { %v3612_v60 = vld [vmem:[#allocation2 + $0x46] sm:$0xff]  ;;  %4712 = vst [vmem:[#allocation3 + $0x88] sm:$0xf] %v14054_v24  ;;  %v14017_v1 = vpack.c.bf16 %v4295_v30, %v4295_v30  ;;  %v3457_v39 = vpop.f32.mrf.mxu0  ;;  %v3277_v26 = vpop.f32.mrf.mxu1  ;;  %v15796_v11 = vld [vmem:[#allocation3 + $0x80] ss:$20 sps:$4 sm:$0xff]  }
 0x259   :  { %v3840_v28 = vld [vmem:[#allocation2 + $0x47] sm:$0xff]  ;;  %5721 = vmatmul.mubr.bf16.gmra.mxu1 %v15786_v51  ;;  %v13904_v0 = vpack.c.bf16 %v3612_v60, %v3612_v60  ;;  %v15787_v41 = vld [vmem:[#allocation3 + $0x5c] ss:$20 sps:$4 sm:$0xff]   ;;  %v3458_v37 = vadd.f32 %v3457_v39, %v3273_v54  ;;  %4260 = vst [vmem:[#allocation3 + $0xd0] sm:$0xf] %v13982_v4  ;;  %v3278_v29 = vadd.f32 %v17212_v20, %v3277_v26 }
 0x25a   :  { %v13942_v36 = vpack.c.bf16 %v3840_v28, %v3840_v28  ;;  %v4523_v35 = vld [vmem:[#allocation2 + $0x42] sm:$0xff]  ;;  %15214 = vmatpush3.bf16.msra.mxu1 %v15835_v16  ;;  %4485 = vst [vmem:[#allocation3 + $0x98] sm:$0xf] %v14017_v1  ;;  %v15152_v43 = vpop.f32.mrf.mxu0  ;;  %5905 = vmatprep.mubr.bf16.mxu0 %v15787_v41  ;;  %v3613_v44 = vld [vmem:[#allocation2 + $0x4e] sm:$0xff]  ;;  %v3279_v56 = vpop.f32.mrf.mxu1 }
 0x25b   :  { %v14055_v2 = vpack.c.bf16 %v4523_v35, %v4523_v35  ;;  %3802 = vst [vmem:[#allocation3 + $0xa0] sm:$0xf] %v13904_v0  ;;  %15215 = vmatprep.subr.bf16.mxu1 %v17189_v17  ;;  %v3841_v7 = vld [vmem:[#allocation2 + $0x4f] sm:$0xff]  ;;  %3576 = vst [vmem:[#allocation2 + $0x60] sm:$0xff] %v3458_v37  ;;  %v13905_v14 = vpack.c.bf16 %v3613_v44, %v3613_v44  ;;  %v13983_v52 = vpack.c.bf16 %v3458_v37, %v3458_v37  ;;  %v15880_v38 = vld [vmem:[%s18383_s28 + $0x100] sm:$0xff]  }
 0x25c   :  { %4030 = vst [vmem:[#allocation3 + $0xa4] sm:$0xf] %v13942_v36  ;;  %v4296_v45 = vld [vmem:[#allocation2 + $0x49] sm:$0xff]  ;;  %v13943_v27 = vpack.c.bf16 %v3841_v7, %v3841_v7  ;;  %v3462_v57 = vpop.f32.mrf.mxu0  ;;  %v3280_v25 = vpop.f32.mrf.mxu1 }
 0x25d   :  { %4713 = vst [vmem:[#allocation3 + $0x9c] sm:$0xf] %v14055_v2  ;;  %5906 = vmatmul.mubr.bf16.gmra.mxu0 %v15790_v40  ;;  %v14018_v48 = vpack.c.bf16 %v4296_v45, %v4296_v45  ;;  %v4524_v55 = vld [vmem:[#allocation2 + $0x4a] sm:$0xff]  ;;  %v3463_v23 = vadd.f32 %v3462_v57, %v3278_v29  ;;  %3803 = vst [vmem:[#allocation3 + $0xb4] sm:$0xf] %v13905_v14  ;;  %v3281_v61 = vadd.f32 %v17212_v20, %v3280_v25 }
 0x25e   :  { %v15791_v18 = vld [vmem:[#allocation3 + $0x7c] ss:$20 sps:$4 sm:$0xff]   ;;  %v15793_v58 = vld [vmem:[#allocation3 + $0x78] ss:$20 sps:$4 sm:$0xff]   ;;  %15216 = vmatpush3.bf16.msra.mxu1 %v15851_v15  ;;  %v14056_v59 = vpack.c.bf16 %v4524_v55, %v4524_v55  ;;  %4031 = vst [vmem:[#allocation3 + $0xb8] sm:$0xf] %v13943_v27  ;;  %v15155_v31 = vpop.f32.mrf.mxu0  ;;  %v3282_v5 = vpop.f32.mrf.mxu1 }
 0x25f   :  { %4486 = vst [vmem:[#allocation3 + $0xac] sm:$0xf] %v14018_v48  ;;  %4261 = vst [vmem:[#allocation3 + $0xe4] sm:$0xf] %v13983_v52  ;;  %15217 = vmatprep.subr.bf16.mxu1 %v17189_v17  ;;  %5728 = vmatprep.mubr.bf16.mxu1 %v15791_v18  ;;  %v4297_v32 = vld [vmem:[#allocation2 + $0x51] sm:$0xff]  ;;  %v13984_v10 = vpack.c.bf16 %v3463_v23, %v3463_v23 }
 0x260   :  { %v3614_v63 = vld [vmem:[#allocation2 + $0x56] sm:$0xff]  ;;  %4714 = vst [vmem:[#allocation3 + $0xb0] sm:$0xf] %v14056_v59  ;;  %3577 = vst [vmem:[#allocation2 + $0x68] sm:$0xff] %v3463_v23  ;;  %v14019_v6 = vpack.c.bf16 %v4297_v32, %v4297_v32  ;;  %v3465_v34 = vpop.f32.mrf.mxu0  ;;  %v3285_v13 = vpop.f32.mrf.mxu1 }
 0x261   :  { %v3842_v49 = vld [vmem:[#allocation2 + $0x57] sm:$0xff]  ;;  %5729 = vmatmul.mubr.bf16.gmra.mxu1 %v15793_v58  ;;  %v13906_v8 = vpack.c.bf16 %v3614_v63, %v3614_v63  ;;  %v3466_v12 = vadd.f32 %v3465_v34, %v3281_v61  ;;  %4262 = vst [vmem:[#allocation3 + $0xf8] sm:$0xf] %v13984_v10  ;;  %v3286_v16 = vadd.f32 %v17212_v20, %v3285_v13 }
 0x262   :  { %v13944_v9 = vpack.c.bf16 %v3842_v49, %v3842_v49  ;;  %v4525_v33 = vld [vmem:[#allocation2 + $0x52] sm:$0xff]  ;;  %15218 = vmatpush3.bf16.msra.mxu1 %v15864_v53  ;;  %4487 = vst [vmem:[#allocation3 + $0xc0] sm:$0xf] %v14019_v6  ;;  %v15156_v19 = vpop.f32.mrf.mxu0  ;;  %v3615_v21 = vld [vmem:[#allocation2 + $0x5e] sm:$0xff]  ;;  %v3287_v24 = vpop.f32.mrf.mxu1 }
 0x263   :  { %v15794_v46 = vld [vmem:[#allocation3 + $0x84] ss:$20 sps:$4 sm:$0xff]   ;;  %v14057_v47 = vpack.c.bf16 %v4525_v33, %v4525_v33  ;;  %3804 = vst [vmem:[#allocation3 + $0xc8] sm:$0xf] %v13906_v8  ;;  %15219 = vmatprep.subr.bf16.mxu1 %v17189_v17  ;;  %3578 = vst [vmem:[#allocation2 + $0x70] sm:$0xff] %v3466_v12  ;;  %v13907_v42 = vpack.c.bf16 %v3615_v21, %v3615_v21  ;;  %v13985_v50 = vpack.c.bf16 %v3466_v12, %v3466_v12 }
 0x264   :  { %4032 = vst [vmem:[#allocation3 + $0xcc] sm:$0xf] %v13944_v9  ;;  %5913 = vmatprep.mubr.bf16.mxu0 %v15794_v46  ;;  %v3843_v22 = vld [vmem:[#allocation2 + $0x5f] sm:$0xff]  ;;  %v3470_v60 = vpop.f32.mrf.mxu0  ;;  %v3288_v0 = vpop.f32.mrf.mxu1 }
 0x265   :  { %v4298_v51 = vld [vmem:[#allocation2 + $0x59] sm:$0xff]  ;;  %4715 = vst [vmem:[#allocation3 + $0xc4] sm:$0xf] %v14057_v47  ;;  %5914 = vmatmul.mubr.bf16.gmra.mxu0 %v15796_v11  ;;  %v13945_v62 = vpack.c.bf16 %v3843_v22, %v3843_v22  ;;  %v3471_v1 = vadd.f32 %v3470_v60, %v3286_v16  ;;  %3805 = vst [vmem:[#allocation3 + $0xdc] sm:$0xf] %v13907_v42  ;;  %v3289_v36 = vadd.f32 %v17212_v20, %v3288_v0 }
 0x266   :  { %v14020_v54 = vpack.c.bf16 %v4298_v51, %v4298_v51  ;;  %v4526_v30 = vld [vmem:[#allocation2 + $0x5a] sm:$0xff]  ;;  %15220 = vmatpush3.bf16.msra.mxu1 %v15880_v38  ;;  %4263 = vst [vmem:[#allocation3 + $0x10c] sm:$0xf] %v13985_v50  ;;  %v15159_v4 = vpop.f32.mrf.mxu0  ;;  %v3290_v41 = vpop.f32.mrf.mxu1  ;;  %v15809_v19 = vld [vmem:[#allocation3 + $0xd0] ss:$20 sps:$4 sm:$0xff]  }
 0x267   :  { %v15797_v28 = vld [vmem:[#allocation3 + $0xa4] ss:$20 sps:$4 sm:$0xff]   ;;  %v15799_v3 = vld [vmem:[#allocation3 + $0xa0] ss:$20 sps:$4 sm:$0xff]   ;;  %v14058_v17 = vpack.c.bf16 %v4526_v30, %v4526_v30  ;;  %4033 = vst [vmem:[#allocation3 + $0xe0] sm:$0xf] %v13945_v62  ;;  %v13986_v26 = vpack.c.bf16 %v3471_v1, %v3471_v1 }
 0x268   :  { %4488 = vst [vmem:[#allocation3 + $0xd4] sm:$0xf] %v14020_v54  ;;  %5736 = vmatprep.mubr.bf16.mxu1 %v15797_v28  ;;  %v4299_v15 = vld [vmem:[#allocation2 + $0x61] sm:$0xff]  ;;  %3579 = vst [vmem:[#allocation2 + $0x78] sm:$0xff] %v3471_v1  ;;  %v3473_v43 = vpop.f32.mrf.mxu0  ;;  %v3293_v14 = vpop.f32.mrf.mxu1 }
 0x269   :  { %v3616_v35 = vld [vmem:[#allocation2 + $0x66] sm:$0xff]  ;;  %4716 = vst [vmem:[#allocation3 + $0xd8] sm:$0xf] %v14058_v17  ;;  %5737 = vmatmul.mubr.bf16.gmra.mxu1 %v15799_v3  ;;  %v14021_v40 = vpack.c.bf16 %v4299_v15, %v4299_v15  ;;  %v3474_v56 = vadd.f32 %v3473_v43, %v3289_v36  ;;  %4264 = vst [vmem:[#allocation3 + $0x120] sm:$0xf] %v13986_v26  ;;  %v3294_v27 = vadd.f32 %v17212_v20, %v3293_v14 }
 0x26a   :  { %v3844_v39 = vld [vmem:[#allocation2 + $0x67] sm:$0xff]  ;;  %v13908_v2 = vpack.c.bf16 %v3616_v35, %v3616_v35  ;;  %v15160_v48 = vpop.f32.mrf.mxu0  ;;  %v3845_v53 = vld [vmem:[#allocation2 + $0x6f] sm:$0xff]  ;;  %v3295_v57 = vpop.f32.mrf.mxu1 }
 0x26b   :  { %v13946_v37 = vpack.c.bf16 %v3844_v39, %v3844_v39  ;;  %v4527_v29 = vld [vmem:[#allocation2 + $0x62] sm:$0xff]  ;;  %4489 = vst [vmem:[#allocation3 + $0xe8] sm:$0xf] %v14021_v40  ;;  %v3617_v52 = vld [vmem:[#allocation2 + $0x6e] sm:$0xff]  ;;  %3580 = vst [vmem:[#allocation2 + $0x80] sm:$0xff] %v3474_v56  ;;  %v13947_v58 = vpack.c.bf16 %v3845_v53, %v3845_v53  ;;  %v13987_v23 = vpack.c.bf16 %v3474_v56, %v3474_v56 }
 0x26c   :  { %v15800_v44 = vld [vmem:[#allocation3 + $0xac] ss:$20 sps:$4 sm:$0xff]   ;;  %v15802_v7 = vld [vmem:[#allocation3 + $0xa8] ss:$20 sps:$4 sm:$0xff]   ;;  %v14059_v45 = vpack.c.bf16 %v4527_v29, %v4527_v29  ;;  %3806 = vst [vmem:[#allocation3 + $0xf0] sm:$0xf] %v13908_v2  ;;  %v13909_v18 = vpack.c.bf16 %v3617_v52, %v3617_v52  ;;  %v3478_v61 = vpop.f32.mrf.mxu0  ;;  %v3296_v5 = vpop.f32.mrf.mxu1 }
 0x26d   :  { %4034 = vst [vmem:[#allocation3 + $0xf4] sm:$0xf] %v13946_v37  ;;  %5921 = vmatprep.mubr.bf16.mxu0 %v15800_v44  ;;  %v4300_v55 = vld [vmem:[#allocation2 + $0x69] sm:$0xff]  ;;  %v3479_v49 = vadd.f32 %v3478_v61, %v3294_v27  ;;  %4035 = vst [vmem:[#allocation3 + $0x108] sm:$0xf] %v13947_v58  ;;  %v3297_v6 = vadd.f32 %v17212_v20, %v3296_v5 }
 0x26e   :  { %4717 = vst [vmem:[#allocation3 + $0xec] sm:$0xf] %v14059_v45  ;;  %5922 = vmatmul.mubr.bf16.gmra.mxu0 %v15802_v7  ;;  %v14022_v59 = vpack.c.bf16 %v4300_v55, %v4300_v55  ;;  %v4528_v25 = vld [vmem:[#allocation2 + $0x6a] sm:$0xff]  ;;  %3807 = vst [vmem:[#allocation3 + $0x104] sm:$0xf] %v13909_v18  ;;  %v15163_v8 = vpop.f32.mrf.mxu0  ;;  %v3298_v33 = vpop.f32.mrf.mxu1 }
 0x26f   :  { %v15804_v31 = vld [vmem:[#allocation3 + $0xcc] ss:$20 sps:$4 sm:$0xff]   ;;  %v15806_v32 = vld [vmem:[#allocation3 + $0xc8] ss:$20 sps:$4 sm:$0xff]   ;;  %v14060_v63 = vpack.c.bf16 %v4528_v25, %v4528_v25  ;;  %4265 = vst [vmem:[#allocation3 + $0x134] sm:$0xf] %v13987_v23  ;;  %v13988_v47 = vpack.c.bf16 %v3479_v49, %v3479_v49 }
 0x270   :  { %4490 = vst [vmem:[#allocation3 + $0xfc] sm:$0xf] %v14022_v59  ;;  %5744 = vmatprep.mubr.bf16.mxu1 %v15804_v31  ;;  %v4301_v9 = vld [vmem:[#allocation2 + $0x71] sm:$0xff]  ;;  %3581 = vst [vmem:[#allocation2 + $0x88] sm:$0xff] %v3479_v49  ;;  %v3481_v13 = vpop.f32.mrf.mxu0  ;;  %v3301_v51 = vpop.f32.mrf.mxu1  ;;  %v17269_v33 = vld [vmem:[%s18384_s29] ss:$0 sm:$0xff] }
 0x271   :  { %v3618_v10 = vld [vmem:[#allocation2 + $0x76] sm:$0xff]  ;;  %4718 = vst [vmem:[#allocation3 + $0x100] sm:$0xf] %v14060_v63  ;;  %5745 = vmatmul.mubr.bf16.gmra.mxu1 %v15806_v32  ;;  %v14023_v34 = vpack.c.bf16 %v4301_v9, %v4301_v9  ;;  %v3482_v22 = vadd.f32 %v3481_v13, %v3297_v6  ;;  %4266 = vst [vmem:[#allocation3 + $0x148] sm:$0xf] %v13988_v47  ;;  %v3302_v24 = vadd.f32 %v17212_v20, %v3301_v51 }
 0x272   :  { %v3846_v38 = vld [vmem:[#allocation2 + $0x77] sm:$0xff]  ;;  %v13910_v46 = vpack.c.bf16 %v3618_v10, %v3618_v10  ;;  %v15164_v42 = vpop.f32.mrf.mxu0  ;;  %v3847_v54 = vld [vmem:[#allocation2 + $0x7f] sm:$0xff]  ;;  %v3303_v30 = vpop.f32.mrf.mxu1 }
 0x273   :  { %v13948_v11 = vpack.c.bf16 %v3846_v38, %v3846_v38  ;;  %v4529_v12 = vld [vmem:[#allocation2 + $0x72] sm:$0xff]  ;;  %4491 = vst [vmem:[#allocation3 + $0x110] sm:$0xf] %v14023_v34  ;;  %v3619_v62 = vld [vmem:[#allocation2 + $0x7e] sm:$0xff]  ;;  %3582 = vst [vmem:[#allocation2 + $0x90] sm:$0xff] %v3482_v22  ;;  %v13949_v28 = vpack.c.bf16 %v3847_v54, %v3847_v54  ;;  %v13989_v17 = vpack.c.bf16 %v3482_v22, %v3482_v22 }
 0x274   :  { %v15807_v16 = vld [vmem:[#allocation3 + $0xd4] ss:$20 sps:$4 sm:$0xff]   ;;  %v14061_v21 = vpack.c.bf16 %v4529_v12, %v4529_v12  ;;  %3808 = vst [vmem:[#allocation3 + $0x118] sm:$0xf] %v13910_v46  ;;  %v4302_v50 = vld [vmem:[#allocation2 + $0x79] sm:$0xff]  ;;  %v13911_v60 = vpack.c.bf16 %v3619_v62, %v3619_v62  ;;  %v3486_v0 = vpop.f32.mrf.mxu0  ;;  %v3304_v39 = vpop.f32.mrf.mxu1 }
 0x275   :  { %4036 = vst [vmem:[#allocation3 + $0x11c] sm:$0xf] %v13948_v11  ;;  %5929 = vmatprep.mubr.bf16.mxu0 %v15807_v16  ;;  %v14024_v3 = vpack.c.bf16 %v4302_v50, %v4302_v50  ;;  %v4530_v1 = vld [vmem:[#allocation2 + $0x7a] sm:$0xff]  ;;  %v15810_v36 = vld [vmem:[#allocation3 + $0xf4] ss:$20 sps:$4 sm:$0xff]   ;;  %v3487_v35 = vadd.f32 %v3486_v0, %v3302_v24  ;;  %v3305_v41 = vadd.f32 %v17212_v20, %v3304_v39 }
 0x276   :  { %4719 = vst [vmem:[#allocation3 + $0x114] sm:$0xf] %v14061_v21  ;;  %5930 = vmatmul.mubr.bf16.gmra.mxu0 %v15809_v19  ;;  %v15812_v4 = vld [vmem:[#allocation3 + $0xf0] ss:$20 sps:$4 sm:$0xff]   ;;  %v14062_v15 = vpack.c.bf16 %v4530_v1, %v4530_v1  ;;  %3809 = vst [vmem:[#allocation3 + $0x12c] sm:$0xf] %v13911_v60  ;;  %v15167_v40 = vpop.f32.mrf.mxu0  ;;  %5752 = vmatprep.mubr.bf16.mxu1 %v15810_v36  ;;  %v3306_v29 = vpop.f32.mrf.mxu1 }
 0x277   :  { %4037 = vst [vmem:[#allocation3 + $0x130] sm:$0xf] %v13949_v28  ;;  %4492 = vst [vmem:[#allocation3 + $0x124] sm:$0xf] %v14024_v3  ;;  %v4303_v2 = vld [vmem:[#allocation2 + $0x81] sm:$0xff]  ;;  %v13990_v45 = vpack.c.bf16 %v3487_v35, %v3487_v35 }
 0x278   :  { %4267 = vst [vmem:[#allocation3 + $0x15c] sm:$0xf] %v13989_v17  ;;  %v3620_v37 = vld [vmem:[#allocation2 + $0x86] sm:$0xff]  ;;  %4720 = vst [vmem:[#allocation3 + $0x128] sm:$0xf] %v14062_v15  ;;  %v14025_v43 = vpack.c.bf16 %v4303_v2, %v4303_v2  ;;  %v3489_v14 = vpop.f32.mrf.mxu0  ;;  %v3309_v55 = vpop.f32.mrf.mxu1 }
 0x279   :  { %v3848_v26 = vld [vmem:[#allocation2 + $0x87] sm:$0xff]  ;;  %3583 = vst [vmem:[#allocation2 + $0x98] sm:$0xff] %v3487_v35  ;;  %5753 = vmatmul.mubr.bf16.gmra.mxu1 %v15812_v4  ;;  %v13912_v44 = vpack.c.bf16 %v3620_v37, %v3620_v37  ;;  %v3490_v53 = vadd.f32 %v3489_v14, %v3305_v41  ;;  %4268 = vst [vmem:[#allocation3 + $0x170] sm:$0xf] %v13990_v45  ;;  %v3310_v57 = vadd.f32 %v17212_v20, %v3309_v55  ;;  %v15822_v42 = vld [vmem:[#allocation3 + $0x120] ss:$20 sps:$4 sm:$0xff]  }
 0x27a   :  { %v13950_v7 = vpack.c.bf16 %v3848_v26, %v3848_v26  ;;  %v4531_v56 = vld [vmem:[#allocation2 + $0x82] sm:$0xff]  ;;  %v15813_v27 = vld [vmem:[#allocation3 + $0xfc] ss:$20 sps:$4 sm:$0xff]   ;;  %v15815_v48 = vld [vmem:[#allocation3 + $0xf8] ss:$20 sps:$4 sm:$0xff]   ;;  %v15168_v18 = vpop.f32.mrf.mxu0  ;;  %v3311_v25 = vpop.f32.mrf.mxu1 }
 0x27b   :  { %v14063_v52 = vpack.c.bf16 %v4531_v56, %v4531_v56  ;;  %4493 = vst [vmem:[#allocation3 + $0x138] sm:$0xf] %v14025_v43  ;;  %3810 = vst [vmem:[#allocation3 + $0x140] sm:$0xf] %v13912_v44  ;;  %5937 = vmatprep.mubr.bf16.mxu0 %v15813_v27  ;;  %v3621_v58 = vld [vmem:[#allocation2 + $0x8e] sm:$0xff]  ;;  %v13991_v63 = vpack.c.bf16 %v3490_v53, %v3490_v53 }
 0x27c   :  { %4038 = vst [vmem:[#allocation3 + $0x144] sm:$0xf] %v13950_v7  ;;  %v3849_v59 = vld [vmem:[#allocation2 + $0x8f] sm:$0xff]  ;;  %3584 = vst [vmem:[#allocation2 + $0xa0] sm:$0xff] %v3490_v53  ;;  %v13913_v61 = vpack.c.bf16 %v3621_v58, %v3621_v58  ;;  %v3494_v5 = vpop.f32.mrf.mxu0  ;;  %v3312_v20 = vpop.f32.mrf.mxu1 }
 0x27d   :  { %v4304_v23 = vld [vmem:[#allocation2 + $0x89] sm:$0xff]  ;;  %4721 = vst [vmem:[#allocation3 + $0x13c] sm:$0xf] %v14063_v52  ;;  %v13951_v31 = vpack.c.bf16 %v3849_v59, %v3849_v59  ;;  %v3495_v10 = vadd.f32 %v3494_v5, %v3310_v57  ;;  %4269 = vst [vmem:[#allocation3 + $0x184] sm:$0xf] %v13991_v63  ;;  %v3313_v34 = vadd.f32 %v17269_v33, %v3312_v20 }
 0x27e   :  { %5938 = vmatmul.mubr.bf16.gmra.mxu0 %v15815_v48  ;;  %v14026_v32 = vpack.c.bf16 %v4304_v23, %v4304_v23  ;;  %v4532_v49 = vld [vmem:[#allocation2 + $0x8a] sm:$0xff]  ;;  %3811 = vst [vmem:[#allocation3 + $0x154] sm:$0xf] %v13913_v61  ;;  %v15171_v46 = vpop.f32.mrf.mxu0  ;;  %v3314_v12 = vpop.f32.mrf.mxu1 }
 0x27f   :  { %v15816_v6 = vld [vmem:[#allocation3 + $0x11c] ss:$20 sps:$4 sm:$0xff]   ;;  %v15818_v8 = vld [vmem:[#allocation3 + $0x118] ss:$20 sps:$4 sm:$0xff]   ;;  %v14064_v9 = vpack.c.bf16 %v4532_v49, %v4532_v49  ;;  %4039 = vst [vmem:[#allocation3 + $0x158] sm:$0xf] %v13951_v31  ;;  %v13992_v21 = vpack.c.bf16 %v3495_v10, %v3495_v10 }
 0x280   :  { %4494 = vst [vmem:[#allocation3 + $0x14c] sm:$0xf] %v14026_v32  ;;  %v3850_v38 = vld [vmem:[#allocation2 + $0x97] sm:$0xff]  ;;  %5760 = vmatprep.mubr.bf16.mxu1 %v15816_v6  ;;  %3585 = vst [vmem:[#allocation2 + $0xa8] sm:$0xff] %v3495_v10  ;;  %v3497_v51 = vpop.f32.mrf.mxu0  ;;  %v3317_v50 = vpop.f32.mrf.mxu1 }
 0x281   :  { %v4305_v11 = vld [vmem:[#allocation2 + $0x91] sm:$0xff]  ;;  %4722 = vst [vmem:[#allocation3 + $0x150] sm:$0xf] %v14064_v9  ;;  %5761 = vmatmul.mubr.bf16.gmra.mxu1 %v15818_v8  ;;  %v13952_v19 = vpack.c.bf16 %v3850_v38, %v3850_v38  ;;  %v3498_v54 = vadd.f32 %v3497_v51, %v3313_v34  ;;  %4270 = vst [vmem:[#allocation3 + $0x198] sm:$0xf] %v13992_v21  ;;  %v3318_v30 = vadd.f32 %v17269_v33, %v3317_v50 }
 0x282   :  { %v3622_v47 = vld [vmem:[#allocation2 + $0x96] sm:$0xff]  ;;  %v14027_v13 = vpack.c.bf16 %v4305_v11, %v4305_v11  ;;  %v15172_v60 = vpop.f32.mrf.mxu0  ;;  %v3319_v1 = vpop.f32.mrf.mxu1 }
 0x283   :  { %v13914_v16 = vpack.c.bf16 %v3622_v47, %v3622_v47  ;;  %v4533_v22 = vld [vmem:[#allocation2 + $0x92] sm:$0xff]  ;;  %4040 = vst [vmem:[#allocation3 + $0x16c] sm:$0xf] %v13952_v19  ;;  %v3623_v28 = vld [vmem:[#allocation2 + $0x9e] sm:$0xff]  ;;  %3586 = vst [vmem:[#allocation2 + $0xb0] sm:$0xff] %v3498_v54  ;;  %v13993_v15 = vpack.c.bf16 %v3498_v54, %v3498_v54 }
 0x284   :  { %v15820_v24 = vld [vmem:[#allocation3 + $0x124] ss:$20 sps:$4 sm:$0xff]   ;;  %v14065_v62 = vpack.c.bf16 %v4533_v22, %v4533_v22  ;;  %4495 = vst [vmem:[#allocation3 + $0x160] sm:$0xf] %v14027_v13  ;;  %v13915_v0 = vpack.c.bf16 %v3623_v28, %v3623_v28  ;;  %v3502_v39 = vpop.f32.mrf.mxu0  ;;  %v3320_v26 = vpop.f32.mrf.mxu1  ;;  %v15828_v18 = vld [vmem:[#allocation3 + $0x148] ss:$20 sps:$4 sm:$0xff]  }
 0x285   :  { %3812 = vst [vmem:[#allocation3 + $0x168] sm:$0xf] %v13914_v16  ;;  %5945 = vmatprep.mubr.bf16.mxu0 %v15820_v24  ;;  %v3851_v3 = vld [vmem:[#allocation2 + $0x9f] sm:$0xff]  ;;  %v3503_v37 = vadd.f32 %v3502_v39, %v3318_v30  ;;  %4271 = vst [vmem:[#allocation3 + $0x1ac] sm:$0xf] %v13993_v15  ;;  %v3321_v29 = vadd.f32 %v17269_v33, %v3320_v26 }
 0x286   :  { %v4306_v17 = vld [vmem:[#allocation2 + $0x99] sm:$0xff]  ;;  %4723 = vst [vmem:[#allocation3 + $0x164] sm:$0xf] %v14065_v62  ;;  %5946 = vmatmul.mubr.bf16.gmra.mxu0 %v15822_v42  ;;  %v13953_v36 = vpack.c.bf16 %v3851_v3, %v3851_v3  ;;  %3813 = vst [vmem:[#allocation3 + $0x17c] sm:$0xf] %v13915_v0  ;;  %v15175_v43 = vpop.f32.mrf.mxu0  ;;  %v3322_v56 = vpop.f32.mrf.mxu1 }
 0x287   :  { %v14028_v4 = vpack.c.bf16 %v4306_v17, %v4306_v17  ;;  %v4534_v35 = vld [vmem:[#allocation2 + $0x9a] sm:$0xff]  ;;  %v3624_v7 = vld [vmem:[#allocation2 + $0xa6] sm:$0xff]  ;;  %3587 = vst [vmem:[#allocation2 + $0xb8] sm:$0xff] %v3503_v37  ;;  %v13994_v52 = vpack.c.bf16 %v3503_v37, %v3503_v37 }
 0x288   :  { %v15823_v41 = vld [vmem:[#allocation3 + $0x144] ss:$20 sps:$4 sm:$0xff]   ;;  %v15825_v40 = vld [vmem:[#allocation3 + $0x140] ss:$20 sps:$4 sm:$0xff]   ;;  %v14066_v2 = vpack.c.bf16 %v4534_v35, %v4534_v35  ;;  %4041 = vst [vmem:[#allocation3 + $0x180] sm:$0xf] %v13953_v36  ;;  %v13916_v27 = vpack.c.bf16 %v3624_v7, %v3624_v7  ;;  %v3505_v55 = vpop.f32.mrf.mxu0  ;;  %v3325_v23 = vpop.f32.mrf.mxu1 }
 0x289   :  { %4496 = vst [vmem:[#allocation3 + $0x174] sm:$0xf] %v14028_v4  ;;  %5768 = vmatprep.mubr.bf16.mxu1 %v15823_v41  ;;  %v4307_v44 = vld [vmem:[#allocation2 + $0xa1] sm:$0xff]  ;;  %v3506_v59 = vadd.f32 %v3505_v55, %v3321_v29  ;;  %4272 = vst [vmem:[#allocation3 + $0x1c0] sm:$0xf] %v13994_v52  ;;  %v3326_v25 = vadd.f32 %v17269_v33, %v3325_v23 }
 0x28a   :  { %v3852_v45 = vld [vmem:[#allocation2 + $0xa7] sm:$0xff]  ;;  %4724 = vst [vmem:[#allocation3 + $0x178] sm:$0xf] %v14066_v2  ;;  %5769 = vmatmul.mubr.bf16.gmra.mxu1 %v15825_v40  ;;  %v14029_v14 = vpack.c.bf16 %v4307_v44, %v4307_v44  ;;  %3814 = vst [vmem:[#allocation3 + $0x190] sm:$0xf] %v13916_v27  ;;  %v15176_v61 = vpop.f32.mrf.mxu0  ;;  %v3853_v32 = vld [vmem:[#allocation2 + $0xaf] sm:$0xff]  ;;  %v3327_v49 = vpop.f32.mrf.mxu1 }
 0x28b   :  { %v13954_v48 = vpack.c.bf16 %v3852_v45, %v3852_v45  ;;  %v4535_v53 = vld [vmem:[#allocation2 + $0xa2] sm:$0xff]  ;;  %v3625_v31 = vld [vmem:[#allocation2 + $0xae] sm:$0xff]  ;;  %3588 = vst [vmem:[#allocation2 + $0xc0] sm:$0xff] %v3506_v59  ;;  %v13955_v6 = vpack.c.bf16 %v3853_v32, %v3853_v32  ;;  %v13995_v9 = vpack.c.bf16 %v3506_v59, %v3506_v59 }
 0x28c   :  { %v15826_v57 = vld [vmem:[#allocation3 + $0x14c] ss:$20 sps:$4 sm:$0xff]   ;;  %v14067_v58 = vpack.c.bf16 %v4535_v53, %v4535_v53  ;;  %4497 = vst [vmem:[#allocation3 + $0x188] sm:$0xf] %v14029_v14  ;;  %v13917_v5 = vpack.c.bf16 %v3625_v31, %v3625_v31  ;;  %v3510_v20 = vpop.f32.mrf.mxu0  ;;  %v3328_v47 = vpop.f32.mrf.mxu1  ;;  %v15832_v30 = vld [vmem:[#allocation3 + $0x170] ss:$20 sps:$4 sm:$0xff]  }
 0x28d   :  { %4042 = vst [vmem:[#allocation3 + $0x194] sm:$0xf] %v13954_v48  ;;  %5953 = vmatprep.mubr.bf16.mxu0 %v15826_v57  ;;  %v4308_v63 = vld [vmem:[#allocation2 + $0xa9] sm:$0xff]  ;;  %v3511_v11 = vadd.f32 %v3510_v20, %v3326_v25  ;;  %4043 = vst [vmem:[#allocation3 + $0x1a8] sm:$0xf] %v13955_v6  ;;  %v3329_v12 = vadd.f32 %v17269_v33, %v3328_v47 }
 0x28e   :  { %4725 = vst [vmem:[#allocation3 + $0x18c] sm:$0xf] %v14067_v58  ;;  %5954 = vmatmul.mubr.bf16.gmra.mxu0 %v15828_v18  ;;  %v14030_v8 = vpack.c.bf16 %v4308_v63, %v4308_v63  ;;  %v4536_v10 = vld [vmem:[#allocation2 + $0xaa] sm:$0xff]  ;;  %3815 = vst [vmem:[#allocation3 + $0x1a4] sm:$0xf] %v13917_v5  ;;  %v15179_v13 = vpop.f32.mrf.mxu0  ;;  %v3626_v19 = vld [vmem:[#allocation2 + $0xb6] sm:$0xff]  ;;  %v3330_v22 = vpop.f32.mrf.mxu1 }
 0x28f   :  { %v15829_v38 = vld [vmem:[#allocation3 + $0x168] ss:$20 sps:$4 sm:$0xff]   ;;  %v15831_v34 = vld [vmem:[#allocation3 + $0x16c] ss:$20 sps:$4 sm:$0xff]   ;;  %v14068_v46 = vpack.c.bf16 %v4536_v10, %v4536_v10  ;;  %4273 = vst [vmem:[#allocation3 + $0x1d4] sm:$0xf] %v13995_v9  ;;  %v13918_v24 = vpack.c.bf16 %v3626_v19, %v3626_v19  ;;  %v13996_v62 = vpack.c.bf16 %v3511_v11, %v3511_v11 }
 0x290   :  { %4498 = vst [vmem:[#allocation3 + $0x19c] sm:$0xf] %v14030_v8  ;;  %5776 = vmatprep.mubr.bf16.mxu1 %v15831_v34  ;;  %v4309_v16 = vld [vmem:[#allocation2 + $0xb1] sm:$0xff]  ;;  %3589 = vst [vmem:[#allocation2 + $0xc8] sm:$0xff] %v3511_v11  ;;  %v3513_v50 = vpop.f32.mrf.mxu0  ;;  %v3333_v17 = vpop.f32.mrf.mxu1 }
 0x291   :  { %v3854_v21 = vld [vmem:[#allocation2 + $0xb7] sm:$0xff]  ;;  %4726 = vst [vmem:[#allocation3 + $0x1a0] sm:$0xf] %v14068_v46  ;;  %v14031_v51 = vpack.c.bf16 %v4309_v16, %v4309_v16  ;;  %v3514_v3 = vadd.f32 %v3513_v50, %v3329_v12  ;;  %3816 = vst [vmem:[#allocation3 + $0x1b8] sm:$0xf] %v13918_v24  ;;  %v3334_v1 = vadd.f32 %v17269_v33, %v3333_v17 }
 0x292   :  { %5777 = vmatmul.mubr.bf16.gmra.mxu1 %v15829_v38  ;;  %v13956_v42 = vpack.c.bf16 %v3854_v21, %v3854_v21  ;;  %v4537_v54 = vld [vmem:[#allocation2 + $0xb2] sm:$0xff]  ;;  %4274 = vst [vmem:[#allocation3 + $0x1e8] sm:$0xf] %v13996_v62  ;;  %v15180_v0 = vpop.f32.mrf.mxu0  ;;  %v3627_v36 = vld [vmem:[#allocation2 + $0xbe] sm:$0xff]  ;;  %v3335_v35 = vpop.f32.mrf.mxu1 }
 0x293   :  { %v15834_v60 = vld [vmem:[#allocation3 + $0x174] ss:$20 sps:$4 sm:$0xff]   ;;  %v14069_v28 = vpack.c.bf16 %v4537_v54, %v4537_v54  ;;  %4499 = vst [vmem:[#allocation3 + $0x1b0] sm:$0xf] %v14031_v51  ;;  %v3855_v4 = vld [vmem:[#allocation2 + $0xbf] sm:$0xff]  ;;  %3590 = vst [vmem:[#allocation2 + $0xd0] sm:$0xff] %v3514_v3  ;;  %v13919_v39 = vpack.c.bf16 %v3627_v36, %v3627_v36  ;;  %v13997_v2 = vpack.c.bf16 %v3514_v3, %v3514_v3 }
 0x294   :  { %4044 = vst [vmem:[#allocation3 + $0x1bc] sm:$0xf] %v13956_v42  ;;  %5961 = vmatprep.mubr.bf16.mxu0 %v15834_v60  ;;  %v4310_v15 = vld [vmem:[#allocation2 + $0xb9] sm:$0xff]  ;;  %v13957_v41 = vpack.c.bf16 %v3855_v4, %v3855_v4  ;;  %v3518_v26 = vpop.f32.mrf.mxu0  ;;  %v15838_v43 = vld [vmem:[#allocation3 + $0x194] ss:$20 sps:$4 sm:$0xff]   ;;  %v3336_v45 = vpop.f32.mrf.mxu1 }
 0x295   :  { %4727 = vst [vmem:[#allocation3 + $0x1b4] sm:$0xf] %v14069_v28  ;;  %v14032_v40 = vpack.c.bf16 %v4310_v15, %v4310_v15  ;;  %v4538_v37 = vld [vmem:[#allocation2 + $0xba] sm:$0xff]  ;;  %v15836_v29 = vld [vmem:[#allocation3 + $0x190] ss:$20 sps:$4 sm:$0xff]   ;;  %v3519_v7 = vadd.f32 %v3518_v26, %v3334_v1  ;;  %v3337_v56 = vadd.f32 %v17269_v33, %v3336_v45  ;;  %5784 = vmatprep.mubr.bf16.mxu1 %v15838_v43 }
 0x296   :  { %5962 = vmatmul.mubr.bf16.gmra.mxu0 %v15832_v30  ;;  %v14070_v44 = vpack.c.bf16 %v4538_v37, %v4538_v37  ;;  %3817 = vst [vmem:[#allocation3 + $0x1cc] sm:$0xf] %v13919_v39  ;;  %4045 = vst [vmem:[#allocation3 + $0x1d0] sm:$0xf] %v13957_v41  ;;  %v15183_v14 = vpop.f32.mrf.mxu0  ;;  %v3338_v53 = vpop.f32.mrf.mxu1  ;;  %v15839_v25 = vld [vmem:[#allocation3 + $0x198] ss:$20 sps:$4 sm:$0xff]  }
 0x297   :  { %4500 = vst [vmem:[#allocation3 + $0x1c4] sm:$0xf] %v14032_v40  ;;  %4275 = vst [vmem:[#allocation3 + $0x1fc] sm:$0xf] %v13997_v2  ;;  %v4311_v27 = vld [vmem:[#allocation2 + $0xc1] sm:$0xff]  ;;  %v13998_v58 = vpack.c.bf16 %v3519_v7, %v3519_v7 }
 0x298   :  { %v3628_v48 = vld [vmem:[#allocation2 + $0xc6] sm:$0xff]  ;;  %4728 = vst [vmem:[#allocation3 + $0x1c8] sm:$0xf] %v14070_v44  ;;  %3591 = vst [vmem:[#allocation2 + $0xd8] sm:$0xff] %v3519_v7  ;;  %v14033_v55 = vpack.c.bf16 %v4311_v27, %v4311_v27  ;;  %v3521_v23 = vpop.f32.mrf.mxu0  ;;  %v3341_v63 = vpop.f32.mrf.mxu1  ;;  %v15845_v1 = vld [vmem:[#allocation3 + $0x1c0] ss:$20 sps:$4 sm:$0xff]  }
 0x299   :  { %v3856_v52 = vld [vmem:[#allocation2 + $0xc7] sm:$0xff]  ;;  %v13920_v57 = vpack.c.bf16 %v3628_v48, %v3628_v48  ;;  %v3522_v32 = vadd.f32 %v3521_v23, %v3337_v56  ;;  %4276 = vst [vmem:[#allocation3 + $0x210] sm:$0xf] %v13998_v58  ;;  %v3342_v49 = vadd.f32 %v17269_v33, %v3341_v63 }
 0x29a   :  { %5785 = vmatmul.mubr.bf16.gmra.mxu1 %v15836_v29  ;;  %v13958_v18 = vpack.c.bf16 %v3856_v52, %v3856_v52  ;;  %v4539_v59 = vld [vmem:[#allocation2 + $0xc2] sm:$0xff]  ;;  %v15841_v61 = vld [vmem:[#allocation3 + $0x19c] ss:$20 sps:$4 sm:$0xff]   ;;  %4501 = vst [vmem:[#allocation3 + $0x1d8] sm:$0xf] %v14033_v55  ;;  %v15184_v5 = vpop.f32.mrf.mxu0  ;;  %v3343_v10 = vpop.f32.mrf.mxu1 }
 0x29b   :  { %v14071_v31 = vpack.c.bf16 %v4539_v59, %v4539_v59  ;;  %3818 = vst [vmem:[#allocation3 + $0x1e0] sm:$0xf] %v13920_v57  ;;  %5969 = vmatprep.mubr.bf16.mxu0 %v15841_v61  ;;  %v3629_v6 = vld [vmem:[#allocation2 + $0xce] sm:$0xff]  ;;  %3592 = vst [vmem:[#allocation2 + $0xe0] sm:$0xff] %v3522_v32  ;;  %v13999_v46 = vpack.c.bf16 %v3522_v32, %v3522_v32 }
 0x29c   :  { %4046 = vst [vmem:[#allocation3 + $0x1e4] sm:$0xf] %v13958_v18  ;;  %v3857_v8 = vld [vmem:[#allocation2 + $0xcf] sm:$0xff]  ;;  %v13921_v20 = vpack.c.bf16 %v3629_v6, %v3629_v6  ;;  %v3526_v47 = vpop.f32.mrf.mxu0  ;;  %v3344_v21 = vpop.f32.mrf.mxu1 }
 0x29d   :  { %v4312_v9 = vld [vmem:[#allocation2 + $0xc9] sm:$0xff]  ;;  %4729 = vst [vmem:[#allocation3 + $0x1dc] sm:$0xf] %v14071_v31  ;;  %v13959_v38 = vpack.c.bf16 %v3857_v8, %v3857_v8  ;;  %v3527_v19 = vadd.f32 %v3526_v47, %v3342_v49  ;;  %4277 = vst [vmem:[#allocation3 + $0x224] sm:$0xf] %v13999_v46  ;;  %v3345_v22 = vadd.f32 %v17269_v33, %v3344_v21 }
 0x29e   :  { %5970 = vmatmul.mubr.bf16.gmra.mxu0 %v15839_v25  ;;  %v14034_v34 = vpack.c.bf16 %v4312_v9, %v4312_v9  ;;  %v4540_v11 = vld [vmem:[#allocation2 + $0xca] sm:$0xff]  ;;  %3819 = vst [vmem:[#allocation3 + $0x1f4] sm:$0xf] %v13921_v20  ;;  %v15187_v51 = vpop.f32.mrf.mxu0  ;;  %v3346_v54 = vpop.f32.mrf.mxu1 }
 0x29f   :  { %v15842_v12 = vld [vmem:[#allocation3 + $0x1b8] ss:$20 sps:$4 sm:$0xff]   ;;  %v15844_v13 = vld [vmem:[#allocation3 + $0x1bc] ss:$20 sps:$4 sm:$0xff]   ;;  %v14072_v16 = vpack.c.bf16 %v4540_v11, %v4540_v11  ;;  %4047 = vst [vmem:[#allocation3 + $0x1f8] sm:$0xf] %v13959_v38  ;;  %v14000_v28 = vpack.c.bf16 %v3527_v19, %v3527_v19 }
 0x2a0   :  { %4502 = vst [vmem:[#allocation3 + $0x1ec] sm:$0xf] %v14034_v34  ;;  %5792 = vmatprep.mubr.bf16.mxu1 %v15844_v13  ;;  %v4313_v24 = vld [vmem:[#allocation2 + $0xd1] sm:$0xff]  ;;  %3593 = vst [vmem:[#allocation2 + $0xe8] sm:$0xff] %v3527_v19  ;;  %v3529_v17 = vpop.f32.mrf.mxu0  ;;  %v3349_v15 = vpop.f32.mrf.mxu1  ;;  %v15852_v49 = vld [vmem:[#allocation3 + $0x1e8] ss:$20 sps:$4 sm:$0xff]  }
 0x2a1   :  { %v3630_v42 = vld [vmem:[#allocation2 + $0xd6] sm:$0xff]  ;;  %4730 = vst [vmem:[#allocation3 + $0x1f0] sm:$0xf] %v14072_v16  ;;  %v14035_v50 = vpack.c.bf16 %v4313_v24, %v4313_v24  ;;  %v3530_v4 = vadd.f32 %v3529_v17, %v3345_v22  ;;  %4278 = vst [vmem:[#allocation3 + $0x238] sm:$0xf] %v14000_v28  ;;  %v3350_v35 = vadd.f32 %v17269_v33, %v3349_v15 }
 0x2a2   :  { %v3858_v62 = vld [vmem:[#allocation2 + $0xd7] sm:$0xff]  ;;  %5793 = vmatmul.mubr.bf16.gmra.mxu1 %v15842_v12  ;;  %v13922_v30 = vpack.c.bf16 %v3630_v42, %v3630_v42  ;;  %v15188_v39 = vpop.f32.mrf.mxu0  ;;  %v3859_v40 = vld [vmem:[#allocation2 + $0xdf] sm:$0xff]  ;;  %v3351_v37 = vpop.f32.mrf.mxu1 }
 0x2a3   :  { %v13960_v60 = vpack.c.bf16 %v3858_v62, %v3858_v62  ;;  %v4541_v3 = vld [vmem:[#allocation2 + $0xd2] sm:$0xff]  ;;  %4503 = vst [vmem:[#allocation3 + $0x200] sm:$0xf] %v14035_v50  ;;  %v3631_v41 = vld [vmem:[#allocation2 + $0xde] sm:$0xff]  ;;  %3594 = vst [vmem:[#allocation2 + $0xf0] sm:$0xff] %v3530_v4  ;;  %v13961_v29 = vpack.c.bf16 %v3859_v40, %v3859_v40  ;;  %v14001_v44 = vpack.c.bf16 %v3530_v4, %v3530_v4 }
 0x2a4   :  { %v15847_v0 = vld [vmem:[#allocation3 + $0x1c4] ss:$20 sps:$4 sm:$0xff]   ;;  %v14073_v36 = vpack.c.bf16 %v4541_v3, %v4541_v3  ;;  %3820 = vst [vmem:[#allocation3 + $0x208] sm:$0xf] %v13922_v30  ;;  %v13923_v26 = vpack.c.bf16 %v3631_v41, %v3631_v41  ;;  %v3534_v45 = vpop.f32.mrf.mxu0  ;;  %v3352_v52 = vpop.f32.mrf.mxu1 }
 0x2a5   :  { %4048 = vst [vmem:[#allocation3 + $0x20c] sm:$0xf] %v13960_v60  ;;  %5977 = vmatprep.mubr.bf16.mxu0 %v15847_v0  ;;  %v4314_v2 = vld [vmem:[#allocation2 + $0xd9] sm:$0xff]  ;;  %v3535_v48 = vadd.f32 %v3534_v45, %v3350_v35  ;;  %4049 = vst [vmem:[#allocation3 + $0x220] sm:$0xf] %v13961_v29  ;;  %v3353_v53 = vadd.f32 %v17269_v33, %v3352_v52 }
 0x2a6   :  { %4731 = vst [vmem:[#allocation3 + $0x204] sm:$0xf] %v14073_v36  ;;  %5978 = vmatmul.mubr.bf16.gmra.mxu0 %v15845_v1  ;;  %v14036_v43 = vpack.c.bf16 %v4314_v2, %v4314_v2  ;;  %v4542_v7 = vld [vmem:[#allocation2 + $0xda] sm:$0xff]  ;;  %3821 = vst [vmem:[#allocation3 + $0x21c] sm:$0xf] %v13923_v26  ;;  %v15191_v55 = vpop.f32.mrf.mxu0  ;;  %v3354_v59 = vpop.f32.mrf.mxu1 }
 0x2a7   :  { %v15848_v56 = vld [vmem:[#allocation3 + $0x1e0] ss:$20 sps:$4 sm:$0xff]   ;;  %v15850_v14 = vld [vmem:[#allocation3 + $0x1e4] ss:$20 sps:$4 sm:$0xff]   ;;  %v14074_v27 = vpack.c.bf16 %v4542_v7, %v4542_v7  ;;  %4279 = vst [vmem:[#allocation3 + $0x24c] sm:$0xf] %v14001_v44  ;;  %v14002_v31 = vpack.c.bf16 %v3535_v48, %v3535_v48 }
 0x2a8   :  { %4504 = vst [vmem:[#allocation3 + $0x214] sm:$0xf] %v14036_v43  ;;  %5800 = vmatprep.mubr.bf16.mxu1 %v15850_v14  ;;  %v4315_v57 = vld [vmem:[#allocation2 + $0xe1] sm:$0xff]  ;;  %3595 = vst [vmem:[#allocation2 + $0xf8] sm:$0xff] %v3535_v48  ;;  %v3537_v63 = vpop.f32.mrf.mxu0  ;;  %v3357_v9 = vpop.f32.mrf.mxu1 }
 0x2a9   :  { %v3632_v18 = vld [vmem:[#allocation2 + $0xe6] sm:$0xff]  ;;  %4732 = vst [vmem:[#allocation3 + $0x218] sm:$0xf] %v14074_v27  ;;  %v14037_v23 = vpack.c.bf16 %v4315_v57, %v4315_v57  ;;  %v3538_v8 = vadd.f32 %v3537_v63, %v3353_v53  ;;  %4280 = vst [vmem:[#allocation3 + $0x260] sm:$0xf] %v14002_v31  ;;  %v3358_v10 = vadd.f32 %v17269_v33, %v3357_v9 }
 0x2aa   :  { %v3860_v58 = vld [vmem:[#allocation2 + $0xe7] sm:$0xff]  ;;  %5801 = vmatmul.mubr.bf16.gmra.mxu1 %v15848_v56  ;;  %v13924_v25 = vpack.c.bf16 %v3632_v18, %v3632_v18  ;;  %v15192_v20 = vpop.f32.mrf.mxu0  ;;  %v3861_v34 = vld [vmem:[#allocation2 + $0xef] sm:$0xff]  ;;  %v3359_v11 = vpop.f32.mrf.mxu1 }
 0x2ab   :  { %v13962_v61 = vpack.c.bf16 %v3860_v58, %v3860_v58  ;;  %v4543_v32 = vld [vmem:[#allocation2 + $0xe2] sm:$0xff]  ;;  %4505 = vst [vmem:[#allocation3 + $0x228] sm:$0xf] %v14037_v23  ;;  %v3633_v38 = vld [vmem:[#allocation2 + $0xee] sm:$0xff]  ;;  %3596 = vst [vmem:[#allocation2 + $0x100] sm:$0xff] %v3538_v8  ;;  %v13963_v12 = vpack.c.bf16 %v3861_v34, %v3861_v34  ;;  %v14003_v16 = vpack.c.bf16 %v3538_v8, %v3538_v8 }
 0x2ac   :  { %v15854_v5 = vld [vmem:[#allocation3 + $0x1ec] ss:$20 sps:$4 sm:$0xff]   ;;  %v14075_v6 = vpack.c.bf16 %v4543_v32, %v4543_v32  ;;  %3822 = vst [vmem:[#allocation3 + $0x230] sm:$0xf] %v13924_v25  ;;  %v13925_v47 = vpack.c.bf16 %v3633_v38, %v3633_v38  ;;  %v3542_v21 = vpop.f32.mrf.mxu0  ;;  %v3360_v62 = vpop.f32.mrf.mxu1  ;;  %v15858_v35 = vld [vmem:[#allocation3 + $0x210] ss:$20 sps:$4 sm:$0xff]  }
 0x2ad   :  { %4050 = vst [vmem:[#allocation3 + $0x234] sm:$0xf] %v13962_v61  ;;  %5985 = vmatprep.mubr.bf16.mxu0 %v15854_v5  ;;  %v4316_v46 = vld [vmem:[#allocation2 + $0xe9] sm:$0xff]  ;;  %v3543_v42 = vadd.f32 %v3542_v21, %v3358_v10  ;;  %4051 = vst [vmem:[#allocation3 + $0x248] sm:$0xf] %v13963_v12  ;;  %v3361_v54 = vadd.f32 %v17269_v33, %v3360_v62 }
 0x2ae   :  { %4733 = vst [vmem:[#allocation3 + $0x22c] sm:$0xf] %v14075_v6  ;;  %5986 = vmatmul.mubr.bf16.gmra.mxu0 %v15852_v49  ;;  %v14038_v13 = vpack.c.bf16 %v4316_v46, %v4316_v46  ;;  %v4544_v19 = vld [vmem:[#allocation2 + $0xea] sm:$0xff]  ;;  %3823 = vst [vmem:[#allocation3 + $0x244] sm:$0xf] %v13925_v47  ;;  %v15195_v50 = vpop.f32.mrf.mxu0  ;;  %v3362_v3 = vpop.f32.mrf.mxu1 }
 0x2af   :  { %v15855_v22 = vld [vmem:[#allocation3 + $0x208] ss:$20 sps:$4 sm:$0xff]   ;;  %v15857_v51 = vld [vmem:[#allocation3 + $0x20c] ss:$20 sps:$4 sm:$0xff]   ;;  %v14076_v24 = vpack.c.bf16 %v4544_v19, %v4544_v19  ;;  %4281 = vst [vmem:[#allocation3 + $0x274] sm:$0xf] %v14003_v16  ;;  %v14004_v36 = vpack.c.bf16 %v3543_v42, %v3543_v42 }
 0x2b0   :  { %4506 = vst [vmem:[#allocation3 + $0x23c] sm:$0xf] %v14038_v13  ;;  %5808 = vmatprep.mubr.bf16.mxu1 %v15857_v51  ;;  %v4317_v30 = vld [vmem:[#allocation2 + $0xf1] sm:$0xff]  ;;  %3597 = vst [vmem:[#allocation2 + $0x108] sm:$0xff] %v3543_v42  ;;  %v3545_v15 = vpop.f32.mrf.mxu0  ;;  %v3365_v2 = vpop.f32.mrf.mxu1 }
 0x2b1   :  { %v3634_v60 = vld [vmem:[#allocation2 + $0xf6] sm:$0xff]  ;;  %4734 = vst [vmem:[#allocation3 + $0x240] sm:$0xf] %v14076_v24  ;;  %v14039_v17 = vpack.c.bf16 %v4317_v30, %v4317_v30  ;;  %v3546_v40 = vadd.f32 %v3545_v15, %v3361_v54  ;;  %4282 = vst [vmem:[#allocation3 + $0x288] sm:$0xf] %v14004_v36  ;;  %v3366_v37 = vadd.f32 %v17269_v33, %v3365_v2 }
 0x2b2   :  { %v3862_v28 = vld [vmem:[#allocation2 + $0xf7] sm:$0xff]  ;;  %5809 = vmatmul.mubr.bf16.gmra.mxu1 %v15855_v22  ;;  %v13926_v1 = vpack.c.bf16 %v3634_v60, %v3634_v60  ;;  %v15196_v26 = vpop.f32.mrf.mxu0  ;;  %v3863_v43 = vld [vmem:[#allocation2 + $0xff] sm:$0xff]  ;;  %v3367_v7 = vpop.f32.mrf.mxu1 }
 0x2b3   :  { %v13964_v0 = vpack.c.bf16 %v3862_v28, %v3862_v28  ;;  %v4545_v4 = vld [vmem:[#allocation2 + $0xf2] sm:$0xff]  ;;  %4507 = vst [vmem:[#allocation3 + $0x250] sm:$0xf] %v14039_v17  ;;  %v3635_v29 = vld [vmem:[#allocation2 + $0xfe] sm:$0xff]  ;;  %3598 = vst [vmem:[#allocation2 + $0x110] sm:$0xff] %v3546_v40  ;;  %v13965_v56 = vpack.c.bf16 %v3863_v43, %v3863_v43  ;;  %v14005_v27 = vpack.c.bf16 %v3546_v40, %v3546_v40 }
 0x2b4   :  { %v15860_v39 = vld [vmem:[#allocation3 + $0x214] ss:$20 sps:$4 sm:$0xff]   ;;  %v14077_v41 = vpack.c.bf16 %v4545_v4, %v4545_v4  ;;  %3824 = vst [vmem:[#allocation3 + $0x258] sm:$0xf] %v13926_v1  ;;  %v4318_v44 = vld [vmem:[#allocation2 + $0xf9] sm:$0xff]  ;;  %v13927_v45 = vpack.c.bf16 %v3635_v29, %v3635_v29  ;;  %v3550_v52 = vpop.f32.mrf.mxu0  ;;  %v3368_v58 = vpop.f32.mrf.mxu1 }
 0x2b5   :  { %4052 = vst [vmem:[#allocation3 + $0x25c] sm:$0xf] %v13964_v0  ;;  %5993 = vmatprep.mubr.bf16.mxu0 %v15860_v39  ;;  %v14040_v14 = vpack.c.bf16 %v4318_v44, %v4318_v44  ;;  %v4546_v48 = vld [vmem:[#allocation2 + $0xfa] sm:$0xff]  ;;  %v15861_v53 = vld [vmem:[#allocation3 + $0x230] ss:$20 sps:$4 sm:$0xff]   ;;  %v3551_v18 = vadd.f32 %v3550_v52, %v3366_v37  ;;  %v3369_v59 = vadd.f32 %v17269_v33, %v3368_v58 }
 0x2b6   :  { %4735 = vst [vmem:[#allocation3 + $0x254] sm:$0xf] %v14077_v41  ;;  %5994 = vmatmul.mubr.bf16.gmra.mxu0 %v15858_v35  ;;  %v15863_v55 = vld [vmem:[#allocation3 + $0x234] ss:$20 sps:$4 sm:$0xff]   ;;  %v14078_v57 = vpack.c.bf16 %v4546_v48, %v4546_v48  ;;  %3825 = vst [vmem:[#allocation3 + $0x26c] sm:$0xf] %v13927_v45  ;;  %v15199_v23 = vpop.f32.mrf.mxu0  ;;  %v3370_v32 = vpop.f32.mrf.mxu1 }
 0x2b7   :  { %4053 = vst [vmem:[#allocation3 + $0x270] sm:$0xf] %v13965_v56  ;;  %4508 = vst [vmem:[#allocation3 + $0x264] sm:$0xf] %v14040_v14  ;;  %5816 = vmatprep.mubr.bf16.mxu1 %v15863_v55  ;;  %v4319_v25 = vld [vmem:[#allocation2 + $0x101] sm:$0xff]  ;;  %v14006_v6 = vpack.c.bf16 %v3551_v18, %v3551_v18 }
 0x2b8   :  { %4283 = vst [vmem:[#allocation3 + $0x29c] sm:$0xf] %v14005_v27  ;;  %v3636_v61 = vld [vmem:[#allocation2 + $0x106] sm:$0xff]  ;;  %4736 = vst [vmem:[#allocation3 + $0x268] sm:$0xf] %v14078_v57  ;;  %v14041_v63 = vpack.c.bf16 %v4319_v25, %v4319_v25  ;;  %v3553_v9 = vpop.f32.mrf.mxu0 }
 0x2b9   :  { %v3864_v31 = vld [vmem:[#allocation2 + $0x107] sm:$0xff]  ;;  %3599 = vst [vmem:[#allocation2 + $0x118] sm:$0xff] %v3551_v18  ;;  %v13928_v49 = vpack.c.bf16 %v3636_v61, %v3636_v61  ;;  %v3554_v34 = vadd.f32 %v3553_v9, %v3369_v59  ;;  %v3373_v46 = vpop.f32.mrf.mxu1  ;;  %4284 = vst [vmem:[#allocation3 + $0x2b0] sm:$0xf] %v14006_v6  ;;  %v15871_v37 = vld [vmem:[#allocation3 + $0x260] ss:$20 sps:$4 sm:$0xff]  }
 0x2ba   :  { %5817 = vmatmul.mubr.bf16.gmra.mxu1 %v15861_v53  ;;  %v13966_v5 = vpack.c.bf16 %v3864_v31, %v3864_v31  ;;  %v4547_v8 = vld [vmem:[#allocation2 + $0x102] sm:$0xff]  ;;  %v15865_v10 = vld [vmem:[#allocation3 + $0x238] ss:$20 sps:$4 sm:$0xff]   ;;  %v15867_v20 = vld [vmem:[#allocation3 + $0x23c] ss:$20 sps:$4 sm:$0xff]   ;;  %v3374_v11 = vadd.f32 %v17269_v33, %v3373_v46  ;;  %v15200_v47 = vpop.f32.mrf.mxu0 }
 0x2bb   :  { %v14079_v38 = vpack.c.bf16 %v4547_v8, %v4547_v8  ;;  %4509 = vst [vmem:[#allocation3 + $0x278] sm:$0xf] %v14041_v63  ;;  %3826 = vst [vmem:[#allocation3 + $0x280] sm:$0xf] %v13928_v49  ;;  %6001 = vmatprep.mubr.bf16.mxu0 %v15867_v20  ;;  %v3637_v12 = vld [vmem:[#allocation2 + $0x10e] sm:$0xff]  ;;  %v3375_v19 = vpop.f32.mrf.mxu1  ;;  %v14007_v24 = vpack.c.bf16 %v3554_v34, %v3554_v34 }
 0x2bc   :  { %4054 = vst [vmem:[#allocation3 + $0x284] sm:$0xf] %v13966_v5  ;;  %v3865_v13 = vld [vmem:[#allocation2 + $0x10f] sm:$0xff]  ;;  %3600 = vst [vmem:[#allocation2 + $0x120] sm:$0xff] %v3554_v34  ;;  %v13929_v21 = vpack.c.bf16 %v3637_v12, %v3637_v12  ;;  %v3558_v62 = vpop.f32.mrf.mxu0 }
 0x2bd   :  { %v4320_v16 = vld [vmem:[#allocation2 + $0x109] sm:$0xff]  ;;  %4737 = vst [vmem:[#allocation3 + $0x27c] sm:$0xf] %v14079_v38  ;;  %v13967_v22 = vpack.c.bf16 %v3865_v13, %v3865_v13  ;;  %v3559_v60 = vadd.f32 %v3558_v62, %v3374_v11  ;;  %v3376_v28 = vpop.f32.mrf.mxu1  ;;  %4285 = vst [vmem:[#allocation3 + $0x2c4] sm:$0xf] %v14007_v24 }
 0x2be   :  { %6002 = vmatmul.mubr.bf16.gmra.mxu0 %v15865_v10  ;;  %v14042_v51 = vpack.c.bf16 %v4320_v16, %v4320_v16  ;;  %v4548_v42 = vld [vmem:[#allocation2 + $0x10a] sm:$0xff]  ;;  %3827 = vst [vmem:[#allocation3 + $0x294] sm:$0xf] %v13929_v21  ;;  %v3377_v3 = vadd.f32 %v17269_v33, %v3376_v28  ;;  %v15203_v17 = vpop.f32.mrf.mxu0 }
 0x2bf   :  { %v15868_v54 = vld [vmem:[#allocation3 + $0x258] ss:$20 sps:$4 sm:$0xff]   ;;  %v15870_v50 = vld [vmem:[#allocation3 + $0x25c] ss:$20 sps:$4 sm:$0xff]   ;;  %v14080_v30 = vpack.c.bf16 %v4548_v42, %v4548_v42  ;;  %4055 = vst [vmem:[#allocation3 + $0x298] sm:$0xf] %v13967_v22  ;;  %v3378_v4 = vpop.f32.mrf.mxu1  ;;  %v14008_v41 = vpack.c.bf16 %v3559_v60, %v3559_v60 }
 0x2c0   :  { %4510 = vst [vmem:[#allocation3 + $0x28c] sm:$0xf] %v14042_v51  ;;  %5824 = vmatprep.mubr.bf16.mxu1 %v15870_v50  ;;  %v4321_v1 = vld [vmem:[#allocation2 + $0x111] sm:$0xff]  ;;  %3601 = vst [vmem:[#allocation2 + $0x128] sm:$0xff] %v3559_v60  ;;  %v3561_v2 = vpop.f32.mrf.mxu0  ;;  %v15877_v31 = vld [vmem:[#allocation3 + $0x288] ss:$20 sps:$4 sm:$0xff]  }
 0x2c1   :  { %v3638_v0 = vld [vmem:[#allocation2 + $0x116] sm:$0xff]  ;;  %4738 = vst [vmem:[#allocation3 + $0x290] sm:$0xf] %v14080_v30  ;;  %v14043_v15 = vpack.c.bf16 %v4321_v1, %v4321_v1  ;;  %v3562_v43 = vadd.f32 %v3561_v2, %v3377_v3  ;;  %4286 = vst [vmem:[#allocation3 + $0x2d8] sm:$0xf] %v14008_v41  ;;  %v15914_v41 = vld [vmem:[#allocation6 + $0x70] sm:$0xff]  }
 0x2c2   :  { %v3866_v36 = vld [vmem:[#allocation2 + $0x117] sm:$0xff]  ;;  %5825 = vmatmul.mubr.bf16.gmra.mxu1 %v15868_v54  ;;  %v13930_v35 = vpack.c.bf16 %v3638_v0, %v3638_v0  ;;  %v15204_v33 = vpop.f32.mrf.mxu0  ;;  %v15893_v50 = vld [vmem:[#allocation3 + $0x10] ss:$20 sps:$4 sm:$0xff]  }
 0x2c3   :  { %v13968_v39 = vpack.c.bf16 %v3866_v36, %v3866_v36  ;;  %v4549_v40 = vld [vmem:[#allocation2 + $0x112] sm:$0xff]  ;;  %4511 = vst [vmem:[#allocation3 + $0x2a0] sm:$0xf] %v14043_v15  ;;  %v3639_v44 = vld [vmem:[#allocation2 + $0x11e] sm:$0xff]  ;;  %3602 = vst [vmem:[#allocation2 + $0x130] sm:$0xf] %v3562_v43 }
 0x2c4   :  { %v15873_v26 = vld [vmem:[#allocation3 + $0x264] ss:$20 sps:$4 sm:$0xff]   ;;  %v14081_v29 = vpack.c.bf16 %v4549_v40, %v4549_v40  ;;  %3828 = vst [vmem:[#allocation3 + $0x2a8] sm:$0xf] %v13930_v35  ;;  %v13931_v56 = vpack.c.bf16 %v3639_v44, %v3639_v44  ;;  %v15895_v60 = vld [vmem:[#allocation3 + $0x60] ss:$20 sps:$4 sm:$0xff]  }
 0x2c5   :  { %4056 = vst [vmem:[#allocation3 + $0x2ac] sm:$0xf] %v13968_v39  ;;  %6009 = vmatprep.mubr.bf16.mxu0 %v15873_v26  ;;  %v3867_v7 = vld [vmem:[#allocation2 + $0x11f] sm:$0xff]  ;;  %v15894_v30 = vld [vmem:[#allocation3 + $0x38] ss:$20 sps:$4 sm:$0xff]   ;;  %v15912_v3 = vld [vmem:[#allocation6 + $0x78] sm:$0xff]  }
 0x2c6   :  { %v4322_v45 = vld [vmem:[#allocation2 + $0x119] sm:$0xff]  ;;  %4739 = vst [vmem:[#allocation3 + $0x2a4] sm:$0xf] %v14081_v29  ;;  %6010 = vmatmul.mubr.bf16.gmra.mxu0 %v15871_v37  ;;  %v13969_v14 = vpack.c.bf16 %v3867_v7, %v3867_v7  ;;  %3829 = vst [vmem:[#allocation3 + $0x2bc] sm:$0xf] %v13931_v56  ;;  %v15913_v17 = vld [vmem:[#allocation6 + $0x38] sm:$0xff]   ;;  %14432 = vmatprep.subr.bf16.mxu0 %v15912_v3 }
 0x2c7   :  { %v14044_v27 = vpack.c.bf16 %v4322_v45, %v4322_v45  ;;  %v4550_v48 = vld [vmem:[#allocation2 + $0x11a] sm:$0xff]  ;;  %v3640_v18 = vld [vmem:[#allocation2 + $0x126] sm:$0xff]  ;;  %14433 = vmatpush3.bf16.msra.mxu0 %v15913_v17 }
 0x2c8   :  { %v15874_v52 = vld [vmem:[#allocation3 + $0x280] ss:$20 sps:$4 sm:$0xff]   ;;  %v15876_v53 = vld [vmem:[#allocation3 + $0x284] ss:$20 sps:$4 sm:$0xff]   ;;  %v14082_v55 = vpack.c.bf16 %v4550_v48, %v4550_v48  ;;  %4057 = vst [vmem:[#allocation3 + $0x2c0] sm:$0xf] %v13969_v14  ;;  %v13932_v23 = vpack.c.bf16 %v3640_v18, %v3640_v18  ;;  %14434 = vmatprep.subr.bf16.mxu0 %v15914_v41 }
 0x2c9   :  { %4512 = vst [vmem:[#allocation3 + $0x2b4] sm:$0xf] %v14044_v27  ;;  %5832 = vmatprep.mubr.bf16.mxu1 %v15876_v53  ;;  %v4323_v57 = vld [vmem:[#allocation2 + $0x121] sm:$0xff]  ;;  %v17288_v54 = vld [vmem:[#allocation2 + $0x138] sm:$0xff] }
 0x2ca   :  { %v3868_v58 = vld [vmem:[#allocation2 + $0x127] sm:$0xff]  ;;  %4740 = vst [vmem:[#allocation3 + $0x2b8] sm:$0xf] %v14082_v55  ;;  %5833 = vmatmul.mubr.bf16.gmra.mxu1 %v15874_v52  ;;  %v14045_v59 = vpack.c.bf16 %v4323_v57, %v4323_v57  ;;  %3830 = vst [vmem:[#allocation3 + $0x2d0] sm:$0xf] %v13932_v23 }
 0x2cb   :  { %v13970_v25 = vpack.c.bf16 %v3868_v58, %v3868_v58  ;;  %v4551_v61 = vld [vmem:[#allocation2 + $0x122] sm:$0xff]  ;;  %v3641_v49 = vld [vmem:[#allocation2 + $0x12e] sm:$0xf]  ;;  %v4553_v16 = vld [vmem:[#allocation2 + $0x132] sm:$0xf] }
 0x2cc   :  { %v15879_v32 = vld [vmem:[#allocation3 + $0x28c] ss:$20 sps:$4 sm:$0xff]   ;;  %v14083_v63 = vpack.c.bf16 %v4551_v61, %v4551_v61  ;;  %4513 = vst [vmem:[#allocation3 + $0x2c8] sm:$0xf] %v14045_v59  ;;  %v4097_v6 = vld [vmem:[#allocation2 + $0x130] sm:$0xf]  ;;  %v13933_v8 = vpack.c.bf16 %v3641_v49, %v3641_v49  ;;  %v14085_v19 = vpack.c.bf16 %v4553_v16, %v4553_v16 }
 0x2cd   :  { %4058 = vst [vmem:[#allocation3 + $0x2d4] sm:$0xf] %v13970_v25  ;;  %6017 = vmatprep.mubr.bf16.mxu0 %v15879_v32  ;;  %v3869_v5 = vld [vmem:[#allocation2 + $0x12f] sm:$0xf]  ;;  %v14009_v10 = vpack.c.bf16 %v4097_v6, %v4097_v6  ;;  %v15881_v46 = vld [vmem:[#allocation3 + $0x2a8] ss:$20 sps:$4 sm:$0xff]  }
 0x2ce   :  { %4741 = vst [vmem:[#allocation3 + $0x2cc] sm:$0xf] %v14083_v63  ;;  %6018 = vmatmul.mubr.bf16.gmra.mxu0 %v15877_v31  ;;  %v13971_v9 = vpack.c.bf16 %v3869_v5, %v3869_v5  ;;  %v4324_v20 = vld [vmem:[#allocation2 + $0x129] sm:$0xff]  ;;  %v4325_v38 = vld [vmem:[#allocation2 + $0x131] sm:$0xf]  ;;  %v15916_v63 = vld [vmem:[#allocation6 + $0x68] sm:$0xff]  }
 0x2cf   :  { %v4552_v34 = vld [vmem:[#allocation2 + $0x12a] sm:$0xff]  ;;  %v14046_v47 = vpack.c.bf16 %v4324_v20, %v4324_v20  ;;  %v14047_v12 = vpack.c.bf16 %v4325_v38, %v4325_v38  ;;  %3831 = vst [vmem:[#allocation3 + $0x2e4] sm:$0x3] %v13933_v8  ;;  %4287 = vst [vmem:[#allocation3 + $0x2ec] sm:$0x3] %v14009_v10  ;;  %v15917_v38 = vld [vmem:[#allocation6 + $0x28] sm:$0xff]  }
 0x2d0   :  { %v15883_v11 = vld [vmem:[#allocation3 + $0x2ac] ss:$20 sps:$4 sm:$0xff]   ;;  %v14084_v13 = vpack.c.bf16 %v4552_v34, %v4552_v34  ;;  %4059 = vst [vmem:[#allocation3 + $0x2e8] sm:$0x3] %v13971_v9  ;;  %v15884_v21 = vld [vmem:[#allocation3 + $0x2b0] ss:$20 sps:$4 sm:$0xff]  }
 0x2d1   :  { %5840 = vmatprep.mubr.bf16.mxu1 %v15883_v11  ;;  %4514 = vst [vmem:[#allocation3 + $0x2dc] sm:$0xf] %v14046_v47  ;;  %4515 = vst [vmem:[#allocation3 + $0x2f0] sm:$0x3] %v14047_v12  ;;  %v15896_v28 = vld [vmem:[#allocation3 + $0x88] ss:$20 sps:$4 sm:$0xff]  }
 0x2d2   :  { %4742 = vst [vmem:[#allocation3 + $0x2e0] sm:$0xf] %v14084_v13  ;;  %5841 = vmatmul.mubr.bf16.gmra.mxu1 %v15881_v46  ;;  %4743 = vst [vmem:[#allocation3 + $0x2f4] sm:$0x3] %v14085_v19  ;;  %v15897_v1 = vld [vmem:[#allocation3 + $0xb0] ss:$20 sps:$4 sm:$0xff]  }
 0x2d3   :  { %v15886_v22 = vld [vmem:[#allocation3 + $0x2b4] ss:$20 sps:$4 sm:$0xff]   ;;  %v15898_v0 = vld [vmem:[#allocation3 + $0xd8] ss:$20 sps:$4 sm:$0xff]   ;;  %v15901_v32 = vld [vmem:[#allocation3 + $0x150] ss:$20 sps:$4 sm:$0xff]  }
 0x2d4   :  { %6025 = vmatprep.mubr.bf16.mxu0 %v15886_v22  ;;  %v15915_v40 = vld [vmem:[#allocation6 + $0x30] sm:$0xff]   ;;  %v15899_v26 = vld [vmem:[#allocation3 + $0x100] ss:$20 sps:$4 sm:$0xff]  }
 0x2d5   :  { %14435 = vmatpush3.bf16.msra.mxu0 %v15915_v40  ;;  %v15900_v52 = vld [vmem:[#allocation3 + $0x128] ss:$20 sps:$4 sm:$0xff]   ;;  %v15902_v47 = vld [vmem:[#allocation3 + $0x178] ss:$20 sps:$4 sm:$0xff]  }
 0x2d6   :  { %6026 = vmatmul.mubr.bf16.gmra.mxu0 %v15884_v21  ;;  %v15887_v51 = vld [vmem:[#allocation3 + $0x2d0] ss:$20 sps:$4 sm:$0x3f]   ;;  %v15890_v62 = vld [vmem:[#allocation3 + $0x2d8] ss:$20 sps:$4 sm:$0x3f]   ;;  %14436 = vmatprep.subr.bf16.mxu0 %v15916_v63 }
 0x2d7   :  { %v15889_v24 = vld [vmem:[#allocation3 + $0x2d4] ss:$20 sps:$4 sm:$0x3f]  }
 0x2d8   :  { %v15892_v42 = vld [vmem:[#allocation3 + $0x2dc] ss:$20 sps:$4 sm:$0x3f]   ;;  %5848 = vmatprep.mubr.bf16.mxu1 %v15889_v24 }
 0x2d9   :  { %6033 = vmatprep.mubr.bf16.mxu0 %v15892_v42  ;;  %14437 = vmatpush3.bf16.msra.mxu0 %v15917_v38 }
 0x2da   :  { %5849 = vmatmul.mubr.bf16.gmra.mxu1 %v15887_v51 }
 0x2db   :  { %15221 = vmatprep.mubr.msk.bf16.mxu1 %vm16452_vm0, %v17288_v54 }
 0x2de   :  { %6034 = vmatmul.mubr.bf16.gmra.mxu0 %v15890_v62 }
 0x2e2   :  { %15222 = vmatmul.mubr.bf16.vlgmr.msra.gmra.mxu1 %v15893_v50  ;;  %v15903_v50 = vld [vmem:[#allocation3 + $0x1a0] ss:$20 sps:$4 sm:$0xff]  }
 0x2e3   :  { %15225 = vmatprep.mubr.msk.bf16.mxu1 %vm16452_vm0, %v17288_v54 }
 0x2ea   :  { %15226 = vmatmul.mubr.bf16.gmra.mxu1 %v15894_v30 }
 0x2eb   :  { %15229 = vmatprep.mubr.msk.bf16.mxu1 %vm16452_vm0, %v17288_v54 }
 0x2f2   :  { %15230 = vmatmul.mubr.bf16.gmra.mxu1 %v15895_v60 }
 0x2f3   :  { %15233 = vmatprep.mubr.msk.bf16.mxu1 %vm16452_vm0, %v17288_v54 }
 0x2fa   :  { %15234 = vmatmul.mubr.bf16.gmra.mxu1 %v15896_v28 }
 0x2fb   :  { %15237 = vmatprep.mubr.msk.bf16.mxu1 %vm16452_vm0, %v17288_v54 }
 0x302   :  { %15238 = vmatmul.mubr.bf16.gmra.mxu1 %v15897_v1 }
 0x303   :  { %15241 = vmatprep.mubr.msk.bf16.mxu1 %vm16452_vm0, %v17288_v54 }
 0x308   :  { %v5706_v36 = vpop.f32.mrf.mxu1 }
 0x30a   :  { %15242 = vmatmul.mubr.bf16.gmra.mxu1 %v15898_v0  ;;  %v5708_v4 = vpop.f32.mrf.mxu1 }
 0x30b   :  { %15245 = vmatprep.mubr.msk.bf16.mxu1 %vm16452_vm0, %v17288_v54 }
 0x30c   :  { %v5709_v15 = vpop.f32.mrf.mxu1 }
 0x30d   :  { %v5891_v35 = vpop.f32.mrf.mxu0 }
 0x30e   :  { %v17304_v39 = vadd.f32 %v5891_v35, %v5706_v36  ;;  %v5711_v2 = vpop.f32.mrf.mxu1  ;;  %v15904_v35 = vld [vmem:[#allocation3 + $0x1c8] ss:$20 sps:$4 sm:$0xff]  }
 0x30f   :  { %v5893_v37 = vpop.f32.mrf.mxu0 }
 0x311   :  { %v5714_v29 = vpop.f32.mrf.mxu1  ;;  %v5894_v43 = vpop.f32.mrf.mxu0 }
 0x312   :  { %v17306_v33 = vadd.f32 %v5894_v43, %v5709_v15  ;;  %15246 = vmatmul.mubr.bf16.gmra.mxu1 %v15899_v26 }
 0x313   :  { %v5716_v44 = vpop.f32.mrf.mxu1  ;;  %v5896_v7 = vpop.f32.mrf.mxu0  ;;  %15249 = vmatprep.mubr.msk.bf16.mxu1 %vm16452_vm0, %v17288_v54 }
 0x314   :  { %v15918_v44 = vld [vmem:[#allocation6 + $0x60] sm:$0xff]  }
 0x315   :  { %v5717_v45 = vpop.f32.mrf.mxu1  ;;  %v5899_v56 = vpop.f32.mrf.mxu0  ;;  %v15919_v7 = vld [vmem:[#allocation6 + $0x20] sm:$0xff]   ;;  %14438 = vmatprep.subr.bf16.mxu0 %v15918_v44 }
 0x316   :  { %v17310_v14 = vadd.f32 %v5899_v56, %v5714_v29  ;;  %14439 = vmatpush3.bf16.msra.mxu0 %v15919_v7 }
 0x317   :  { %v5719_v27 = vpop.f32.mrf.mxu1  ;;  %v5901_v48 = vpop.f32.mrf.mxu0 }
 0x318   :  { %v15905_v48 = vld [vmem:[#allocation3 + $0x1f0] ss:$20 sps:$4 sm:$0xff]  }
 0x319   :  { %v5722_v53 = vpop.f32.mrf.mxu1  ;;  %v5902_v55 = vpop.f32.mrf.mxu0 }
 0x31a   :  { %v17312_v57 = vadd.f32 %v5902_v55, %v5717_v45  ;;  %15250 = vmatmul.mubr.bf16.gmra.mxu1 %v15900_v52 }
 0x31b   :  { %v5724_v18 = vpop.f32.mrf.mxu1  ;;  %v5904_v58 = vpop.f32.mrf.mxu0  ;;  %15253 = vmatprep.mubr.msk.bf16.mxu1 %vm16452_vm0, %v17288_v54 }
 0x31d   :  { %v5725_v59 = vpop.f32.mrf.mxu1  ;;  %v5907_v23 = vpop.f32.mrf.mxu0 }
 0x31e   :  { %v17316_v25 = vadd.f32 %v5907_v23, %v5722_v53 }
 0x31f   :  { %v5727_v61 = vpop.f32.mrf.mxu1  ;;  %v5909_v31 = vpop.f32.mrf.mxu0 }
 0x320   :  { %v15921_v31 = vld [vmem:[#allocation6 + $0x18] sm:$0xff]  }
 0x321   :  { %v5730_v49 = vpop.f32.mrf.mxu1  ;;  %v5910_v5 = vpop.f32.mrf.mxu0 }
 0x322   :  { %v17318_v6 = vadd.f32 %v5910_v5, %v5725_v59  ;;  %15254 = vmatmul.mubr.bf16.gmra.mxu1 %v15901_v32  ;;  %v15920_v59 = vld [vmem:[#allocation6 + $0x58] sm:$0xff]   ;;  %v15906_v5 = vld [vmem:[#allocation3 + $0x218] ss:$20 sps:$4 sm:$0xff]  }
 0x323   :  { %v5732_v8 = vpop.f32.mrf.mxu1  ;;  %v5912_v9 = vpop.f32.mrf.mxu0  ;;  %15257 = vmatprep.mubr.msk.bf16.mxu1 %vm16452_vm0, %v17288_v54  ;;  %14440 = vmatprep.subr.bf16.mxu0 %v15920_v59 }
 0x324   :  { %14441 = vmatpush3.bf16.msra.mxu0 %v15921_v31  ;;  %v15922_v8 = vld [vmem:[#allocation6 + $0x50] sm:$0xff]  }
 0x325   :  { %v5733_v10 = vpop.f32.mrf.mxu1  ;;  %v5915_v20 = vpop.f32.mrf.mxu0  ;;  %14442 = vmatprep.subr.bf16.mxu0 %v15922_v8 }
 0x326   :  { %v17322_v34 = vadd.f32 %v5915_v20, %v5730_v49  ;;  %v15923_v20 = vld [vmem:[#allocation6 + $0x10] sm:$0xff]  }
 0x327   :  { %v5735_v46 = vpop.f32.mrf.mxu1  ;;  %v5917_v11 = vpop.f32.mrf.mxu0 }
 0x328   :  { %14443 = vmatpush3.bf16.msra.mxu0 %v15923_v20 }
 0x329   :  { %v5738_v12 = vpop.f32.mrf.mxu1  ;;  %v5918_v13 = vpop.f32.mrf.mxu0 }
 0x32a   :  { %v17324_v16 = vadd.f32 %v5918_v13, %v5733_v10  ;;  %15258 = vmatmul.mubr.bf16.gmra.mxu1 %v15902_v47  ;;  %v15924_v47 = vld [vmem:[#allocation6 + $0x48] sm:$0xff]  }
 0x32b   :  { %v5740_v19 = vpop.f32.mrf.mxu1  ;;  %v5920_v21 = vpop.f32.mrf.mxu0  ;;  %15261 = vmatprep.mubr.msk.bf16.mxu1 %vm16452_vm0, %v17288_v54  ;;  %14444 = vmatprep.subr.bf16.mxu0 %v15924_v47 }
 0x32c   :  { %v15925_v19 = vld [vmem:[#allocation6 + $0x8] sm:$0xff]  }
 0x32d   :  { %v5741_v22 = vpop.f32.mrf.mxu1  ;;  %14445 = vmatpush3.bf16.msra.mxu0 %v15925_v19 }
 0x32e   :  { %v5923_v51 = vpop.f32.mrf.mxu0 }
 0x32f   :  { %v17328_v24 = vadd.f32 %v5923_v51, %v5738_v12  ;;  %v5743_v42 = vpop.f32.mrf.mxu1 }
 0x330   :  { %v5925_v62 = vpop.f32.mrf.mxu0  ;;  %v15907_v42 = vld [vmem:[#allocation3 + $0x240] ss:$20 sps:$4 sm:$0xff]  }
 0x331   :  { %v5746_v30 = vpop.f32.mrf.mxu1  ;;  %v15926_v62 = vld [vmem:[#allocation6 + $0x40] sm:$0xff]  }
 0x332   :  { %v5926_v60 = vpop.f32.mrf.mxu0  ;;  %15262 = vmatmul.mubr.bf16.gmra.mxu1 %v15903_v50  ;;  %14446 = vmatprep.subr.bf16.mxu0 %v15926_v62 }
 0x333   :  { %v17330_v28 = vadd.f32 %v5926_v60, %v5741_v22  ;;  %v5748_v3 = vpop.f32.mrf.mxu1  ;;  %15265 = vmatprep.mubr.msk.bf16.mxu1 %vm16452_vm0, %v17288_v54  ;;  %v15927_v60 = vld [vmem:[#allocation6] sm:$0xff]  }
 0x334   :  { %v5928_v17 = vpop.f32.mrf.mxu0  ;;  %14447 = vmatpush3.bf16.msra.mxu0 %v15927_v60 }
 0x335   :  { %v5749_v1 = vpop.f32.mrf.mxu1 }
 0x336   :  { %v5931_v0 = vpop.f32.mrf.mxu0 }
 0x337   :  { %v17334_v36 = vadd.f32 %v5931_v0, %v5746_v30  ;;  %v5751_v4 = vpop.f32.mrf.mxu1 }
 0x338   :  { %v5933_v15 = vpop.f32.mrf.mxu0 }
 0x339   :  { %v5754_v41 = vpop.f32.mrf.mxu1 }
 0x33a   :  { %v5934_v40 = vpop.f32.mrf.mxu0  ;;  %15266 = vmatmul.mubr.bf16.gmra.mxu1 %v15904_v35 }
 0x33b   :  { %v17336_v2 = vadd.f32 %v5934_v40, %v5749_v1  ;;  %v5756_v37 = vpop.f32.mrf.mxu1  ;;  %15269 = vmatprep.mubr.msk.bf16.mxu1 %vm16452_vm0, %v17288_v54  ;;  %v15908_v40 = vld [vmem:[#allocation3 + $0x268] ss:$20 sps:$4 sm:$0xff]  }
 0x33c   :  { %v5936_v26 = vpop.f32.mrf.mxu0 }
 0x33d   :  { %v5757_v29 = vpop.f32.mrf.mxu1 }
 0x33e   :  { %v5939_v43 = vpop.f32.mrf.mxu0 }
 0x33f   :  { %v17340_v45 = vadd.f32 %v5939_v43, %v5754_v41  ;;  %v5759_v56 = vpop.f32.mrf.mxu1 }
 0x340   :  { %v5941_v27 = vpop.f32.mrf.mxu0 }
 0x341   :  { %v5762_v52 = vpop.f32.mrf.mxu1 }
 0x342   :  { %v5942_v53 = vpop.f32.mrf.mxu0  ;;  %15270 = vmatmul.mubr.bf16.gmra.mxu1 %v15905_v48 }
 0x343   :  { %v17342_v55 = vadd.f32 %v5942_v53, %v5757_v29  ;;  %v5764_v18 = vpop.f32.mrf.mxu1  ;;  %15273 = vmatprep.mubr.msk.bf16.mxu1 %vm16452_vm0, %v17288_v54  ;;  %v15909_v53 = vld [vmem:[#allocation3 + $0x290] ss:$20 sps:$4 sm:$0xff]  }
 0x344   :  { %v5944_v58 = vpop.f32.mrf.mxu0 }
 0x345   :  { %v5765_v23 = vpop.f32.mrf.mxu1 }
 0x346   :  { %v5947_v61 = vpop.f32.mrf.mxu0 }
 0x347   :  { %v17346_v32 = vadd.f32 %v5947_v61, %v5762_v52  ;;  %v5767_v63 = vpop.f32.mrf.mxu1 }
 0x348   :  { %v5949_v49 = vpop.f32.mrf.mxu0 }
 0x34a   :  { %v5770_v9 = vpop.f32.mrf.mxu1  ;;  %v5950_v10 = vpop.f32.mrf.mxu0  ;;  %15274 = vmatmul.mubr.bf16.gmra.mxu1 %v15906_v5 }
 0x34b   :  { %v17348_v38 = vadd.f32 %v5950_v10, %v5765_v23  ;;  %15277 = vmatprep.mubr.msk.bf16.mxu1 %vm16452_vm0, %v17288_v54 }
 0x34c   :  { %v5772_v46 = vpop.f32.mrf.mxu1  ;;  %v5952_v11 = vpop.f32.mrf.mxu0 }
 0x34e   :  { %v5773_v12 = vpop.f32.mrf.mxu1  ;;  %v5955_v13 = vpop.f32.mrf.mxu0 }
 0x34f   :  { %v17352_v21 = vadd.f32 %v5955_v13, %v5770_v9  ;;  %v15910_v9 = vld [vmem:[#allocation3 + $0x2b8] ss:$20 sps:$4 sm:$0xff]  }
 0x350   :  { %v5775_v22 = vpop.f32.mrf.mxu1  ;;  %v5957_v51 = vpop.f32.mrf.mxu0 }
 0x352   :  { %v5778_v50 = vpop.f32.mrf.mxu1  ;;  %v5958_v30 = vpop.f32.mrf.mxu0  ;;  %15278 = vmatmul.mubr.bf16.gmra.mxu1 %v15907_v42  ;;  %v15911_v42 = vld [vmem:[#allocation3 + $0x2e0] ss:$20 sps:$4 sm:$0x3f]  }
 0x353   :  { %v17354_v3 = vadd.f32 %v5958_v30, %v5773_v12  ;;  %15281 = vmatprep.mubr.msk.bf16.mxu1 %vm16452_vm0, %v17288_v54 }
 0x354   :  { %v5780_v17 = vpop.f32.mrf.mxu1  ;;  %v5960_v1 = vpop.f32.mrf.mxu0 }
 0x356   :  { %v5781_v0 = vpop.f32.mrf.mxu1  ;;  %v5963_v4 = vpop.f32.mrf.mxu0 }
 0x357   :  { %v17358_v15 = vadd.f32 %v5963_v4, %v5778_v50 }
 0x358   :  { %v5783_v35 = vpop.f32.mrf.mxu1  ;;  %v5965_v41 = vpop.f32.mrf.mxu0 }
 0x35a   :  { %v5786_v37 = vpop.f32.mrf.mxu1  ;;  %v5966_v26 = vpop.f32.mrf.mxu0  ;;  %15282 = vmatmul.mubr.bf16.gmra.mxu1 %v15908_v40 }
 0x35b   :  { %v17360_v29 = vadd.f32 %v5966_v26, %v5781_v0  ;;  %15285 = vmatprep.mubr.msk.bf16.mxu1 %vm16452_vm0, %v17288_v54 }
 0x35c   :  { %v5788_v43 = vpop.f32.mrf.mxu1  ;;  %v5968_v44 = vpop.f32.mrf.mxu0 }
 0x35e   :  { %v5789_v7 = vpop.f32.mrf.mxu1  ;;  %v5971_v56 = vpop.f32.mrf.mxu0 }
 0x35f   :  { %v17364_v27 = vadd.f32 %v5971_v56, %v5786_v37 }
 0x360   :  { %v5791_v48 = vpop.f32.mrf.mxu1  ;;  %v5973_v52 = vpop.f32.mrf.mxu0 }
 0x362   :  { %v5794_v18 = vpop.f32.mrf.mxu1  ;;  %v5974_v58 = vpop.f32.mrf.mxu0  ;;  %15286 = vmatmul.mubr.bf16.gmra.mxu1 %v15909_v53 }
 0x363   :  { %v17366_v59 = vadd.f32 %v5974_v58, %v5789_v7  ;;  %15289 = vmatprep.mubr.msk.bf16.mxu1 %vm16452_vm0, %v17288_v54 }
 0x364   :  { %v5796_v23 = vpop.f32.mrf.mxu1  ;;  %v5976_v61 = vpop.f32.mrf.mxu0 }
 0x366   :  { %v5797_v31 = vpop.f32.mrf.mxu1  ;;  %v5979_v63 = vpop.f32.mrf.mxu0 }
 0x367   :  { %v17370_v49 = vadd.f32 %v5979_v63, %v5794_v18 }
 0x368   :  { %v5799_v5 = vpop.f32.mrf.mxu1  ;;  %v5981_v8 = vpop.f32.mrf.mxu0 }
 0x36a   :  { %v5802_v10 = vpop.f32.mrf.mxu1  ;;  %v5982_v20 = vpop.f32.mrf.mxu0  ;;  %15290 = vmatmul.mubr.bf16.gmra.mxu1 %v15910_v9 }
 0x36b   :  { %v17372_v46 = vadd.f32 %v5982_v20, %v5797_v31  ;;  %15293 = vmatprep.mubr.msk.bf16.mxu1 %vm16452_vm0, %v17288_v54 }
 0x36c   :  { %v5804_v11 = vpop.f32.mrf.mxu1  ;;  %v5984_v47 = vpop.f32.mrf.mxu0 }
 0x36e   :  { %v5805_v12 = vpop.f32.mrf.mxu1  ;;  %v5987_v13 = vpop.f32.mrf.mxu0 }
 0x36f   :  { %v17376_v19 = vadd.f32 %v5987_v13, %v5802_v10 }
 0x370   :  { %v5807_v22 = vpop.f32.mrf.mxu1  ;;  %v5989_v51 = vpop.f32.mrf.mxu0 }
 0x372   :  { %v5810_v62 = vpop.f32.mrf.mxu1  ;;  %v5990_v50 = vpop.f32.mrf.mxu0  ;;  %15294 = vmatmul.mubr.bf16.gmra.mxu1 %v15911_v42 }
 0x373   :  { %v17378_v30 = vadd.f32 %v5990_v50, %v5805_v12 }
 0x374   :  { %v5812_v60 = vpop.f32.mrf.mxu1  ;;  %v5992_v17 = vpop.f32.mrf.mxu0 }
 0x376   :  { %v5813_v1 = vpop.f32.mrf.mxu1  ;;  %v5995_v0 = vpop.f32.mrf.mxu0 }
 0x377   :  { %v17380_v4 = vadd.f32 %v5995_v0, %v5810_v62 }
 0x378   :  { %v5815_v35 = vpop.f32.mrf.mxu1  ;;  %v5997_v54 = vpop.f32.mrf.mxu0 }
 0x37a   :  { %v5818_v41 = vpop.f32.mrf.mxu1  ;;  %v5998_v40 = vpop.f32.mrf.mxu0 }
 0x37b   :  { %v17382_v37 = vadd.f32 %v5998_v40, %v5813_v1 }
 0x37c   :  { %v5820_v26 = vpop.f32.mrf.mxu1  ;;  %v6000_v43 = vpop.f32.mrf.mxu0 }
 0x37e   :  { %v5821_v44 = vpop.f32.mrf.mxu1  ;;  %v6003_v7 = vpop.f32.mrf.mxu0 }
 0x37f   :  { %v17384_v56 = vadd.f32 %v6003_v7, %v5818_v41 }
 0x380   :  { %v5823_v48 = vpop.f32.mrf.mxu1  ;;  %v6005_v52 = vpop.f32.mrf.mxu0 }
 0x382   :  { %v5826_v53 = vpop.f32.mrf.mxu1  ;;  %v6006_v18 = vpop.f32.mrf.mxu0 }
 0x383   :  { %v17386_v58 = vadd.f32 %v6006_v18, %v5821_v44 }
 0x384   :  { %v5828_v23 = vpop.f32.mrf.mxu1  ;;  %v6008_v61 = vpop.f32.mrf.mxu0 }
 0x386   :  { %v5829_v31 = vpop.f32.mrf.mxu1  ;;  %v6011_v63 = vpop.f32.mrf.mxu0 }
 0x387   :  { %v17388_v5 = vadd.f32 %v6011_v63, %v5826_v53 }
 0x388   :  { %v5831_v8 = vpop.f32.mrf.mxu1  ;;  %v6013_v9 = vpop.f32.mrf.mxu0 }
 0x38a   :  { %v5834_v10 = vpop.f32.mrf.mxu1  ;;  %v6014_v20 = vpop.f32.mrf.mxu0 }
 0x38b   :  { %v17390_v11 = vadd.f32 %v6014_v20, %v5829_v31  ;;  %v17402_v31 = vld [vmem:[#allocation6 + $0xb8] sm:$0xff]  }
 0x38c   :  { %v5836_v47 = vpop.f32.mrf.mxu1  ;;  %v6016_v12 = vpop.f32.mrf.mxu0  ;;  %15297 = vmatprep.subr.bf16.mxu0 %v17402_v31 }
 0x38e   :  { %v5837_v13 = vpop.f32.mrf.mxu1  ;;  %v6019_v22 = vpop.f32.mrf.mxu0 }
 0x38f   :  { %v17392_v51 = vadd.f32 %v6019_v22, %v5834_v10 }
 0x390   :  { %v5839_v42 = vpop.f32.mrf.mxu1  ;;  %v6021_v62 = vpop.f32.mrf.mxu0 }
 0x392   :  { %v5842_v50 = vpop.f32.mrf.mxu1  ;;  %v6022_v60 = vpop.f32.mrf.mxu0 }
 0x393   :  { %v17394_v17 = vadd.f32 %v6022_v60, %v5837_v13 }
 0x394   :  { %v5844_v1 = vpop.f32.mrf.mxu1  ;;  %v6024_v0 = vpop.f32.mrf.mxu0 }
 0x396   :  { %v5845_v35 = vpop.f32.mrf.mxu1  ;;  %v6027_v54 = vpop.f32.mrf.mxu0 }
 0x397   :  { %v17396_v41 = vadd.f32 %v6027_v54, %v5842_v50 }
 0x398   :  { %v5847_v40 = vpop.f32.mrf.mxu1  ;;  %v6029_v26 = vpop.f32.mrf.mxu0 }
 0x399   :  { %v17414_v26 = vld [vmem:[%s18385_s9] ss:$0 sm:$0xff] }
 0x39a   :  { %v6030_v43 = vpop.f32.mrf.mxu0  ;;  %v5850_v44 = vpop.f32.mrf.mxu1 }
 0x39b   :  { %v17398_v7 = vadd.f32 %v6030_v43, %v5845_v35 }
 0x39c   :  { %v6032_v48 = vpop.f32.mrf.mxu0  ;;  %v5852_v52 = vpop.f32.mrf.mxu1 }
 0x39e   :  { %v6035_v53 = vpop.f32.mrf.mxu0  ;;  %v5853_v18 = vpop.f32.mrf.mxu1 }
 0x39f   :  { %v17400_v23 = vadd.f32 %v6035_v53, %v5850_v44 }
 0x3a0   :  { %v6037_v61 = vpop.f32.mrf.mxu0  ;;  %v5855_v63 = vpop.f32.mrf.mxu1 }
 0x3a2   :  { %v6038_v8 = vpop.f32.mrf.mxu0  ;;  %v6076_v10 = vpop.f32.mrf.mxu1 }
 0x3a3   :  { %v17405_v9 = vadd.f32 %v6038_v8, %v5853_v18  ;;  %v6077_v20 = vadd.f32 %v6076_v10, %v17304_v39 }
 0x3a4   :  { %v6040_v47 = vpop.f32.mrf.mxu0  ;;  %v15223_v12 = vpop.f32.mrf.mxu1 }
 0x3a5   :  { %6227 = vst [vmem:[#allocation2 + $0x8] sm:$0xff] %v6077_v20 }
 0x3a6   :  { %v6079_v13 = vpop.f32.mrf.mxu1 }
 0x3a7   :  { %v6080_v22 = vadd.f32 %v6079_v13, %v17306_v33 }
 0x3a8   :  { %v15224_v42 = vpop.f32.mrf.mxu1 }
 0x3a9   :  { %6228 = vst [vmem:[#allocation2 + $0x10] sm:$0xff] %v6080_v22 }
 0x3aa   :  { %v6084_v62 = vpop.f32.mrf.mxu1 }
 0x3ab   :  { %v6085_v50 = vadd.f32 %v6084_v62, %v17310_v14 }
 0x3ac   :  { %v15227_v60 = vpop.f32.mrf.mxu1 }
 0x3ad   :  { %6229 = vst [vmem:[#allocation2 + $0x18] sm:$0xff] %v6085_v50 }
 0x3ae   :  { %v6087_v1 = vpop.f32.mrf.mxu1 }
 0x3af   :  { %v6088_v0 = vadd.f32 %v6087_v1, %v17312_v57 }
 0x3b0   :  { %v15228_v35 = vpop.f32.mrf.mxu1  ;;  %v6266_v54 = vld [vmem:[#allocation2 + $0x8] ss:$2 sm:$0xff]  ;;  %v6304_v40 = vld [vmem:[#allocation2 + $0x9] ss:$2 sm:$0xff] }
 0x3b1   :  { %6230 = vst [vmem:[#allocation2 + $0x20] sm:$0xff] %v6088_v0  ;;  %v6341_v39 = vadd.f32 %v6304_v40, %v6266_v54 }
 0x3b2   :  { %v6092_v33 = vpop.f32.mrf.mxu1 }
 0x3b3   :  { %v6093_v43 = vadd.f32 %v6092_v33, %v17316_v25  ;;  %v6360_v44 = vmul.f32 0.5, %v6341_v39 }
 0x3b4   :  { %v15231_v14 = vpop.f32.mrf.mxu1 }
 0x3b5   :  { %6231 = vst [vmem:[#allocation2 + $0x28] sm:$0xff] %v6093_v43  ;;  %v6386_v48 = vadd.f32 %v17414_v26, %v6360_v44 }
 0x3b6   :  { %v6095_v52 = vpop.f32.mrf.mxu1 }
 0x3b7   :  { %v6096_v57 = vadd.f32 %v6095_v52, %v17318_v6  ;;  %6405 = vst [vmem:[#allocation2 + $0x8] sm:$0xff] %v6386_v48  ;;  %v14105_v53 = vpack.c.bf16 %v6386_v48, %v6386_v48 }
 0x3b8   :  { %v6268_v18 = vld [vmem:[#allocation2 + $0x18] ss:$2 sm:$0xff]  ;;  %v6306_v61 = vld [vmem:[#allocation2 + $0x19] ss:$2 sm:$0xff]  ;;  %v15232_v63 = vpop.f32.mrf.mxu1 }
 0x3b9   :  { %v6342_v8 = vadd.f32 %v6306_v61, %v6268_v18  ;;  %6232 = vst [vmem:[#allocation2 + $0x30] sm:$0xff] %v6096_v57  ;;  %6636 = vst [vmem:[#allocation3 + $0x4] sm:$0xf] %v14105_v53 }
 0x3ba   :  { %v6100_v10 = vpop.f32.mrf.mxu1 }
 0x3bb   :  { %v6361_v20 = vmul.f32 0.5, %v6342_v8  ;;  %v6101_v25 = vadd.f32 %v6100_v10, %v17322_v34 }
 0x3bc   :  { %v15235_v47 = vpop.f32.mrf.mxu1 }
 0x3bd   :  { %v6387_v12 = vadd.f32 %v17414_v26, %v6361_v20  ;;  %6233 = vst [vmem:[#allocation2 + $0x38] sm:$0xff] %v6101_v25 }
 0x3be   :  { %v6103_v13 = vpop.f32.mrf.mxu1  ;;  %v6425_v22 = vld [vmem:[#allocation2 + $0x4] sm:$0xff] }
 0x3bf   :  { %v6104_v6 = vadd.f32 %v6103_v13, %v17324_v16  ;;  %6406 = vst [vmem:[#allocation2 + $0x10] sm:$0xff] %v6387_v12  ;;  %v14086_v42 = vpack.c.bf16 %v6425_v22, %v6425_v22  ;;  %v14106_v62 = vpack.c.bf16 %v6387_v12, %v6387_v12 }
 0x3c0   :  { %v6270_v50 = vld [vmem:[#allocation2 + $0x28] ss:$2 sm:$0xff]  ;;  %v6308_v60 = vld [vmem:[#allocation2 + $0x29] ss:$2 sm:$0xff]  ;;  %v15236_v1 = vpop.f32.mrf.mxu1 }
 0x3c1   :  { %v6343_v0 = vadd.f32 %v6308_v60, %v6270_v50  ;;  %6234 = vst [vmem:[#allocation2 + $0x40] sm:$0xff] %v6104_v6  ;;  %6521 = vst [vmem:[#allocation3] sm:$0xf] %v14086_v42  ;;  %v15944_v50 = vld [vmem:[#allocation6 + $0xb0] sm:$0xff]  }
 0x3c2   :  { %6637 = vst [vmem:[#allocation3 + $0x18] sm:$0xf] %v14106_v62  ;;  %v6108_v35 = vpop.f32.mrf.mxu1 }
 0x3c3   :  { %v6362_v34 = vmul.f32 0.5, %v6343_v0  ;;  %v6109_v54 = vadd.f32 %v6108_v35, %v17328_v24 }
 0x3c4   :  { %v15239_v40 = vpop.f32.mrf.mxu1 }
 0x3c5   :  { %v6388_v39 = vadd.f32 %v17414_v26, %v6362_v34  ;;  %6235 = vst [vmem:[#allocation2 + $0x48] sm:$0xff] %v6109_v54  ;;  %v15948_v54 = vld [vmem:[#allocation6 + $0xa8] sm:$0xff]  }
 0x3c6   :  { %v6111_v33 = vpop.f32.mrf.mxu1  ;;  %v6426_v16 = vld [vmem:[#allocation2 + $0xc] sm:$0xff] }
 0x3c7   :  { %6407 = vst [vmem:[#allocation2 + $0x18] sm:$0xff] %v6388_v39  ;;  %v6112_v43 = vadd.f32 %v6111_v33, %v17330_v28  ;;  %v14087_v44 = vpack.c.bf16 %v6426_v16, %v6426_v16  ;;  %v14107_v14 = vpack.c.bf16 %v6388_v39, %v6388_v39 }
 0x3c8   :  { %v6272_v48 = vld [vmem:[#allocation2 + $0x38] ss:$2 sm:$0xff]  ;;  %v6310_v52 = vld [vmem:[#allocation2 + $0x39] ss:$2 sm:$0xff]  ;;  %v15240_v57 = vpop.f32.mrf.mxu1 }
 0x3c9   :  { %v6344_v53 = vadd.f32 %v6310_v52, %v6272_v48  ;;  %6236 = vst [vmem:[#allocation2 + $0x50] sm:$0xff] %v6112_v43  ;;  %6522 = vst [vmem:[#allocation3 + $0x14] sm:$0xf] %v14087_v44  ;;  %v15928_v42 = vld [vmem:[#allocation3 + $0x4] ss:$20 sps:$4 sm:$0xff]  }
 0x3ca   :  { %6638 = vst [vmem:[#allocation3 + $0x2c] sm:$0xf] %v14107_v14  ;;  %6751 = vst [vmem:[#allocation3 + $0x8] sm:$0xf] %v14087_v44  ;;  %v6116_v24 = vpop.f32.mrf.mxu1  ;;  %7194 = vmatprep.mubr.bf16.mxu0 %v15928_v42 }
 0x3cb   :  { %v6363_v18 = vmul.f32 0.5, %v6344_v53  ;;  %v6117_v61 = vadd.f32 %v6116_v24, %v17334_v36 }
 0x3cc   :  { %v15243_v63 = vpop.f32.mrf.mxu1 }
 0x3cd   :  { %v6389_v8 = vadd.f32 %v17414_v26, %v6363_v18  ;;  %6237 = vst [vmem:[#allocation2 + $0x58] sm:$0xff] %v6117_v61  ;;  %v15953_v18 = vld [vmem:[#allocation6 + $0x98] sm:$0xff]  }
 0x3ce   :  { %v6119_v10 = vpop.f32.mrf.mxu1  ;;  %v6427_v28 = vld [vmem:[#allocation2 + $0x14] sm:$0xff] }
 0x3cf   :  { %6408 = vst [vmem:[#allocation2 + $0x20] sm:$0xff] %v6389_v8  ;;  %v6120_v20 = vadd.f32 %v6119_v10, %v17336_v2  ;;  %v14088_v25 = vpack.c.bf16 %v6427_v28, %v6427_v28  ;;  %v14108_v47 = vpack.c.bf16 %v6389_v8, %v6389_v8 }
 0x3d0   :  { %v6274_v12 = vld [vmem:[#allocation2 + $0x48] ss:$2 sm:$0xff]  ;;  %v6312_v13 = vld [vmem:[#allocation2 + $0x49] ss:$2 sm:$0xff]  ;;  %v15244_v22 = vpop.f32.mrf.mxu1 }
 0x3d1   :  { %v6345_v6 = vadd.f32 %v6312_v13, %v6274_v12  ;;  %6238 = vst [vmem:[#allocation2 + $0x60] sm:$0xff] %v6120_v20  ;;  %v15930_v62 = vld [vmem:[#allocation3] ss:$20 sps:$4 sm:$0xff]   ;;  %6523 = vst [vmem:[#allocation3 + $0x28] sm:$0xf] %v14088_v25  ;;  %v15957_v13 = vld [vmem:[#allocation6 + $0x90] sm:$0xff]  }
 0x3d2   :  { %6639 = vst [vmem:[#allocation3 + $0x40] sm:$0xf] %v14108_v47  ;;  %6752 = vst [vmem:[#allocation3 + $0x1c] sm:$0xf] %v14088_v25  ;;  %v6124_v36 = vpop.f32.mrf.mxu1  ;;  %7195 = vmatmul.mubr.bf16.vlgmr.msra.gmra.mxu0 %v15930_v62 }
 0x3d3   :  { %v6364_v60 = vmul.f32 0.5, %v6345_v6  ;;  %v6125_v1 = vadd.f32 %v6124_v36, %v17340_v45  ;;  %15298 = vmatpush3.bf16.msra.mxu0 %v17402_v31  ;;  %v15949_v31 = vld [vmem:[#allocation6 + $0xa0] sm:$0xff]  }
 0x3d4   :  { %v15247_v0 = vpop.f32.mrf.mxu1  ;;  %15299 = vmatprep.subr.bf16.mxu0 %v15944_v50 }
 0x3d5   :  { %v6390_v2 = vadd.f32 %v17414_v26, %v6364_v60  ;;  %6239 = vst [vmem:[#allocation2 + $0x68] sm:$0xff] %v6125_v1 }
 0x3d6   :  { %v6127_v35 = vpop.f32.mrf.mxu1  ;;  %v6428_v34 = vld [vmem:[#allocation2 + $0x1c] sm:$0xff] }
 0x3d7   :  { %6409 = vst [vmem:[#allocation2 + $0x28] sm:$0xff] %v6390_v2  ;;  %v6128_v40 = vadd.f32 %v6127_v35, %v17342_v55  ;;  %v14089_v39 = vpack.c.bf16 %v6428_v34, %v6428_v34  ;;  %v14109_v33 = vpack.c.bf16 %v6390_v2, %v6390_v2  ;;  %15300 = vmatpush3.bf16.msra.mxu0 %v15944_v50  ;;  %v15958_v50 = vld [vmem:[#allocation6 + $0x88] sm:$0xff]  }
 0x3d8   :  { %v6276_v16 = vld [vmem:[#allocation2 + $0x58] ss:$2 sm:$0xff]  ;;  %v6314_v43 = vld [vmem:[#allocation2 + $0x59] ss:$2 sm:$0xff]  ;;  %v15248_v45 = vpop.f32.mrf.mxu1  ;;  %15301 = vmatprep.subr.bf16.mxu0 %v15948_v54 }
 0x3d9   :  { %v6346_v44 = vadd.f32 %v6314_v43, %v6276_v16  ;;  %6240 = vst [vmem:[#allocation2 + $0x70] sm:$0xff] %v6128_v40  ;;  %6524 = vst [vmem:[#allocation3 + $0x3c] sm:$0xf] %v14089_v39  ;;  %v15962_v40 = vld [vmem:[#allocation6 + $0x80] sm:$0xff]  }
 0x3da   :  { %6640 = vst [vmem:[#allocation3 + $0x54] sm:$0xf] %v14109_v33  ;;  %6753 = vst [vmem:[#allocation3 + $0x30] sm:$0xf] %v14089_v39  ;;  %v6132_v14 = vpop.f32.mrf.mxu1 }
 0x3db   :  { %v6365_v48 = vmul.f32 0.5, %v6346_v44  ;;  %v6133_v52 = vadd.f32 %v6132_v14, %v17346_v32  ;;  %15302 = vmatpush3.bf16.msra.mxu0 %v15948_v54  ;;  %v15931_v32 = vld [vmem:[#allocation3 + $0x2c] ss:$20 sps:$4 sm:$0xff]  }
 0x3dc   :  { %v15251_v57 = vpop.f32.mrf.mxu1  ;;  %15303 = vmatprep.subr.bf16.mxu0 %v15949_v31  ;;  %7202 = vmatprep.mubr.bf16.mxu0 %v15931_v32 }
 0x3dd   :  { %v6391_v55 = vadd.f32 %v17414_v26, %v6365_v48  ;;  %6241 = vst [vmem:[#allocation2 + $0x78] sm:$0xff] %v6133_v52 }
 0x3de   :  { %v6135_v53 = vpop.f32.mrf.mxu1  ;;  %v6429_v24 = vld [vmem:[#allocation2 + $0x24] sm:$0xff] }
 0x3df   :  { %6410 = vst [vmem:[#allocation2 + $0x30] sm:$0xff] %v6391_v55  ;;  %v6136_v61 = vadd.f32 %v6135_v53, %v17348_v38  ;;  %v14090_v63 = vpack.c.bf16 %v6429_v24, %v6429_v24  ;;  %v14110_v8 = vpack.c.bf16 %v6391_v55, %v6391_v55  ;;  %15304 = vmatpush3.bf16.msra.mxu0 %v15949_v31 }
 0x3e0   :  { %v6278_v10 = vld [vmem:[#allocation2 + $0x68] ss:$2 sm:$0xff]  ;;  %v6316_v28 = vld [vmem:[#allocation2 + $0x69] ss:$2 sm:$0xff]  ;;  %v15252_v20 = vpop.f32.mrf.mxu1  ;;  %15305 = vmatprep.subr.bf16.mxu0 %v15953_v18 }
 0x3e1   :  { %v6347_v25 = vadd.f32 %v6316_v28, %v6278_v10  ;;  %6242 = vst [vmem:[#allocation2 + $0x80] sm:$0xff] %v6136_v61  ;;  %v15933_v47 = vld [vmem:[#allocation3 + $0x28] ss:$20 sps:$4 sm:$0xff]   ;;  %6525 = vst [vmem:[#allocation3 + $0x50] sm:$0xf] %v14090_v63 }
 0x3e2   :  { %6641 = vst [vmem:[#allocation3 + $0x68] sm:$0xf] %v14110_v8  ;;  %6754 = vst [vmem:[#allocation3 + $0x44] sm:$0xf] %v14090_v63  ;;  %v6140_v12 = vpop.f32.mrf.mxu1  ;;  %7203 = vmatmul.mubr.bf16.gmra.mxu0 %v15933_v47 }
 0x3e3   :  { %v6366_v22 = vmul.f32 0.5, %v6347_v25  ;;  %v6141_v6 = vadd.f32 %v6140_v12, %v17352_v21  ;;  %15306 = vmatpush3.bf16.msra.mxu0 %v15953_v18 }
 0x3e4   :  { %v15255_v38 = vpop.f32.mrf.mxu1  ;;  %15307 = vmatprep.subr.bf16.mxu0 %v15957_v13 }
 0x3e5   :  { %v6392_v42 = vadd.f32 %v17414_v26, %v6366_v22  ;;  %6243 = vst [vmem:[#allocation2 + $0x88] sm:$0xff] %v6141_v6  ;;  %v17444_v22 = vld [vmem:[#allocation2 + $0x138] sm:$0xff] }
 0x3e6   :  { %v6143_v62 = vpop.f32.mrf.mxu1  ;;  %v6430_v36 = vld [vmem:[#allocation2 + $0x2c] sm:$0xff] }
 0x3e7   :  { %6411 = vst [vmem:[#allocation2 + $0x38] sm:$0xff] %v6392_v42  ;;  %v6144_v60 = vadd.f32 %v6143_v62, %v17354_v3  ;;  %v14091_v1 = vpack.c.bf16 %v6430_v36, %v6430_v36  ;;  %v14111_v0 = vpack.c.bf16 %v6392_v42, %v6392_v42  ;;  %15308 = vmatpush3.bf16.msra.mxu0 %v15957_v13 }
 0x3e8   :  { %v6280_v2 = vld [vmem:[#allocation2 + $0x78] ss:$2 sm:$0xff]  ;;  %v6318_v35 = vld [vmem:[#allocation2 + $0x79] ss:$2 sm:$0xff]  ;;  %v15256_v34 = vpop.f32.mrf.mxu1  ;;  %15309 = vmatprep.subr.bf16.mxu0 %v15958_v50 }
 0x3e9   :  { %v6348_v21 = vadd.f32 %v6318_v35, %v6280_v2  ;;  %6244 = vst [vmem:[#allocation2 + $0x90] sm:$0xff] %v6144_v60  ;;  %6526 = vst [vmem:[#allocation3 + $0x64] sm:$0xf] %v14091_v1  ;;  %v15934_v53 = vld [vmem:[#allocation3 + $0x54] ss:$20 sps:$4 sm:$0xff]  }
 0x3ea   :  { %6642 = vst [vmem:[#allocation3 + $0x7c] sm:$0xf] %v14111_v0  ;;  %6755 = vst [vmem:[#allocation3 + $0x58] sm:$0xf] %v14091_v1  ;;  %v6148_v54 = vpop.f32.mrf.mxu1  ;;  %7210 = vmatprep.mubr.bf16.mxu0 %v15934_v53 }
 0x3eb   :  { %v6367_v39 = vmul.f32 0.5, %v6348_v21  ;;  %v6149_v33 = vadd.f32 %v6148_v54, %v17358_v15  ;;  %15310 = vmatpush3.bf16.msra.mxu0 %v15958_v50 }
 0x3ec   :  { %v15259_v16 = vpop.f32.mrf.mxu1  ;;  %15311 = vmatprep.subr.bf16.mxu0 %v15962_v40 }
 0x3ed   :  { %v6393_v3 = vadd.f32 %v17414_v26, %v6367_v39  ;;  %6245 = vst [vmem:[#allocation2 + $0x98] sm:$0xff] %v6149_v33 }
 0x3ee   :  { %v6151_v43 = vpop.f32.mrf.mxu1  ;;  %v6431_v45 = vld [vmem:[#allocation2 + $0x34] sm:$0xff] }
 0x3ef   :  { %6412 = vst [vmem:[#allocation2 + $0x40] sm:$0xff] %v6393_v3  ;;  %v6152_v44 = vadd.f32 %v6151_v43, %v17360_v29  ;;  %v14092_v14 = vpack.c.bf16 %v6431_v45, %v6431_v45  ;;  %v14112_v31 = vpack.c.bf16 %v6393_v3, %v6393_v3  ;;  %15312 = vmatpush3.bf16.msra.mxu0 %v15962_v40 }
 0x3f0   :  { %v6282_v48 = vld [vmem:[#allocation2 + $0x88] ss:$2 sm:$0xff]  ;;  %v6320_v52 = vld [vmem:[#allocation2 + $0x89] ss:$2 sm:$0xff]  ;;  %v15260_v57 = vpop.f32.mrf.mxu1 }
 0x3f1   :  { %v6349_v55 = vadd.f32 %v6320_v52, %v6282_v48  ;;  %6246 = vst [vmem:[#allocation2 + $0xa0] sm:$0xff] %v6152_v44  ;;  %v15936_v15 = vld [vmem:[#allocation3 + $0x50] ss:$20 sps:$4 sm:$0xff]   ;;  %6527 = vst [vmem:[#allocation3 + $0x78] sm:$0xf] %v14092_v14 }
 0x3f2   :  { %6643 = vst [vmem:[#allocation3 + $0x90] sm:$0xf] %v14112_v31  ;;  %6756 = vst [vmem:[#allocation3 + $0x6c] sm:$0xf] %v14092_v14  ;;  %v6156_v24 = vpop.f32.mrf.mxu1  ;;  %7211 = vmatmul.mubr.bf16.gmra.mxu0 %v15936_v15 }
 0x3f3   :  { %v6368_v18 = vmul.f32 0.5, %v6349_v55  ;;  %v6157_v61 = vadd.f32 %v6156_v24, %v17364_v27 }
 0x3f4   :  { %v15263_v63 = vpop.f32.mrf.mxu1 }
 0x3f5   :  { %v6394_v29 = vadd.f32 %v17414_v26, %v6368_v18  ;;  %6247 = vst [vmem:[#allocation2 + $0xa8] sm:$0xff] %v6157_v61 }
 0x3f6   :  { %v6159_v8 = vpop.f32.mrf.mxu1  ;;  %v6432_v10 = vld [vmem:[#allocation2 + $0x3c] sm:$0xff] }
 0x3f7   :  { %6413 = vst [vmem:[#allocation2 + $0x48] sm:$0xff] %v6394_v29  ;;  %v6160_v28 = vadd.f32 %v6159_v8, %v17366_v59  ;;  %v14093_v20 = vpack.c.bf16 %v6432_v10, %v6432_v10  ;;  %v14113_v25 = vpack.c.bf16 %v6394_v29, %v6394_v29 }
 0x3f8   :  { %v6284_v32 = vld [vmem:[#allocation2 + $0x98] ss:$2 sm:$0xff]  ;;  %v6322_v47 = vld [vmem:[#allocation2 + $0x99] ss:$2 sm:$0xff]  ;;  %v15264_v12 = vpop.f32.mrf.mxu1 }
 0x3f9   :  { %v6350_v13 = vadd.f32 %v6322_v47, %v6284_v32  ;;  %6424 = vst [vmem:[#allocation2 + $0x9e] sm:$0xf] %v17444_v22  ;;  %6248 = vst [vmem:[#allocation2 + $0xb0] sm:$0xff] %v6160_v28  ;;  %v15937_v21 = vld [vmem:[#allocation3 + $0x7c] ss:$20 sps:$4 sm:$0xff]  }
 0x3fa   :  { %6528 = vst [vmem:[#allocation3 + $0x8c] sm:$0xf] %v14093_v20  ;;  %6644 = vst [vmem:[#allocation3 + $0xa4] sm:$0xf] %v14113_v25  ;;  %v6164_v27 = vpop.f32.mrf.mxu1  ;;  %7218 = vmatprep.mubr.bf16.mxu0 %v15937_v21 }
 0x3fb   :  { %6757 = vst [vmem:[#allocation3 + $0x80] sm:$0xf] %v14093_v20  ;;  %v6369_v6 = vmul.f32 0.5, %v6350_v13  ;;  %v6165_v38 = vadd.f32 %v6164_v27, %v17370_v49 }
 0x3fc   :  { %v15267_v42 = vpop.f32.mrf.mxu1 }
 0x3fd   :  { %v6395_v59 = vadd.f32 %v17414_v26, %v6369_v6  ;;  %6249 = vst [vmem:[#allocation2 + $0xb8] sm:$0xff] %v6165_v38 }
 0x3fe   :  { %v6167_v62 = vpop.f32.mrf.mxu1  ;;  %v6433_v36 = vld [vmem:[#allocation2 + $0x44] sm:$0xff] }
 0x3ff   :  { %6414 = vst [vmem:[#allocation2 + $0x50] sm:$0xff] %v6395_v59  ;;  %v6168_v50 = vadd.f32 %v6167_v62, %v17372_v46  ;;  %v14094_v60 = vpack.c.bf16 %v6433_v36, %v6433_v36  ;;  %v14114_v1 = vpack.c.bf16 %v6395_v59, %v6395_v59 }
 0x400   :  { %v6286_v0 = vld [vmem:[#allocation2 + $0xa8] ss:$2 sm:$0xff]  ;;  %v6324_v2 = vld [vmem:[#allocation2 + $0xa9] ss:$2 sm:$0xff]  ;;  %v15268_v35 = vpop.f32.mrf.mxu1 }
 0x401   :  { %v6351_v34 = vadd.f32 %v6324_v2, %v6286_v0  ;;  %6250 = vst [vmem:[#allocation2 + $0xc0] sm:$0xff] %v6168_v50  ;;  %v15939_v54 = vld [vmem:[#allocation3 + $0x78] ss:$20 sps:$4 sm:$0xff]   ;;  %6529 = vst [vmem:[#allocation3 + $0xa0] sm:$0xf] %v14094_v60 }
 0x402   :  { %6645 = vst [vmem:[#allocation3 + $0xb8] sm:$0xf] %v14114_v1  ;;  %6758 = vst [vmem:[#allocation3 + $0x94] sm:$0xf] %v14094_v60  ;;  %v6172_v49 = vpop.f32.mrf.mxu1  ;;  %7219 = vmatmul.mubr.bf16.gmra.mxu0 %v15939_v54 }
 0x403   :  { %v6370_v40 = vmul.f32 0.5, %v6351_v34  ;;  %v6173_v39 = vadd.f32 %v6172_v49, %v17376_v19 }
 0x404   :  { %v15271_v33 = vpop.f32.mrf.mxu1 }
 0x405   :  { %v6396_v46 = vadd.f32 %v17414_v26, %v6370_v40  ;;  %6251 = vst [vmem:[#allocation2 + $0xc8] sm:$0xff] %v6173_v39 }
 0x406   :  { %v6175_v16 = vpop.f32.mrf.mxu1  ;;  %v6434_v3 = vld [vmem:[#allocation2 + $0x4c] sm:$0xff] }
 0x407   :  { %6415 = vst [vmem:[#allocation2 + $0x58] sm:$0xff] %v6396_v46  ;;  %v6176_v43 = vadd.f32 %v6175_v16, %v17378_v30  ;;  %v14095_v45 = vpack.c.bf16 %v6434_v3, %v6434_v3  ;;  %v14115_v44 = vpack.c.bf16 %v6396_v46, %v6396_v46 }
 0x408   :  { %v6288_v14 = vld [vmem:[#allocation2 + $0xb8] ss:$2 sm:$0xff]  ;;  %v6326_v31 = vld [vmem:[#allocation2 + $0xb9] ss:$2 sm:$0xff]  ;;  %v15272_v48 = vpop.f32.mrf.mxu1 }
 0x409   :  { %v6352_v52 = vadd.f32 %v6326_v31, %v6288_v14  ;;  %6252 = vst [vmem:[#allocation2 + $0xd0] sm:$0xff] %v6176_v43  ;;  %6530 = vst [vmem:[#allocation3 + $0xb4] sm:$0xf] %v14095_v45  ;;  %v15940_v20 = vld [vmem:[#allocation3 + $0xa4] ss:$20 sps:$4 sm:$0xff]  }
 0x40a   :  { %6646 = vst [vmem:[#allocation3 + $0xcc] sm:$0xf] %v14115_v44  ;;  %6759 = vst [vmem:[#allocation3 + $0xa8] sm:$0xf] %v14095_v45  ;;  %v6180_v19 = vpop.f32.mrf.mxu1  ;;  %7226 = vmatprep.mubr.bf16.mxu0 %v15940_v20 }
 0x40b   :  { %v6371_v57 = vmul.f32 0.5, %v6352_v52  ;;  %v6181_v55 = vadd.f32 %v6180_v19, %v17380_v4 }
 0x40c   :  { %v15275_v53 = vpop.f32.mrf.mxu1 }
 0x40d   :  { %v6397_v15 = vadd.f32 %v17414_v26, %v6371_v57  ;;  %6253 = vst [vmem:[#allocation2 + $0xd8] sm:$0xff] %v6181_v55 }
 0x40e   :  { %v6183_v24 = vpop.f32.mrf.mxu1  ;;  %v6435_v30 = vld [vmem:[#allocation2 + $0x54] sm:$0xff] }
 0x40f   :  { %6416 = vst [vmem:[#allocation2 + $0x60] sm:$0xff] %v6397_v15  ;;  %v6184_v18 = vadd.f32 %v6183_v24, %v17382_v37  ;;  %v14096_v61 = vpack.c.bf16 %v6435_v30, %v6435_v30  ;;  %v14116_v63 = vpack.c.bf16 %v6397_v15, %v6397_v15  ;;  %v15975_v30 = vld [vmem:[#allocation8 + $0xb8] sm:$0xff]  }
 0x410   :  { %v6290_v29 = vld [vmem:[#allocation2 + $0xc8] ss:$2 sm:$0xff]  ;;  %v6328_v8 = vld [vmem:[#allocation2 + $0xc9] ss:$2 sm:$0xff]  ;;  %v15276_v10 = vpop.f32.mrf.mxu1  ;;  %15333 = vmatprep.subr.bf16.mxu1 %v15975_v30 }
 0x411   :  { %v6353_v28 = vadd.f32 %v6328_v8, %v6290_v29  ;;  %6254 = vst [vmem:[#allocation2 + $0xe0] sm:$0xff] %v6184_v18  ;;  %v15943_v25 = vld [vmem:[#allocation3 + $0xa0] ss:$20 sps:$4 sm:$0xff]   ;;  %6531 = vst [vmem:[#allocation3 + $0xc8] sm:$0xf] %v14096_v61  ;;  %15334 = vmatpush3.bf16.msra.mxu1 %v15975_v30 }
 0x412   :  { %6647 = vst [vmem:[#allocation3 + $0xe0] sm:$0xf] %v14116_v63  ;;  %6760 = vst [vmem:[#allocation3 + $0xbc] sm:$0xf] %v14096_v61  ;;  %v6188_v4 = vpop.f32.mrf.mxu1  ;;  %7227 = vmatmul.mubr.bf16.gmra.mxu0 %v15943_v25 }
 0x413   :  { %v6372_v32 = vmul.f32 0.5, %v6353_v28  ;;  %v6189_v47 = vadd.f32 %v6188_v4, %v17384_v56 }
 0x414   :  { %v15279_v12 = vpop.f32.mrf.mxu1 }
 0x415   :  { %v6398_v37 = vadd.f32 %v17414_v26, %v6372_v32  ;;  %6255 = vst [vmem:[#allocation2 + $0xe8] sm:$0xff] %v6189_v47 }
 0x416   :  { %v6191_v13 = vpop.f32.mrf.mxu1  ;;  %v6436_v27 = vld [vmem:[#allocation2 + $0x5c] sm:$0xff] }
 0x417   :  { %6417 = vst [vmem:[#allocation2 + $0x68] sm:$0xff] %v6398_v37  ;;  %v6192_v6 = vadd.f32 %v6191_v13, %v17386_v58  ;;  %v14097_v38 = vpack.c.bf16 %v6436_v27, %v6436_v27  ;;  %v14117_v42 = vpack.c.bf16 %v6398_v37, %v6398_v37 }
 0x418   :  { %v6292_v59 = vld [vmem:[#allocation2 + $0xd8] ss:$2 sm:$0xff]  ;;  %v6330_v62 = vld [vmem:[#allocation2 + $0xd9] ss:$2 sm:$0xff]  ;;  %v15280_v36 = vpop.f32.mrf.mxu1 }
 0x419   :  { %v6354_v50 = vadd.f32 %v6330_v62, %v6292_v59  ;;  %6256 = vst [vmem:[#allocation2 + $0xf0] sm:$0xff] %v6192_v6  ;;  %6532 = vst [vmem:[#allocation3 + $0xdc] sm:$0xf] %v14097_v38  ;;  %v15945_v46 = vld [vmem:[#allocation3 + $0xcc] ss:$20 sps:$4 sm:$0xff]  }
 0x41a   :  { %6648 = vst [vmem:[#allocation3 + $0xf4] sm:$0xf] %v14117_v42  ;;  %6761 = vst [vmem:[#allocation3 + $0xd0] sm:$0xf] %v14097_v38  ;;  %v6196_v56 = vpop.f32.mrf.mxu1  ;;  %7234 = vmatprep.mubr.bf16.mxu0 %v15945_v46  ;;  %v15977_v46 = vld [vmem:[#allocation8 + $0xa8] sm:$0xff]  }
 0x41b   :  { %v6373_v60 = vmul.f32 0.5, %v6354_v50  ;;  %v6197_v1 = vadd.f32 %v6196_v56, %v17388_v5 }
 0x41c   :  { %v15283_v0 = vpop.f32.mrf.mxu1 }
 0x41d   :  { %v6399_v2 = vadd.f32 %v17414_v26, %v6373_v60  ;;  %6257 = vst [vmem:[#allocation2 + $0xf8] sm:$0xff] %v6197_v1  ;;  %v15976_v60 = vld [vmem:[#allocation8 + $0xb0] sm:$0xff]  }
 0x41e   :  { %v6199_v35 = vpop.f32.mrf.mxu1  ;;  %v6437_v58 = vld [vmem:[#allocation2 + $0x64] sm:$0xff]  ;;  %15335 = vmatprep.subr.bf16.mxu1 %v15976_v60 }
 0x41f   :  { %6418 = vst [vmem:[#allocation2 + $0x70] sm:$0xff] %v6399_v2  ;;  %v6200_v34 = vadd.f32 %v6199_v35, %v17390_v11  ;;  %v14098_v21 = vpack.c.bf16 %v6437_v58, %v6437_v58  ;;  %v14118_v54 = vpack.c.bf16 %v6399_v2, %v6399_v2  ;;  %15336 = vmatpush3.bf16.msra.mxu1 %v15976_v60  ;;  %v15993_v60 = vld [vmem:[#allocation8 + $0x80] sm:$0xff]  }
 0x420   :  { %v6294_v49 = vld [vmem:[#allocation2 + $0xe8] ss:$2 sm:$0xff]  ;;  %v6332_v40 = vld [vmem:[#allocation2 + $0xe9] ss:$2 sm:$0xff]  ;;  %v15284_v39 = vpop.f32.mrf.mxu1  ;;  %15337 = vmatprep.subr.bf16.mxu1 %v15977_v46 }
 0x421   :  { %v6355_v33 = vadd.f32 %v6332_v40, %v6294_v49  ;;  %6258 = vst [vmem:[#allocation2 + $0x100] sm:$0xff] %v6200_v34  ;;  %v15947_v16 = vld [vmem:[#allocation3 + $0xc8] ss:$20 sps:$4 sm:$0xff]   ;;  %6533 = vst [vmem:[#allocation3 + $0xf0] sm:$0xf] %v14098_v21 }
 0x422   :  { %6649 = vst [vmem:[#allocation3 + $0x108] sm:$0xf] %v14118_v54  ;;  %6762 = vst [vmem:[#allocation3 + $0xe4] sm:$0xf] %v14098_v21  ;;  %v6204_v5 = vpop.f32.mrf.mxu1  ;;  %7235 = vmatmul.mubr.bf16.gmra.mxu0 %v15947_v16 }
 0x423   :  { %v6374_v3 = vmul.f32 0.5, %v6355_v33  ;;  %v6205_v43 = vadd.f32 %v6204_v5, %v17392_v51  ;;  %15338 = vmatpush3.bf16.msra.mxu1 %v15977_v46 }
 0x424   :  { %v15287_v45 = vpop.f32.mrf.mxu1 }
 0x425   :  { %v6400_v11 = vadd.f32 %v17414_v26, %v6374_v3  ;;  %6259 = vst [vmem:[#allocation2 + $0x108] sm:$0xff] %v6205_v43 }
 0x426   :  { %v6207_v44 = vpop.f32.mrf.mxu1  ;;  %v6438_v14 = vld [vmem:[#allocation2 + $0x6c] sm:$0xff] }
 0x427   :  { %6419 = vst [vmem:[#allocation2 + $0x78] sm:$0xff] %v6400_v11  ;;  %v6208_v31 = vadd.f32 %v6207_v44, %v17394_v17  ;;  %v14099_v48 = vpack.c.bf16 %v6438_v14, %v6438_v14  ;;  %v14119_v52 = vpack.c.bf16 %v6400_v11, %v6400_v11 }
 0x428   :  { %v6296_v19 = vld [vmem:[#allocation2 + $0xf8] ss:$2 sm:$0xff]  ;;  %v6334_v57 = vld [vmem:[#allocation2 + $0xf9] ss:$2 sm:$0xff]  ;;  %v15288_v55 = vpop.f32.mrf.mxu1 }
 0x429   :  { %v6356_v53 = vadd.f32 %v6334_v57, %v6296_v19  ;;  %6260 = vst [vmem:[#allocation2 + $0x110] sm:$0xff] %v6208_v31  ;;  %6534 = vst [vmem:[#allocation3 + $0x104] sm:$0xf] %v14099_v48  ;;  %v15965_v57 = vld [vmem:[#allocation3 + $0x8] ss:$20 sps:$4 sm:$0xff]  }
 0x42a   :  { %6650 = vst [vmem:[#allocation3 + $0x11c] sm:$0xf] %v14119_v52  ;;  %6763 = vst [vmem:[#allocation3 + $0xf8] sm:$0xf] %v14099_v48  ;;  %v6212_v51 = vpop.f32.mrf.mxu1  ;;  %v15966_v55 = vld [vmem:[#allocation3 + $0x30] ss:$20 sps:$4 sm:$0xff]  }
 0x42b   :  { %v6375_v15 = vmul.f32 0.5, %v6356_v53  ;;  %v6213_v24 = vadd.f32 %v6212_v51, %v17396_v41  ;;  %v15950_v41 = vld [vmem:[#allocation3 + $0xf4] ss:$20 sps:$4 sm:$0xff]   ;;  %v15967_v53 = vld [vmem:[#allocation3 + $0x58] ss:$20 sps:$4 sm:$0xff]  }
 0x42c   :  { %v15291_v18 = vpop.f32.mrf.mxu1  ;;  %7242 = vmatprep.mubr.bf16.mxu0 %v15950_v41  ;;  %v15978_v51 = vld [vmem:[#allocation8 + $0xa0] sm:$0xff]   ;;  %v15983_v41 = vld [vmem:[#allocation8 + $0x70] sm:$0xff]  }
 0x42d   :  { %v6401_v61 = vadd.f32 %v17414_v26, %v6375_v15  ;;  %6261 = vst [vmem:[#allocation2 + $0x118] sm:$0xff] %v6213_v24  ;;  %15339 = vmatprep.subr.bf16.mxu1 %v15978_v51  ;;  %v15969_v15 = vld [vmem:[#allocation3 + $0xa8] ss:$20 sps:$4 sm:$0xff]   ;;  %v15970_v24 = vld [vmem:[#allocation3 + $0xd0] ss:$20 sps:$4 sm:$0xff]  }
 0x42e   :  { %v6215_v17 = vpop.f32.mrf.mxu1  ;;  %v6439_v63 = vld [vmem:[#allocation2 + $0x74] sm:$0xff]  ;;  %15340 = vmatpush3.bf16.msra.mxu1 %v15978_v51 }
 0x42f   :  { %6420 = vst [vmem:[#allocation2 + $0x80] sm:$0xff] %v6401_v61  ;;  %v6216_v29 = vadd.f32 %v6215_v17, %v17398_v7  ;;  %v14100_v8 = vpack.c.bf16 %v6439_v63, %v6439_v63  ;;  %v14120_v10 = vpack.c.bf16 %v6401_v61, %v6401_v61  ;;  %v15979_v18 = vld [vmem:[#allocation8 + $0x98] sm:$0xff]  }
 0x430   :  { %v6298_v28 = vld [vmem:[#allocation2 + $0x108] ss:$2 sm:$0xff]  ;;  %v6336_v20 = vld [vmem:[#allocation2 + $0x109] ss:$2 sm:$0xff]  ;;  %v15292_v25 = vpop.f32.mrf.mxu1  ;;  %15341 = vmatprep.subr.bf16.mxu1 %v15979_v18 }
 0x431   :  { %v6357_v4 = vadd.f32 %v6336_v20, %v6298_v28  ;;  %6262 = vst [vmem:[#allocation2 + $0x120] sm:$0xff] %v6216_v29  ;;  %v15952_v32 = vld [vmem:[#allocation3 + $0xf0] ss:$20 sps:$4 sm:$0xff]   ;;  %6535 = vst [vmem:[#allocation3 + $0x118] sm:$0xf] %v14100_v8  ;;  %v15980_v29 = vld [vmem:[#allocation8 + $0x90] sm:$0xff]  }
 0x432   :  { %6651 = vst [vmem:[#allocation3 + $0x130] sm:$0xf] %v14120_v10  ;;  %6764 = vst [vmem:[#allocation3 + $0x10c] sm:$0xf] %v14100_v8  ;;  %v6220_v47 = vpop.f32.mrf.mxu1  ;;  %7243 = vmatmul.mubr.bf16.gmra.mxu0 %v15952_v32  ;;  %15342 = vmatpush3.bf16.msra.mxu1 %v15979_v18  ;;  %v15981_v20 = vld [vmem:[#allocation8 + $0x78] sm:$0xff]   ;;  %v15984_v32 = vld [vmem:[#allocation8 + $0x30] sm:$0xff]  }
 0x433   :  { %v6376_v12 = vmul.f32 0.5, %v6357_v4  ;;  %v6221_v37 = vadd.f32 %v6220_v47, %v17400_v23  ;;  %15343 = vmatprep.subr.bf16.mxu1 %v15980_v29  ;;  %14526 = vmatprep.subr.bf16.mxu0 %v15981_v20  ;;  %v15982_v25 = vld [vmem:[#allocation8 + $0x38] sm:$0xff]   ;;  %v15985_v47 = vld [vmem:[#allocation8 + $0x88] sm:$0xff]  }
 0x434   :  { %v15295_v13 = vpop.f32.mrf.mxu1 }
 0x435   :  { %v6402_v7 = vadd.f32 %v17414_v26, %v6376_v12  ;;  %6263 = vst [vmem:[#allocation2 + $0x128] sm:$0xff] %v6221_v37  ;;  %v15986_v37 = vld [vmem:[#allocation8 + $0x68] sm:$0xff]  }
 0x436   :  { %v6223_v27 = vpop.f32.mrf.mxu1  ;;  %v6440_v6 = vld [vmem:[#allocation2 + $0x7c] sm:$0xff]  ;;  %15344 = vmatpush3.bf16.msra.mxu1 %v15980_v29 }
 0x437   :  { %6421 = vst [vmem:[#allocation2 + $0x88] sm:$0xff] %v6402_v7  ;;  %v6224_v38 = vadd.f32 %v6223_v27, %v17405_v9  ;;  %v14101_v42 = vpack.c.bf16 %v6440_v6, %v6440_v6  ;;  %v14121_v59 = vpack.c.bf16 %v6402_v7, %v6402_v7  ;;  %15345 = vmatprep.subr.bf16.mxu1 %v15985_v47  ;;  %v15987_v6 = vld [vmem:[#allocation8 + $0x28] sm:$0xff]  }
 0x438   :  { %v6300_v62 = vld [vmem:[#allocation2 + $0x118] ss:$2 sm:$0xff]  ;;  %v6338_v36 = vld [vmem:[#allocation2 + $0x119] ss:$2 sm:$0xff]  ;;  %v15296_v50 = vpop.f32.mrf.mxu1 }
 0x439   :  { %v6358_v56 = vadd.f32 %v6338_v36, %v6300_v62  ;;  %6264 = vst [vmem:[#allocation2 + $0x130] sm:$0xf] %v6224_v38  ;;  %6536 = vst [vmem:[#allocation3 + $0x12c] sm:$0xf] %v14101_v42  ;;  %v15954_v21 = vld [vmem:[#allocation3 + $0x11c] ss:$20 sps:$4 sm:$0xff]  }
 0x43a   :  { %6652 = vst [vmem:[#allocation3 + $0x144] sm:$0xf] %v14121_v59  ;;  %6765 = vst [vmem:[#allocation3 + $0x120] sm:$0xf] %v14101_v42  ;;  %7250 = vmatprep.mubr.bf16.mxu0 %v15954_v21  ;;  %v15971_v30 = vld [vmem:[#allocation3 + $0xf8] ss:$20 sps:$4 sm:$0xff]   ;;  %15346 = vmatpush3.bf16.msra.mxu1 %v15985_v47 }
 0x43b   :  { %v6377_v23 = vmul.f32 0.5, %v6358_v56  ;;  %v15988_v38 = vld [vmem:[#allocation8 + $0x60] sm:$0xff]   ;;  %v15990_v62 = vld [vmem:[#allocation8 + $0x58] sm:$0xff]   ;;  %15347 = vmatprep.subr.bf16.mxu1 %v15993_v60  ;;  %v17533_v29 = vld [vmem:[%s18348_s8] ss:$0 sm:$0xff] }
 0x43c   :  { %v15989_v42 = vld [vmem:[#allocation8 + $0x20] sm:$0xff]   ;;  %v15991_v36 = vld [vmem:[#allocation8 + $0x18] sm:$0xff]  }
 0x43d   :  { %v6403_v1 = vadd.f32 %v17414_v26, %v6377_v23  ;;  %v15992_v23 = vld [vmem:[#allocation8 + $0x50] sm:$0xff]  }
 0x43e   :  { %v6441_v0 = vld [vmem:[#allocation2 + $0x84] sm:$0xff]  ;;  %15348 = vmatpush3.bf16.msra.mxu1 %v15993_v60 }
 0x43f   :  { %6422 = vst [vmem:[#allocation2 + $0x90] sm:$0xff] %v6403_v1  ;;  %v14102_v2 = vpack.c.bf16 %v6441_v0, %v6441_v0  ;;  %v14122_v9 = vpack.c.bf16 %v6403_v1, %v6403_v1  ;;  %v15994_v1 = vld [vmem:[#allocation8 + $0x10] sm:$0xff]  }
 0x440   :  { %v6302_v35 = vld [vmem:[#allocation2 + $0x128] ss:$2 sm:$0x3f]  ;;  %v6340_v58 = vld [vmem:[#allocation2 + $0x129] ss:$2 sm:$0x3f] }
 0x441   :  { %v6359_v34 = vadd.f32 %v6340_v58, %v6302_v35  ;;  %v15956_v54 = vld [vmem:[#allocation3 + $0x118] ss:$20 sps:$4 sm:$0xff]   ;;  %6537 = vst [vmem:[#allocation3 + $0x140] sm:$0xf] %v14102_v2  ;;  %6653 = vst [vmem:[#allocation3 + $0x158] sm:$0xf] %v14122_v9 }
 0x442   :  { %6766 = vst [vmem:[#allocation3 + $0x134] sm:$0xf] %v14102_v2  ;;  %7251 = vmatmul.mubr.bf16.gmra.mxu0 %v15956_v54  ;;  %v15995_v9 = vld [vmem:[#allocation8 + $0x48] sm:$0xff]   ;;  %v15997_v58 = vld [vmem:[#allocation8 + $0x40] sm:$0xff]  }
 0x443   :  { %v6378_v49 = vmul.f32 0.5, %v6359_v34  ;;  %v15996_v35 = vld [vmem:[#allocation8 + $0x8] sm:$0xff]   ;;  %v15998_v34 = vld [vmem:[#allocation8] sm:$0xff]  }
 0x445   :  { %v6404_v40 = vadd.f32 %v17414_v26, %v6378_v49 }
 0x446   :  { %v6442_v39 = vld [vmem:[#allocation2 + $0x8c] sm:$0xff] }
 0x447   :  { %6423 = vst [vmem:[#allocation2 + $0x98] sm:$0x3f] %v6404_v40  ;;  %v14103_v33 = vpack.c.bf16 %v6442_v39, %v6442_v39 }
 0x448   :  { %v15959_v14 = vld [vmem:[#allocation3 + $0x144] ss:$20 sps:$4 sm:$0xff]  }
 0x449   :  { %6538 = vst [vmem:[#allocation3 + $0x154] sm:$0xf] %v14103_v33  ;;  %6767 = vst [vmem:[#allocation3 + $0x148] sm:$0xf] %v14103_v33  ;;  %7258 = vmatprep.mubr.bf16.mxu0 %v15959_v14  ;;  %v15972_v61 = vld [vmem:[#allocation3 + $0x120] ss:$20 sps:$4 sm:$0xff]  }
 0x44e   :  { %v6443_v16 = vld [vmem:[#allocation2 + $0x94] sm:$0x3f]  ;;  %v6673_v44 = vld [vmem:[#allocation2 + $0x9c] sm:$0x3f] }
 0x44f   :  { %v6558_v5 = vld [vmem:[#allocation2 + $0x98] sm:$0x3f]  ;;  %v14104_v43 = vpack.c.bf16 %v6443_v16, %v6443_v16  ;;  %v14142_v48 = vpack.c.bf16 %v6673_v44, %v6673_v44  ;;  %7405 = vst [vmem:[#allocation2 + $0x9e] sm:$0xf] %v17444_v22  ;;  %v15968_v22 = vld [vmem:[#allocation3 + $0x80] ss:$20 sps:$4 sm:$0xff]  }
 0x450   :  { %v6672_v3 = vld [vmem:[#allocation2 + $0x94] sm:$0xff]  ;;  %v14123_v45 = vpack.c.bf16 %v6558_v5, %v6558_v5 }
 0x451   :  { %v14141_v11 = vpack.c.bf16 %v6672_v3, %v6672_v3  ;;  %v15961_v31 = vld [vmem:[#allocation3 + $0x140] ss:$20 sps:$4 sm:$0xff]   ;;  %6539 = vst [vmem:[#allocation3 + $0x168] sm:$0x7] %v14104_v43  ;;  %6769 = vst [vmem:[#allocation3 + $0x170] sm:$0x7] %v14142_v48 }
 0x452   :  { %6654 = vst [vmem:[#allocation3 + $0x16c] sm:$0x7] %v14123_v45  ;;  %7259 = vmatmul.mubr.bf16.gmra.mxu0 %v15961_v31 }
 0x453   :  { %6768 = vst [vmem:[#allocation3 + $0x15c] sm:$0xf] %v14141_v11 }
 0x458   :  { %v15974_v63 = vld [vmem:[#allocation3 + $0x170] ss:$0 sps:$4 sm:$0x77]  }
 0x459   :  { %v6806_v26 = vld [vmem:[#allocation3 + $0x168] sm:$0x77] }
 0x45a   :  { %v13107_v52 = vcombine.high %v6806_v26, %v6806_v26  ;;  %v13106_v19 = vcombine.low %v6806_v26, %v6806_v26  ;;  %v15973_v17 = vld [vmem:[#allocation3 + $0x148] ss:$20 sps:$4 sm:$0xff]  }
 0x45c   :  { %7266 = vmatprep.mubr.bf16.mxu0 %v13107_v52 }
 0x45d   :  { %7267 = vmatmul.mubr.bf16.gmra.mxu0 %v13106_v19 }
 0x45e   :  { %15313 = vmatprep.mubr.bf16.mxu0 %v15965_v57  ;;  %v16036_v57 = vld [vmem:[%s18351_s11 + $0x78] sm:$0xff]  }
 0x45f   :  { %14620 = vmatprep.subr.bf16.mxu1 %v16036_v57 }
 0x465   :  { %15314 = vmatmul.mubr.bf16.vlgmr.msra.gmra.mxu0 %v15966_v55  ;;  %v16037_v55 = vld [vmem:[%s18351_s11 + $0xf8] sm:$0xff]  }
 0x466   :  { %15317 = vmatprep.mubr.bf16.mxu0 %v15967_v53  ;;  %14527 = vmatpush3.bf16.msra.mxu0 %v15982_v25 }
 0x467   :  { %14528 = vmatprep.subr.bf16.mxu0 %v15983_v41 }
 0x46a   :  { %14529 = vmatpush3.bf16.msra.mxu0 %v15984_v32 }
 0x46b   :  { %14530 = vmatprep.subr.bf16.mxu0 %v15986_v37 }
 0x46d   :  { %15318 = vmatmul.mubr.bf16.gmra.mxu0 %v15968_v22 }
 0x46e   :  { %15321 = vmatprep.mubr.bf16.mxu0 %v15969_v15  ;;  %14531 = vmatpush3.bf16.msra.mxu0 %v15987_v6 }
 0x46f   :  { %14532 = vmatprep.subr.bf16.mxu0 %v15988_v38 }
 0x472   :  { %14533 = vmatpush3.bf16.msra.mxu0 %v15989_v42 }
 0x473   :  { %14534 = vmatprep.subr.bf16.mxu0 %v15990_v62 }
 0x475   :  { %15322 = vmatmul.mubr.bf16.gmra.mxu0 %v15970_v24 }
 0x476   :  { %15325 = vmatprep.mubr.bf16.mxu0 %v15971_v30  ;;  %14535 = vmatpush3.bf16.msra.mxu0 %v15991_v36 }
 0x477   :  { %14536 = vmatprep.subr.bf16.mxu0 %v15992_v23 }
 0x47a   :  { %14537 = vmatpush3.bf16.msra.mxu0 %v15994_v1 }
 0x47b   :  { %14538 = vmatprep.subr.bf16.mxu0 %v15995_v9 }
 0x47d   :  { %15326 = vmatmul.mubr.bf16.gmra.mxu0 %v15972_v61 }
 0x47e   :  { %15329 = vmatprep.mubr.bf16.mxu0 %v15973_v17  ;;  %14539 = vmatpush3.bf16.msra.mxu0 %v15996_v35 }
 0x47f   :  { %14540 = vmatprep.subr.bf16.mxu0 %v15997_v58 }
 0x482   :  { %14541 = vmatpush3.bf16.msra.mxu0 %v15998_v34 }
 0x483   :  { %14696 = vmatprep.subr.bf16.mxu0 %v16037_v55 }
 0x485   :  { %15330 = vmatmul.mubr.bf16.gmra.mxu0 %v15974_v63 }
 0x492   :  { %v14448_v8 = vpop.f32.mrf.mxu0 }
 0x494   :  { %v14449_v10 = vpop.f32.mrf.mxu0 }
 0x495   :  { %v17474_v28 = vadd.f32 %v14449_v10, %v14448_v8 }
 0x496   :  { %v17476_v4 = vpop.f32.mrf.mxu0 }
 0x497   :  { %v7197_v32 = vadd.f32 %v17474_v28, %v17533_v29 }
 0x498   :  { %v17478_v12 = vpop.f32.mrf.mxu0 }
 0x499   :  { %v14453_v25 = vadd.f32 %v17478_v12, %v17476_v4 }
 0x4a2   :  { %v14454_v13 = vpop.f32.mrf.mxu0 }
 0x4a4   :  { %v14455_v7 = vpop.f32.mrf.mxu0 }
 0x4a5   :  { %v17480_v27 = vadd.f32 %v14455_v7, %v14454_v13 }
 0x4a6   :  { %v14457_v59 = vpop.f32.mrf.mxu0 }
 0x4a7   :  { %v7205_v10 = vadd.f32 %v17480_v27, %v17533_v29  ;;  %v7200_v27 = vadd.f32 %v14453_v25, %v17533_v29 }
 0x4a8   :  { %v14458_v50 = vpop.f32.mrf.mxu0 }
 0x4a9   :  { %v14459_v8 = vadd.f32 %v14458_v50, %v14457_v59 }
 0x4ab   :  { %v7208_v7 = vadd.f32 %v14459_v8, %v17533_v29 }
 0x4b2   :  { %v14460_v56 = vpop.f32.mrf.mxu0 }
 0x4b4   :  { %v14461_v0 = vpop.f32.mrf.mxu0 }
 0x4b5   :  { %v17482_v2 = vadd.f32 %v14461_v0, %v14460_v56 }
 0x4b6   :  { %v14463_v21 = vpop.f32.mrf.mxu0 }
 0x4b7   :  { %v7213_v60 = vadd.f32 %v17482_v2, %v17533_v29 }
 0x4b8   :  { %v14464_v54 = vpop.f32.mrf.mxu0 }
 0x4b9   :  { %v14465_v56 = vadd.f32 %v14464_v54, %v14463_v21 }
 0x4c2   :  { %v14466_v49 = vpop.f32.mrf.mxu0 }
 0x4c4   :  { %v14467_v40 = vpop.f32.mrf.mxu0 }
 0x4c5   :  { %v14468_v37 = vadd.f32 %v14467_v40, %v14466_v49 }
 0x4c6   :  { %v14469_v39 = vpop.f32.mrf.mxu0 }
 0x4c7   :  { %v7221_v28 = vadd.f32 %v14468_v37, %v17533_v29 }
 0x4c8   :  { %v14470_v33 = vpop.f32.mrf.mxu0 }
 0x4c9   :  { %v14471_v4 = vadd.f32 %v14470_v33, %v14469_v39  ;;  %v7216_v39 = vadd.f32 %v14465_v56, %v17533_v29 }
 0x4cb   :  { %v7224_v58 = vadd.f32 %v14471_v4, %v17533_v29 }
 0x4d2   :  { %v17484_v46 = vpop.f32.mrf.mxu0 }
 0x4d4   :  { %v17486_v16 = vpop.f32.mrf.mxu0 }
 0x4d5   :  { %v14474_v49 = vadd.f32 %v17486_v16, %v17484_v46 }
 0x4d6   :  { %v17488_v5 = vpop.f32.mrf.mxu0 }
 0x4d8   :  { %v17490_v3 = vpop.f32.mrf.mxu0 }
 0x4e2   :  { %v14478_v43 = vpop.f32.mrf.mxu0 }
 0x4e4   :  { %v14479_v45 = vpop.f32.mrf.mxu0 }
 0x4e5   :  { %v14480_v0 = vadd.f32 %v14479_v45, %v14478_v43 }
 0x4e6   :  { %v17492_v11 = vpop.f32.mrf.mxu0 }
 0x4e7   :  { %v7237_v45 = vadd.f32 %v14480_v0, %v17533_v29 }
 0x4e8   :  { %v17494_v44 = vpop.f32.mrf.mxu0 }
 0x4e9   :  { %v14483_v55 = vadd.f32 %v17494_v44, %v17492_v11 }
 0x4f2   :  { %v17496_v14 = vpop.f32.mrf.mxu0 }
 0x4f4   :  { %v17498_v31 = vpop.f32.mrf.mxu0 }
 0x4f6   :  { %v17500_v48 = vpop.f32.mrf.mxu0 }
 0x4f8   :  { %v17502_v26 = vpop.f32.mrf.mxu0 }
 0x502   :  { %v17504_v52 = vpop.f32.mrf.mxu0 }
 0x504   :  { %v17506_v19 = vpop.f32.mrf.mxu0 }
 0x505   :  { %v14492_v37 = vadd.f32 %v17506_v19, %v17504_v52 }
 0x506   :  { %v17514_v53 = vpop.f32.mrf.mxu0 }
 0x508   :  { %v17516_v51 = vpop.f32.mrf.mxu0 }
 0x512   :  { %v17518_v22 = vpop.f32.mrf.mxu0 }
 0x514   :  { %v17520_v15 = vpop.f32.mrf.mxu0 }
 0x516   :  { %v17522_v24 = vpop.f32.mrf.mxu0 }
 0x518   :  { %v17524_v30 = vpop.f32.mrf.mxu0 }
 0x51d   :  { %v17526_v18 = vpop.f32.mrf.mxu0 }
 0x51f   :  { %v17528_v61 = vpop.f32.mrf.mxu0 }
 0x521   :  { %v14505_v17 = vpop.f32.mrf.mxu0 }
 0x523   :  { %v14506_v63 = vpop.f32.mrf.mxu0 }
 0x524   :  { %v14477_v63 = vadd.f32 %v17490_v3, %v17488_v5  ;;  %v7240_v5 = vadd.f32 %v14483_v55, %v17533_v29 }
 0x525   :  { %v15315_v20 = vpop.f32.mrf.mxu0 }
 0x526   :  { %v7317_v41 = vadd.f32 %v15315_v20, %v7205_v10  ;;  %v7229_v10 = vadd.f32 %v14474_v49, %v17533_v29  ;;  %v14504_v49 = vadd.f32 %v17528_v61, %v17526_v18 }
 0x527   :  { %v7308_v47 = vpop.f32.mrf.mxu0 }
 0x528   :  { %7388 = vst [vmem:[#allocation2 + $0x18] sm:$0xff] %v7317_v41  ;;  %v7309_v13 = vadd.f32 %v7308_v47, %v7197_v32  ;;  %v14164_v6 = vpack.c.bf16 %v7317_v41, %v7317_v41 }
 0x529   :  { %v15316_v38 = vpop.f32.mrf.mxu0 }
 0x52a   :  { %7386 = vst [vmem:[#allocation2 + $0x8] sm:$0xff] %v7309_v13  ;;  %v7320_v42 = vadd.f32 %v15316_v38, %v7208_v7  ;;  %v14162_v59 = vpack.c.bf16 %v7309_v13, %v7309_v13  ;;  %7619 = vst [vmem:[#allocation3 + $0x2c] sm:$0xf] %v14164_v6  ;;  %v7232_v6 = vadd.f32 %v14477_v63, %v17533_v29 }
 0x52b   :  { %v7311_v62 = vpop.f32.mrf.mxu0 }
 0x52c   :  { %7389 = vst [vmem:[#allocation2 + $0x20] sm:$0xff] %v7320_v42  ;;  %v7312_v12 = vadd.f32 %v7311_v62, %v7200_v27  ;;  %7617 = vst [vmem:[#allocation3 + $0x4] sm:$0xf] %v14162_v59  ;;  %v14165_v36 = vpack.c.bf16 %v7320_v42, %v7320_v42  ;;  %v14486_v42 = vadd.f32 %v17498_v31, %v17496_v14 }
 0x52d   :  { %v15319_v50 = vpop.f32.mrf.mxu0  ;;  %v14495_v59 = vadd.f32 %v17516_v51, %v17514_v53  ;;  %v14489_v14 = vadd.f32 %v17502_v26, %v17500_v48 }
 0x52e   :  { %7387 = vst [vmem:[#allocation2 + $0x10] sm:$0xff] %v7312_v12  ;;  %v7333_v23 = vadd.f32 %v15319_v50, %v7221_v28  ;;  %v14163_v1 = vpack.c.bf16 %v7312_v12, %v7312_v12  ;;  %7620 = vst [vmem:[#allocation3 + $0x40] sm:$0xf] %v14165_v36  ;;  %v7253_v28 = vadd.f32 %v14492_v37, %v17533_v29 }
 0x52f   :  { %v7324_v9 = vpop.f32.mrf.mxu0  ;;  %v7245_v53 = vadd.f32 %v14486_v42, %v17533_v29  ;;  %v7256_v48 = vadd.f32 %v14495_v59, %v17533_v29 }
 0x530   :  { %7392 = vst [vmem:[#allocation2 + $0x38] sm:$0xff] %v7333_v23  ;;  %v7325_v35 = vadd.f32 %v7324_v9, %v7213_v60  ;;  %7618 = vst [vmem:[#allocation3 + $0x18] sm:$0xf] %v14163_v1  ;;  %v14168_v34 = vpack.c.bf16 %v7333_v23, %v7333_v23  ;;  %v16039_v9 = vld [vmem:[%s18351_s11 + $0xb8] sm:$0xff]  }
 0x531   :  { %v15320_v40 = vpop.f32.mrf.mxu0  ;;  %v7406_v21 = vld [vmem:[#allocation2 + $0x4] sm:$0xff] }
 0x532   :  { %7390 = vst [vmem:[#allocation2 + $0x28] sm:$0xff] %v7325_v35  ;;  %v7336_v54 = vadd.f32 %v15320_v40, %v7224_v58  ;;  %v14143_v2 = vpack.c.bf16 %v7406_v21, %v7406_v21  ;;  %v14166_v33 = vpack.c.bf16 %v7325_v35, %v7325_v35  ;;  %7623 = vst [vmem:[#allocation3 + $0x7c] sm:$0xf] %v14168_v34 }
 0x533   :  { %v7327_v43 = vpop.f32.mrf.mxu0  ;;  %v7409_v57 = vld [vmem:[#allocation2 + $0x1c] sm:$0xff] }
 0x534   :  { %7393 = vst [vmem:[#allocation2 + $0x40] sm:$0xff] %v7336_v54  ;;  %v7328_v17 = vadd.f32 %v7327_v43, %v7216_v39  ;;  %7502 = vst [vmem:[#allocation3] sm:$0xf] %v14143_v2  ;;  %v14146_v46 = vpack.c.bf16 %v7409_v57, %v7409_v57  ;;  %v14169_v16 = vpack.c.bf16 %v7336_v54, %v7336_v54 }
 0x535   :  { %7621 = vst [vmem:[#allocation3 + $0x54] sm:$0xf] %v14166_v33  ;;  %v15323_v8 = vpop.f32.mrf.mxu0  ;;  %v7407_v20 = vld [vmem:[#allocation2 + $0xc] sm:$0xff]  ;;  %v7637_v25 = vld [vmem:[#allocation2 + $0x14] sm:$0xff]  ;;  %v14498_v2 = vadd.f32 %v17520_v15, %v17518_v22  ;;  %v7248_v43 = vadd.f32 %v14489_v14, %v17533_v29 }
 0x536   :  { %7391 = vst [vmem:[#allocation2 + $0x30] sm:$0xff] %v7328_v17  ;;  %v7349_v41 = vadd.f32 %v15323_v8, %v7237_v45  ;;  %v14144_v32 = vpack.c.bf16 %v7407_v20, %v7407_v20  ;;  %v14182_v47 = vpack.c.bf16 %v7637_v25, %v7637_v25  ;;  %7505 = vst [vmem:[#allocation3 + $0x3c] sm:$0xf] %v14146_v46  ;;  %v16002_v45 = vld [vmem:[#allocation3 + $0x2c] ss:$20 sps:$4 sm:$0xff]   ;;  %v16040_v22 = vld [vmem:[%s18351_s11 + $0x70] sm:$0xff]  }
 0x537   :  { %7734 = vst [vmem:[#allocation3 + $0x30] sm:$0xf] %v14146_v46  ;;  %v14167_v11 = vpack.c.bf16 %v7328_v17, %v7328_v17  ;;  %7624 = vst [vmem:[#allocation3 + $0x90] sm:$0xf] %v14169_v16  ;;  %v7340_v44 = vpop.f32.mrf.mxu0  ;;  %v15999_v58 = vld [vmem:[#allocation3 + $0x4] ss:$20 sps:$4 sm:$0xff]   ;;  %v7269_v8 = vadd.f32 %v14504_v49, %v17533_v29  ;;  %v14501_v25 = vadd.f32 %v17524_v30, %v17522_v24 }
 0x538   :  { %7396 = vst [vmem:[#allocation2 + $0x58] sm:$0xff] %v7349_v41  ;;  %v7341_v13 = vadd.f32 %v7340_v44, %v7229_v10  ;;  %7503 = vst [vmem:[#allocation3 + $0x14] sm:$0xf] %v14144_v32  ;;  %v14172_v3 = vpack.c.bf16 %v7349_v41, %v7349_v41  ;;  %8175 = vmatprep.mubr.bf16.mxu0 %v15999_v58  ;;  %v16038_v17 = vld [vmem:[%s18351_s11 + $0x38] sm:$0xff]  }
 0x539   :  { %7732 = vst [vmem:[#allocation3 + $0x8] sm:$0xf] %v14144_v32  ;;  %7733 = vst [vmem:[#allocation3 + $0x1c] sm:$0xf] %v14182_v47  ;;  %v15324_v7 = vpop.f32.mrf.mxu0  ;;  %v7639_v38 = vld [vmem:[#allocation2 + $0x24] sm:$0xff]  ;;  %v7261_v32 = vadd.f32 %v14498_v2, %v17533_v29  ;;  %v7264_v59 = vadd.f32 %v14501_v25, %v17533_v29 }
 0x53a   :  { %7504 = vst [vmem:[#allocation3 + $0x28] sm:$0xf] %v14182_v47  ;;  %7622 = vst [vmem:[#allocation3 + $0x68] sm:$0xf] %v14167_v11  ;;  %v7352_v27 = vadd.f32 %v15324_v7, %v7240_v5  ;;  %v14184_v52 = vpack.c.bf16 %v7639_v38, %v7639_v38  ;;  %v14170_v19 = vpack.c.bf16 %v7341_v13, %v7341_v13  ;;  %v16041_v7 = vld [vmem:[%s18351_s11 + $0x30] sm:$0xff]  }
 0x53b   :  { %7394 = vst [vmem:[#allocation2 + $0x48] sm:$0xff] %v7341_v13  ;;  %7627 = vst [vmem:[#allocation3 + $0xcc] sm:$0xf] %v14172_v3  ;;  %v7343_v62 = vpop.f32.mrf.mxu0  ;;  %v7642_v4 = vld [vmem:[#allocation2 + $0x3c] sm:$0xff] }
 0x53c   :  { %7397 = vst [vmem:[#allocation2 + $0x60] sm:$0xff] %v7352_v27  ;;  %v7344_v12 = vadd.f32 %v7343_v62, %v7232_v6  ;;  %7735 = vst [vmem:[#allocation3 + $0x44] sm:$0xf] %v14184_v52  ;;  %v14187_v36 = vpack.c.bf16 %v7642_v4, %v7642_v4  ;;  %v14173_v50 = vpack.c.bf16 %v7352_v27, %v7352_v27  ;;  %v7751_v51 = vld [vmem:[#allocation3] sm:$0xff] }
 0x53d   :  { %7506 = vst [vmem:[#allocation3 + $0x50] sm:$0xf] %v14184_v52  ;;  %7625 = vst [vmem:[#allocation3 + $0xa4] sm:$0xf] %v14170_v19  ;;  %v15327_v31 = vpop.f32.mrf.mxu0  ;;  %v7640_v56 = vld [vmem:[#allocation2 + $0x2c] sm:$0xff]  ;;  %v7641_v60 = vld [vmem:[#allocation2 + $0x34] sm:$0xff] }
 0x53e   :  { %7395 = vst [vmem:[#allocation2 + $0x50] sm:$0xff] %v7344_v12  ;;  %v7365_v23 = vadd.f32 %v15327_v31, %v7253_v28  ;;  %v14185_v1 = vpack.c.bf16 %v7640_v56, %v7640_v56  ;;  %7738 = vst [vmem:[#allocation3 + $0x80] sm:$0xf] %v14187_v36  ;;  %v14171_v0 = vpack.c.bf16 %v7344_v12, %v7344_v12  ;;  %v7757_v6 = vld [vmem:[#allocation3 + $0x3c] sm:$0xff] }
 0x53f   :  { %7509 = vst [vmem:[#allocation3 + $0x8c] sm:$0xf] %v14187_v36  ;;  %7628 = vst [vmem:[#allocation3 + $0xe0] sm:$0xf] %v14173_v50  ;;  %v7356_v35 = vpop.f32.mrf.mxu0  ;;  %v7753_v26 = vld [vmem:[#allocation3 + $0x14] sm:$0xff]  ;;  %v14186_v34 = vpack.c.bf16 %v7641_v60, %v7641_v60 }
 0x540   :  { %7400 = vst [vmem:[#allocation2 + $0x78] sm:$0xff] %v7365_v23  ;;  %v7357_v40 = vadd.f32 %v7356_v35, %v7245_v53  ;;  %v16001_v21 = vld [vmem:[#allocation3 + $0x8] ss:$20 sps:$4 sm:$0xff]   ;;  %v13191_v54 = vcombine.low %v7751_v51, %v7753_v26  ;;  %7736 = vst [vmem:[#allocation3 + $0x58] sm:$0xf] %v14185_v1  ;;  %v14176_v39 = vpack.c.bf16 %v7365_v23, %v7365_v23 }
 0x541   :  { %7507 = vst [vmem:[#allocation3 + $0x64] sm:$0xf] %v14185_v1  ;;  %7626 = vst [vmem:[#allocation3 + $0xb8] sm:$0xf] %v14171_v0  ;;  %v15328_v33 = vpop.f32.mrf.mxu0  ;;  %15349 = vmatprep.mubr.bf16.mxu1 %v16001_v21  ;;  %v7755_v63 = vld [vmem:[#allocation3 + $0x28] sm:$0xff] }
 0x542   :  { %7737 = vst [vmem:[#allocation3 + $0x6c] sm:$0xf] %v14186_v34  ;;  %v7643_v57 = vld [vmem:[#allocation2 + $0x44] sm:$0xff]  ;;  %7508 = vst [vmem:[#allocation3 + $0x78] sm:$0xf] %v14186_v34  ;;  %v7368_v18 = vadd.f32 %v15328_v33, %v7256_v48  ;;  %8176 = vmatmul.mubr.bf16.vlgmr.msra.gmra.mxu0 %v13191_v54  ;;  %v14174_v55 = vpack.c.bf16 %v7357_v40, %v7357_v40  ;;  %v13194_v42 = vcombine.low %v7755_v63, %v7757_v6  ;;  %v17591_v34 = vld [vmem:[#allocation2 + $0x138] sm:$0xff] }
 0x543   :  { %7398 = vst [vmem:[#allocation2 + $0x68] sm:$0xff] %v7357_v40  ;;  %v14188_v61 = vpack.c.bf16 %v7643_v57, %v7643_v57  ;;  %7631 = vst [vmem:[#allocation3 + $0x11c] sm:$0xf] %v14176_v39  ;;  %v7359_v15 = vpop.f32.mrf.mxu0  ;;  %8183 = vmatprep.mubr.bf16.mxu0 %v16002_v45  ;;  %v16004_v46 = vld [vmem:[#allocation3 + $0x30] ss:$20 sps:$4 sm:$0xff]   ;;  %14697 = vmatpush3.bf16.msra.mxu0 %v16039_v9  ;;  %v7646_v10 = vld [vmem:[#allocation2 + $0x5c] sm:$0xff] }
 0x544   :  { %7401 = vst [vmem:[#allocation2 + $0x80] sm:$0xff] %v7368_v18  ;;  %v7360_v16 = vadd.f32 %v7359_v15, %v7248_v43  ;;  %7629 = vst [vmem:[#allocation3 + $0xf4] sm:$0xf] %v14174_v55  ;;  %v14177_v20 = vpack.c.bf16 %v7368_v18, %v7368_v18  ;;  %15350 = vmatmul.mubr.bf16.vlgmr.msra.gmra.mxu1 %v16004_v46  ;;  %v14191_v44 = vpack.c.bf16 %v7646_v10, %v7646_v10  ;;  %v16006_v52 = vld [vmem:[#allocation3 + $0x54] ss:$20 sps:$4 sm:$0xff]   ;;  %v16048_v6 = vld [vmem:[%s18351_s11 + $0x58] sm:$0xff]  }
 0x545   :  { %7739 = vst [vmem:[#allocation3 + $0x94] sm:$0xf] %v14188_v61  ;;  %7510 = vst [vmem:[#allocation3 + $0xa0] sm:$0xf] %v14188_v61  ;;  %v15331_v41 = vpop.f32.mrf.mxu0  ;;  %v7644_v47 = vld [vmem:[#allocation2 + $0x4c] sm:$0xff]  ;;  %v7645_v11 = vld [vmem:[#allocation2 + $0x54] sm:$0xff]  ;;  %14621 = vmatpush3.bf16.msra.mxu1 %v16038_v17 }
 0x546   :  { %7399 = vst [vmem:[#allocation2 + $0x70] sm:$0xff] %v7360_v16  ;;  %v7381_v37 = vadd.f32 %v15331_v41, %v7269_v8  ;;  %v14189_v13 = vpack.c.bf16 %v7644_v47, %v7644_v47  ;;  %v14190_v5 = vpack.c.bf16 %v7645_v11, %v7645_v11  ;;  %v14175_v3 = vpack.c.bf16 %v7360_v16, %v7360_v16  ;;  %v16011_v1 = vld [vmem:[#allocation3 + $0x7c] ss:$20 sps:$4 sm:$0xff]   ;;  %v16021_v17 = vld [vmem:[#allocation3 + $0xcc] ss:$20 sps:$4 sm:$0xff]  }
 0x547   :  { %7632 = vst [vmem:[#allocation3 + $0x130] sm:$0xf] %v14177_v20  ;;  %v7372_v24 = vpop.f32.mrf.mxu0  ;;  %7742 = vst [vmem:[#allocation3 + $0xd0] sm:$0xf] %v14191_v44  ;;  %14622 = vmatprep.subr.bf16.mxu1 %v16040_v22  ;;  %v16043_v47 = vld [vmem:[%s18351_s11 + $0xf0] sm:$0xff]   ;;  %v16044_v11 = vld [vmem:[%s18351_s11 + $0x28] sm:$0xff]  }
 0x548   :  { %7513 = vst [vmem:[#allocation3 + $0xdc] sm:$0xf] %v14191_v44  ;;  %7404 = vst [vmem:[#allocation2 + $0x98] sm:$0x3f] %v7381_v37  ;;  %v7373_v30 = vadd.f32 %v7372_v24, %v7261_v32  ;;  %v16010_v60 = vld [vmem:[#allocation3 + $0x50] ss:$20 sps:$4 sm:$0xff]   ;;  %14698 = vmatprep.subr.bf16.mxu0 %v16043_v47 }
 0x549   :  { %v16005_v38 = vld [vmem:[#allocation3 + $0x58] ss:$20 sps:$4 sm:$0xff]   ;;  %7740 = vst [vmem:[#allocation3 + $0xa8] sm:$0xf] %v14189_v13  ;;  %7741 = vst [vmem:[#allocation3 + $0xbc] sm:$0xf] %v14190_v5  ;;  %v15332_v27 = vpop.f32.mrf.mxu0  ;;  %14623 = vmatpush3.bf16.msra.mxu1 %v16041_v7 }
 0x54a   :  { %7511 = vst [vmem:[#allocation3 + $0xb4] sm:$0xf] %v14189_v13  ;;  %7512 = vst [vmem:[#allocation3 + $0xc8] sm:$0xf] %v14190_v5  ;;  %v7647_v19 = vld [vmem:[#allocation2 + $0x64] sm:$0xff]  ;;  %15353 = vmatprep.mubr.bf16.mxu1 %v16005_v38  ;;  %8184 = vmatmul.mubr.bf16.gmra.mxu0 %v13194_v42  ;;  %v14178_v4 = vpack.c.bf16 %v7373_v30, %v7373_v30  ;;  %v16045_v44 = vld [vmem:[%s18351_s11 + $0xb0] sm:$0xff]  }
 0x54b   :  { %7630 = vst [vmem:[#allocation3 + $0x108] sm:$0xf] %v14175_v3  ;;  %7402 = vst [vmem:[#allocation2 + $0x88] sm:$0xff] %v7373_v30  ;;  %v14192_v62 = vpack.c.bf16 %v7647_v19, %v7647_v19  ;;  %v7375_v12 = vpop.f32.mrf.mxu0  ;;  %8191 = vmatprep.mubr.bf16.mxu0 %v16006_v52  ;;  %v7650_v50 = vld [vmem:[#allocation2 + $0x7c] sm:$0xff]  ;;  %v16015_v45 = vld [vmem:[#allocation3 + $0x78] ss:$20 sps:$4 sm:$0xff]   ;;  %14699 = vmatpush3.bf16.msra.mxu0 %v16045_v44 }
 0x54c   :  { %v16008_v28 = vld [vmem:[#allocation3 + $0x80] ss:$20 sps:$4 sm:$0xff]   ;;  %v7376_v36 = vadd.f32 %v7375_v12, %v7264_v59  ;;  %7633 = vst [vmem:[#allocation3 + $0x144] sm:$0xf] %v14178_v4  ;;  %v14195_v56 = vpack.c.bf16 %v7650_v50, %v7650_v50  ;;  %v16016_v57 = vld [vmem:[#allocation3 + $0xa4] ss:$20 sps:$4 sm:$0xff]  }
 0x54d   :  { %7743 = vst [vmem:[#allocation3 + $0xe4] sm:$0xf] %v14192_v62  ;;  %7514 = vst [vmem:[#allocation3 + $0xf0] sm:$0xf] %v14192_v62  ;;  %15354 = vmatmul.mubr.bf16.gmra.mxu1 %v16008_v28  ;;  %v7648_v14 = vld [vmem:[#allocation2 + $0x6c] sm:$0xff]  ;;  %v7649_v31 = vld [vmem:[#allocation2 + $0x74] sm:$0xff] }
 0x54e   :  { %7403 = vst [vmem:[#allocation2 + $0x90] sm:$0xff] %v7376_v36  ;;  %v14193_v23 = vpack.c.bf16 %v7648_v14, %v7648_v14  ;;  %v14194_v53 = vpack.c.bf16 %v7649_v31, %v7649_v31  ;;  %v14179_v29 = vpack.c.bf16 %v7376_v36, %v7376_v36  ;;  %7746 = vst [vmem:[#allocation3 + $0x120] sm:$0xf] %v14195_v56  ;;  %v16028_v63 = vld [vmem:[#allocation3 + $0x11c] ss:$20 sps:$4 sm:$0xff]   ;;  %v16042_v32 = vld [vmem:[%s18351_s11 + $0x68] sm:$0xff]  }
 0x54f   :  { %7517 = vst [vmem:[#allocation3 + $0x12c] sm:$0xf] %v14195_v56  ;;  %v7654_v35 = vld [vmem:[#allocation2 + $0x9c] sm:$0x3f]  ;;  %14624 = vmatprep.subr.bf16.mxu1 %v16042_v32  ;;  %v16049_v3 = vld [vmem:[%s18351_s11 + $0xe8] sm:$0xff]   ;;  %v16052_v42 = vld [vmem:[%s18351_s11 + $0x50] sm:$0xff]  }
 0x550   :  { %v16009_v51 = vld [vmem:[#allocation3 + $0xa8] ss:$20 sps:$4 sm:$0xff]   ;;  %7744 = vst [vmem:[#allocation3 + $0xf8] sm:$0xf] %v14193_v23  ;;  %7745 = vst [vmem:[#allocation3 + $0x10c] sm:$0xf] %v14194_v53  ;;  %v14199_v58 = vpack.c.bf16 %v7654_v35, %v7654_v35  ;;  %14625 = vmatpush3.bf16.msra.mxu1 %v16044_v11  ;;  %14700 = vmatprep.subr.bf16.mxu0 %v16049_v3 }
 0x551   :  { %7515 = vst [vmem:[#allocation3 + $0x104] sm:$0xf] %v14193_v23  ;;  %7516 = vst [vmem:[#allocation3 + $0x118] sm:$0xf] %v14194_v53  ;;  %15357 = vmatprep.mubr.bf16.mxu1 %v16009_v51  ;;  %v7539_v48 = vld [vmem:[#allocation2 + $0x98] sm:$0x3f] }
 0x552   :  { %7634 = vst [vmem:[#allocation3 + $0x158] sm:$0xf] %v14179_v29  ;;  %v7651_v0 = vld [vmem:[#allocation2 + $0x84] sm:$0xff]  ;;  %8192 = vmatmul.mubr.bf16.gmra.mxu0 %v16010_v60  ;;  %8386 = vst [vmem:[#allocation2 + $0x9e] sm:$0x3] %v17591_v34  ;;  %v14180_v49 = vpack.c.bf16 %v7539_v48, %v7539_v48  ;;  %v16050_v30 = vld [vmem:[%s18351_s11 + $0x18] sm:$0xff]  }
 0x553   :  { %v14196_v9 = vpack.c.bf16 %v7651_v0, %v7651_v0  ;;  %8199 = vmatprep.mubr.bf16.mxu0 %v16011_v1  ;;  %7750 = vst [vmem:[#allocation3 + $0x170] sm:$0x7] %v14199_v58  ;;  %v16020_v55 = vld [vmem:[#allocation3 + $0xa0] ss:$20 sps:$4 sm:$0xff]   ;;  %v16024_v15 = vld [vmem:[#allocation3 + $0xc8] ss:$20 sps:$4 sm:$0xff]  }
 0x554   :  { %v16013_v26 = vld [vmem:[#allocation3 + $0xd0] ss:$20 sps:$4 sm:$0xff]   ;;  %7635 = vst [vmem:[#allocation3 + $0x16c] sm:$0x7] %v14180_v49  ;;  %v16025_v46 = vld [vmem:[#allocation3 + $0xf4] ss:$20 sps:$4 sm:$0xff]  }
 0x555   :  { %7747 = vst [vmem:[#allocation3 + $0x134] sm:$0xf] %v14196_v9  ;;  %7518 = vst [vmem:[#allocation3 + $0x140] sm:$0xf] %v14196_v9  ;;  %15358 = vmatmul.mubr.bf16.gmra.mxu1 %v16013_v26  ;;  %v7652_v40 = vld [vmem:[#allocation2 + $0x8c] sm:$0xff]  ;;  %v7653_v21 = vld [vmem:[#allocation2 + $0x94] sm:$0xff] }
 0x556   :  { %v7424_v54 = vld [vmem:[#allocation2 + $0x94] sm:$0x3f]  ;;  %v14197_v39 = vpack.c.bf16 %v7652_v40, %v7652_v40  ;;  %v14198_v2 = vpack.c.bf16 %v7653_v21, %v7653_v21  ;;  %v16046_v13 = vld [vmem:[%s18351_s11 + $0x60] sm:$0xff]   ;;  %v16051_v7 = vld [vmem:[%s18351_s11 + $0xa8] sm:$0xff]  }
 0x557   :  { %v14161_v33 = vpack.c.bf16 %v7424_v54, %v7424_v54  ;;  %v16014_v43 = vld [vmem:[#allocation3 + $0xf8] ss:$20 sps:$4 sm:$0xff]   ;;  %14626 = vmatprep.subr.bf16.mxu1 %v16046_v13  ;;  %v16047_v5 = vld [vmem:[%s18351_s11 + $0x20] sm:$0xff]   ;;  %14701 = vmatpush3.bf16.msra.mxu0 %v16051_v7  ;;  %v16054_v52 = vld [vmem:[%s18351_s11 + $0x10] sm:$0xff]  }
 0x558   :  { %7748 = vst [vmem:[#allocation3 + $0x148] sm:$0xf] %v14197_v39  ;;  %7749 = vst [vmem:[#allocation3 + $0x15c] sm:$0xf] %v14198_v2  ;;  %15361 = vmatprep.mubr.bf16.mxu1 %v16014_v43  ;;  %v16027_v16 = vld [vmem:[#allocation3 + $0xf0] ss:$20 sps:$4 sm:$0xff]   ;;  %14627 = vmatpush3.bf16.msra.mxu1 %v16047_v5 }
 0x559   :  { %7519 = vst [vmem:[#allocation3 + $0x154] sm:$0xf] %v14197_v39  ;;  %7520 = vst [vmem:[#allocation3 + $0x168] sm:$0x7] %v14161_v33  ;;  %v16030_v8 = vld [vmem:[#allocation3 + $0x118] ss:$20 sps:$4 sm:$0xff]   ;;  %14628 = vmatprep.subr.bf16.mxu1 %v16048_v6 }
 0x55a   :  { %8200 = vmatmul.mubr.bf16.gmra.mxu0 %v16015_v45  ;;  %v16023_v22 = vld [vmem:[#allocation3 + $0x170] ss:$0 sps:$4 sm:$0x77]   ;;  %v16031_v10 = vld [vmem:[#allocation3 + $0x144] ss:$20 sps:$4 sm:$0xff]   ;;  %v16057_v59 = vld [vmem:[%s18351_s11 + $0x48] sm:$0xff]  }
 0x55b   :  { %8207 = vmatprep.mubr.bf16.mxu0 %v16016_v57  ;;  %v16053_v24 = vld [vmem:[%s18351_s11 + $0xe0] sm:$0xff]   ;;  %v16056_v27 = vld [vmem:[%s18351_s11 + $0xd8] sm:$0xff]   ;;  %v16060_v62 = vld [vmem:[%s18351_s11 + $0xd0] sm:$0xff]  }
 0x55c   :  { %v16018_v18 = vld [vmem:[#allocation3 + $0x120] ss:$20 sps:$4 sm:$0xff]   ;;  %14702 = vmatprep.subr.bf16.mxu0 %v16053_v24  ;;  %14629 = vmatpush3.bf16.msra.mxu1 %v16050_v30  ;;  %v16058_v19 = vld [vmem:[%s18351_s11 + $0x98] sm:$0xff]   ;;  %v16059_v4 = vld [vmem:[%s18351_s11 + $0x8] sm:$0xff]  }
 0x55d   :  { %15362 = vmatmul.mubr.bf16.gmra.mxu1 %v16018_v18  ;;  %v16055_v38 = vld [vmem:[%s18351_s11 + $0xa0] sm:$0xff]   ;;  %14630 = vmatprep.subr.bf16.mxu1 %v16052_v42  ;;  %v16061_v12 = vld [vmem:[%s18351_s11 + $0x90] sm:$0xff]   ;;  %v16064_v36 = vld [vmem:[%s18351_s11 + $0xc8] sm:$0xff]  }
 0x55e   :  { %14703 = vmatpush3.bf16.msra.mxu0 %v16055_v38  ;;  %v16062_v28 = vld [vmem:[%s18351_s11 + $0x40] sm:$0xff]   ;;  %v16065_v14 = vld [vmem:[%s18351_s11 + $0x88] sm:$0xff]   ;;  %v17675_v23 = vld [vmem:[%s18351_s11 + $0x138] sm:$0xff]  }
 0x55f   :  { %v16019_v61 = vld [vmem:[#allocation3 + $0x148] ss:$20 sps:$4 sm:$0xff]   ;;  %14704 = vmatprep.subr.bf16.mxu0 %v16056_v27  ;;  %v16063_v50 = vld [vmem:[%s18351_s11] sm:$0xff]  }
 0x560   :  { %15365 = vmatprep.mubr.bf16.mxu1 %v16019_v61  ;;  %v7787_v20 = vld [vmem:[#allocation3 + $0x168] sm:$0x77]  ;;  %v16033_v25 = vld [vmem:[#allocation3 + $0x140] ss:$20 sps:$4 sm:$0xff]   ;;  %14631 = vmatpush3.bf16.msra.mxu1 %v16054_v52 }
 0x561   :  { %v13219_v41 = vcombine.high %v7787_v20, %v7787_v20  ;;  %v13218_v37 = vcombine.low %v7787_v20, %v7787_v20  ;;  %14632 = vmatprep.subr.bf16.mxu1 %v16057_v59  ;;  %v16070_v31 = vld [vmem:[%s18351_s11 + $0xc0] sm:$0xff]  }
 0x562   :  { %8208 = vmatmul.mubr.bf16.gmra.mxu0 %v16020_v55  ;;  %v16071_v56 = vld [vmem:[%s18351_s11 + $0x80] sm:$0xff]  }
 0x563   :  { %8215 = vmatprep.mubr.bf16.mxu0 %v16021_v17  ;;  %14705 = vmatpush3.bf16.msra.mxu0 %v16058_v19  ;;  %v17681_v51 = vld [vmem:[%s18350_s10] ss:$0 sm:$0xff] }
 0x564   :  { %14706 = vmatprep.subr.bf16.mxu0 %v16060_v62  ;;  %14633 = vmatpush3.bf16.msra.mxu1 %v16059_v4 }
 0x565   :  { %15366 = vmatmul.mubr.bf16.gmra.mxu1 %v16023_v22  ;;  %14634 = vmatprep.subr.bf16.mxu1 %v16062_v28 }
 0x567   :  { %14707 = vmatpush3.bf16.msra.mxu0 %v16061_v12 }
 0x568   :  { %14708 = vmatprep.subr.bf16.mxu0 %v16064_v36  ;;  %14635 = vmatpush3.bf16.msra.mxu1 %v16063_v50 }
 0x569   :  { %15369 = vmatprep.subr.bf16.mxu1 %v17675_v23 }
 0x56a   :  { %8216 = vmatmul.mubr.bf16.gmra.mxu0 %v16024_v15 }
 0x56b   :  { %8223 = vmatprep.mubr.bf16.mxu0 %v16025_v46  ;;  %14709 = vmatpush3.bf16.msra.mxu0 %v16065_v14 }
 0x56c   :  { %14710 = vmatprep.subr.bf16.mxu0 %v16070_v31 }
 0x56f   :  { %14711 = vmatpush3.bf16.msra.mxu0 %v16071_v56 }
 0x572   :  { %8224 = vmatmul.mubr.bf16.gmra.mxu0 %v16027_v16 }
 0x573   :  { %8231 = vmatprep.mubr.bf16.mxu0 %v16028_v63 }
 0x57a   :  { %8232 = vmatmul.mubr.bf16.gmra.mxu0 %v16030_v8 }
 0x57b   :  { %8239 = vmatprep.mubr.bf16.mxu0 %v16031_v10 }
 0x582   :  { %8240 = vmatmul.mubr.bf16.gmra.mxu0 %v16033_v25 }
 0x583   :  { %8247 = vmatprep.mubr.bf16.mxu0 %v13219_v41 }
 0x58a   :  { %8248 = vmatmul.mubr.bf16.gmra.mxu0 %v13218_v37 }
 0x602   :  { %v14542_v53 = vpop.f32.mrf.mxu0 }
 0x604   :  { %v14543_v29 = vpop.f32.mrf.mxu0  ;;  %v15351_v1 = vpop.f32.mrf.mxu1 }
 0x605   :  { %v14544_v60 = vadd.f32 %v14543_v29, %v14542_v53 }
 0x606   :  { %v14545_v0 = vpop.f32.mrf.mxu0  ;;  %v8289_v35 = vpop.f32.mrf.mxu1 }
 0x607   :  { %v8178_v9 = vadd.f32 %v14544_v60, %v17681_v51 }
 0x608   :  { %v14546_v48 = vpop.f32.mrf.mxu0  ;;  %v15352_v49 = vpop.f32.mrf.mxu1 }
 0x609   :  { %v8290_v26 = vadd.f32 %v8289_v35, %v8178_v9  ;;  %v14547_v58 = vadd.f32 %v14546_v48, %v14545_v0 }
 0x60a   :  { %v14548_v40 = vpop.f32.mrf.mxu0  ;;  %v8292_v54 = vpop.f32.mrf.mxu1 }
 0x60b   :  { %8367 = vst [vmem:[#allocation2 + $0x8] sm:$0xff] %v8290_v26  ;;  %v8181_v21 = vadd.f32 %v14547_v58, %v17681_v51  ;;  %v14238_v39 = vpack.c.bf16 %v8290_v26, %v8290_v26 }
 0x60c   :  { %v14549_v2 = vpop.f32.mrf.mxu0 }
 0x60d   :  { %v8293_v33 = vadd.f32 %v8292_v54, %v8181_v21  ;;  %v14550_v43 = vadd.f32 %v14549_v2, %v14548_v40  ;;  %v17685_v45 = vpop.f32.mrf.mxu1  ;;  %8713 = vst [vmem:[#allocation3 + $0x8] sm:$0xf] %v14238_v39 }
 0x60e   :  { %v14551_v57 = vpop.f32.mrf.mxu0 }
 0x60f   :  { %8368 = vst [vmem:[#allocation2 + $0x10] sm:$0xff] %v8293_v33  ;;  %v8186_v18 = vadd.f32 %v14550_v43, %v17681_v51  ;;  %v8305_v61 = vpop.f32.mrf.mxu1  ;;  %v14239_v55 = vpack.c.bf16 %v8293_v33, %v8293_v33 }
 0x610   :  { %v14552_v17 = vpop.f32.mrf.mxu0 }
 0x611   :  { %v8298_v22 = vadd.f32 %v15351_v1, %v8186_v18  ;;  %v14553_v15 = vadd.f32 %v14552_v17, %v14551_v57  ;;  %v17688_v46 = vpop.f32.mrf.mxu1  ;;  %8714 = vst [vmem:[#allocation3 + $0x1c] sm:$0xf] %v14239_v55 }
 0x612   :  { %v14554_v16 = vpop.f32.mrf.mxu0  ;;  %v8387_v63 = vld [vmem:[#allocation2 + $0x6] sm:$0xff] }
 0x613   :  { %v8502_v8 = vld [vmem:[#allocation2 + $0x7] sm:$0xff]  ;;  %8369 = vst [vmem:[#allocation2 + $0x18] sm:$0xff] %v8298_v22  ;;  %v8189_v10 = vadd.f32 %v14553_v15, %v17681_v51  ;;  %v8308_v20 = vpop.f32.mrf.mxu1  ;;  %v14200_v25 = vpack.c.bf16 %v8387_v63, %v8387_v63  ;;  %v14240_v32 = vpack.c.bf16 %v8298_v22, %v8298_v22 }
 0x614   :  { %v14219_v41 = vpack.c.bf16 %v8502_v8, %v8502_v8  ;;  %v14555_v47 = vpop.f32.mrf.mxu0 }
 0x615   :  { %v8301_v11 = vadd.f32 %v15352_v49, %v8189_v10  ;;  %v14556_v44 = vadd.f32 %v14555_v47, %v14554_v16  ;;  %v17691_v37 = vpop.f32.mrf.mxu1  ;;  %8483 = vst [vmem:[#allocation3] sm:$0xf] %v14200_v25  ;;  %8715 = vst [vmem:[#allocation3 + $0x30] sm:$0xf] %v14240_v32  ;;  %v16078_v10 = vld [vmem:[%s18351_s11 + $0x130] sm:$0xff]  }
 0x616   :  { %8598 = vst [vmem:[#allocation3 + $0x4] sm:$0xf] %v14219_v41  ;;  %v14557_v13 = vpop.f32.mrf.mxu0  ;;  %v8388_v5 = vld [vmem:[#allocation2 + $0xe] sm:$0xff] }
 0x617   :  { %v8503_v3 = vld [vmem:[#allocation2 + $0xf] sm:$0xff]  ;;  %8370 = vst [vmem:[#allocation2 + $0x20] sm:$0xff] %v8301_v11  ;;  %v8194_v6 = vadd.f32 %v14556_v44, %v17681_v51  ;;  %v17694_v24 = vpop.f32.mrf.mxu1  ;;  %v14201_v30 = vpack.c.bf16 %v8388_v5, %v8388_v5  ;;  %v14241_v19 = vpack.c.bf16 %v8301_v11, %v8301_v11 }
 0x618   :  { %v8732_v7 = vld [vmem:[#allocation2 + $0x9] sm:$0xff]  ;;  %v14220_v38 = vpack.c.bf16 %v8503_v3, %v8503_v3  ;;  %v14558_v52 = vpop.f32.mrf.mxu0 }
 0x619   :  { %v14257_v42 = vpack.c.bf16 %v8732_v7, %v8732_v7  ;;  %v8847_v27 = vld [vmem:[#allocation2 + $0xa] sm:$0xff]  ;;  %v8306_v62 = vadd.f32 %v8305_v61, %v8194_v6  ;;  %v14559_v4 = vadd.f32 %v14558_v52, %v14557_v13  ;;  %v17696_v12 = vpop.f32.mrf.mxu1  ;;  %8484 = vst [vmem:[#allocation3 + $0x14] sm:$0xf] %v14201_v30  ;;  %8716 = vst [vmem:[#allocation3 + $0x44] sm:$0xf] %v14241_v19 }
 0x61a   :  { %v14276_v59 = vpack.c.bf16 %v8847_v27, %v8847_v27  ;;  %8599 = vst [vmem:[#allocation3 + $0x18] sm:$0xf] %v14220_v38  ;;  %v14560_v28 = vpop.f32.mrf.mxu0  ;;  %v8733_v36 = vld [vmem:[#allocation2 + $0x11] sm:$0xff]  ;;  %v16074_v6 = vld [vmem:[#allocation3 + $0x8] ss:$20 sps:$4 sm:$0xff]  }
 0x61b   :  { %8828 = vst [vmem:[#allocation3 + $0xc] sm:$0xf] %v14257_v42  ;;  %v8389_v50 = vld [vmem:[#allocation2 + $0x16] sm:$0xff]  ;;  %8371 = vst [vmem:[#allocation2 + $0x28] sm:$0xff] %v8306_v62  ;;  %v8197_v31 = vadd.f32 %v14559_v4, %v17681_v51  ;;  %v17699_v56 = vpop.f32.mrf.mxu1  ;;  %v14258_v53 = vpack.c.bf16 %v8733_v36, %v8733_v36  ;;  %v14242_v9 = vpack.c.bf16 %v8306_v62, %v8306_v62  ;;  %v16088_v19 = vld [vmem:[%s18351_s11 + $0x128] sm:$0xff]  }
 0x61c   :  { %v8504_v14 = vld [vmem:[#allocation2 + $0x17] sm:$0xff]  ;;  %8943 = vst [vmem:[#allocation3 + $0x10] sm:$0xf] %v14276_v59  ;;  %v14202_v29 = vpack.c.bf16 %v8389_v50, %v8389_v50  ;;  %v14561_v0 = vpop.f32.mrf.mxu0 }
 0x61d   :  { %v14221_v60 = vpack.c.bf16 %v8504_v14, %v8504_v14  ;;  %v8848_v1 = vld [vmem:[#allocation2 + $0x12] sm:$0xff]  ;;  %v8309_v48 = vadd.f32 %v8308_v20, %v8197_v31  ;;  %v14562_v26 = vadd.f32 %v14561_v0, %v14560_v28  ;;  %v17701_v58 = vpop.f32.mrf.mxu1  ;;  %8829 = vst [vmem:[#allocation3 + $0x20] sm:$0xf] %v14258_v53  ;;  %8717 = vst [vmem:[#allocation3 + $0x58] sm:$0xf] %v14242_v9 }
 0x61e   :  { %v14277_v35 = vpack.c.bf16 %v8848_v1, %v8848_v1  ;;  %8485 = vst [vmem:[#allocation3 + $0x28] sm:$0xf] %v14202_v29  ;;  %v14563_v49 = vpop.f32.mrf.mxu0  ;;  %v8390_v40 = vld [vmem:[#allocation2 + $0x1e] sm:$0xff] }
 0x61f   :  { %8600 = vst [vmem:[#allocation3 + $0x2c] sm:$0xf] %v14221_v60  ;;  %v8505_v21 = vld [vmem:[#allocation2 + $0x1f] sm:$0xff]  ;;  %8372 = vst [vmem:[#allocation2 + $0x30] sm:$0xff] %v8309_v48  ;;  %v8202_v39 = vadd.f32 %v14562_v26, %v17681_v51  ;;  %v17704_v2 = vpop.f32.mrf.mxu1  ;;  %v14203_v33 = vpack.c.bf16 %v8390_v40, %v8390_v40  ;;  %v14243_v22 = vpack.c.bf16 %v8309_v48, %v8309_v48 }
 0x620   :  { %v8734_v54 = vld [vmem:[#allocation2 + $0x19] sm:$0xff]  ;;  %8944 = vst [vmem:[#allocation3 + $0x24] sm:$0xf] %v14277_v35  ;;  %v14222_v43 = vpack.c.bf16 %v8505_v21, %v8505_v21  ;;  %v14564_v61 = vpop.f32.mrf.mxu0 }
 0x621   :  { %v14259_v57 = vpack.c.bf16 %v8734_v54, %v8734_v54  ;;  %v8849_v18 = vld [vmem:[#allocation2 + $0x1a] sm:$0xff]  ;;  %v8314_v16 = vadd.f32 %v17685_v45, %v8202_v39  ;;  %v14565_v63 = vadd.f32 %v14564_v61, %v14563_v49  ;;  %v17707_v8 = vpop.f32.mrf.mxu1  ;;  %8486 = vst [vmem:[#allocation3 + $0x3c] sm:$0xf] %v14203_v33  ;;  %8718 = vst [vmem:[#allocation3 + $0x6c] sm:$0xf] %v14243_v22 }
 0x622   :  { %v16066_v55 = vld [vmem:[#allocation3 + $0x4] ss:$20 sps:$4 sm:$0xff]   ;;  %v16069_v17 = vld [vmem:[#allocation3] ss:$20 sps:$4 sm:$0xff]   ;;  %v14278_v15 = vpack.c.bf16 %v8849_v18, %v8849_v18  ;;  %8601 = vst [vmem:[#allocation3 + $0x40] sm:$0xf] %v14222_v43  ;;  %v14566_v20 = vpop.f32.mrf.mxu0 }
 0x623   :  { %8830 = vst [vmem:[#allocation3 + $0x34] sm:$0xf] %v14259_v57  ;;  %9623 = vmatprep.mubr.bf16.mxu1 %v16066_v55  ;;  %v8735_v25 = vld [vmem:[#allocation2 + $0x21] sm:$0xff]  ;;  %8373 = vst [vmem:[#allocation2 + $0x38] sm:$0xff] %v8314_v16  ;;  %v8205_v45 = vadd.f32 %v14565_v63, %v17681_v51  ;;  %v17713_v47 = vpop.f32.mrf.mxu1  ;;  %v14244_v30 = vpack.c.bf16 %v8314_v16, %v8314_v16  ;;  %v16105_v63 = vld [vmem:[%s18351_s11 + $0x118] sm:$0xff]  }
 0x624   :  { %v8391_v41 = vld [vmem:[#allocation2 + $0x26] sm:$0xff]  ;;  %8945 = vst [vmem:[#allocation3 + $0x38] sm:$0xf] %v14278_v15  ;;  %9624 = vmatmul.mubr.bf16.vlgmr.msra.gmra.mxu1 %v16069_v17  ;;  %v14260_v11 = vpack.c.bf16 %v8735_v25, %v8735_v25  ;;  %v14567_v3 = vpop.f32.mrf.mxu0 }
 0x625   :  { %v8506_v32 = vld [vmem:[#allocation2 + $0x27] sm:$0xff]  ;;  %v14204_v44 = vpack.c.bf16 %v8391_v41, %v8391_v41  ;;  %15370 = vmatpush3.bf16.msra.mxu1 %v17675_v23  ;;  %v8317_v42 = vadd.f32 %v17688_v46, %v8205_v45  ;;  %v14568_v27 = vadd.f32 %v14567_v3, %v14566_v20  ;;  %v17717_v52 = vpop.f32.mrf.mxu1  ;;  %8719 = vst [vmem:[#allocation3 + $0x80] sm:$0xf] %v14244_v30 }
 0x626   :  { %v14223_v13 = vpack.c.bf16 %v8506_v32, %v8506_v32  ;;  %v8850_v5 = vld [vmem:[#allocation2 + $0x22] sm:$0xff]  ;;  %15371 = vmatprep.subr.bf16.mxu1 %v16078_v10  ;;  %8831 = vst [vmem:[#allocation3 + $0x48] sm:$0xf] %v14260_v11  ;;  %v14569_v59 = vpop.f32.mrf.mxu0  ;;  %v8392_v23 = vld [vmem:[#allocation2 + $0x2e] sm:$0xff] }
 0x627   :  { %v16072_v7 = vld [vmem:[#allocation3 + $0xc] ss:$20 sps:$4 sm:$0xff]   ;;  %v14279_v38 = vpack.c.bf16 %v8850_v5, %v8850_v5  ;;  %8487 = vst [vmem:[#allocation3 + $0x50] sm:$0xf] %v14204_v44  ;;  %8374 = vst [vmem:[#allocation2 + $0x40] sm:$0xff] %v8317_v42  ;;  %v8210_v46 = vadd.f32 %v14568_v27, %v17681_v51  ;;  %v17723_v28 = vpop.f32.mrf.mxu1  ;;  %v14205_v36 = vpack.c.bf16 %v8392_v23, %v8392_v23 }
 0x628   :  { %8602 = vst [vmem:[#allocation3 + $0x54] sm:$0xf] %v14223_v13  ;;  %9735 = vmatprep.mubr.bf16.mxu0 %v16072_v7  ;;  %v8507_v62 = vld [vmem:[#allocation2 + $0x2f] sm:$0xff]  ;;  %v14570_v53 = vpop.f32.mrf.mxu0  ;;  %v16077_v60 = vld [vmem:[#allocation3 + $0x28] ss:$20 sps:$4 sm:$0xff]   ;;  %v14245_v1 = vpack.c.bf16 %v8317_v42, %v8317_v42  ;;  %v16095_v26 = vld [vmem:[%s18351_s11 + $0x120] sm:$0xff]  }
 0x629   :  { %v8736_v4 = vld [vmem:[#allocation2 + $0x29] sm:$0xff]  ;;  %8946 = vst [vmem:[#allocation3 + $0x4c] sm:$0xf] %v14279_v38  ;;  %9736 = vmatmul.mubr.bf16.vlgmr.msra.gmra.mxu0 %v16074_v6  ;;  %v14224_v50 = vpack.c.bf16 %v8507_v62, %v8507_v62  ;;  %15372 = vmatpush3.bf16.msra.mxu1 %v16078_v10  ;;  %v8322_v9 = vadd.f32 %v17694_v24, %v8210_v46  ;;  %v15368_v48 = vpop.f32.mrf.mxu1  ;;  %8488 = vst [vmem:[#allocation3 + $0x64] sm:$0xf] %v14205_v36 }
 0x62a   :  { %v14261_v14 = vpack.c.bf16 %v8736_v4, %v8736_v4  ;;  %v8851_v31 = vld [vmem:[#allocation2 + $0x2a] sm:$0xff]  ;;  %v14571_v35 = vadd.f32 %v14570_v53, %v14569_v59  ;;  %15373 = vmatprep.subr.bf16.mxu1 %v16088_v19  ;;  %v14572_v49 = vpop.f32.mrf.mxu0  ;;  %v8393_v21 = vld [vmem:[#allocation2 + $0x36] sm:$0xff]  ;;  %8720 = vst [vmem:[#allocation3 + $0x94] sm:$0xf] %v14245_v1 }
 0x62b   :  { %v16075_v29 = vld [vmem:[#allocation3 + $0x2c] ss:$20 sps:$4 sm:$0xff]   ;;  %v14280_v0 = vpack.c.bf16 %v8851_v31, %v8851_v31  ;;  %8603 = vst [vmem:[#allocation3 + $0x68] sm:$0xf] %v14224_v50  ;;  %v8737_v40 = vld [vmem:[#allocation2 + $0x31] sm:$0xff]  ;;  %8375 = vst [vmem:[#allocation2 + $0x48] sm:$0xff] %v8322_v9  ;;  %v14206_v33 = vpack.c.bf16 %v8393_v21, %v8393_v21  ;;  %v14246_v17 = vpack.c.bf16 %v8322_v9, %v8322_v9 }
 0x62c   :  { %8832 = vst [vmem:[#allocation3 + $0x5c] sm:$0xf] %v14261_v14  ;;  %9631 = vmatprep.mubr.bf16.mxu1 %v16075_v29  ;;  %v8508_v54 = vld [vmem:[#allocation2 + $0x37] sm:$0xff]  ;;  %v8213_v24 = vadd.f32 %v14571_v35, %v17681_v51  ;;  %v14262_v39 = vpack.c.bf16 %v8737_v40, %v8737_v40  ;;  %v14573_v18 = vpop.f32.mrf.mxu0  ;;  %v16081_v55 = vld [vmem:[#allocation3 + $0x30] ss:$20 sps:$4 sm:$0xff]  }
 0x62d   :  { %8947 = vst [vmem:[#allocation3 + $0x60] sm:$0xf] %v14280_v0  ;;  %9632 = vmatmul.mubr.bf16.gmra.mxu1 %v16077_v60  ;;  %v14225_v43 = vpack.c.bf16 %v8508_v54, %v8508_v54  ;;  %v8852_v57 = vld [vmem:[#allocation2 + $0x32] sm:$0xff]  ;;  %v14574_v16 = vadd.f32 %v14573_v18, %v14572_v49  ;;  %8489 = vst [vmem:[#allocation3 + $0x78] sm:$0xf] %v14206_v33  ;;  %v16122_v0 = vld [vmem:[%s18351_s11 + $0x108] sm:$0xff]  }
 0x62e   :  { %v16079_v61 = vld [vmem:[#allocation3 + $0x34] ss:$20 sps:$4 sm:$0xff]   ;;  %15374 = vmatpush3.bf16.msra.mxu1 %v16088_v19  ;;  %v14281_v22 = vpack.c.bf16 %v8852_v57, %v8852_v57  ;;  %v8325_v15 = vadd.f32 %v17699_v56, %v8213_v24  ;;  %8833 = vst [vmem:[#allocation3 + $0x70] sm:$0xf] %v14262_v39  ;;  %v14575_v10 = vpop.f32.mrf.mxu0  ;;  %v8394_v20 = vld [vmem:[#allocation2 + $0x3e] sm:$0xff] }
 0x62f   :  { %8604 = vst [vmem:[#allocation3 + $0x7c] sm:$0xf] %v14225_v43  ;;  %15375 = vmatprep.subr.bf16.mxu1 %v16095_v26  ;;  %9743 = vmatprep.mubr.bf16.mxu0 %v16079_v61  ;;  %v8509_v25 = vld [vmem:[#allocation2 + $0x3f] sm:$0xff]  ;;  %8721 = vst [vmem:[#allocation3 + $0xa8] sm:$0xf] %v14246_v17  ;;  %v8218_v32 = vadd.f32 %v14574_v16, %v17681_v51  ;;  %v14207_v56 = vpack.c.bf16 %v8394_v20, %v8394_v20  ;;  %v16112_v42 = vld [vmem:[%s18351_s11 + $0x110] sm:$0xff]  }
 0x630   :  { %v8738_v41 = vld [vmem:[#allocation2 + $0x39] sm:$0xff]  ;;  %8948 = vst [vmem:[#allocation3 + $0x74] sm:$0xf] %v14281_v22  ;;  %8376 = vst [vmem:[#allocation2 + $0x50] sm:$0xff] %v8325_v15  ;;  %v14226_v45 = vpack.c.bf16 %v8509_v25, %v8509_v25  ;;  %v14576_v13 = vpop.f32.mrf.mxu0  ;;  %v16082_v5 = vld [vmem:[#allocation3 + $0x50] ss:$20 sps:$4 sm:$0xff]   ;;  %v14247_v7 = vpack.c.bf16 %v8325_v15, %v8325_v15 }
 0x631   :  { %9744 = vmatmul.mubr.bf16.gmra.mxu0 %v16081_v55  ;;  %v14263_v11 = vpack.c.bf16 %v8738_v41, %v8738_v41  ;;  %v8853_v44 = vld [vmem:[#allocation2 + $0x3a] sm:$0xff]  ;;  %v8330_v30 = vadd.f32 %v17691_v37, %v8218_v32  ;;  %v14577_v38 = vadd.f32 %v14576_v13, %v14575_v10  ;;  %8490 = vst [vmem:[#allocation3 + $0x8c] sm:$0xf] %v14207_v56 }
 0x632   :  { %v16084_v3 = vld [vmem:[#allocation3 + $0x54] ss:$20 sps:$4 sm:$0xff]   ;;  %15376 = vmatpush3.bf16.msra.mxu1 %v16095_v26  ;;  %v14282_v6 = vpack.c.bf16 %v8853_v44, %v8853_v44  ;;  %8605 = vst [vmem:[#allocation3 + $0x90] sm:$0xf] %v14226_v45  ;;  %v14578_v27 = vpop.f32.mrf.mxu0  ;;  %8722 = vst [vmem:[#allocation3 + $0xbc] sm:$0xf] %v14247_v7 }
 0x633   :  { %8834 = vst [vmem:[#allocation3 + $0x84] sm:$0xf] %v14263_v11  ;;  %15377 = vmatprep.subr.bf16.mxu1 %v16105_v63  ;;  %9639 = vmatprep.mubr.bf16.mxu1 %v16084_v3  ;;  %v8739_v19 = vld [vmem:[#allocation2 + $0x41] sm:$0xff]  ;;  %8377 = vst [vmem:[#allocation2 + $0x58] sm:$0xff] %v8330_v30  ;;  %v8221_v62 = vadd.f32 %v14577_v38, %v17681_v51  ;;  %v16085_v14 = vld [vmem:[#allocation3 + $0x58] ss:$20 sps:$4 sm:$0xff]   ;;  %v14248_v53 = vpack.c.bf16 %v8330_v30, %v8330_v30 }
 0x634   :  { %v8395_v59 = vld [vmem:[#allocation2 + $0x46] sm:$0xff]  ;;  %8949 = vst [vmem:[#allocation3 + $0x88] sm:$0xf] %v14282_v6  ;;  %v14264_v37 = vpack.c.bf16 %v8739_v19, %v8739_v19  ;;  %v14579_v50 = vpop.f32.mrf.mxu0  ;;  %v16092_v32 = vld [vmem:[#allocation3 + $0x80] ss:$20 sps:$4 sm:$0xff]  }
 0x635   :  { %v8510_v23 = vld [vmem:[#allocation2 + $0x47] sm:$0xff]  ;;  %9640 = vmatmul.mubr.bf16.gmra.mxu1 %v16082_v5  ;;  %v14208_v4 = vpack.c.bf16 %v8395_v59, %v8395_v59  ;;  %v16087_v31 = vld [vmem:[#allocation3 + $0x5c] ss:$20 sps:$4 sm:$0xff]   ;;  %v8333_v60 = vadd.f32 %v17696_v12, %v8221_v62  ;;  %v14580_v1 = vadd.f32 %v14579_v50, %v14578_v27  ;;  %8723 = vst [vmem:[#allocation3 + $0xd0] sm:$0xf] %v14248_v53 }
 0x636   :  { %v14227_v46 = vpack.c.bf16 %v8510_v23, %v8510_v23  ;;  %v8854_v36 = vld [vmem:[#allocation2 + $0x42] sm:$0xff]  ;;  %15378 = vmatpush3.bf16.msra.mxu1 %v16105_v63  ;;  %8835 = vst [vmem:[#allocation3 + $0x98] sm:$0xf] %v14264_v37  ;;  %v14581_v9 = vpop.f32.mrf.mxu0  ;;  %9751 = vmatprep.mubr.bf16.mxu0 %v16087_v31 }
 0x637   :  { %v14283_v29 = vpack.c.bf16 %v8854_v36, %v8854_v36  ;;  %8491 = vst [vmem:[#allocation3 + $0xa0] sm:$0xf] %v14208_v4  ;;  %15379 = vmatprep.subr.bf16.mxu1 %v16112_v42  ;;  %v8396_v35 = vld [vmem:[#allocation2 + $0x4e] sm:$0xff]  ;;  %8378 = vst [vmem:[#allocation2 + $0x60] sm:$0xff] %v8333_v60  ;;  %v8226_v49 = vadd.f32 %v14580_v1, %v17681_v51  ;;  %v14249_v43 = vpack.c.bf16 %v8333_v60, %v8333_v60  ;;  %v16133_v55 = vld [vmem:[%s18351_s11 + $0x100] sm:$0xff]  }
 0x638   :  { %8606 = vst [vmem:[#allocation3 + $0xa4] sm:$0xf] %v14227_v46  ;;  %v8511_v48 = vld [vmem:[#allocation2 + $0x4f] sm:$0xff]  ;;  %v14209_v12 = vpack.c.bf16 %v8396_v35, %v8396_v35  ;;  %v14582_v24 = vpop.f32.mrf.mxu0 }
 0x639   :  { %v8740_v26 = vld [vmem:[#allocation2 + $0x49] sm:$0xff]  ;;  %8950 = vst [vmem:[#allocation3 + $0x9c] sm:$0xf] %v14283_v29  ;;  %9752 = vmatmul.mubr.bf16.gmra.mxu0 %v16085_v14  ;;  %v14228_v40 = vpack.c.bf16 %v8511_v48, %v8511_v48  ;;  %v8338_v18 = vadd.f32 %v17704_v2, %v8226_v49  ;;  %v14583_v61 = vadd.f32 %v14582_v24, %v14581_v9  ;;  %8724 = vst [vmem:[#allocation3 + $0xe4] sm:$0xf] %v14249_v43 }
 0x63a   :  { %v14265_v21 = vpack.c.bf16 %v8740_v26, %v8740_v26  ;;  %v8855_v54 = vld [vmem:[#allocation2 + $0x4a] sm:$0xff]  ;;  %15380 = vmatpush3.bf16.msra.mxu1 %v16112_v42  ;;  %8492 = vst [vmem:[#allocation3 + $0xb4] sm:$0xf] %v14209_v12  ;;  %v14584_v17 = vpop.f32.mrf.mxu0  ;;  %v8397_v15 = vld [vmem:[#allocation2 + $0x56] sm:$0xff] }
 0x63b   :  { %v16089_v39 = vld [vmem:[#allocation3 + $0x78] ss:$20 sps:$4 sm:$0xff]   ;;  %v16091_v33 = vld [vmem:[#allocation3 + $0x7c] ss:$20 sps:$4 sm:$0xff]   ;;  %v14284_v57 = vpack.c.bf16 %v8855_v54, %v8855_v54  ;;  %8607 = vst [vmem:[#allocation3 + $0xb8] sm:$0xf] %v14228_v40  ;;  %15381 = vmatprep.subr.bf16.mxu1 %v16122_v0  ;;  %v8229_v63 = vadd.f32 %v14583_v61, %v17681_v51  ;;  %v14210_v10 = vpack.c.bf16 %v8397_v15, %v8397_v15 }
 0x63c   :  { %8836 = vst [vmem:[#allocation3 + $0xac] sm:$0xf] %v14265_v21  ;;  %9647 = vmatprep.mubr.bf16.mxu1 %v16091_v33  ;;  %v8741_v22 = vld [vmem:[#allocation2 + $0x51] sm:$0xff]  ;;  %8379 = vst [vmem:[#allocation2 + $0x68] sm:$0xff] %v8338_v18  ;;  %v14585_v41 = vpop.f32.mrf.mxu0  ;;  %v14250_v45 = vpack.c.bf16 %v8338_v18, %v8338_v18  ;;  %v16099_v9 = vld [vmem:[#allocation3 + $0xa8] ss:$20 sps:$4 sm:$0xff]  }
 0x63d   :  { %v8512_v16 = vld [vmem:[#allocation2 + $0x57] sm:$0xff]  ;;  %8951 = vst [vmem:[#allocation3 + $0xb0] sm:$0xf] %v14284_v57  ;;  %9648 = vmatmul.mubr.bf16.gmra.mxu1 %v16089_v39  ;;  %v14266_v2 = vpack.c.bf16 %v8741_v22, %v8741_v22  ;;  %v8341_v44 = vadd.f32 %v17713_v47, %v8229_v63  ;;  %v14586_v13 = vadd.f32 %v14585_v41, %v14584_v17  ;;  %8493 = vst [vmem:[#allocation3 + $0xc8] sm:$0xf] %v14210_v10 }
 0x63e   :  { %v14229_v20 = vpack.c.bf16 %v8512_v16, %v8512_v16  ;;  %v8856_v25 = vld [vmem:[#allocation2 + $0x52] sm:$0xff]  ;;  %15382 = vmatpush3.bf16.msra.mxu1 %v16122_v0  ;;  %v14587_v5 = vpop.f32.mrf.mxu0  ;;  %v8398_v3 = vld [vmem:[#allocation2 + $0x5e] sm:$0xff]  ;;  %8725 = vst [vmem:[#allocation3 + $0xf8] sm:$0xf] %v14250_v45 }
 0x63f   :  { %v16094_v56 = vld [vmem:[#allocation3 + $0x84] ss:$20 sps:$4 sm:$0xff]   ;;  %v14285_v11 = vpack.c.bf16 %v8856_v25, %v8856_v25  ;;  %8837 = vst [vmem:[#allocation3 + $0xc0] sm:$0xf] %v14266_v2  ;;  %15383 = vmatprep.subr.bf16.mxu1 %v16133_v55  ;;  %8380 = vst [vmem:[#allocation2 + $0x70] sm:$0xff] %v8341_v44  ;;  %v8234_v30 = vadd.f32 %v14586_v13, %v17681_v51  ;;  %v14211_v38 = vpack.c.bf16 %v8398_v3, %v8398_v3 }
 0x640   :  { %8608 = vst [vmem:[#allocation3 + $0xcc] sm:$0xf] %v14229_v20  ;;  %9759 = vmatprep.mubr.bf16.mxu0 %v16094_v56  ;;  %v8513_v7 = vld [vmem:[#allocation2 + $0x5f] sm:$0xff]  ;;  %v14588_v19 = vpop.f32.mrf.mxu0  ;;  %v14251_v62 = vpack.c.bf16 %v8341_v44, %v8341_v44 }
 0x641   :  { %v8742_v6 = vld [vmem:[#allocation2 + $0x59] sm:$0xff]  ;;  %8952 = vst [vmem:[#allocation3 + $0xc4] sm:$0xf] %v14285_v11  ;;  %9760 = vmatmul.mubr.bf16.gmra.mxu0 %v16092_v32  ;;  %v14230_v42 = vpack.c.bf16 %v8513_v7, %v8513_v7  ;;  %v8346_v4 = vadd.f32 %v17701_v58, %v8234_v30  ;;  %v14589_v46 = vadd.f32 %v14588_v19, %v14587_v5  ;;  %8494 = vst [vmem:[#allocation3 + $0xdc] sm:$0xf] %v14211_v38 }
 0x642   :  { %v14267_v27 = vpack.c.bf16 %v8742_v6, %v8742_v6  ;;  %v8857_v47 = vld [vmem:[#allocation2 + $0x5a] sm:$0xff]  ;;  %15384 = vmatpush3.bf16.msra.mxu1 %v16133_v55  ;;  %v14590_v36 = vpop.f32.mrf.mxu0  ;;  %8726 = vst [vmem:[#allocation3 + $0x10c] sm:$0xf] %v14251_v62  ;;  %v16106_v11 = vld [vmem:[#allocation3 + $0xd0] ss:$20 sps:$4 sm:$0xff]  }
 0x643   :  { %v16096_v59 = vld [vmem:[#allocation3 + $0xa0] ss:$20 sps:$4 sm:$0xff]   ;;  %v16098_v23 = vld [vmem:[#allocation3 + $0xa4] ss:$20 sps:$4 sm:$0xff]   ;;  %v14286_v37 = vpack.c.bf16 %v8857_v47, %v8857_v47  ;;  %8609 = vst [vmem:[#allocation3 + $0xe0] sm:$0xf] %v14230_v42  ;;  %15405 = vmatprep.subr.bf16.mxu1 %v17591_v34  ;;  %v8237_v53 = vadd.f32 %v14589_v46, %v17681_v51  ;;  %v14252_v48 = vpack.c.bf16 %v8346_v4, %v8346_v4 }
 0x644   :  { %8838 = vst [vmem:[#allocation3 + $0xd4] sm:$0xf] %v14267_v27  ;;  %9655 = vmatprep.mubr.bf16.mxu1 %v16098_v23  ;;  %v8743_v50 = vld [vmem:[#allocation2 + $0x61] sm:$0xff]  ;;  %8381 = vst [vmem:[#allocation2 + $0x78] sm:$0xff] %v8346_v4  ;;  %v14591_v0 = vpop.f32.mrf.mxu0 }
 0x645   :  { %v8399_v14 = vld [vmem:[#allocation2 + $0x66] sm:$0xff]  ;;  %8953 = vst [vmem:[#allocation3 + $0xd8] sm:$0xf] %v14286_v37  ;;  %9656 = vmatmul.mubr.bf16.gmra.mxu1 %v16096_v59  ;;  %v14268_v29 = vpack.c.bf16 %v8743_v50, %v8743_v50  ;;  %v8349_v26 = vadd.f32 %v17707_v8, %v8237_v53  ;;  %v14592_v49 = vadd.f32 %v14591_v0, %v14590_v36  ;;  %8727 = vst [vmem:[#allocation3 + $0x120] sm:$0xf] %v14252_v48 }
 0x646   :  { %v8514_v31 = vld [vmem:[#allocation2 + $0x67] sm:$0xff]  ;;  %v14212_v60 = vpack.c.bf16 %v8399_v14, %v8399_v14  ;;  %v14593_v12 = vpop.f32.mrf.mxu0  ;;  %v8515_v21 = vld [vmem:[#allocation2 + $0x6f] sm:$0xff] }
 0x647   :  { %v14231_v58 = vpack.c.bf16 %v8514_v31, %v8514_v31  ;;  %v8858_v1 = vld [vmem:[#allocation2 + $0x62] sm:$0xff]  ;;  %8839 = vst [vmem:[#allocation3 + $0xe8] sm:$0xf] %v14268_v29  ;;  %v8400_v40 = vld [vmem:[#allocation2 + $0x6e] sm:$0xff]  ;;  %8382 = vst [vmem:[#allocation2 + $0x80] sm:$0xff] %v8349_v26  ;;  %v8242_v24 = vadd.f32 %v14592_v49, %v17681_v51  ;;  %v14232_v33 = vpack.c.bf16 %v8515_v21, %v8515_v21 }
 0x648   :  { %v16101_v35 = vld [vmem:[#allocation3 + $0xac] ss:$20 sps:$4 sm:$0xff]   ;;  %v14287_v34 = vpack.c.bf16 %v8858_v1, %v8858_v1  ;;  %8495 = vst [vmem:[#allocation3 + $0xf0] sm:$0xf] %v14212_v60  ;;  %v14213_v39 = vpack.c.bf16 %v8400_v40, %v8400_v40  ;;  %v14594_v8 = vpop.f32.mrf.mxu0  ;;  %v16102_v18 = vld [vmem:[#allocation3 + $0xc8] ss:$20 sps:$4 sm:$0xff]   ;;  %v14253_v55 = vpack.c.bf16 %v8349_v26, %v8349_v26 }
 0x649   :  { %8610 = vst [vmem:[#allocation3 + $0xf4] sm:$0xf] %v14231_v58  ;;  %9767 = vmatprep.mubr.bf16.mxu0 %v16101_v35  ;;  %v8744_v54 = vld [vmem:[#allocation2 + $0x69] sm:$0xff]  ;;  %v8354_v22 = vadd.f32 %v17723_v28, %v8242_v24  ;;  %v14595_v15 = vadd.f32 %v14594_v8, %v14593_v12  ;;  %8611 = vst [vmem:[#allocation3 + $0x108] sm:$0xf] %v14232_v33  ;;  %v8356_v28 = vpop.f32.mrf.mxu1 }
 0x64a   :  { %8954 = vst [vmem:[#allocation3 + $0xec] sm:$0xf] %v14287_v34  ;;  %9768 = vmatmul.mubr.bf16.gmra.mxu0 %v16099_v9  ;;  %v14269_v43 = vpack.c.bf16 %v8744_v54, %v8744_v54  ;;  %v8859_v57 = vld [vmem:[#allocation2 + $0x6a] sm:$0xff]  ;;  %8496 = vst [vmem:[#allocation3 + $0x104] sm:$0xf] %v14213_v39  ;;  %v14596_v16 = vpop.f32.mrf.mxu0 }
 0x64b   :  { %v16104_v61 = vld [vmem:[#allocation3 + $0xcc] ss:$20 sps:$4 sm:$0xff]   ;;  %v14288_v17 = vpack.c.bf16 %v8859_v57, %v8859_v57  ;;  %v8745_v63 = vld [vmem:[#allocation2 + $0x71] sm:$0xff]  ;;  %8728 = vst [vmem:[#allocation3 + $0x134] sm:$0xf] %v14253_v55  ;;  %8383 = vst [vmem:[#allocation2 + $0x88] sm:$0xff] %v8354_v22  ;;  %v8245_v20 = vadd.f32 %v14595_v15, %v17681_v51  ;;  %v14254_v13 = vpack.c.bf16 %v8354_v22, %v8354_v22 }
 0x64c   :  { %8840 = vst [vmem:[#allocation3 + $0xfc] sm:$0xf] %v14269_v43  ;;  %9663 = vmatprep.mubr.bf16.mxu1 %v16104_v61  ;;  %v8401_v2 = vld [vmem:[#allocation2 + $0x76] sm:$0xff]  ;;  %v14270_v25 = vpack.c.bf16 %v8745_v63, %v8745_v63  ;;  %v14597_v45 = vpop.f32.mrf.mxu0 }
 0x64d   :  { %v8516_v10 = vld [vmem:[#allocation2 + $0x77] sm:$0xff]  ;;  %8955 = vst [vmem:[#allocation3 + $0x100] sm:$0xf] %v14288_v17  ;;  %9664 = vmatmul.mubr.bf16.gmra.mxu1 %v16102_v18  ;;  %v14214_v41 = vpack.c.bf16 %v8401_v2, %v8401_v2  ;;  %v8357_v3 = vadd.f32 %v8356_v28, %v8245_v20  ;;  %v14598_v7 = vadd.f32 %v14597_v45, %v14596_v16  ;;  %8729 = vst [vmem:[#allocation3 + $0x148] sm:$0xf] %v14254_v13 }
 0x64e   :  { %v14233_v32 = vpack.c.bf16 %v8516_v10, %v8516_v10  ;;  %v8860_v56 = vld [vmem:[#allocation2 + $0x72] sm:$0xff]  ;;  %8841 = vst [vmem:[#allocation3 + $0x110] sm:$0xf] %v14270_v25  ;;  %v14599_v6 = vpop.f32.mrf.mxu0  ;;  %v8402_v30 = vld [vmem:[#allocation2 + $0x7e] sm:$0xff] }
 0x64f   :  { %v16108_v44 = vld [vmem:[#allocation3 + $0xd4] ss:$20 sps:$4 sm:$0xff]   ;;  %v14289_v5 = vpack.c.bf16 %v8860_v56, %v8860_v56  ;;  %8497 = vst [vmem:[#allocation3 + $0x118] sm:$0xf] %v14214_v41  ;;  %v8517_v38 = vld [vmem:[#allocation2 + $0x7f] sm:$0xff]  ;;  %8384 = vst [vmem:[#allocation2 + $0x90] sm:$0xff] %v8357_v3  ;;  %v8250_v27 = vadd.f32 %v14598_v7, %v17681_v51  ;;  %v14215_v47 = vpack.c.bf16 %v8402_v30, %v8402_v30 }
 0x650   :  { %8612 = vst [vmem:[#allocation3 + $0x11c] sm:$0xf] %v14233_v32  ;;  %9775 = vmatprep.mubr.bf16.mxu0 %v16108_v44  ;;  %v8746_v42 = vld [vmem:[#allocation2 + $0x79] sm:$0xff]  ;;  %v14234_v19 = vpack.c.bf16 %v8517_v38, %v8517_v38  ;;  %v14600_v62 = vpop.f32.mrf.mxu0  ;;  %v16111_v4 = vld [vmem:[#allocation3 + $0xf4] ss:$20 sps:$4 sm:$0xff]   ;;  %v14255_v46 = vpack.c.bf16 %v8357_v3, %v8357_v3 }
 0x651   :  { %8956 = vst [vmem:[#allocation3 + $0x114] sm:$0xf] %v14289_v5  ;;  %v14271_v59 = vpack.c.bf16 %v8746_v42, %v8746_v42  ;;  %v8861_v23 = vld [vmem:[#allocation2 + $0x7a] sm:$0xff]  ;;  %v16109_v37 = vld [vmem:[#allocation3 + $0xf0] ss:$20 sps:$4 sm:$0xff]   ;;  %v8362_v50 = vadd.f32 %v17717_v52, %v8250_v27  ;;  %9671 = vmatprep.mubr.bf16.mxu1 %v16111_v4  ;;  %v16147_v4 = vld [vmem:[#allocation9 + $0x30] sm:$0xff]  }
 0x652   :  { %9776 = vmatmul.mubr.bf16.gmra.mxu0 %v16106_v11  ;;  %v14290_v36 = vpack.c.bf16 %v8861_v23, %v8861_v23  ;;  %8498 = vst [vmem:[#allocation3 + $0x12c] sm:$0xf] %v14215_v47  ;;  %8613 = vst [vmem:[#allocation3 + $0x130] sm:$0xf] %v14234_v19  ;;  %v8747_v14 = vld [vmem:[#allocation2 + $0x81] sm:$0xff]  ;;  %v16144_v23 = vld [vmem:[#allocation9 + $0x78] sm:$0xff]  }
 0x653   :  { %8842 = vst [vmem:[#allocation3 + $0x124] sm:$0xf] %v14271_v59  ;;  %v8403_v31 = vld [vmem:[#allocation2 + $0x86] sm:$0xff]  ;;  %8730 = vst [vmem:[#allocation3 + $0x15c] sm:$0xf] %v14255_v46  ;;  %v14272_v51 = vpack.c.bf16 %v8747_v14, %v8747_v14  ;;  %v17761_v59 = vld [vmem:[#allocation2 + $0x138] sm:$0xff]  ;;  %14790 = vmatprep.subr.bf16.mxu0 %v16144_v23 }
 0x654   :  { %v8518_v53 = vld [vmem:[#allocation2 + $0x87] sm:$0xff]  ;;  %8957 = vst [vmem:[#allocation3 + $0x128] sm:$0xf] %v14290_v36  ;;  %8385 = vst [vmem:[#allocation2 + $0x98] sm:$0x3f] %v8362_v50  ;;  %v14216_v29 = vpack.c.bf16 %v8403_v31, %v8403_v31  ;;  %v16145_v62 = vld [vmem:[#allocation9 + $0x38] sm:$0xff]  }
 0x655   :  { %9672 = vmatmul.mubr.bf16.gmra.mxu1 %v16109_v37  ;;  %v14235_v60 = vpack.c.bf16 %v8518_v53, %v8518_v53  ;;  %v8862_v58 = vld [vmem:[#allocation2 + $0x82] sm:$0xff]  ;;  %v16113_v1 = vld [vmem:[#allocation3 + $0xf8] ss:$20 sps:$4 sm:$0xff]   ;;  %v16115_v0 = vld [vmem:[#allocation3 + $0xfc] ss:$20 sps:$4 sm:$0xff]   ;;  %14791 = vmatpush3.bf16.msra.mxu0 %v16145_v62 }
 0x656   :  { %v14291_v9 = vpack.c.bf16 %v8862_v58, %v8862_v58  ;;  %8843 = vst [vmem:[#allocation3 + $0x138] sm:$0xf] %v14272_v51  ;;  %8499 = vst [vmem:[#allocation3 + $0x140] sm:$0xf] %v14216_v29  ;;  %9783 = vmatprep.mubr.bf16.mxu0 %v16115_v0  ;;  %v8404_v52 = vld [vmem:[#allocation2 + $0x8e] sm:$0xff]  ;;  %v16148_v46 = vld [vmem:[#allocation9 + $0x68] sm:$0xff]  }
 0x657   :  { %8614 = vst [vmem:[#allocation3 + $0x144] sm:$0xf] %v14235_v60  ;;  %v8519_v35 = vld [vmem:[#allocation2 + $0x8f] sm:$0xff]  ;;  %v14217_v34 = vpack.c.bf16 %v8404_v52, %v8404_v52  ;;  %v16137_v6 = vld [vmem:[#allocation3 + $0x88] ss:$20 sps:$4 sm:$0xff]   ;;  %v16149_v36 = vld [vmem:[#allocation9 + $0x28] sm:$0xff]   ;;  %v17768_v60 = vpack.c.bf16 %v17761_v59, %v17761_v59 }
 0x658   :  { %v8748_v48 = vld [vmem:[#allocation2 + $0x89] sm:$0xff]  ;;  %8958 = vst [vmem:[#allocation3 + $0x13c] sm:$0xf] %v14291_v9  ;;  %v14236_v26 = vpack.c.bf16 %v8519_v35, %v8519_v35  ;;  %v16119_v17 = vld [vmem:[#allocation3 + $0x120] ss:$20 sps:$4 sm:$0xff]   ;;  %v16150_v50 = vld [vmem:[#allocation9 + $0x60] sm:$0xff]  }
 0x659   :  { %v14273_v49 = vpack.c.bf16 %v8748_v48, %v8748_v48  ;;  %v8863_v12 = vld [vmem:[#allocation2 + $0x8a] sm:$0xff]  ;;  %8500 = vst [vmem:[#allocation3 + $0x154] sm:$0xf] %v14217_v34  ;;  %v16136_v7 = vld [vmem:[#allocation3 + $0x60] ss:$20 sps:$4 sm:$0xff]   ;;  %v16151_v14 = vld [vmem:[#allocation9 + $0x20] sm:$0xff]  }
 0x65a   :  { %9784 = vmatmul.mubr.bf16.gmra.mxu0 %v16113_v1  ;;  %v16116_v40 = vld [vmem:[#allocation3 + $0x118] ss:$20 sps:$4 sm:$0xff]   ;;  %v16118_v21 = vld [vmem:[#allocation3 + $0x11c] ss:$20 sps:$4 sm:$0xff]   ;;  %v14292_v54 = vpack.c.bf16 %v8863_v12, %v8863_v12  ;;  %8615 = vst [vmem:[#allocation3 + $0x158] sm:$0xf] %v14236_v26 }
 0x65b   :  { %8844 = vst [vmem:[#allocation3 + $0x14c] sm:$0xf] %v14273_v49  ;;  %9679 = vmatprep.mubr.bf16.mxu1 %v16118_v21  ;;  %v8405_v24 = vld [vmem:[#allocation2 + $0x96] sm:$0x3f]  ;;  %v16128_v32 = vld [vmem:[#allocation3 + $0x148] ss:$20 sps:$4 sm:$0xff]  }
 0x65c   :  { %v8520_v39 = vld [vmem:[#allocation2 + $0x97] sm:$0x3f]  ;;  %8959 = vst [vmem:[#allocation3 + $0x150] sm:$0xf] %v14292_v54  ;;  %v14218_v43 = vpack.c.bf16 %v8405_v24, %v8405_v24  ;;  %v16134_v13 = vld [vmem:[#allocation3 + $0x10] ss:$20 sps:$4 sm:$0xff]  }
 0x65d   :  { %v8749_v33 = vld [vmem:[#allocation2 + $0x91] sm:$0xff]  ;;  %9680 = vmatmul.mubr.bf16.gmra.mxu1 %v16116_v40  ;;  %v14237_v57 = vpack.c.bf16 %v8520_v39, %v8520_v39  ;;  %v8750_v61 = vld [vmem:[#allocation2 + $0x99] sm:$0x3f]  ;;  %v16146_v37 = vld [vmem:[#allocation9 + $0x70] sm:$0xff]   ;;  %18386 = vst [vmem:[#allocation15_spill] sm:$0xff] %v17768_v60 }
 0x65e   :  { %v14274_v8 = vpack.c.bf16 %v8749_v33, %v8749_v33  ;;  %v8635_v18 = vld [vmem:[#allocation2 + $0x98] sm:$0x3f]  ;;  %v14275_v16 = vpack.c.bf16 %v8750_v61, %v8750_v61  ;;  %8501 = vst [vmem:[#allocation3 + $0x168] sm:$0x7] %v14218_v43  ;;  %v16138_v30 = vld [vmem:[#allocation3 + $0xb0] ss:$20 sps:$4 sm:$0xff]   ;;  %14792 = vmatprep.subr.bf16.mxu0 %v16146_v37 }
 0x65f   :  { %v8864_v55 = vld [vmem:[#allocation2 + $0x92] sm:$0xff]  ;;  %v14256_v15 = vpack.c.bf16 %v8635_v18, %v8635_v18  ;;  %8616 = vst [vmem:[#allocation3 + $0x16c] sm:$0x7] %v14237_v57  ;;  %v8865_v2 = vld [vmem:[#allocation2 + $0x9a] sm:$0x3f]  ;;  %14793 = vmatpush3.bf16.msra.mxu0 %v16147_v4  ;;  %v16157_v29 = vld [vmem:[#allocation9 + $0xb0] sm:$0xff]  }
 0x660   :  { %v16121_v22 = vld [vmem:[#allocation3 + $0x124] ss:$20 sps:$4 sm:$0xff]   ;;  %v14293_v63 = vpack.c.bf16 %v8864_v55, %v8864_v55  ;;  %8845 = vst [vmem:[#allocation3 + $0x160] sm:$0xf] %v14274_v8  ;;  %8846 = vst [vmem:[#allocation3 + $0x174] sm:$0x7] %v14275_v16  ;;  %v14294_v10 = vpack.c.bf16 %v8865_v2, %v8865_v2  ;;  %14794 = vmatprep.subr.bf16.mxu0 %v16148_v46 }
 0x661   :  { %9791 = vmatprep.mubr.bf16.mxu0 %v16121_v22  ;;  %8731 = vst [vmem:[#allocation3 + $0x170] sm:$0x7] %v14256_v15  ;;  %v16123_v20 = vld [vmem:[#allocation3 + $0x140] ss:$20 sps:$4 sm:$0xff]   ;;  %v16125_v25 = vld [vmem:[#allocation3 + $0x144] ss:$20 sps:$4 sm:$0xff]  }
 0x662   :  { %8960 = vst [vmem:[#allocation3 + $0x164] sm:$0xf] %v14293_v63  ;;  %9792 = vmatmul.mubr.bf16.gmra.mxu0 %v16119_v17  ;;  %8961 = vst [vmem:[#allocation3 + $0x178] sm:$0x7] %v14294_v10  ;;  %9687 = vmatprep.mubr.bf16.mxu1 %v16125_v25  ;;  %v16135_v3 = vld [vmem:[#allocation3 + $0x38] ss:$20 sps:$4 sm:$0xff]  }
 0x663   :  { %v16139_v38 = vld [vmem:[#allocation3 + $0xd8] ss:$20 sps:$4 sm:$0xff]   ;;  %v16140_v42 = vld [vmem:[#allocation3 + $0x100] ss:$20 sps:$4 sm:$0xff]   ;;  %v16141_v27 = vld [vmem:[#allocation3 + $0x128] ss:$20 sps:$4 sm:$0xff]   ;;  %14795 = vmatpush3.bf16.msra.mxu0 %v16149_v36 }
 0x664   :  { %14796 = vmatprep.subr.bf16.mxu0 %v16150_v50  ;;  %v16152_v31 = vld [vmem:[#allocation9 + $0x58] sm:$0xff]   ;;  %v16155_v58 = vld [vmem:[#allocation9 + $0x50] sm:$0xff]   ;;  %v16158_v1 = vld [vmem:[#allocation9 + $0xa8] sm:$0xff]   ;;  %10015 = vst [vmem:[#allocation3] sm:$0xf] %v17768_v60 }
 0x665   :  { %9688 = vmatmul.mubr.bf16.gmra.mxu1 %v16123_v20  ;;  %v16153_v53 = vld [vmem:[#allocation9 + $0x18] sm:$0xff]   ;;  %v16156_v0 = vld [vmem:[#allocation9 + $0x10] sm:$0xff]   ;;  %v16161_v9 = vld [vmem:[#allocation9 + $0xa0] sm:$0xff]  }
 0x666   :  { %v9016_v41 = vld [vmem:[#allocation3 + $0x168] sm:$0x77]  ;;  %v16154_v51 = vld [vmem:[#allocation9 + $0xb8] sm:$0xff]   ;;  %v16159_v52 = vld [vmem:[#allocation9 + $0x48] sm:$0xff]  }
 0x667   :  { %v13386_v56 = vcombine.high %v9016_v41, %v9016_v41  ;;  %v16130_v28 = vld [vmem:[#allocation3 + $0x14c] ss:$20 sps:$4 sm:$0xff]   ;;  %v13385_v44 = vcombine.low %v9016_v41, %v9016_v41  ;;  %14797 = vmatpush3.bf16.msra.mxu0 %v16151_v14  ;;  %v16162_v35 = vld [vmem:[#allocation9 + $0x98] sm:$0xff]   ;;  %v16163_v34 = vld [vmem:[#allocation9 + $0x40] sm:$0xff]  }
 0x668   :  { %v9017_v45 = vld [vmem:[#allocation3 + $0x170] sm:$0x77]  ;;  %9799 = vmatprep.mubr.bf16.mxu0 %v16130_v28  ;;  %14798 = vmatprep.subr.bf16.mxu0 %v16152_v31  ;;  %v16160_v48 = vld [vmem:[#allocation9 + $0x8] sm:$0xff]   ;;  %v16164_v26 = vld [vmem:[#allocation9] sm:$0xff]  }
 0x669   :  { %v13388_v11 = vcombine.high %v9017_v45, %v9017_v45  ;;  %9695 = vmatprep.mubr.bf16.mxu1 %v13386_v56  ;;  %v13387_v5 = vcombine.low %v9017_v45, %v9017_v45  ;;  %v16142_v47 = vld [vmem:[#allocation3 + $0x150] ss:$20 sps:$4 sm:$0xff]   ;;  %v16143_v19 = vld [vmem:[#allocation3 + $0x178] ss:$0 sps:$4 sm:$0x77]   ;;  %v16165_v49 = vld [vmem:[#allocation9 + $0x90] sm:$0xff]  }
 0x66a   :  { %9800 = vmatmul.mubr.bf16.gmra.mxu0 %v16128_v32  ;;  %v16169_v12 = vld [vmem:[#allocation9 + $0x88] sm:$0xff]   ;;  %v16170_v21 = vld [vmem:[#allocation9 + $0x80] sm:$0xff]  }
 0x66b   :  { %9807 = vmatprep.mubr.bf16.mxu0 %v13388_v11  ;;  %14799 = vmatpush3.bf16.msra.mxu0 %v16153_v53 }
 0x66c   :  { %14800 = vmatprep.subr.bf16.mxu0 %v16155_v58 }
 0x66d   :  { %9696 = vmatmul.mubr.bf16.gmra.mxu1 %v13385_v44 }
 0x66e   :  { %15385 = vmatprep.mubr.bf16.mxu1 %v16134_v13 }
 0x66f   :  { %14801 = vmatpush3.bf16.msra.mxu0 %v16156_v0 }
 0x670   :  { %14802 = vmatprep.subr.bf16.mxu0 %v16159_v52 }
 0x672   :  { %9808 = vmatmul.mubr.bf16.gmra.mxu0 %v13387_v5 }
 0x673   :  { %14803 = vmatpush3.bf16.msra.mxu0 %v16160_v48 }
 0x674   :  { %14804 = vmatprep.subr.bf16.mxu0 %v16163_v34 }
 0x675   :  { %15386 = vmatmul.mubr.bf16.vlgmr.msra.gmra.mxu1 %v16135_v3 }
 0x676   :  { %15389 = vmatprep.mubr.bf16.mxu1 %v16136_v7  ;;  %15406 = vmatpush3.bf16.msra.mxu1 %v16154_v51 }
 0x677   :  { %15407 = vmatprep.subr.bf16.mxu1 %v17761_v59  ;;  %14805 = vmatpush3.bf16.msra.mxu0 %v16164_v26 }
 0x67a   :  { %15408 = vmatpush3.bf16.msra.mxu1 %v16157_v29 }
 0x67b   :  { %15409 = vmatprep.subr.bf16.mxu1 %v17761_v59 }
 0x67d   :  { %15390 = vmatmul.mubr.bf16.gmra.mxu1 %v16137_v6 }
 0x67e   :  { %15393 = vmatprep.mubr.bf16.mxu1 %v16138_v30  ;;  %15410 = vmatpush3.bf16.msra.mxu1 %v16158_v1 }
 0x67f   :  { %15411 = vmatprep.subr.bf16.mxu1 %v17761_v59 }
 0x682   :  { %15412 = vmatpush3.bf16.msra.mxu1 %v16161_v9 }
 0x683   :  { %15413 = vmatprep.subr.bf16.mxu1 %v17761_v59 }
 0x685   :  { %15394 = vmatmul.mubr.bf16.gmra.mxu1 %v16139_v38 }
 0x686   :  { %15397 = vmatprep.mubr.bf16.mxu1 %v16140_v42  ;;  %15414 = vmatpush3.bf16.msra.mxu1 %v16162_v35 }
 0x687   :  { %15415 = vmatprep.subr.bf16.mxu1 %v17761_v59 }
 0x68a   :  { %15416 = vmatpush3.bf16.msra.mxu1 %v16165_v49 }
 0x68b   :  { %15417 = vmatprep.subr.bf16.mxu1 %v17761_v59 }
 0x68d   :  { %15398 = vmatmul.mubr.bf16.gmra.mxu1 %v16141_v27 }
 0x68e   :  { %15401 = vmatprep.mubr.bf16.mxu1 %v16142_v47  ;;  %15418 = vmatpush3.bf16.msra.mxu1 %v16169_v12 }
 0x68f   :  { %15419 = vmatprep.subr.bf16.mxu1 %v17761_v59 }
 0x692   :  { %15420 = vmatpush3.bf16.msra.mxu1 %v16170_v21 }
 0x693   :  { %15433 = vmatprep.subr.bf16.mxu1 %v17761_v59 }
 0x695   :  { %15402 = vmatmul.mubr.bf16.gmra.mxu1 %v16143_v19 }
 0x696   :  { %15421 = vmatprep.mubr.msk.bf16.mxu1 %vm16452_vm0, %v17761_v59 }
 0x6e4   :  { %v14636_v40 = vpop.f32.mrf.mxu1 }
 0x6e6   :  { %v14637_v54 = vpop.f32.mrf.mxu1 }
 0x6e7   :  { %v14638_v24 = vadd.f32 %v14637_v54, %v14636_v40 }
 0x6e8   :  { %v14639_v39 = vpop.f32.mrf.mxu1 }
 0x6e9   :  { %v14712_v33 = vpop.f32.mrf.mxu0 }
 0x6ea   :  { %v14640_v43 = vpop.f32.mrf.mxu1 }
 0x6eb   :  { %v14713_v57 = vpop.f32.mrf.mxu0  ;;  %v14641_v8 = vadd.f32 %v14640_v43, %v14639_v39 }
 0x6ec   :  { %v14714_v18 = vadd.f32 %v14713_v57, %v14712_v33 }
 0x6ed   :  { %v14642_v61 = vpop.f32.mrf.mxu1  ;;  %v14715_v55 = vpop.f32.mrf.mxu0 }
 0x6ee   :  { %v17778_v17 = vadd.f32 %v14714_v18, %v14638_v24 }
 0x6ef   :  { %v14643_v22 = vpop.f32.mrf.mxu1  ;;  %v14716_v15 = vpop.f32.mrf.mxu0 }
 0x6f0   :  { %v17780_v16 = vadd.f32 %v14643_v22, %v14642_v61  ;;  %v14717_v63 = vadd.f32 %v14716_v15, %v14715_v55 }
 0x6f1   :  { %v14645_v2 = vpop.f32.mrf.mxu1  ;;  %v17782_v10 = vpop.f32.mrf.mxu0 }
 0x6f2   :  { %v17784_v20 = vadd.f32 %v14717_v63, %v14641_v8 }
 0x6f3   :  { %v14646_v25 = vpop.f32.mrf.mxu1  ;;  %v17786_v41 = vpop.f32.mrf.mxu0 }
 0x6f4   :  { %v17788_v32 = vadd.f32 %v14646_v25, %v14645_v2 }
 0x6f5   :  { %v14648_v56 = vpop.f32.mrf.mxu1  ;;  %v17790_v28 = vpop.f32.mrf.mxu0 }
 0x6f7   :  { %v14649_v45 = vpop.f32.mrf.mxu1  ;;  %v17792_v11 = vpop.f32.mrf.mxu0 }
 0x6f8   :  { %v14650_v44 = vadd.f32 %v14649_v45, %v14648_v56 }
 0x6f9   :  { %v14651_v13 = vpop.f32.mrf.mxu1  ;;  %v14724_v5 = vpop.f32.mrf.mxu0 }
 0x6fb   :  { %v14652_v3 = vpop.f32.mrf.mxu1  ;;  %v14725_v7 = vpop.f32.mrf.mxu0 }
 0x6fc   :  { %v14653_v6 = vadd.f32 %v14652_v3, %v14651_v13  ;;  %v14726_v30 = vadd.f32 %v14725_v7, %v14724_v5 }
 0x6fd   :  { %v17794_v38 = vpop.f32.mrf.mxu1  ;;  %v14727_v42 = vpop.f32.mrf.mxu0 }
 0x6fe   :  { %v17796_v27 = vadd.f32 %v14726_v30, %v14650_v44 }
 0x6ff   :  { %v17798_v47 = vpop.f32.mrf.mxu1  ;;  %v14728_v19 = vpop.f32.mrf.mxu0 }
 0x700   :  { %v14729_v23 = vadd.f32 %v14728_v19, %v14727_v42  ;;  %v14720_v42 = vadd.f32 %v17786_v41, %v17782_v10 }
 0x701   :  { %v17800_v62 = vpop.f32.mrf.mxu1  ;;  %v14730_v37 = vpop.f32.mrf.mxu0 }
 0x702   :  { %v17802_v4 = vadd.f32 %v14729_v23, %v14653_v6 }
 0x703   :  { %v17804_v46 = vpop.f32.mrf.mxu1  ;;  %v14731_v36 = vpop.f32.mrf.mxu0 }
 0x705   :  { %v17806_v50 = vpop.f32.mrf.mxu1  ;;  %v17808_v14 = vpop.f32.mrf.mxu0 }
 0x707   :  { %v17810_v31 = vpop.f32.mrf.mxu1  ;;  %v14734_v53 = vpop.f32.mrf.mxu0 }
 0x709   :  { %v17812_v51 = vpop.f32.mrf.mxu1 }
 0x70a   :  { %v17814_v29 = vpop.f32.mrf.mxu0 }
 0x70b   :  { %v17816_v58 = vpop.f32.mrf.mxu1 }
 0x70c   :  { %v17818_v1 = vpop.f32.mrf.mxu0 }
 0x70d   :  { %v17820_v0 = vpop.f32.mrf.mxu1 }
 0x70e   :  { %v17822_v9 = vpop.f32.mrf.mxu0 }
 0x70f   :  { %v17824_v52 = vpop.f32.mrf.mxu1 }
 0x710   :  { %v17826_v35 = vpop.f32.mrf.mxu0 }
 0x711   :  { %v17828_v48 = vpop.f32.mrf.mxu1 }
 0x712   :  { %v14742_v34 = vpop.f32.mrf.mxu0 }
 0x713   :  { %v17830_v26 = vpop.f32.mrf.mxu1 }
 0x714   :  { %v14743_v49 = vpop.f32.mrf.mxu0 }
 0x715   :  { %v17832_v12 = vpop.f32.mrf.mxu1 }
 0x716   :  { %v17834_v40 = vpop.f32.mrf.mxu0 }
 0x717   :  { %v17836_v21 = vpop.f32.mrf.mxu1 }
 0x718   :  { %v17838_v54 = vpop.f32.mrf.mxu0 }
 0x719   :  { %v17840_v24 = vpop.f32.mrf.mxu1 }
 0x71a   :  { %v17842_v39 = vpop.f32.mrf.mxu0 }
 0x71b   :  { %v17844_v33 = vpop.f32.mrf.mxu1 }
 0x71c   :  { %v17846_v43 = vpop.f32.mrf.mxu0 }
 0x71d   :  { %v17848_v57 = vpop.f32.mrf.mxu1 }
 0x71e   :  { %v17850_v8 = vpop.f32.mrf.mxu0 }
 0x71f   :  { %v17852_v18 = vpop.f32.mrf.mxu1 }
 0x720   :  { %v17854_v61 = vpop.f32.mrf.mxu0 }
 0x721   :  { %v17856_v55 = vpop.f32.mrf.mxu1 }
 0x722   :  { %v17858_v22 = vpop.f32.mrf.mxu0 }
 0x723   :  { %v17860_v15 = vpop.f32.mrf.mxu1 }
 0x724   :  { %v17862_v63 = vpop.f32.mrf.mxu0 }
 0x725   :  { %v17864_v2 = vpop.f32.mrf.mxu1 }
 0x726   :  { %18387 = vst [vmem:[#allocation16_spill] sm:$0xff] %v17864_v2  ;;  %v17866_v25 = vpop.f32.mrf.mxu0  ;;  %v9746_v2 = vadd.f32 %v14720_v42, %v17780_v16  ;;  %v14735_v16 = vadd.f32 %v14734_v53, %v17808_v14  ;;  %v14738_v14 = vadd.f32 %v17818_v1, %v17814_v29 }
 0x727   :  { %v17868_v56 = vpop.f32.mrf.mxu1 }
 0x728   :  { %18388 = vst [vmem:[#allocation17_spill] sm:$0xff] %v17868_v56  ;;  %v17870_v45 = vpop.f32.mrf.mxu0 }
 0x729   :  { %v17872_v44 = vpop.f32.mrf.mxu1 }
 0x72a   :  { %18389 = vst [vmem:[#allocation18_spill] sm:$0xff] %v17872_v44  ;;  %v17874_v13 = vpop.f32.mrf.mxu0 }
 0x72b   :  { %18390 = vst [vmem:[#allocation19_spill] sm:$0xff] %v17874_v13  ;;  %v17876_v5 = vpop.f32.mrf.mxu1  ;;  %v14732_v13 = vadd.f32 %v14731_v36, %v14730_v37  ;;  %v14659_v36 = vadd.f32 %v17804_v46, %v17800_v62  ;;  %v14662_v62 = vadd.f32 %v17810_v31, %v17806_v50  ;;  %v14747_v46 = vadd.f32 %v17838_v54, %v17834_v40 }
 0x72c   :  { %18391 = vst [vmem:[#allocation20_spill] sm:$0xff] %v17876_v5  ;;  %v17878_v3 = vpop.f32.mrf.mxu0  ;;  %v14723_v5 = vadd.f32 %v17792_v11, %v17790_v28  ;;  %v14665_v31 = vadd.f32 %v17816_v58, %v17812_v51  ;;  %v14680_v51 = vadd.f32 %v17852_v18, %v17848_v57 }
 0x72d   :  { %18392 = vst [vmem:[#allocation21_spill] sm:$0xff] %v17878_v3  ;;  %v17880_v7 = vpop.f32.mrf.mxu1 }
 0x72e   :  { %18393 = vst [vmem:[#allocation22_spill] sm:$0xff] %v17880_v7  ;;  %v17882_v6 = vpop.f32.mrf.mxu0 }
 0x72f   :  { %18394 = vst [vmem:[#allocation23_spill] sm:$0xff] %v17882_v6  ;;  %v17884_v30 = vpop.f32.mrf.mxu1 }
 0x730   :  { %18395 = vst [vmem:[#allocation24_spill] sm:$0xff] %v17884_v30  ;;  %v17888_v19 = vpop.f32.mrf.mxu0 }
 0x731   :  { %18396 = vst [vmem:[#allocation25_spill] sm:$0xff] %v17888_v19  ;;  %v14693_v23 = vpop.f32.mrf.mxu1 }
 0x732   :  { %v17890_v60 = vpop.f32.mrf.mxu0  ;;  %v9749_v23 = vadd.f32 %v14723_v5, %v17788_v32  ;;  %v14744_v5 = vadd.f32 %v14743_v49, %v14742_v34  ;;  %v14741_v49 = vadd.f32 %v17826_v35, %v17822_v9  ;;  %v14756_v9 = vadd.f32 %v17862_v63, %v17858_v22 }
 0x733   :  { %v14694_v44 = vpop.f32.mrf.mxu1  ;;  %v14759_v63 = vadd.f32 %v17870_v45, %v17866_v25  ;;  %v14677_v25 = vadd.f32 %v17844_v33, %v17840_v24 }
 0x734   :  { %v17894_v56 = vpop.f32.mrf.mxu0  ;;  %v14656_v44 = vadd.f32 %v17798_v47, %v17794_v38  ;;  %v9765_v47 = vadd.f32 %v14735_v16, %v14659_v36  ;;  %v9773_v42 = vadd.f32 %v14741_v49, %v14665_v31  ;;  %v18398_v36 = vld [vmem:[#allocation21_spill] sm:$0xff]  ;;  %v18407_v31 = vld [vmem:[#allocation18_spill] sm:$0xff] }
 0x735   :  { %v15387_v7 = vpop.f32.mrf.mxu1 }
 0x736   :  { %v14769_v6 = vpop.f32.mrf.mxu0  ;;  %v9858_v3 = vadd.f32 %v15387_v7, %v9746_v2  ;;  %v9762_v7 = vadd.f32 %v14732_v13, %v14656_v44  ;;  %v9794_v44 = vadd.f32 %v14756_v9, %v14680_v51 }
 0x737   :  { %v9849_v30 = vpop.f32.mrf.mxu1 }
 0x738   :  { %9929 = vst [vmem:[#allocation2 + $0x18] sm:$0xff] %v9858_v3  ;;  %v14770_v10 = vpop.f32.mrf.mxu0  ;;  %v9850_v41 = vadd.f32 %v9849_v30, %v17778_v17  ;;  %v9770_v30 = vadd.f32 %v14738_v14, %v14662_v62 }
 0x739   :  { %v15388_v19 = vpop.f32.mrf.mxu1 }
 0x73a   :  { %9927 = vst [vmem:[#allocation2 + $0x8] sm:$0xff] %v9850_v41  ;;  %v9861_v28 = vadd.f32 %v15388_v19, %v9749_v23  ;;  %v14750_v19 = vadd.f32 %v17846_v43, %v17842_v39  ;;  %v14674_v41 = vadd.f32 %v17836_v21, %v17832_v12  ;;  %v14753_v39 = vadd.f32 %v17854_v61, %v17850_v8 }
 0x73b   :  { %v9852_v11 = vpop.f32.mrf.mxu1  ;;  %v14768_v8 = vadd.f32 %v17894_v56, %v17890_v60  ;;  %v18401_v60 = vld [vmem:[#allocation16_spill] sm:$0xff]  ;;  %v18402_v56 = vld [vmem:[#allocation17_spill] sm:$0xff] }
 0x73c   :  { %9930 = vst [vmem:[#allocation2 + $0x20] sm:$0xff] %v9861_v28  ;;  %v9853_v2 = vadd.f32 %v9852_v11, %v17784_v20  ;;  %v14668_v20 = vadd.f32 %v17824_v52, %v17820_v0  ;;  %v14671_v0 = vadd.f32 %v17830_v26, %v17828_v48  ;;  %v14683_v11 = vadd.f32 %v17860_v15, %v17856_v55 }
 0x73d   :  { %v15391_v37 = vpop.f32.mrf.mxu1  ;;  %v9786_v12 = vadd.f32 %v14750_v19, %v14674_v41  ;;  %v9789_v15 = vadd.f32 %v14753_v39, %v14677_v25  ;;  %v18409_v39 = vld [vmem:[#allocation15_spill] sm:$0xff] }
 0x73e   :  { %9928 = vst [vmem:[#allocation2 + $0x10] sm:$0xff] %v9853_v2  ;;  %v9874_v17 = vadd.f32 %v15391_v37, %v9762_v7  ;;  %v9778_v34 = vadd.f32 %v14744_v5, %v14668_v20  ;;  %v9781_v54 = vadd.f32 %v14747_v46, %v14671_v0  ;;  %v9797_v2 = vadd.f32 %v14759_v63, %v14683_v11  ;;  %v18397_v37 = vld [vmem:[#allocation19_spill] sm:$0xff]  ;;  %v18400_v5 = vld [vmem:[#allocation24_spill] sm:$0xff]  ;;  %v16268_v0 = vld [vmem:[%s18357_s17 + $0x108] sm:$0xff]  }
 0x73f   :  { %v9865_v32 = vpop.f32.mrf.mxu1 }
 0x740   :  { %9933 = vst [vmem:[#allocation2 + $0x38] sm:$0xff] %v9874_v17  ;;  %v9866_v38 = vadd.f32 %v9865_v32, %v17796_v27  ;;  %v14762_v17 = vadd.f32 %v18398_v36, %v18397_v37  ;;  %v18399_v32 = vld [vmem:[#allocation22_spill] sm:$0xff] }
 0x741   :  { %v15392_v3 = vpop.f32.mrf.mxu1 }
 0x742   :  { %9931 = vst [vmem:[#allocation2 + $0x28] sm:$0xff] %v9866_v38  ;;  %v9877_v53 = vadd.f32 %v15392_v3, %v9765_v47  ;;  %v14692_v38 = vadd.f32 %v18400_v5, %v18399_v32  ;;  %v14686_v3 = vadd.f32 %v18402_v56, %v18401_v60  ;;  %v10055_v5 = vld [vmem:[#allocation3 + $0x54] sm:$0x7] }
 0x743   :  { %v9868_v13 = vpop.f32.mrf.mxu1 }
 0x744   :  { %9934 = vst [vmem:[#allocation2 + $0x40] sm:$0xff] %v9877_v53  ;;  %v9869_v27 = vadd.f32 %v9868_v13, %v17802_v4  ;;  %v17924_v4 = vld [vmem:[%s18352_s12] ss:$0 sm:$0xff]  ;;  %v9810_v20 = vadd.f32 %v14768_v8, %v14692_v38 }
 0x745   :  { %v15395_v29 = vpop.f32.mrf.mxu1  ;;  %v9946_v1 = vld [vmem:[#allocation2 + $0x8] ss:$4 sm:$0xff]  ;;  %v9952_v6 = vld [vmem:[#allocation2 + $0xa] ss:$4 sm:$0xff] }
 0x746   :  { %9932 = vst [vmem:[#allocation2 + $0x30] sm:$0xff] %v9869_v27  ;;  %v9890_v52 = vadd.f32 %v15395_v29, %v9778_v34  ;;  %v9961_v50 = vadd.f32 %v9952_v6, %v9946_v1  ;;  %v18403_v27 = vld [vmem:[#allocation23_spill] sm:$0xff]  ;;  %v18404_v34 = vld [vmem:[#allocation25_spill] sm:$0xff]  ;;  %v9802_v1 = vadd.f32 %v14762_v17, %v14686_v3 }
 0x747   :  { %v9881_v40 = vpop.f32.mrf.mxu1  ;;  %v14765_v49 = vadd.f32 %v18404_v34, %v18403_v27  ;;  %v16183_v27 = vld [vmem:[#allocation11 + $0x68] sm:$0xff]  }
 0x748   :  { %9937 = vst [vmem:[#allocation2 + $0x58] sm:$0xff] %v9890_v52  ;;  %v9882_v35 = vadd.f32 %v9881_v40, %v9770_v30  ;;  %v9966_v48 = vmul.f32 0.5, %v9961_v50  ;;  %v18408_v40 = vld [vmem:[#allocation20_spill] sm:$0xff] }
 0x749   :  { %v15396_v26 = vpop.f32.mrf.mxu1  ;;  %v14689_v9 = vadd.f32 %v18408_v40, %v18407_v31  ;;  %v16184_v34 = vld [vmem:[#allocation11 + $0x28] sm:$0xff]   ;;  %v16189_v31 = vld [vmem:[#allocation11 + $0xb0] sm:$0xff]  }
 0x74a   :  { %9935 = vst [vmem:[#allocation2 + $0x48] sm:$0xff] %v9882_v35  ;;  %v9893_v58 = vadd.f32 %v15396_v26, %v9781_v54  ;;  %v9978_v10 = vadd.f32 %v17924_v4, %v9966_v48  ;;  %v10088_v48 = vld [vmem:[#allocation3 + $0x58] sm:$0x7]  ;;  %v16194_v40 = vld [vmem:[#allocation11 + $0x48] sm:$0xff]  }
 0x74b   :  { %v9884_v22 = vpop.f32.mrf.mxu1  ;;  %v9805_v19 = vadd.f32 %v14765_v49, %v14689_v9  ;;  %v16185_v49 = vld [vmem:[#allocation11 + $0x60] sm:$0xff]   ;;  %v16196_v9 = vld [vmem:[#allocation11 + $0x8] sm:$0xff]  }
 0x74c   :  { %9938 = vst [vmem:[#allocation2 + $0x60] sm:$0xff] %v9893_v58  ;;  %v9885_v23 = vadd.f32 %v9884_v22, %v9773_v42  ;;  %v14296_v28 = vpack.c.bf16 %v9978_v10, %v9978_v10 }
 0x74d   :  { %v15399_v43 = vpop.f32.mrf.mxu1  ;;  %v9947_v57 = vld [vmem:[#allocation2 + $0x28] ss:$4 sm:$0xff]  ;;  %v9954_v18 = vld [vmem:[#allocation2 + $0x2a] ss:$4 sm:$0xff] }
 0x74e   :  { %9936 = vst [vmem:[#allocation2 + $0x50] sm:$0xff] %v9885_v23  ;;  %v9906_v16 = vadd.f32 %v15399_v43, %v9794_v44  ;;  %v9962_v21 = vadd.f32 %v9954_v18, %v9947_v57  ;;  %10016 = vst [vmem:[#allocation3 + $0x14] sm:$0xf] %v14296_v28 }
 0x74f   :  { %10051 = vst [vmem:[#allocation3 + $0x4] sm:$0xf] %v14296_v28  ;;  %9988 = vst [vmem:[#allocation2 + $0x2d] sm:$0xff] %v17761_v59  ;;  %v9897_v45 = vpop.f32.mrf.mxu1 }
 0x750   :  { %9941 = vst [vmem:[#allocation2 + $0x78] sm:$0xff] %v9906_v16  ;;  %v9898_v61 = vadd.f32 %v9897_v45, %v9786_v12  ;;  %v9967_v7 = vmul.f32 0.5, %v9962_v21 }
 0x751   :  { %v15400_v55 = vpop.f32.mrf.mxu1 }
 0x752   :  { %9939 = vst [vmem:[#allocation2 + $0x68] sm:$0xff] %v9898_v61  ;;  %v9909_v47 = vadd.f32 %v15400_v55, %v9797_v2  ;;  %v9979_v24 = vadd.f32 %v17924_v4, %v9967_v7  ;;  %v10022_v2 = vld [vmem:[#allocation3 + $0x50] sm:$0x7] }
 0x753   :  { %v9900_v33 = vpop.f32.mrf.mxu1 }
 0x754   :  { %9942 = vst [vmem:[#allocation2 + $0x80] sm:$0xff] %v9909_v47  ;;  %v9901_v14 = vadd.f32 %v9900_v33, %v9789_v15  ;;  %v14301_v53 = vpack.c.bf16 %v9979_v24, %v9979_v24 }
 0x755   :  { %v15403_v13 = vpop.f32.mrf.mxu1  ;;  %v9948_v62 = vld [vmem:[#allocation2 + $0x48] ss:$4 sm:$0xff]  ;;  %v9956_v46 = vld [vmem:[#allocation2 + $0x4a] ss:$4 sm:$0xff] }
 0x756   :  { %9940 = vst [vmem:[#allocation2 + $0x70] sm:$0xff] %v9901_v14  ;;  %v9922_v29 = vadd.f32 %v15403_v13, %v9810_v20  ;;  %v9963_v6 = vadd.f32 %v9956_v46, %v9948_v62  ;;  %10052 = vst [vmem:[#allocation3 + $0x18] sm:$0xf] %v14301_v53  ;;  %v10062_v52 = vld [vmem:[#allocation2 + $0x30] sm:$0x1f]  ;;  %v16181_v62 = vld [vmem:[#allocation11 + $0x70] sm:$0xff]  }
 0x757   :  { %10084 = vst [vmem:[#allocation3 + $0x8] sm:$0xf] %v14301_v53  ;;  %10017 = vst [vmem:[#allocation3 + $0x28] sm:$0xf] %v14301_v53  ;;  %v9913_v30 = vpop.f32.mrf.mxu1  ;;  %v14309_v50 = vpack.c.bf16 %v10062_v52, %v10062_v52  ;;  %v16168_v28 = vld [vmem:[#allocation3] ss:$20 sps:$4 sm:$0xff]  }
 0x758   :  { %9945 = vst [vmem:[#allocation2 + $0x98] sm:$0x3f] %v9922_v29  ;;  %v9914_v35 = vadd.f32 %v9913_v30, %v9802_v1  ;;  %v9968_v54 = vmul.f32 0.5, %v9963_v6  ;;  %10487 = vst [vmem:[#allocation3] sm:$0xf] %v18409_v39  ;;  %v16179_v53 = vld [vmem:[#allocation11 + $0x78] sm:$0xff]  }
 0x759   :  { %v15404_v26 = vpop.f32.mrf.mxu1  ;;  %v10089_v42 = vsel %vm17957_vm3, %v14309_v50, %v10088_v48  ;;  %v16180_v13 = vld [vmem:[#allocation11 + $0x38] sm:$0xff]   ;;  %14835 = vmatprep.subr.bf16.mxu0 %v16179_v53  ;;  %v16182_v46 = vld [vmem:[#allocation11 + $0x30] sm:$0xff]   ;;  %v16187_v29 = vld [vmem:[#allocation11 + $0x20] sm:$0xff]  }
 0x75a   :  { %9943 = vst [vmem:[#allocation2 + $0x88] sm:$0xff] %v9914_v35  ;;  %v9980_v51 = vadd.f32 %v17924_v4, %v9968_v54  ;;  %10090 = vst [vmem:[#allocation3 + $0x58] sm:$0x7] %v10089_v42  ;;  %v16188_v1 = vld [vmem:[#allocation11 + $0x58] sm:$0xff]   ;;  %v16191_v30 = vld [vmem:[#allocation11 + $0x50] sm:$0xff]  }
 0x75b   :  { %v9916_v58 = vpop.f32.mrf.mxu1  ;;  %v16190_v6 = vld [vmem:[#allocation11 + $0x18] sm:$0xff]   ;;  %v16193_v50 = vld [vmem:[#allocation11 + $0x10] sm:$0xff]   ;;  %v16192_v35 = vld [vmem:[#allocation11 + $0xa8] sm:$0xff]  }
 0x75c   :  { %v9917_v10 = vadd.f32 %v9916_v58, %v9805_v19  ;;  %v14306_v41 = vpack.c.bf16 %v9980_v51, %v9980_v51  ;;  %v16186_v52 = vld [vmem:[#allocation11 + $0xb8] sm:$0xff]   ;;  %v16197_v54 = vld [vmem:[#allocation11 + $0x40] sm:$0xff]   ;;  %v16203_v19 = vld [vmem:[#allocation11 + $0x90] sm:$0xff]  }
 0x75d   :  { %v9949_v22 = vld [vmem:[#allocation2 + $0x68] ss:$4 sm:$0xff]  ;;  %v9958_v63 = vld [vmem:[#allocation2 + $0x6a] ss:$4 sm:$0xff] }
 0x75e   :  { %9944 = vst [vmem:[#allocation2 + $0x90] sm:$0xff] %v9917_v10  ;;  %v9964_v23 = vadd.f32 %v9958_v63, %v9949_v22  ;;  %v16166_v44 = vld [vmem:[#allocation3 + $0x4] ss:$20 sps:$4 sm:$0xff]   ;;  %10085 = vst [vmem:[#allocation3 + $0x1c] sm:$0xf] %v14306_v41  ;;  %v16198_v42 = vld [vmem:[#allocation11 + $0x98] sm:$0xff]  }
 0x75f   :  { %10018 = vst [vmem:[#allocation3 + $0x3c] sm:$0xf] %v14306_v41  ;;  %10053 = vst [vmem:[#allocation3 + $0x2c] sm:$0xf] %v14306_v41  ;;  %10375 = vmatprep.mubr.bf16.mxu0 %v16166_v44  ;;  %v16199_v48 = vld [vmem:[#allocation11] sm:$0xff]   ;;  %v16204_v51 = vld [vmem:[#allocation11 + $0x88] sm:$0xff]  }
 0x760   :  { %v9969_v43 = vmul.f32 0.5, %v9964_v23  ;;  %10376 = vmatmul.mubr.bf16.vlgmr.msra.gmra.mxu0 %v16168_v28  ;;  %v16195_v26 = vld [vmem:[#allocation11 + $0xa0] sm:$0xff]   ;;  %v13446_v22 = vld [vmem:[%s18354_s14] ss:$0 sm:$0xff] }
 0x761   :  { %v10557_v33 = vld [vmem:[#allocation3 + $0x58] sm:$0x7]  ;;  %14836 = vmatpush3.bf16.msra.mxu0 %v16180_v13 }
 0x762   :  { %v9981_v57 = vadd.f32 %v17924_v4, %v9969_v43  ;;  %v16178_v56 = vld [vmem:[#allocation3 + $0x58] ss:$0 sps:$4 sm:$0x77]   ;;  %14837 = vmatprep.subr.bf16.mxu0 %v16181_v62 }
 0x763   :  { %v16205_v58 = vld [vmem:[#allocation11 + $0x80] sm:$0xff]  }
 0x764   :  { %9986 = vst [vmem:[#allocation2 + $0x20] sm:$0xff] %v9981_v57  ;;  %v14303_v18 = vpack.c.bf16 %v9981_v57, %v9981_v57 }
 0x765   :  { %v9950_v11 = vld [vmem:[#allocation2 + $0x88] ss:$4 sm:$0x1f]  ;;  %v9960_v16 = vld [vmem:[#allocation2 + $0x8a] ss:$4 sm:$0x1f]  ;;  %14838 = vmatpush3.bf16.msra.mxu0 %v16182_v46 }
 0x766   :  { %v9965_v12 = vadd.f32 %v9960_v16, %v9950_v11  ;;  %v16171_v21 = vld [vmem:[#allocation3 + $0x8] ss:$20 sps:$4 sm:$0xff]   ;;  %10054 = vst [vmem:[#allocation3 + $0x40] sm:$0xf] %v14303_v18  ;;  %10086 = vst [vmem:[#allocation3 + $0x30] sm:$0xf] %v14303_v18  ;;  %14839 = vmatprep.subr.bf16.mxu0 %v16183_v27 }
 0x767   :  { %15422 = vmatmul.mubr.bf16.vlgmr.msra.gmra.mxu1 %v16171_v21  ;;  %v16174_v55 = vld [vmem:[#allocation3 + $0x28] ss:$20 sps:$4 sm:$0xff]  }
 0x768   :  { %v9970_v25 = vmul.f32 0.5, %v9965_v12  ;;  %15425 = vmatprep.mubr.msk.bf16.mxu1 %vm16452_vm0, %v17761_v59  ;;  %15434 = vmatpush3.bf16.msra.mxu1 %v16186_v52 }
 0x769   :  { %14840 = vmatpush3.bf16.msra.mxu0 %v16184_v34  ;;  %15435 = vmatprep.subr.bf16.mxu1 %v17761_v59 }
 0x76a   :  { %v9982_v45 = vadd.f32 %v17924_v4, %v9970_v25  ;;  %14841 = vmatprep.subr.bf16.mxu0 %v16185_v49 }
 0x76b   :  { %v9993_v8 = vld [vmem:[#allocation2 + $0x20] sm:$0x1f] }
 0x76c   :  { %9987 = vst [vmem:[#allocation2 + $0x28] sm:$0x1f] %v9982_v45  ;;  %v14299_v61 = vpack.c.bf16 %v9993_v8, %v9993_v8  ;;  %15436 = vmatpush3.bf16.msra.mxu1 %v16189_v31 }
 0x76d   :  { %v16172_v7 = vld [vmem:[#allocation3 + $0x2c] ss:$20 sps:$4 sm:$0xff]   ;;  %14842 = vmatpush3.bf16.msra.mxu0 %v16187_v29  ;;  %15437 = vmatprep.subr.bf16.mxu1 %v17761_v59 }
 0x76e   :  { %v10023_v15 = vsel %vm17957_vm3, %v14299_v61, %v10022_v2  ;;  %10383 = vmatprep.mubr.bf16.mxu0 %v16172_v7  ;;  %14843 = vmatprep.subr.bf16.mxu0 %v16188_v1 }
 0x76f   :  { %10024 = vst [vmem:[#allocation3 + $0x50] sm:$0x7] %v10023_v15  ;;  %10384 = vmatmul.mubr.bf16.gmra.mxu0 %v16174_v55 }
 0x770   :  { %15438 = vmatpush3.bf16.msra.mxu1 %v16192_v35 }
 0x771   :  { %14844 = vmatpush3.bf16.msra.mxu0 %v16190_v6  ;;  %15439 = vmatprep.subr.bf16.mxu1 %v17761_v59 }
 0x772   :  { %14845 = vmatprep.subr.bf16.mxu0 %v16191_v30 }
 0x773   :  { %v10061_v37 = vld [vmem:[#allocation2 + $0x28] sm:$0xff] }
 0x774   :  { %v10029_v36 = vld [vmem:[#allocation2 + $0x28] sm:$0x1f]  ;;  %v14308_v17 = vpack.c.bf16 %v10061_v37, %v10061_v37  ;;  %10460 = vst [vmem:[#allocation2 + $0x2d] sm:$0xff] %v17761_v59  ;;  %15440 = vmatpush3.bf16.msra.mxu1 %v16195_v26 }
 0x775   :  { %v14304_v32 = vpack.c.bf16 %v10029_v36, %v10029_v36  ;;  %14846 = vmatpush3.bf16.msra.mxu0 %v16193_v50  ;;  %15441 = vmatprep.subr.bf16.mxu1 %v17761_v59 }
 0x776   :  { %10087 = vst [vmem:[#allocation3 + $0x44] sm:$0xf] %v14308_v17  ;;  %14847 = vmatprep.subr.bf16.mxu0 %v16194_v40  ;;  %v10491_v30 = vld [vmem:[#allocation3 + $0x50] sm:$0x7] }
 0x777   :  { %v10056_v4 = vsel %vm17957_vm3, %v14304_v32, %v10055_v5 }
 0x778   :  { %10057 = vst [vmem:[#allocation3 + $0x54] sm:$0x7] %v10056_v4  ;;  %15442 = vmatpush3.bf16.msra.mxu1 %v16198_v42 }
 0x779   :  { %14848 = vmatpush3.bf16.msra.mxu0 %v16196_v9  ;;  %15443 = vmatprep.subr.bf16.mxu1 %v17761_v59 }
 0x77a   :  { %14849 = vmatprep.subr.bf16.mxu0 %v16197_v54 }
 0x77b   :  { %v10531_v38 = vld [vmem:[#allocation2 + $0x30] sm:$0x1f] }
 0x77c   :  { %v14324_v47 = vpack.c.bf16 %v10531_v38, %v10531_v38  ;;  %15444 = vmatpush3.bf16.msra.mxu1 %v16203_v19 }
 0x77d   :  { %v16175_v24 = vld [vmem:[#allocation3 + $0x30] ss:$20 sps:$4 sm:$0xff]   ;;  %14850 = vmatpush3.bf16.msra.mxu0 %v16199_v48  ;;  %15445 = vmatprep.subr.bf16.mxu1 %v17761_v59 }
 0x77e   :  { %v10558_v3 = vsel %vm17957_vm3, %v14324_v47, %v10557_v33  ;;  %15426 = vmatmul.mubr.bf16.gmra.mxu1 %v16175_v24 }
 0x77f   :  { %v10099_v60 = vld [vmem:[#allocation3 + $0x50] sm:$0x77]  ;;  %10559 = vst [vmem:[#allocation3 + $0x58] sm:$0x7] %v10558_v3  ;;  %15429 = vmatprep.mubr.msk.bf16.mxu1 %vm16452_vm0, %v17761_v59 }
 0x780   :  { %v13454_v14 = vcombine.high %v10099_v60, %v10099_v60  ;;  %v13453_v20 = vcombine.low %v10099_v60, %v10099_v60  ;;  %15446 = vmatpush3.bf16.msra.mxu1 %v16204_v51  ;;  %v10524_v26 = vld [vmem:[#allocation3 + $0x54] sm:$0x7] }
 0x781   :  { %15447 = vmatprep.subr.bf16.mxu1 %v17761_v59 }
 0x782   :  { %10391 = vmatprep.mubr.bf16.mxu0 %v13454_v14 }
 0x783   :  { %10392 = vmatmul.mubr.bf16.gmra.mxu0 %v13453_v20 }
 0x784   :  { %15448 = vmatpush3.bf16.msra.mxu1 %v16205_v58 }
 0x786   :  { %15430 = vmatmul.mubr.bf16.gmra.mxu1 %v16178_v56 }
 0x787   :  { %15449 = vmatprep.mubr.msk.bf16.mxu1 %vm16452_vm0, %v17761_v59 }
 0x820   :  { %v14806_v10 = vpop.f32.mrf.mxu0 }
 0x822   :  { %v14807_v41 = vpop.f32.mrf.mxu0 }
 0x823   :  { %v14808_v63 = vadd.f32 %v14807_v41, %v14806_v10  ;;  %v16213_v41 = vld [vmem:[#allocation3 + $0x58] ss:$0 sps:$4 sm:$0x77]  }
 0x824   :  { %v14809_v23 = vpop.f32.mrf.mxu0 }
 0x825   :  { %v10378_v44 = vadd.f32 %v14808_v63, %v13446_v22  ;;  %v16215_v63 = vld [vmem:[%s18357_s17 + $0x38] sm:$0xff]  }
 0x826   :  { %v14810_v28 = vpop.f32.mrf.mxu0 }
 0x827   :  { %v14811_v39 = vadd.f32 %v14810_v28, %v14809_v23  ;;  %v10433_v43 = vpop.f32.mrf.mxu1  ;;  %v16216_v23 = vld [vmem:[%s18357_s17 + $0x70] sm:$0xff]   ;;  %v16219_v28 = vld [vmem:[%s18357_s17 + $0xf8] sm:$0xff]  }
 0x828   :  { %v10434_v57 = vadd.f32 %v10433_v43, %v10378_v44  ;;  %v16218_v44 = vld [vmem:[%s18357_s17 + $0x68] sm:$0xff]   ;;  %14914 = vmatprep.subr.bf16.mxu1 %v16219_v28  ;;  %v16221_v43 = vld [vmem:[%s18357_s17 + $0xb8] sm:$0xff]  }
 0x829   :  { %v15423_v18 = vpop.f32.mrf.mxu1  ;;  %v10381_v11 = vadd.f32 %v14811_v39, %v13446_v22  ;;  %v16220_v39 = vld [vmem:[%s18357_s17 + $0x28] sm:$0xff]  }
 0x82a   :  { %v14311_v16 = vpack.c.bf16 %v10434_v57, %v10434_v57  ;;  %v16222_v57 = vld [vmem:[%s18357_s17 + $0x60] sm:$0xff]   ;;  %v16223_v18 = vld [vmem:[%s18357_s17 + $0xf0] sm:$0xff]  }
 0x82b   :  { %v10436_v12 = vpop.f32.mrf.mxu1 }
 0x82c   :  { %v10437_v21 = vadd.f32 %v10436_v12, %v10381_v11  ;;  %10488 = vst [vmem:[#allocation3 + $0x14] sm:$0xf] %v14311_v16  ;;  %10520 = vst [vmem:[#allocation3 + $0x4] sm:$0xf] %v14311_v16  ;;  %v16224_v11 = vld [vmem:[%s18357_s17 + $0x20] sm:$0xff]   ;;  %v16226_v16 = vld [vmem:[%s18357_s17 + $0x58] sm:$0xff]  }
 0x82d   :  { %v15424_v25 = vpop.f32.mrf.mxu1  ;;  %v16228_v12 = vld [vmem:[%s18357_s17 + $0x18] sm:$0xff]  }
 0x82e   :  { %v14316_v45 = vpack.c.bf16 %v10437_v21, %v10437_v21  ;;  %v16225_v21 = vld [vmem:[%s18357_s17 + $0xb0] sm:$0xff]  }
 0x82f   :  { %v14812_v8 = vpop.f32.mrf.mxu0  ;;  %v16230_v25 = vld [vmem:[%s18357_s17 + $0x50] sm:$0xff]  }
 0x830   :  { %10521 = vst [vmem:[#allocation3 + $0x18] sm:$0xf] %v14316_v45  ;;  %10553 = vst [vmem:[#allocation3 + $0x8] sm:$0xf] %v14316_v45 }
 0x831   :  { %10489 = vst [vmem:[#allocation3 + $0x28] sm:$0xf] %v14316_v45  ;;  %v14813_v61 = vpop.f32.mrf.mxu0  ;;  %v16227_v45 = vld [vmem:[%s18357_s17 + $0xe8] sm:$0xff]  }
 0x832   :  { %v14814_v15 = vadd.f32 %v14813_v61, %v14812_v8  ;;  %v16232_v8 = vld [vmem:[%s18357_s17 + $0x10] sm:$0xff]   ;;  %v16229_v61 = vld [vmem:[%s18357_s17 + $0xa8] sm:$0xff]  }
 0x833   :  { %v14815_v2 = vpop.f32.mrf.mxu0  ;;  %v16200_v7 = vld [vmem:[#allocation3] ss:$20 sps:$4 sm:$0xff]  }
 0x834   :  { %v10386_v17 = vadd.f32 %v14814_v15, %v13446_v22  ;;  %v16233_v15 = vld [vmem:[%s18357_s17 + $0xa0] sm:$0xff]  }
 0x835   :  { %v14816_v37 = vpop.f32.mrf.mxu0 }
 0x836   :  { %v14817_v36 = vadd.f32 %v14816_v37, %v14815_v2  ;;  %v16234_v2 = vld [vmem:[%s18357_s17 + $0x48] sm:$0xff]   ;;  %v16238_v37 = vld [vmem:[%s18357_s17 + $0x40] sm:$0xff]  }
 0x837   :  { %v16202_v55 = vld [vmem:[#allocation3 + $0x4] ss:$20 sps:$4 sm:$0xff]  }
 0x838   :  { %10844 = vmatprep.mubr.bf16.mxu0 %v16202_v55  ;;  %v10389_v47 = vadd.f32 %v14817_v36, %v13446_v22  ;;  %v16236_v55 = vld [vmem:[%s18357_s17 + $0x8] sm:$0xff]   ;;  %v16235_v36 = vld [vmem:[%s18357_s17 + $0xd8] sm:$0xff]  }
 0x839   :  { %10845 = vmatmul.mubr.bf16.vlgmr.msra.gmra.mxu0 %v16200_v7  ;;  %v16231_v7 = vld [vmem:[%s18357_s17 + $0xe0] sm:$0xff]  }
 0x83e   :  { %v10441_v32 = vpop.f32.mrf.mxu1 }
 0x83f   :  { %v10442_v5 = vadd.f32 %v10441_v32, %v10386_v17  ;;  %v16240_v17 = vld [vmem:[%s18357_s17] sm:$0xff]   ;;  %v16237_v32 = vld [vmem:[%s18357_s17 + $0x98] sm:$0xff]  }
 0x840   :  { %v15427_v4 = vpop.f32.mrf.mxu1 }
 0x841   :  { %v14321_v24 = vpack.c.bf16 %v10442_v5, %v10442_v5  ;;  %v18079_v5 = vld [vmem:[#allocation2 + $0x138] sm:$0xff]  ;;  %v16239_v4 = vld [vmem:[%s18357_s17 + $0xd0] sm:$0xff]  }
 0x842   :  { %v10444_v33 = vpop.f32.mrf.mxu1 }
 0x843   :  { %v14818_v38 = vpop.f32.mrf.mxu0  ;;  %v10445_v56 = vadd.f32 %v10444_v33, %v10389_v47  ;;  %10554 = vst [vmem:[#allocation3 + $0x1c] sm:$0xf] %v14321_v24  ;;  %10490 = vst [vmem:[#allocation3 + $0x3c] sm:$0xf] %v14321_v24  ;;  %v16245_v47 = vld [vmem:[%s18357_s17 + $0xc8] sm:$0xff]   ;;  %v16248_v33 = vld [vmem:[%s18357_s17 + $0xc0] sm:$0xff]  }
 0x844   :  { %10522 = vst [vmem:[#allocation3 + $0x2c] sm:$0xf] %v14321_v24  ;;  %v15428_v14 = vpop.f32.mrf.mxu1  ;;  %v16246_v24 = vld [vmem:[%s18357_s17 + $0x88] sm:$0xff]  }
 0x845   :  { %v14819_v60 = vpop.f32.mrf.mxu0  ;;  %10458 = vst [vmem:[#allocation2 + $0x20] sm:$0xff] %v10445_v56  ;;  %v14318_v53 = vpack.c.bf16 %v10445_v56, %v10445_v56 }
 0x846   :  { %v14820_v3 = vadd.f32 %v14819_v60, %v14818_v38  ;;  %v10449_v62 = vpop.f32.mrf.mxu1  ;;  %v16241_v38 = vld [vmem:[%s18357_s17 + $0x90] sm:$0xff]   ;;  %v16249_v60 = vld [vmem:[%s18357_s17 + $0x80] sm:$0xff]  }
 0x847   :  { %v14821_v20 = vpop.f32.mrf.mxu0  ;;  %10523 = vst [vmem:[#allocation3 + $0x40] sm:$0xf] %v14318_v53  ;;  %10555 = vst [vmem:[#allocation3 + $0x30] sm:$0xf] %v14318_v53 }
 0x848   :  { %v10394_v13 = vadd.f32 %v14820_v3, %v13446_v22  ;;  %v15431_v34 = vpop.f32.mrf.mxu1  ;;  %v16214_v22 = vld [vmem:[%s18357_s17 + $0x78] sm:$0xff]  }
 0x849   :  { %v14822_v46 = vpop.f32.mrf.mxu0  ;;  %14880 = vmatprep.subr.bf16.mxu0 %v16214_v22 }
 0x84a   :  { %v10450_v27 = vadd.f32 %v10449_v62, %v10394_v13  ;;  %v10452_v49 = vpop.f32.mrf.mxu1  ;;  %v16206_v29 = vld [vmem:[#allocation3 + $0x8] ss:$20 sps:$4 sm:$0xff]   ;;  %14881 = vmatpush3.bf16.msra.mxu0 %v16215_v63  ;;  %v13495_v13 = vld [vmem:[%s18356_s16] ss:$0 sm:$0xff] }
 0x84b   :  { %15450 = vmatmul.mubr.bf16.vlgmr.msra.gmra.mxu1 %v16206_v29  ;;  %v16209_v31 = vld [vmem:[#allocation3 + $0x28] ss:$20 sps:$4 sm:$0xff]   ;;  %14882 = vmatprep.subr.bf16.mxu0 %v16216_v23 }
 0x84c   :  { %10459 = vst [vmem:[#allocation2 + $0x28] sm:$0x1f] %v10450_v27  ;;  %v15432_v1 = vpop.f32.mrf.mxu1  ;;  %v10465_v6 = vld [vmem:[#allocation2 + $0x20] sm:$0x1f]  ;;  %15453 = vmatprep.mubr.msk.bf16.mxu1 %vm16452_vm0, %v17761_v59  ;;  %14915 = vmatpush3.bf16.msra.mxu1 %v16221_v43 }
 0x84d   :  { %v14314_v52 = vpack.c.bf16 %v10465_v6, %v10465_v6  ;;  %14916 = vmatprep.subr.bf16.mxu1 %v16223_v18 }
 0x84e   :  { %v16207_v50 = vld [vmem:[#allocation3 + $0x2c] ss:$20 sps:$4 sm:$0xff]  }
 0x84f   :  { %v10492_v40 = vsel %vm17957_vm3, %v14314_v52, %v10491_v30  ;;  %10852 = vmatprep.mubr.bf16.mxu0 %v16207_v50 }
 0x850   :  { %10493 = vst [vmem:[#allocation3 + $0x50] sm:$0x7] %v10492_v40  ;;  %10853 = vmatmul.mubr.bf16.gmra.mxu0 %v16209_v31  ;;  %14917 = vmatpush3.bf16.msra.mxu1 %v16225_v21 }
 0x851   :  { %14918 = vmatprep.subr.bf16.mxu1 %v16227_v45 }
 0x853   :  { %v10530_v9 = vld [vmem:[#allocation2 + $0x28] sm:$0xff] }
 0x854   :  { %v10498_v35 = vld [vmem:[#allocation2 + $0x28] sm:$0x1f]  ;;  %v14323_v54 = vpack.c.bf16 %v10530_v9, %v10530_v9  ;;  %10929 = vst [vmem:[#allocation2 + $0x2d] sm:$0x3] %v17761_v59  ;;  %14919 = vmatpush3.bf16.msra.mxu1 %v16229_v61  ;;  %v16247_v61 = vld [vmem:[%s18357_s17 + $0x138] sm:$0xff]  }
 0x855   :  { %v14319_v48 = vpack.c.bf16 %v10498_v35, %v10498_v35  ;;  %14920 = vmatprep.subr.bf16.mxu1 %v16231_v7 }
 0x856   :  { %10556 = vst [vmem:[#allocation3 + $0x44] sm:$0xf] %v14323_v54 }
 0x857   :  { %v10525_v42 = vsel %vm17957_vm3, %v14319_v48, %v10524_v26 }
 0x858   :  { %10526 = vst [vmem:[#allocation3 + $0x54] sm:$0x7] %v10525_v42  ;;  %14921 = vmatpush3.bf16.msra.mxu1 %v16233_v15 }
 0x859   :  { %14922 = vmatprep.subr.bf16.mxu1 %v16235_v36 }
 0x85c   :  { %14923 = vmatpush3.bf16.msra.mxu1 %v16237_v32 }
 0x85d   :  { %v16210_v19 = vld [vmem:[#allocation3 + $0x30] ss:$20 sps:$4 sm:$0xff]   ;;  %14924 = vmatprep.subr.bf16.mxu1 %v16239_v4 }
 0x85e   :  { %15454 = vmatmul.mubr.bf16.gmra.mxu1 %v16210_v19 }
 0x85f   :  { %v10568_v51 = vld [vmem:[#allocation3 + $0x50] sm:$0x77]  ;;  %15457 = vmatprep.mubr.msk.bf16.mxu1 %vm16452_vm0, %v17761_v59 }
 0x860   :  { %v13503_v58 = vcombine.high %v10568_v51, %v10568_v51  ;;  %v13502_v10 = vcombine.low %v10568_v51, %v10568_v51  ;;  %v16217_v59 = vld [vmem:[%s18357_s17 + $0x30] sm:$0xff]   ;;  %14925 = vmatpush3.bf16.msra.mxu1 %v16241_v38 }
 0x861   :  { %14883 = vmatpush3.bf16.msra.mxu0 %v16217_v59  ;;  %14926 = vmatprep.subr.bf16.mxu1 %v16245_v47 }
 0x862   :  { %10860 = vmatprep.mubr.bf16.mxu0 %v13503_v58  ;;  %14884 = vmatprep.subr.bf16.mxu0 %v16218_v44 }
 0x863   :  { %10861 = vmatmul.mubr.bf16.gmra.mxu0 %v13502_v10 }
 0x864   :  { %14927 = vmatpush3.bf16.msra.mxu1 %v16246_v24 }
 0x865   :  { %14885 = vmatpush3.bf16.msra.mxu0 %v16220_v39  ;;  %14928 = vmatprep.subr.bf16.mxu1 %v16248_v33  ;;  %v16250_v33 = vld [vmem:[%s18357_s17 + $0x130] sm:$0xff]  }
 0x866   :  { %15458 = vmatmul.mubr.bf16.gmra.mxu1 %v16213_v41  ;;  %14886 = vmatprep.subr.bf16.mxu0 %v16222_v57 }
 0x868   :  { %14929 = vmatpush3.bf16.msra.mxu1 %v16249_v60 }
 0x869   :  { %14887 = vmatpush3.bf16.msra.mxu0 %v16224_v11 }
 0x86a   :  { %14888 = vmatprep.subr.bf16.mxu0 %v16226_v16 }
 0x86d   :  { %14889 = vmatpush3.bf16.msra.mxu0 %v16228_v12 }
 0x86e   :  { %14890 = vmatprep.subr.bf16.mxu0 %v16230_v25 }
 0x871   :  { %14891 = vmatpush3.bf16.msra.mxu0 %v16232_v8 }
 0x872   :  { %14892 = vmatprep.subr.bf16.mxu0 %v16234_v2 }
 0x875   :  { %14893 = vmatpush3.bf16.msra.mxu0 %v16236_v55 }
 0x876   :  { %14894 = vmatprep.subr.bf16.mxu0 %v16238_v37 }
 0x879   :  { %14895 = vmatpush3.bf16.msra.mxu0 %v16240_v17 }
 0x87a   :  { %15461 = vmatprep.subr.bf16.mxu0 %v18079_v5 }
 0x8f9   :  { %v14851_v56 = vpop.f32.mrf.mxu0 }
 0x8fb   :  { %v14852_v3 = vpop.f32.mrf.mxu0 }
 0x8fc   :  { %v14853_v20 = vadd.f32 %v14852_v3, %v14851_v56 }
 0x8fd   :  { %v14854_v14 = vpop.f32.mrf.mxu0 }
 0x8fe   :  { %v10847_v46 = vadd.f32 %v14853_v20, %v13495_v13 }
 0x8ff   :  { %v14855_v53 = vpop.f32.mrf.mxu0 }
 0x900   :  { %v14856_v62 = vadd.f32 %v14855_v53, %v14854_v14 }
 0x902   :  { %v10850_v29 = vadd.f32 %v14856_v62, %v13495_v13 }
 0x90b   :  { %v10902_v27 = vpop.f32.mrf.mxu1 }
 0x90c   :  { %v10903_v34 = vadd.f32 %v10902_v27, %v10847_v46 }
 0x90d   :  { %v15451_v49 = vpop.f32.mrf.mxu1 }
 0x90e   :  { %10924 = vst [vmem:[#allocation2 + $0x8] sm:$0xff] %v10903_v34  ;;  %v14335_v1 = vpack.c.bf16 %v10903_v34, %v10903_v34  ;;  %v16254_v34 = vld [vmem:[%s18357_s17 + $0x128] sm:$0xff]  }
 0x90f   :  { %v10905_v6 = vpop.f32.mrf.mxu1 }
 0x910   :  { %v10906_v52 = vadd.f32 %v10905_v6, %v10850_v29  ;;  %v14857_v30 = vpop.f32.mrf.mxu0  ;;  %11022 = vst [vmem:[#allocation3 + $0x8] sm:$0xf] %v14335_v1 }
 0x911   :  { %v15452_v50 = vpop.f32.mrf.mxu1 }
 0x912   :  { %10925 = vst [vmem:[#allocation2 + $0x10] sm:$0xff] %v10906_v52  ;;  %v14858_v31 = vpop.f32.mrf.mxu0  ;;  %v14336_v40 = vpack.c.bf16 %v10906_v52, %v10906_v52  ;;  %v10960_v50 = vld [vmem:[#allocation3 + $0x50] sm:$0x7] }
 0x913   :  { %v14859_v42 = vadd.f32 %v14858_v31, %v14857_v30  ;;  %v16258_v30 = vld [vmem:[%s18357_s17 + $0x120] sm:$0xff]   ;;  %v10993_v31 = vld [vmem:[#allocation3 + $0x54] sm:$0x7] }
 0x914   :  { %v14860_v9 = vpop.f32.mrf.mxu0  ;;  %11023 = vst [vmem:[#allocation3 + $0x1c] sm:$0xf] %v14336_v40 }
 0x915   :  { %v10930_v35 = vld [vmem:[#allocation2 + $0x6] sm:$0xff]  ;;  %v10855_v59 = vadd.f32 %v14859_v42, %v13495_v13 }
 0x916   :  { %v10963_v54 = vld [vmem:[#allocation2 + $0x7] sm:$0xff]  ;;  %v14325_v48 = vpack.c.bf16 %v10930_v35, %v10930_v35  ;;  %v14861_v19 = vpop.f32.mrf.mxu0 }
 0x917   :  { %v14330_v26 = vpack.c.bf16 %v10963_v54, %v10963_v54  ;;  %v14862_v44 = vadd.f32 %v14861_v19, %v14860_v9 }
 0x918   :  { %10956 = vst [vmem:[#allocation3] sm:$0xf] %v14325_v48 }
 0x919   :  { %10989 = vst [vmem:[#allocation3 + $0x4] sm:$0xf] %v14330_v26  ;;  %v10931_v51 = vld [vmem:[#allocation2 + $0xe] sm:$0xff]  ;;  %v10858_v18 = vadd.f32 %v14862_v44, %v13495_v13  ;;  %v11026_v44 = vld [vmem:[#allocation3 + $0x58] sm:$0x7] }
 0x91a   :  { %v10964_v58 = vld [vmem:[#allocation2 + $0xf] sm:$0xff]  ;;  %v14326_v41 = vpack.c.bf16 %v10931_v51, %v10931_v51 }
 0x91b   :  { %v11029_v10 = vld [vmem:[#allocation2 + $0x9] sm:$0xff]  ;;  %v14331_v22 = vpack.c.bf16 %v10964_v58, %v10964_v58 }
 0x91c   :  { %v14340_v63 = vpack.c.bf16 %v11029_v10, %v11029_v10  ;;  %v11062_v23 = vld [vmem:[#allocation2 + $0xa] sm:$0xff]  ;;  %10957 = vst [vmem:[#allocation3 + $0x14] sm:$0xf] %v14326_v41 }
 0x91d   :  { %v14345_v28 = vpack.c.bf16 %v11062_v23, %v11062_v23  ;;  %10990 = vst [vmem:[#allocation3 + $0x18] sm:$0xf] %v14331_v22  ;;  %v16251_v54 = vld [vmem:[#allocation3 + $0x8] ss:$20 sps:$4 sm:$0xff]  }
 0x91e   :  { %v10910_v39 = vpop.f32.mrf.mxu1  ;;  %11055 = vst [vmem:[#allocation3 + $0xc] sm:$0xf] %v14340_v63  ;;  %v11059_v23 = vld [vmem:[#allocation3 + $0x5c] sm:$0x7] }
 0x91f   :  { %v10911_v43 = vadd.f32 %v10910_v39, %v10855_v59  ;;  %11088 = vst [vmem:[#allocation3 + $0x10] sm:$0xf] %v14345_v28  ;;  %v16266_v28 = vld [vmem:[%s18357_s17 + $0x118] sm:$0xff]  }
 0x920   :  { %v15455_v57 = vpop.f32.mrf.mxu1 }
 0x921   :  { %10926 = vst [vmem:[#allocation2 + $0x18] sm:$0xff] %v10911_v43  ;;  %v14337_v16 = vpack.c.bf16 %v10911_v43, %v10911_v43 }
 0x922   :  { %v10913_v12 = vpop.f32.mrf.mxu1 }
 0x923   :  { %v14863_v11 = vpop.f32.mrf.mxu0  ;;  %v10914_v21 = vadd.f32 %v10913_v12, %v10858_v18  ;;  %11024 = vst [vmem:[#allocation3 + $0x30] sm:$0xf] %v14337_v16  ;;  %v16242_v7 = vld [vmem:[#allocation3] ss:$20 sps:$4 sm:$0xff]  }
 0x924   :  { %v15456_v45 = vpop.f32.mrf.mxu1  ;;  %v16244_v55 = vld [vmem:[#allocation3 + $0x4] ss:$20 sps:$4 sm:$0xff]  }
 0x925   :  { %v14864_v25 = vpop.f32.mrf.mxu0  ;;  %10927 = vst [vmem:[#allocation2 + $0x20] sm:$0xff] %v10914_v21  ;;  %v14338_v15 = vpack.c.bf16 %v10914_v21, %v10914_v21  ;;  %11532 = vmatprep.mubr.bf16.mxu0 %v16244_v55  ;;  %v11092_v21 = vld [vmem:[#allocation3 + $0x60] sm:$0x7]  ;;  %v16267_v45 = vld [vmem:[%s18357_s17 + $0x110] sm:$0xff]  }
 0x926   :  { %v14865_v8 = vadd.f32 %v14864_v25, %v14863_v11  ;;  %v10918_v36 = vpop.f32.mrf.mxu1  ;;  %11533 = vmatmul.mubr.bf16.vlgmr.msra.gmra.mxu0 %v16242_v7 }
 0x927   :  { %v14866_v2 = vpop.f32.mrf.mxu0  ;;  %11025 = vst [vmem:[#allocation3 + $0x44] sm:$0xf] %v14338_v15  ;;  %15462 = vmatpush3.bf16.msra.mxu0 %v16247_v61 }
 0x928   :  { %v10863_v37 = vadd.f32 %v14865_v8, %v13495_v13  ;;  %v15459_v4 = vpop.f32.mrf.mxu1  ;;  %v11030_v38 = vld [vmem:[#allocation2 + $0x11] sm:$0xff]  ;;  %15463 = vmatprep.subr.bf16.mxu0 %v18079_v5 }
 0x929   :  { %v14867_v17 = vpop.f32.mrf.mxu0  ;;  %v10932_v47 = vld [vmem:[#allocation2 + $0x16] sm:$0xff]  ;;  %v14341_v60 = vpack.c.bf16 %v11030_v38, %v11030_v38 }
 0x92a   :  { %v10919_v32 = vadd.f32 %v10918_v36, %v10863_v37  ;;  %v10965_v24 = vld [vmem:[#allocation2 + $0x17] sm:$0xff]  ;;  %v14327_v56 = vpack.c.bf16 %v10932_v47, %v10932_v47  ;;  %v10921_v20 = vpop.f32.mrf.mxu1  ;;  %v16269_v36 = vld [vmem:[%s18357_s17 + $0x100] sm:$0xff]  }
 0x92b   :  { %v14332_v3 = vpack.c.bf16 %v10965_v24, %v10965_v24  ;;  %v11063_v14 = vld [vmem:[#allocation2 + $0x12] sm:$0xff]  ;;  %11056 = vst [vmem:[#allocation3 + $0x20] sm:$0xf] %v14341_v60  ;;  %15464 = vmatpush3.bf16.msra.mxu0 %v16250_v33  ;;  %v16280_v20 = vld [vmem:[%s18359_s19 + $0x68] sm:$0xff]  }
 0x92c   :  { %10928 = vst [vmem:[#allocation2 + $0x28] sm:$0x1f] %v10919_v32  ;;  %v14346_v53 = vpack.c.bf16 %v11063_v14, %v11063_v14  ;;  %10958 = vst [vmem:[#allocation3 + $0x28] sm:$0xf] %v14327_v56  ;;  %v15460_v13 = vpop.f32.mrf.mxu1  ;;  %v10933_v62 = vld [vmem:[#allocation2 + $0x1e] sm:$0xff]  ;;  %15465 = vmatprep.subr.bf16.mxu0 %v18079_v5  ;;  %v16276_v60 = vld [vmem:[%s18359_s19 + $0x70] sm:$0xff]  }
 0x92d   :  { %10991 = vst [vmem:[#allocation3 + $0x2c] sm:$0xf] %v14332_v3  ;;  %v10966_v46 = vld [vmem:[#allocation2 + $0x1f] sm:$0xff]  ;;  %v14328_v49 = vpack.c.bf16 %v10933_v62, %v10933_v62  ;;  %v16278_v3 = vld [vmem:[%s18359_s19 + $0x30] sm:$0xff]   ;;  %v16283_v13 = vld [vmem:[%s18359_s19 + $0xe8] sm:$0xff]  }
 0x92e   :  { %v11031_v27 = vld [vmem:[#allocation2 + $0x19] sm:$0xff]  ;;  %11089 = vst [vmem:[#allocation3 + $0x24] sm:$0xf] %v14346_v53  ;;  %v14333_v29 = vpack.c.bf16 %v10966_v46, %v10966_v46  ;;  %v16259_v8 = vld [vmem:[#allocation3 + $0x30] ss:$20 sps:$4 sm:$0xff]   ;;  %v16282_v62 = vld [vmem:[%s18359_s19 + $0x28] sm:$0xff]  }
 0x92f   :  { %v14342_v1 = vpack.c.bf16 %v11031_v27, %v11031_v27  ;;  %v11064_v6 = vld [vmem:[#allocation2 + $0x1a] sm:$0xff]  ;;  %10959 = vst [vmem:[#allocation3 + $0x3c] sm:$0xf] %v14328_v49  ;;  %15466 = vmatpush3.bf16.msra.mxu0 %v16254_v34  ;;  %v16279_v14 = vld [vmem:[%s18359_s19 + $0xf0] sm:$0xff]   ;;  %v16285_v27 = vld [vmem:[%s18359_s19 + $0xa8] sm:$0xff]  }
 0x930   :  { %v14347_v52 = vpack.c.bf16 %v11064_v6, %v11064_v6  ;;  %10992 = vst [vmem:[#allocation3 + $0x40] sm:$0xf] %v14333_v29  ;;  %15467 = vmatprep.subr.bf16.mxu0 %v18079_v5  ;;  %v16273_v47 = vld [vmem:[%s18359_s19 + $0x78] sm:$0xff]   ;;  %v16281_v53 = vld [vmem:[%s18359_s19 + $0xb0] sm:$0xff]   ;;  %v16284_v46 = vld [vmem:[%s18359_s19 + $0x60] sm:$0xff]  }
 0x931   :  { %11057 = vst [vmem:[#allocation3 + $0x34] sm:$0xf] %v14342_v1  ;;  %v16274_v24 = vld [vmem:[%s18359_s19 + $0x38] sm:$0xff]   ;;  %14959 = vmatprep.subr.bf16.mxu1 %v16273_v47  ;;  %v16287_v34 = vld [vmem:[%s18359_s19 + $0xe0] sm:$0xff]  }
 0x932   :  { %11090 = vst [vmem:[#allocation3 + $0x38] sm:$0xf] %v14347_v52  ;;  %v16253_v48 = vld [vmem:[#allocation3 + $0xc] ss:$20 sps:$4 sm:$0xff]   ;;  %v16275_v33 = vld [vmem:[%s18359_s19 + $0xf8] sm:$0xff]  }
 0x933   :  { %v11032_v40 = vld [vmem:[#allocation2 + $0x21] sm:$0xff]  ;;  %v11033_v58 = vld [vmem:[#allocation2 + $0x29] sm:$0x1f]  ;;  %11588 = vmatprep.mubr.bf16.mxu1 %v16253_v48  ;;  %15468 = vmatpush3.bf16.msra.mxu0 %v16258_v30  ;;  %v16277_v56 = vld [vmem:[%s18359_s19 + $0xb8] sm:$0xff]  }
 0x934   :  { %v10934_v9 = vld [vmem:[#allocation2 + $0x26] sm:$0x1f]  ;;  %v14343_v26 = vpack.c.bf16 %v11032_v40, %v11032_v40  ;;  %v14344_v63 = vpack.c.bf16 %v11033_v58, %v11033_v58  ;;  %11589 = vmatmul.mubr.bf16.vlgmr.msra.gmra.mxu1 %v16251_v54  ;;  %15469 = vmatprep.subr.bf16.mxu0 %v18079_v5  ;;  %v16288_v29 = vld [vmem:[%s18359_s19 + $0x58] sm:$0xff]   ;;  %v16292_v30 = vld [vmem:[%s18359_s19 + $0x50] sm:$0xff]  }
 0x935   :  { %v10967_v35 = vld [vmem:[#allocation2 + $0x27] sm:$0x1f]  ;;  %v14329_v42 = vpack.c.bf16 %v10934_v9, %v10934_v9  ;;  %14960 = vmatpush3.bf16.msra.mxu1 %v16274_v24  ;;  %v16291_v6 = vld [vmem:[%s18359_s19 + $0xd8] sm:$0xff]   ;;  %v16294_v40 = vld [vmem:[%s18359_s19 + $0x10] sm:$0xff]  }
 0x936   :  { %v14334_v19 = vpack.c.bf16 %v10967_v35, %v10967_v35  ;;  %v11000_v51 = vld [vmem:[#allocation2 + $0x28] sm:$0x1f]  ;;  %11058 = vst [vmem:[#allocation3 + $0x48] sm:$0xf] %v14343_v26  ;;  %v11060_v16 = vsel %vm17957_vm3, %v14344_v63, %v11059_v23  ;;  %v16270_v32 = vld [vmem:[#allocation3 + $0x10] ss:$20 sps:$4 sm:$0xff]   ;;  %14961 = vmatprep.subr.bf16.mxu1 %v16276_v60 }
 0x937   :  { %v10961_v10 = vsel %vm17957_vm3, %v14329_v42, %v10960_v50  ;;  %v14339_v22 = vpack.c.bf16 %v11000_v51, %v11000_v51  ;;  %v11065_v59 = vld [vmem:[#allocation2 + $0x22] sm:$0xff]  ;;  %v11066_v43 = vld [vmem:[#allocation2 + $0x2a] sm:$0x1f]  ;;  %11061 = vst [vmem:[#allocation3 + $0x5c] sm:$0x7] %v11060_v16  ;;  %15470 = vmatpush3.bf16.msra.mxu0 %v16266_v28  ;;  %v16290_v52 = vld [vmem:[%s18359_s19 + $0x18] sm:$0xff]  }
 0x938   :  { %v10994_v41 = vsel %vm17957_vm3, %v14334_v19, %v10993_v31  ;;  %10962 = vst [vmem:[#allocation3 + $0x50] sm:$0x7] %v10961_v10  ;;  %v14348_v39 = vpack.c.bf16 %v11065_v59, %v11065_v59  ;;  %v16255_v57 = vld [vmem:[#allocation3 + $0x28] ss:$20 sps:$4 sm:$0xff]   ;;  %v16257_v18 = vld [vmem:[#allocation3 + $0x2c] ss:$20 sps:$4 sm:$0xff]   ;;  %v14349_v12 = vpack.c.bf16 %v11066_v43, %v11066_v43  ;;  %15471 = vmatprep.subr.bf16.mxu0 %v18079_v5 }
 0x939   :  { %10995 = vst [vmem:[#allocation3 + $0x54] sm:$0x7] %v10994_v41  ;;  %v11027_v11 = vsel %vm17957_vm3, %v14339_v22, %v11026_v44  ;;  %11540 = vmatprep.mubr.bf16.mxu0 %v16257_v18  ;;  %14962 = vmatpush3.bf16.msra.mxu1 %v16278_v3  ;;  %v16286_v49 = vld [vmem:[%s18359_s19 + $0x20] sm:$0xff]   ;;  %v16293_v50 = vld [vmem:[%s18359_s19 + $0x98] sm:$0xff]   ;;  %v16295_v31 = vld [vmem:[%s18359_s19 + $0xd0] sm:$0xff]  }
 0x93a   :  { %11028 = vst [vmem:[#allocation3 + $0x58] sm:$0x7] %v11027_v11  ;;  %11091 = vst [vmem:[#allocation3 + $0x4c] sm:$0xf] %v14348_v39  ;;  %v11093_v25 = vsel %vm17957_vm3, %v14349_v12, %v11092_v21  ;;  %11541 = vmatmul.mubr.bf16.gmra.mxu0 %v16255_v57  ;;  %14963 = vmatprep.subr.bf16.mxu1 %v16280_v20  ;;  %v16289_v1 = vld [vmem:[%s18359_s19 + $0xa0] sm:$0xff]   ;;  %v16296_v9 = vld [vmem:[%s18359_s19 + $0x48] sm:$0xff]  }
 0x93b   :  { %11094 = vst [vmem:[#allocation3 + $0x60] sm:$0x7] %v11093_v25  ;;  %15472 = vmatpush3.bf16.msra.mxu0 %v16267_v45  ;;  %v16297_v35 = vld [vmem:[%s18359_s19 + $0x90] sm:$0xff]   ;;  %v16299_v54 = vld [vmem:[%s18359_s19 + $0xc8] sm:$0xff]   ;;  %v16300_v26 = vld [vmem:[%s18359_s19 + $0x40] sm:$0xff]  }
 0x93c   :  { %15473 = vmatprep.subr.bf16.mxu0 %v18079_v5  ;;  %v16298_v48 = vld [vmem:[%s18359_s19 + $0x8] sm:$0xff]   ;;  %v16303_v19 = vld [vmem:[%s18359_s19 + $0xc0] sm:$0xff]  }
 0x93d   :  { %v16261_v61 = vld [vmem:[#allocation3 + $0x34] ss:$20 sps:$4 sm:$0xff]   ;;  %14964 = vmatpush3.bf16.msra.mxu1 %v16282_v62  ;;  %v16302_v51 = vld [vmem:[%s18359_s19] sm:$0xff]  }
 0x93e   :  { %11596 = vmatprep.mubr.bf16.mxu1 %v16261_v61  ;;  %14965 = vmatprep.subr.bf16.mxu1 %v16284_v46  ;;  %v16301_v42 = vld [vmem:[%s18359_s19 + $0x88] sm:$0xff]   ;;  %v16306_v58 = vld [vmem:[%s18359_s19 + $0x80] sm:$0xff]  }
 0x93f   :  { %11597 = vmatmul.mubr.bf16.gmra.mxu1 %v16259_v8  ;;  %15474 = vmatpush3.bf16.msra.mxu0 %v16268_v0 }
 0x940   :  { %v11107_v2 = vld [vmem:[#allocation3 + $0x50] sm:$0x77]  ;;  %15475 = vmatprep.subr.bf16.mxu0 %v18079_v5 }
 0x941   :  { %v13565_v7 = vcombine.high %v11107_v2, %v11107_v2  ;;  %v11108_v55 = vld [vmem:[#allocation3 + $0x58] sm:$0x77]  ;;  %v13564_v15 = vcombine.low %v11107_v2, %v11107_v2  ;;  %14966 = vmatpush3.bf16.msra.mxu1 %v16286_v49 }
 0x942   :  { %v13567_v37 = vcombine.high %v11108_v55, %v11108_v55  ;;  %v13566_v17 = vcombine.low %v11108_v55, %v11108_v55  ;;  %v16271_v4 = vld [vmem:[#allocation3 + $0x38] ss:$20 sps:$4 sm:$0xff]   ;;  %v16272_v38 = vld [vmem:[#allocation3 + $0x60] ss:$0 sps:$4 sm:$0x77]   ;;  %14967 = vmatprep.subr.bf16.mxu1 %v16288_v29 }
 0x943   :  { %11548 = vmatprep.mubr.bf16.mxu0 %v13565_v7  ;;  %15476 = vmatpush3.bf16.msra.mxu0 %v16269_v36 }
 0x944   :  { %11604 = vmatprep.mubr.bf16.mxu1 %v13567_v37  ;;  %11549 = vmatmul.mubr.bf16.gmra.mxu0 %v13564_v15 }
 0x945   :  { %15477 = vmatprep.mubr.msk.bf16.mxu0 %vm16452_vm0, %v18079_v5  ;;  %14981 = vmatprep.subr.bf16.mxu0 %v16275_v33 }
 0x946   :  { %14968 = vmatpush3.bf16.msra.mxu1 %v16290_v52 }
 0x947   :  { %11605 = vmatmul.mubr.bf16.gmra.mxu1 %v13566_v17  ;;  %14969 = vmatprep.subr.bf16.mxu1 %v16292_v30 }
 0x94a   :  { %14970 = vmatpush3.bf16.msra.mxu1 %v16294_v40 }
 0x94b   :  { %14971 = vmatprep.subr.bf16.mxu1 %v16296_v9 }
 0x94c   :  { %15478 = vmatmul.mubr.bf16.vlgmr.msra.gmra.mxu0 %v16270_v32 }
 0x94d   :  { %15481 = vmatprep.mubr.msk.bf16.mxu0 %vm16452_vm0, %v18079_v5  ;;  %14982 = vmatpush3.bf16.msra.mxu0 %v16277_v56 }
 0x94e   :  { %14983 = vmatprep.subr.bf16.mxu0 %v16279_v14  ;;  %14972 = vmatpush3.bf16.msra.mxu1 %v16298_v48 }
 0x94f   :  { %14973 = vmatprep.subr.bf16.mxu1 %v16300_v26 }
 0x951   :  { %14984 = vmatpush3.bf16.msra.mxu0 %v16281_v53 }
 0x952   :  { %14985 = vmatprep.subr.bf16.mxu0 %v16283_v13  ;;  %14974 = vmatpush3.bf16.msra.mxu1 %v16302_v51 }
 0x953   :  { %15489 = vmatprep.subr.bf16.mxu1 %v18079_v5 }
 0x954   :  { %15482 = vmatmul.mubr.bf16.gmra.mxu0 %v16271_v4 }
 0x955   :  { %15485 = vmatprep.mubr.msk.bf16.mxu0 %vm16452_vm0, %v18079_v5  ;;  %14986 = vmatpush3.bf16.msra.mxu0 %v16285_v27 }
 0x956   :  { %14987 = vmatprep.subr.bf16.mxu0 %v16287_v34 }
 0x959   :  { %14988 = vmatpush3.bf16.msra.mxu0 %v16289_v1 }
 0x95a   :  { %14989 = vmatprep.subr.bf16.mxu0 %v16291_v6 }
 0x95c   :  { %15486 = vmatmul.mubr.bf16.gmra.mxu0 %v16272_v38 }
 0x95d   :  { %14990 = vmatpush3.bf16.msra.mxu0 %v16293_v50 }
 0x95e   :  { %14991 = vmatprep.subr.bf16.mxu0 %v16295_v31 }
 0x961   :  { %14992 = vmatpush3.bf16.msra.mxu0 %v16297_v35 }
 0x962   :  { %14993 = vmatprep.subr.bf16.mxu0 %v16299_v54 }
 0x965   :  { %14994 = vmatpush3.bf16.msra.mxu0 %v16301_v42 }
 0x966   :  { %14995 = vmatprep.subr.bf16.mxu0 %v16303_v19 }
 0x969   :  { %14996 = vmatpush3.bf16.msra.mxu0 %v16306_v58 }
 0x96a   :  { %15509 = vmatprep.subr.bf16.mxu0 %v18079_v5 }
 0x9e6   :  { %v14896_v10 = vpop.f32.mrf.mxu0 }
 0x9e8   :  { %v14897_v41 = vpop.f32.mrf.mxu0 }
 0x9e9   :  { %v14898_v2 = vadd.f32 %v14897_v41, %v14896_v10  ;;  %v13609_v10 = vld [vmem:[%s18358_s18] ss:$0 sm:$0xff] }
 0x9ea   :  { %v14899_v22 = vpop.f32.mrf.mxu0 }
 0x9ec   :  { %v14900_v23 = vpop.f32.mrf.mxu0 }
 0x9ed   :  { %v14901_v17 = vadd.f32 %v14900_v23, %v14899_v22 }
 0x9f4   :  { %v14930_v63 = vpop.f32.mrf.mxu1 }
 0x9f6   :  { %v14931_v59 = vpop.f32.mrf.mxu1 }
 0x9f7   :  { %v14932_v45 = vadd.f32 %v14931_v59, %v14930_v63  ;;  %v11694_v59 = vld [vmem:[#allocation3] sm:$0x1] }
 0x9f8   :  { %v14933_v28 = vpop.f32.mrf.mxu1 }
 0x9f9   :  { %v11591_v37 = vadd.f32 %v14932_v45, %v14898_v2  ;;  %v11718_v45 = vld [vmem:[#allocation3 + $0xc] sm:$0x1] }
 0x9fa   :  { %v14902_v44 = vpop.f32.mrf.mxu0  ;;  %v14934_v43 = vpop.f32.mrf.mxu1 }
 0x9fb   :  { %v14935_v0 = vadd.f32 %v14934_v43, %v14933_v28 }
 0x9fc   :  { %v14903_v39 = vpop.f32.mrf.mxu0 }
 0x9fd   :  { %v11594_v33 = vadd.f32 %v14935_v0, %v14901_v17  ;;  %v14904_v56 = vadd.f32 %v14903_v39, %v14902_v44  ;;  %v16311_v17 = vld [vmem:[%s18359_s19 + $0x128] sm:$0xff]  }
 0x9fe   :  { %v14905_v57 = vpop.f32.mrf.mxu0 }
 0x9ff   :  { %v14936_v18 = vpop.f32.mrf.mxu1 }
 0xa00   :  { %v14906_v11 = vpop.f32.mrf.mxu0 }
 0xa01   :  { %v14937_v16 = vpop.f32.mrf.mxu1  ;;  %v14907_v62 = vadd.f32 %v14906_v11, %v14905_v57  ;;  %v11706_v57 = vld [vmem:[#allocation3 + $0x4] sm:$0x1]  ;;  %v11724_v11 = vld [vmem:[#allocation3 + $0x10] sm:$0x1] }
 0xa02   :  { %v14938_v47 = vadd.f32 %v14937_v16, %v14936_v18  ;;  %v11712_v18 = vld [vmem:[#allocation3 + $0x8] sm:$0x1] }
 0xa03   :  { %v14939_v21 = vpop.f32.mrf.mxu1 }
 0xa04   :  { %v14908_v12 = vpop.f32.mrf.mxu0  ;;  %v11599_v53 = vadd.f32 %v14938_v47, %v14904_v56  ;;  %v16315_v47 = vld [vmem:[%s18359_s19 + $0x108] sm:$0xff]   ;;  %v16319_v56 = vld [vmem:[%s18361_s21 + $0x30] sm:$0xff]  }
 0xa05   :  { %v14940_v8 = vpop.f32.mrf.mxu1 }
 0xa06   :  { %v14909_v25 = vpop.f32.mrf.mxu0  ;;  %v14941_v20 = vadd.f32 %v14940_v8, %v14939_v21 }
 0xa07   :  { %v14942_v7 = vpop.f32.mrf.mxu1  ;;  %v14910_v1 = vadd.f32 %v14909_v25, %v14908_v12 }
 0xa08   :  { %v14911_v61 = vpop.f32.mrf.mxu0  ;;  %v11602_v49 = vadd.f32 %v14941_v20, %v14907_v62  ;;  %v16322_v20 = vld [vmem:[%s18361_s21 + $0x18] sm:$0xff]   ;;  %v16325_v62 = vld [vmem:[%s18361_s21] sm:$0xff]  }
 0xa09   :  { %v14943_v15 = vpop.f32.mrf.mxu1 }
 0xa0a   :  { %v14912_v55 = vpop.f32.mrf.mxu0  ;;  %v14944_v34 = vadd.f32 %v14943_v15, %v14942_v7 }
 0xa0b   :  { %v14945_v32 = vpop.f32.mrf.mxu1  ;;  %v16307_v55 = vld [vmem:[%s18359_s19 + $0x138] sm:$0xff]  }
 0xa0c   :  { %v11646_v36 = vpop.f32.mrf.mxu0  ;;  %v11607_v30 = vadd.f32 %v14944_v34, %v14910_v1  ;;  %v16312_v32 = vld [vmem:[%s18359_s19 + $0x120] sm:$0xff]  }
 0xa0d   :  { %v11647_v4 = vadd.f32 %v11646_v36, %v11591_v37  ;;  %v14946_v24 = vpop.f32.mrf.mxu1  ;;  %v16310_v36 = vld [vmem:[%s18359_s19 + $0x130] sm:$0xff]  }
 0xa0e   :  { %v15479_v38 = vpop.f32.mrf.mxu0  ;;  %v16316_v24 = vld [vmem:[%s18359_s19 + $0x100] sm:$0xff]  }
 0xa0f   :  { %11668 = vst [vmem:[#allocation2 + $0x8] sm:$0xff] %v11647_v4  ;;  %v16313_v4 = vld [vmem:[%s18359_s19 + $0x118] sm:$0xff]   ;;  %v16314_v38 = vld [vmem:[%s18359_s19 + $0x110] sm:$0xff]  }
 0xa10   :  { %v11649_v60 = vpop.f32.mrf.mxu0 }
 0xa11   :  { %v11650_v3 = vadd.f32 %v11649_v60, %v11594_v33  ;;  %v16318_v60 = vld [vmem:[%s18361_s21 + $0x38] sm:$0xff]  }
 0xa12   :  { %v15480_v14 = vpop.f32.mrf.mxu0 }
 0xa13   :  { %11669 = vst [vmem:[#allocation2 + $0x10] sm:$0xff] %v11650_v3  ;;  %v16320_v3 = vld [vmem:[%s18361_s21 + $0x28] sm:$0xff]   ;;  %v16321_v14 = vld [vmem:[%s18361_s21 + $0x20] sm:$0xff]  }
 0xa14   :  { %v11654_v13 = vpop.f32.mrf.mxu0 }
 0xa15   :  { %v11655_v46 = vadd.f32 %v11654_v13, %v11599_v53  ;;  %v16323_v53 = vld [vmem:[%s18361_s21 + $0x10] sm:$0xff]   ;;  %v16324_v13 = vld [vmem:[%s18361_s21 + $0x8] sm:$0xff]  }
 0xa16   :  { %v15483_v27 = vpop.f32.mrf.mxu0 }
 0xa17   :  { %11670 = vst [vmem:[#allocation2 + $0x18] sm:$0xff] %v11655_v46 }
 0xa18   :  { %v11657_v29 = vpop.f32.mrf.mxu0 }
 0xa19   :  { %v11658_v6 = vadd.f32 %v11657_v29, %v11602_v49 }
 0xa1a   :  { %v15484_v52 = vpop.f32.mrf.mxu0 }
 0xa1b   :  { %11671 = vst [vmem:[#allocation2 + $0x20] sm:$0xff] %v11658_v6 }
 0xa1c   :  { %v11662_v50 = vpop.f32.mrf.mxu0 }
 0xa1d   :  { %v11663_v31 = vadd.f32 %v11662_v50, %v11607_v30  ;;  %v11810_v50 = vld [vmem:[%s18360_s20] sm:$0x1] }
 0xa1e   :  { %v15487_v40 = vpop.f32.mrf.mxu0 }
 0xa1f   :  { %11672 = vst [vmem:[#allocation2 + $0x28] sm:$0x1f] %v11663_v31 }
 0xa20   :  { %v11665_v9 = vpop.f32.mrf.mxu0 }
 0xa22   :  { %v15488_v35 = vpop.f32.mrf.mxu0  ;;  %v11673_v54 = vld [vmem:[#allocation2 + $0x8] ss:$8 sm:$0xf]  ;;  %v11677_v48 = vld [vmem:[#allocation2 + $0xc] ss:$8 sm:$0xf] }
 0xa26   :  { %v11674_v26 = vld [vmem:[#allocation2 + $0x8] ss:$8 sm:$0x10]  ;;  %v11678_v42 = vld [vmem:[#allocation2 + $0xc] ss:$8 sm:$0x10] }
 0xa27   :  { %v11675_v19 = vor.u32 %v11674_v26, %v11673_v54  ;;  %v11679_v51 = vor.u32 %v11678_v42, %v11677_v48 }
 0xa29   :  { %v11680_v58 = vadd.f32 %v11679_v51, %v11675_v19  ;;  %v12206_v19 = vld [vmem:[%s18362_s22] sm:$0x1] }
 0xa2b   :  { %v11681_v41 = vmul.f32 0.5, %v11680_v58 }
 0xa2d   :  { %v11689_v22 = vadd.f32 %v13609_v10, %v11681_v41 }
 0xa2f   :  { %v11690_v23 = vpack.c.bf16 %v11689_v22, %v11689_v22 }
 0xa31   :  { %v11695_v44 = vsel %vm18251_vm6, %v11690_v23, %v11694_v59  ;;  %v11701_v28 = vshrl.u32 %v11690_v23, 16  ;;  %v13612_v39 = vrot.slane %v11690_v23, 9  ;;  %v13614_v43 = vrot.slane %v11690_v23, 10 }
 0xa32   :  { %11696 = vst [vmem:[#allocation3] sm:$0x1] %v11695_v44 }
 0xa33   :  { %v11707_v16 = vsel %vm18251_vm6, %v11701_v28, %v11706_v57  ;;  %v11713_v12 = vsel %vm18251_vm6, %v13612_v39, %v11712_v18  ;;  %v13613_v21 = vrot.slane %v11701_v28, 9  ;;  %v11725_v25 = vsel %vm18251_vm6, %v13614_v43, %v11724_v11 }
 0xa34   :  { %11708 = vst [vmem:[#allocation3 + $0x4] sm:$0x1] %v11707_v16  ;;  %11714 = vst [vmem:[#allocation3 + $0x8] sm:$0x1] %v11713_v12 }
 0xa35   :  { %11726 = vst [vmem:[#allocation3 + $0x10] sm:$0x1] %v11725_v25  ;;  %v11719_v8 = vsel %vm18251_vm6, %v13613_v21, %v11718_v45 }
 0xa36   :  { %11720 = vst [vmem:[#allocation3 + $0xc] sm:$0x1] %v11719_v8 }
 0xa3b   :  { %v11727_v61 = vld [vmem:[#allocation3] sm:$0x11] }
 0xa3c   :  { %v13615_v2 = vcombine.low %v11727_v61, %v11727_v61  ;;  %v13616_v7 = vcombine.high %v11727_v61, %v11727_v61  ;;  %v16317_v33 = vld [vmem:[#allocation3 + $0x10] ss:$0 sps:$4 sm:$0x11]  }
 0xa3d   :  { %v11728_v0 = vld [vmem:[#allocation3 + $0x8] sm:$0x11] }
 0xa3e   :  { %12101 = vmatprep.mubr.bf16.mxu1 %v13616_v7  ;;  %v13617_v15 = vcombine.low %v11728_v0, %v11728_v0  ;;  %v13618_v37 = vcombine.high %v11728_v0, %v11728_v0 }
 0xa3f   :  { %12102 = vmatmul.mubr.bf16.vlgmr.msra.gmra.mxu1 %v13615_v2 }
 0xa40   :  { %15490 = vmatpush3.bf16.msra.mxu1 %v16307_v55  ;;  %12141 = vmatprep.mubr.bf16.mxu0 %v13618_v37 }
 0xa41   :  { %12142 = vmatmul.mubr.bf16.vlgmr.msra.gmra.mxu0 %v13617_v15  ;;  %15491 = vmatprep.subr.bf16.mxu1 %v18079_v5 }
 0xa42   :  { %15505 = vmatprep.mubr.msk.bf16.mxu1 %vm16452_vm0, %v18079_v5  ;;  %15525 = vmatprep.mubr.msk.bf16.mxu0 %vm16452_vm0, %v18079_v5 }
 0xa43   :  { %15510 = vmatpush3.bf16.msra.mxu0 %v16318_v60 }
 0xa44   :  { %15492 = vmatpush3.bf16.msra.mxu1 %v16310_v36  ;;  %15511 = vmatprep.subr.bf16.mxu0 %v18079_v5 }
 0xa45   :  { %15493 = vmatprep.subr.bf16.mxu1 %v18079_v5 }
 0xa47   :  { %15512 = vmatpush3.bf16.msra.mxu0 %v16319_v56 }
 0xa48   :  { %15494 = vmatpush3.bf16.msra.mxu1 %v16311_v17  ;;  %15513 = vmatprep.subr.bf16.mxu0 %v18079_v5 }
 0xa49   :  { %15495 = vmatprep.subr.bf16.mxu1 %v18079_v5 }
 0xa4b   :  { %15514 = vmatpush3.bf16.msra.mxu0 %v16320_v3 }
 0xa4c   :  { %15496 = vmatpush3.bf16.msra.mxu1 %v16312_v32  ;;  %15515 = vmatprep.subr.bf16.mxu0 %v18079_v5 }
 0xa4d   :  { %15497 = vmatprep.subr.bf16.mxu1 %v18079_v5 }
 0xa4f   :  { %15516 = vmatpush3.bf16.msra.mxu0 %v16321_v14 }
 0xa50   :  { %15498 = vmatpush3.bf16.msra.mxu1 %v16313_v4  ;;  %15517 = vmatprep.subr.bf16.mxu0 %v18079_v5 }
 0xa51   :  { %15499 = vmatprep.subr.bf16.mxu1 %v18079_v5 }
 0xa53   :  { %15518 = vmatpush3.bf16.msra.mxu0 %v16322_v20 }
 0xa54   :  { %15500 = vmatpush3.bf16.msra.mxu1 %v16314_v38  ;;  %15519 = vmatprep.subr.bf16.mxu0 %v18079_v5 }
 0xa55   :  { %15501 = vmatprep.subr.bf16.mxu1 %v18079_v5 }
 0xa57   :  { %15520 = vmatpush3.bf16.msra.mxu0 %v16323_v53 }
 0xa58   :  { %15502 = vmatpush3.bf16.msra.mxu1 %v16315_v47  ;;  %15521 = vmatprep.subr.bf16.mxu0 %v18079_v5 }
 0xa59   :  { %15503 = vmatprep.subr.bf16.mxu1 %v18079_v5 }
 0xa5b   :  { %15522 = vmatpush3.bf16.msra.mxu0 %v16324_v13 }
 0xa5c   :  { %15504 = vmatpush3.bf16.msra.mxu1 %v16316_v24  ;;  %15523 = vmatprep.subr.bf16.mxu0 %v18079_v5 }
 0xa5f   :  { %15506 = vmatmul.mubr.bf16.vlgmr.msra.gmra.mxu1 %v16317_v33  ;;  %15524 = vmatpush3.bf16.msra.mxu0 %v16325_v62 }
 0xaff   :  { %v14975_v46 = vpop.f32.mrf.mxu1 }
 0xb01   :  { %v14976_v27 = vpop.f32.mrf.mxu1  ;;  %v14997_v34 = vpop.f32.mrf.mxu0 }
 0xb02   :  { %v14977_v30 = vadd.f32 %v14976_v27, %v14975_v46 }
 0xb03   :  { %v14978_v49 = vpop.f32.mrf.mxu1  ;;  %v14998_v29 = vpop.f32.mrf.mxu0 }
 0xb04   :  { %v12104_v31 = vadd.f32 %v14977_v30, %v11810_v50  ;;  %v14999_v5 = vadd.f32 %v14998_v29, %v14997_v34 }
 0xb05   :  { %v14979_v1 = vpop.f32.mrf.mxu1  ;;  %v15000_v6 = vpop.f32.mrf.mxu0 }
 0xb06   :  { %v12144_v40 = vadd.f32 %v14999_v5, %v12104_v31 }
 0xb07   :  { %v15001_v52 = vpop.f32.mrf.mxu0 }
 0xb1f   :  { %v12183_v9 = vpop.f32.mrf.mxu1 }
 0xb20   :  { %v12184_v35 = vadd.f32 %v12183_v9, %v12144_v40 }
 0xb21   :  { %v15507_v54 = vpop.f32.mrf.mxu1 }
 0xb22   :  { %v12189_v48 = vpack.c.bf16 %v12184_v35, %v12184_v35 }
 0xb23   :  { %v12186_v26 = vpop.f32.mrf.mxu1 }
 0xb24   :  { %15526 = vmatmul.mubr.bf16.vlgmr.msra.gmra.mxu0 %v12189_v48 }
 0xb25   :  { %v15508_v42 = vpop.f32.mrf.mxu1 }
 0xbe4   :  { %v12289_v51 = vpop.f32.mrf.mxu0 }
 0xbe5   :  { %v12290_v58 = vadd.f32 %v12289_v51, %v12206_v19 }
 0xbe6   :  { %v15527_v10 = vpop.f32.mrf.mxu0 }
 0xbe7   :  { %12295 = vst [vmem:[%s18363_s23] sm:$0x1] %v12290_v58 }
 0xbe8   :  { %v12292_v41 = vpop.f32.mrf.mxu0 }
 0xbea   :  { %v15528_v22 = vpop.f32.mrf.mxu0 }
 0xbeb   :  { %12300 = vsyncpa [#allocation5], 1 }
 0xbec   :  { %12301 = vsyncpa [#allocation7], 1 }
 0xbed   :  { %12302 = vsyncpa [#allocation10], 1 }

</bundles_post_ra>
